<compile_context>
chip_gen: v7x
topology: tpu7x:2x2x1
jax: 0.10.0
libtpu: 0.0.40
codegen_flags: <defaults>
</compile_context>

<pallas_src>
import functools
import math

import jax
import jax.numpy as jnp
from jax import lax
from jax.experimental import pallas as pl
from jax.experimental.pallas import tpu as pltpu


NODE_TILE = 128   # node-dimension tile used by every kernel (lane/sublane friendly)


def _round_up(x, m):
    return ((x + m - 1) // m) * m


# ---------------------------------------------------------------------------
# Kernel 1: per-head K/Q/V projection fused with the relation transforms.
#   q[h]       = x @ Wq[h] + bq[h]
#   k_rel[h,r] = (x @ Wk[h] + bk[h]) @ A[h,r]      (p_rel / sqrt(D) folded in A)
#   v_rel[h,r] = (x @ Wv[h] + bv[h]) @ M[h,r]
# Outputs are written in bf16 (MXU operands for the attention kernel).
# ---------------------------------------------------------------------------
def _proj_kernel(x_ref, w_ref, b_ref, a_ref, mm_ref, q_ref, kr_ref, vr_ref,
                 *, heads, num_rel):
    x_t = x_ref[...]
    for h in range(heads):          # static loops: heads / num_rel known at trace time
        k_h = jnp.dot(x_t, w_ref[0, h], preferred_element_type=jnp.float32) + b_ref[0, h]
        q_h = jnp.dot(x_t, w_ref[1, h], preferred_element_type=jnp.float32) + b_ref[1, h]
        v_h = jnp.dot(x_t, w_ref[2, h], preferred_element_type=jnp.float32) + b_ref[2, h]
        q_ref[h] = q_h.astype(q_ref.dtype)
        for r in range(num_rel):
            kr_ref[h, r] = jnp.dot(k_h, a_ref[h, r],
                                   preferred_element_type=jnp.float32).astype(kr_ref.dtype)
            vr_ref[h, r] = jnp.dot(v_h, mm_ref[h, r],
                                   preferred_element_type=jnp.float32).astype(vr_ref.dtype)


def project_kqv(x_pad, w_kqv, b_kqv, a_scaled, m_rel):
    n_pad, c_in = x_pad.shape
    _, heads, _, d = w_kqv.shape
    num_rel = a_scaled.shape[1]
    tile = NODE_TILE
    kern = functools.partial(_proj_kernel, heads=heads, num_rel=num_rel)
    return pl.pallas_call(
        kern,
        out_shape=(
            jax.ShapeDtypeStruct((heads, n_pad, d), jnp.bfloat16),
            jax.ShapeDtypeStruct((heads, num_rel, n_pad, d), jnp.bfloat16),
            jax.ShapeDtypeStruct((heads, num_rel, n_pad, d), jnp.bfloat16),
        ),
        grid=(n_pad // tile,),
        in_specs=[
            pl.BlockSpec((tile, c_in), lambda i: (i, 0)),
            pl.BlockSpec((3, heads, c_in, d), lambda i: (0, 0, 0, 0)),   # resident weights
            pl.BlockSpec((3, heads, 1, d), lambda i: (0, 0, 0, 0)),
            pl.BlockSpec((heads, num_rel, d, d), lambda i: (0, 0, 0, 0)),
            pl.BlockSpec((heads, num_rel, d, d), lambda i: (0, 0, 0, 0)),
        ],
        out_specs=(
            pl.BlockSpec((heads, tile, d), lambda i: (0, i, 0)),
            pl.BlockSpec((heads, num_rel, tile, d), lambda i: (0, 0, i, 0)),
            pl.BlockSpec((heads, num_rel, tile, d), lambda i: (0, 0, i, 0)),
        ),
        compiler_params=pltpu.CompilerParams(dimension_semantics=("parallel",)),
    )(x_pad, w_kqv, b_kqv, a_scaled, m_rel)


# ---------------------------------------------------------------------------
# Kernel 2: flash-style heterogeneous attention.
# grid = (head, q_block, kv_block); online softmax over ALL incoming edges
# (both relations) of each destination node; isolated nodes produce 0.
# ---------------------------------------------------------------------------
def _attn_kernel(q_ref, kr_ref, vr_ref, mask_ref, o_ref, m_sc, l_sc, acc_sc,
                 *, num_rel):
    kv = pl.program_id(2)

    @pl.when(kv == 0)
    def _():
        m_sc[...] = jnp.full_like(m_sc, -1e30)
        l_sc[...] = jnp.zeros_like(l_sc)
        acc_sc[...] = jnp.zeros_like(acc_sc)

    q = q_ref[0]                                      # [TQ, D] bf16

    s_list, valid_list = [], []
    for r in range(num_rel):
        s = lax.dot_general(q, kr_ref[0, r], (((1,), (1,)), ((), ())),
                            preferred_element_type=jnp.float32)   # [TQ, TK] f32
        valid = mask_ref[r].astype(jnp.float32) > 0.0
        s_list.append(jnp.where(valid, s, -1e30))
        valid_list.append(valid)

    blk_max = s_list[0].max(axis=1, keepdims=True)
    for s in s_list[1:]:
        blk_max = jnp.maximum(blk_max, s.max(axis=1, keepdims=True))

    m_prev = m_sc[...]
    m_new = jnp.maximum(m_prev, blk_max)
    corr = jnp.exp(m_prev - m_new)
    l_new = corr * l_sc[...]
    acc_new = corr * acc_sc[...]
    for r in range(num_rel):
        # explicit zeroing of masked entries keeps isolated-node rows exactly 0
        e = jnp.where(valid_list[r], jnp.exp(s_list[r] - m_new), 0.0)
        l_new = l_new + e.sum(axis=1, keepdims=True)
        acc_new = acc_new + jnp.dot(e.astype(vr_ref.dtype), vr_ref[0, r],
                                    preferred_element_type=jnp.float32)
    m_sc[...] = m_new
    l_sc[...] = l_new
    acc_sc[...] = acc_new

    @pl.when(kv == pl.num_programs(2) - 1)
    def _():
        l = l_sc[...]
        l_safe = jnp.where(l == 0.0, 1.0, l)          # isolated / padded rows -> 0
        o_ref[0] = (acc_sc[...] * pl.reciprocal(l_safe, approx=True)).astype(o_ref.dtype)


def hgt_attention(q, k_rel, v_rel, adj):
    heads, n_pad, d = q.shape
    num_rel = adj.shape[0]
    tq = tk = NODE_TILE
    kern = functools.partial(_attn_kernel, num_rel=num_rel)
    return pl.pallas_call(
        kern,
        out_shape=jax.ShapeDtypeStruct((heads, n_pad, d), jnp.float32),
        grid=(heads, n_pad // tq, n_pad // tk),
        in_specs=[
            pl.BlockSpec((1, tq, d), lambda h, qi, ki: (h, qi, 0)),
            pl.BlockSpec((1, num_rel, tk, d), lambda h, qi, ki: (h, 0, ki, 0)),
            pl.BlockSpec((1, num_rel, tk, d), lambda h, qi, ki: (h, 0, ki, 0)),
            pl.BlockSpec((num_rel, tq, tk), lambda h, qi, ki: (0, qi, ki)),   # int8 mask
        ],
        out_specs=pl.BlockSpec((1, tq, d), lambda h, qi, ki: (h, qi, 0)),
        scratch_shapes=[
            pltpu.VMEM((tq, 1), jnp.float32),   # running max
            pltpu.VMEM((tq, 1), jnp.float32),   # running denom
            pltpu.VMEM((tq, d), jnp.float32),   # running numerator
        ],
        compiler_params=pltpu.CompilerParams(
            dimension_semantics=("parallel", "parallel", "arbitrary")),
        cost_estimate=pl.CostEstimate(
            flops=4 * heads * num_rel * n_pad * n_pad * d,
            transcendentals=heads * num_rel * n_pad * n_pad,
            bytes_accessed=num_rel * n_pad * n_pad
            + (1 + 4 * num_rel) * heads * n_pad * d * 2
            + heads * n_pad * d * 4,
        ),
    )(q, k_rel, v_rel, adj)


# ---------------------------------------------------------------------------
# Kernel 3: output transform + gated skip.
#   out = gelu(msg) @ (alpha * W_out) + alpha * b_out + (1 - alpha) * x
# alpha and (1-alpha) are folded into the (tiny) weights / skip input on the
# host so the kernel needs no scalar operand.
# ---------------------------------------------------------------------------
def _out_kernel(m_ref, w_ref, b_ref, x_ref, o_ref, *, heads):
    acc = x_ref[...] + b_ref[...]
    for h in range(heads):
        g_in = m_ref[h]
        g = 0.5 * g_in * (1.0 + lax.erf(g_in * 0.7071067811865476))   # exact gelu
        acc = acc + jnp.dot(g, w_ref[h], preferred_element_type=jnp.float32)
    o_ref[...] = acc.astype(o_ref.dtype)


def out_transform(msg, w_eff, b_eff, x_eff):
    heads, n_pad, d = msg.shape
    c_out = w_eff.shape[2]
    tile = NODE_TILE
    kern = functools.partial(_out_kernel, heads=heads)
    return pl.pallas_call(
        kern,
        out_shape=jax.ShapeDtypeStruct((n_pad, c_out), jnp.float32),
        grid=(n_pad // tile,),
        in_specs=[
            pl.BlockSpec((heads, tile, d), lambda i: (0, i, 0)),
            pl.BlockSpec((heads, d, c_out), lambda i: (0, 0, 0)),
            pl.BlockSpec((1, c_out), lambda i: (0, 0)),
            pl.BlockSpec((tile, c_out), lambda i: (i, 0)),
        ],
        out_specs=pl.BlockSpec((tile, c_out), lambda i: (i, 0)),
        compiler_params=pltpu.CompilerParams(dimension_semantics=("parallel",)),
    )(msg, w_eff, b_eff, x_eff)


# ---------------------------------------------------------------------------
# Parameters (deterministic synthetic init; shapes follow HGTConv)
# ---------------------------------------------------------------------------
def init_params(key, c_in, c_out, heads, num_rel=2):
    d = c_out // heads
    ks = jax.random.split(key, 10)
    s = 0.1
    return {
        "w_k": jax.random.normal(ks[0], (c_in, c_out), jnp.float32) * s,
        "w_q": jax.random.normal(ks[1], (c_in, c_out), jnp.float32) * s,
        "w_v": jax.random.normal(ks[2], (c_in, c_out), jnp.float32) * s,
        "b_k": jax.random.normal(ks[3], (c_out,), jnp.float32) * s,
        "b_q": jax.random.normal(ks[4], (c_out,), jnp.float32) * s,
        "b_v": jax.random.normal(ks[5], (c_out,), jnp.float32) * s,
        "a_rel": jax.random.normal(ks[6], (heads, num_rel, d, d), jnp.float32) * s,
        "m_rel": jax.random.normal(ks[7], (heads, num_rel, d, d), jnp.float32) * s,
        "p_rel": jnp.ones((num_rel, heads), jnp.float32),      # PyG inits to ones
        "w_out": jax.random.normal(ks[8], (c_out, c_out), jnp.float32) * s,
        "b_out": jax.random.normal(ks[9], (c_out,), jnp.float32) * s,
        "skip": jnp.ones((), jnp.float32),                      # PyG inits to ones
    }


# ---------------------------------------------------------------------------
# HGTLayer.forward
# ---------------------------------------------------------------------------
def hgt_layer_forward(params, x, edge_index, edge_type):
    n, c_in = x.shape
    c_out = params["w_out"].shape[1]
    heads = params["p_rel"].shape[1]
    num_rel = params["p_rel"].shape[0]
    d = c_out // heads

    n_pad = _round_up(n, NODE_TILE)
    x_pad = jnp.pad(x, ((0, n_pad - n), (0, 0)))

    # ---- per-relation adjacency masks, built on device, stored as int8 -----
    adj = jnp.zeros((num_rel, n_pad, n_pad), jnp.int32)
    if edge_type.shape[0] == 0:
        idx = jnp.arange(n)
        adj = adj.at[1, idx, idx].set(1)                # self loops, 'following'
    else:
        rel = jnp.where(edge_type == 1, 0, 1)           # 0='follower', 1='following'
        adj = adj.at[rel, edge_index[1], edge_index[0]].set(1)
    adj = adj.astype(jnp.int8)
    # TODO(synk): duplicate parallel edges collapse in the dense 0/1 mask (PyG's
    # per-edge softmax would count a repeated edge multiple times).
    # TODO(synk): for large sparse graphs, replace the dense mask with a
    # block-sparse formulation (scalar-prefetched non-empty kv blocks).

    # ---- per-head weight layout (tiny host-side reshapes, not on hot path) -
    def per_head(w):                                    # [C_in, C_out] -> [H, C_in, D]
        return w.reshape(c_in, heads, d).transpose(1, 0, 2)

    w_kqv = jnp.stack([per_head(params["w_k"]),
                       per_head(params["w_q"]),
                       per_head(params["w_v"])])        # [3, H, C_in, D]
    b_kqv = jnp.stack([params["b_k"], params["b_q"],
                       params["b_v"]]).reshape(3, heads, 1, d)

    # fold p_rel and 1/sqrt(D) into the relation K-transform (linear)
    scale = 1.0 / math.sqrt(d)
    a_scaled = params["a_rel"] * (params["p_rel"].T * scale)[:, :, None, None]

    # ---- 1) projection + relation transforms (Pallas, tiled over N) --------
    q, k_rel, v_rel = project_kqv(x_pad, w_kqv, b_kqv, a_scaled, params["m_rel"])

    # ---- 2) flash-style heterogeneous attention (Pallas) -------------------
    msg = hgt_attention(q, k_rel, v_rel, adj)           # [H, n_pad, D] f32

    # ---- 3) output transform + skip gate (Pallas, tiled over N) ------------
    if c_out == c_in:
        a = jax.nn.sigmoid(params["skip"]).astype(jnp.float32)
        w_eff = params["w_out"].reshape(heads, d, c_out) * a
        b_eff = (params["b_out"] * a).reshape(1, c_out)
        x_eff = (1.0 - a) * x_pad
    else:
        w_eff = params["w_out"].reshape(heads, d, c_out)
        b_eff = params["b_out"].reshape(1, c_out)
        x_eff = jnp.zeros((n_pad, c_out), jnp.float32)

    out = out_transform(msg, w_eff, b_eff, x_eff)       # [n_pad, C_out]
    return out[:n]


# ---------------------------------------------------------------------------
if __name__ == "__main__":
    key = jax.random.PRNGKey(0)
    k0, k1, k2, k3, k4 = jax.random.split(key, 5)

    N, C_IN, C_OUT, HEADS, E = 16, 32, 32, 4, 24

    x = jax.random.normal(k0, (N, C_IN), jnp.float32)
    src = jax.random.randint(k1, (E,), 0, N, dtype=jnp.int32)
    dst = jax.random.randint(k2, (E,), 0, N, dtype=jnp.int32)
    edge_index = jnp.stack([src, dst])                               # [2, E]
    edge_type = jax.random.randint(k3, (E,), 0, 2, dtype=jnp.int32)  # [E]

    params = init_params(k4, C_IN, C_OUT, HEADS)

    fwd = jax.jit(hgt_layer_forward)
    out = fwd(params, x, edge_index, edge_type)
    out = jax.block_until_ready(out)
    assert out.shape == (N, C_OUT)
    assert bool(jnp.all(jnp.isfinite(out)))
    print("KERNEL_OK")
</pallas_src>

<mosaic_0001>
module attributes {stable_mosaic.version = 11 : i64} {
  func.func @_attn_kernel(%arg0: i32, %arg1: i32, %arg2: i32, %arg3: memref<1x128x8xbf16, #tpu.memory_space<vmem>>, %arg4: memref<1x2x128x8xbf16, #tpu.memory_space<vmem>>, %arg5: memref<1x2x128x8xbf16, #tpu.memory_space<vmem>>, %arg6: memref<2x128x128xi8, #tpu.memory_space<vmem>>, %arg7: memref<1x128x8xf32, #tpu.memory_space<vmem>>, %arg8: memref<128x1xf32, #tpu.memory_space<vmem>>, %arg9: memref<128x1xf32, #tpu.memory_space<vmem>>, %arg10: memref<128x8xf32, #tpu.memory_space<vmem>>) attributes {dimension_semantics = [#tpu.dimension_semantics<parallel>, #tpu.dimension_semantics<parallel>, #tpu.dimension_semantics<arbitrary>], iteration_bounds = array<i64: 4, 1, 1>, scalar_prefetch = 0 : i64, scratch_operands = 3 : i64, tpu.core_type = #tpu.core_type<tc>, window_params = [{transform_indices = @transform_0, window_bounds = array<i64: 1, 128, 8>}, {transform_indices = @transform_1, window_bounds = array<i64: 1, 2, 128, 8>}, {transform_indices = @transform_2, window_bounds = array<i64: 1, 2, 128, 8>}, {transform_indices = @transform_3, window_bounds = array<i64: 2, 128, 128>}, {transform_indices = @transform_4, window_bounds = array<i64: 1, 128, 8>}]} {
    %c0_i32 = arith.constant 0 : i32
    %0 = arith.cmpi eq, %arg2, %c0_i32 : i32
    %1 = arith.extui %0 : i1 to i32
    %c0_i32_0 = arith.constant 0 : i32
    %2 = arith.cmpi ne, %1, %c0_i32_0 : i32
    scf.if %2 {
      %cst_51 = arith.constant -1.000000e+30 : f32
      %71 = vector.broadcast %cst_51 : f32 to vector<128x1xf32>
      %c0_52 = arith.constant 0 : index
      %c0_53 = arith.constant 0 : index
      %72 = vector.load %arg8[%c0_52, %c0_53] : memref<128x1xf32, #tpu.memory_space<vmem>>, vector<128x1xf32>
      tpu.vector_store %arg8[%c0_52, %c0_53], %71 {strides = array<i32>} : memref<128x1xf32, #tpu.memory_space<vmem>>, vector<128x1xf32>,
      %cst_54 = arith.constant 0.000000e+00 : f32
      %73 = vector.broadcast %cst_54 : f32 to vector<128x1xf32>
      %c0_55 = arith.constant 0 : index
      %c0_56 = arith.constant 0 : index
      %74 = vector.load %arg9[%c0_55, %c0_56] : memref<128x1xf32, #tpu.memory_space<vmem>>, vector<128x1xf32>
      tpu.vector_store %arg9[%c0_55, %c0_56], %73 {strides = array<i32>} : memref<128x1xf32, #tpu.memory_space<vmem>>, vector<128x1xf32>,
      %cst_57 = arith.constant 0.000000e+00 : f32
      %75 = vector.broadcast %cst_57 : f32 to vector<128x8xf32>
      %c0_58 = arith.constant 0 : index
      %c0_59 = arith.constant 0 : index
      %76 = vector.load %arg10[%c0_58, %c0_59] : memref<128x8xf32, #tpu.memory_space<vmem>>, vector<128x8xf32>
      tpu.vector_store %arg10[%c0_58, %c0_59], %75 {strides = array<i32>} : memref<128x8xf32, #tpu.memory_space<vmem>>, vector<128x8xf32>,
    } else {
    }
    %c0 = arith.constant 0 : index
    %c0_1 = arith.constant 0 : index
    %c0_2 = arith.constant 0 : index
    %3 = vector.load %arg3[%c0, %c0_1, %c0_2] : memref<1x128x8xbf16, #tpu.memory_space<vmem>>, vector<1x128x8xbf16>
    %4 = vector.shape_cast %3 : vector<1x128x8xbf16> to vector<128x8xbf16>
    %c0_3 = arith.constant 0 : index
    %c0_4 = arith.constant 0 : index
    %c0_5 = arith.constant 0 : index
    %c0_6 = arith.constant 0 : index
    %5 = vector.load %arg4[%c0_3, %c0_4, %c0_5, %c0_6] : memref<1x2x128x8xbf16, #tpu.memory_space<vmem>>, vector<1x1x128x8xbf16>
    %6 = vector.shape_cast %5 : vector<1x1x128x8xbf16> to vector<128x8xbf16>
    %cst = arith.constant dense<0.000000e+00> : vector<128x128xf32>
    %7 = tpu.matmul %4, %6, %cst {dimension_numbers = #tpu.dot_dimension_numbers<[1], [1], [0], [0], [0, 0, 1, 0], [], []>} : vector<128x8xbf16>, vector<128x8xbf16>, vector<128x128xf32> -> vector<128x128xf32>
    %c0_7 = arith.constant 0 : index
    %c0_8 = arith.constant 0 : index
    %c0_9 = arith.constant 0 : index
    %8 = vector.load %arg6[%c0_7, %c0_8, %c0_9] : memref<2x128x128xi8, #tpu.memory_space<vmem>>, vector<1x128x128xi8>
    %9 = vector.shape_cast %8 : vector<1x128x128xi8> to vector<128x128xi8>
    %10 = arith.sitofp %9 : vector<128x128xi8> to vector<128x128xf32>
    %cst_10 = arith.constant 0.000000e+00 : f32
    %11 = vector.broadcast %cst_10 : f32 to vector<128x128xf32>
    %12 = arith.cmpf ogt, %10, %11 : vector<128x128xf32>
    %cst_11 = arith.constant -1.000000e+30 : f32
    %13 = vector.broadcast %cst_11 : f32 to vector<128x128xf32>
    %14 = arith.select %12, %7, %13 : vector<128x128xi1>, vector<128x128xf32>
    %c0_12 = arith.constant 0 : index
    %c1 = arith.constant 1 : index
    %c0_13 = arith.constant 0 : index
    %c0_14 = arith.constant 0 : index
    %15 = vector.load %arg4[%c0_12, %c1, %c0_13, %c0_14] : memref<1x2x128x8xbf16, #tpu.memory_space<vmem>>, vector<1x1x128x8xbf16>
    %16 = vector.shape_cast %15 : vector<1x1x128x8xbf16> to vector<128x8xbf16>
    %cst_15 = arith.constant dense<0.000000e+00> : vector<128x128xf32>
    %17 = tpu.matmul %4, %16, %cst_15 {dimension_numbers = #tpu.dot_dimension_numbers<[1], [1], [0], [0], [0, 0, 1, 0], [], []>} : vector<128x8xbf16>, vector<128x8xbf16>, vector<128x128xf32> -> vector<128x128xf32>
    %c1_16 = arith.constant 1 : index
    %c0_17 = arith.constant 0 : index
    %c0_18 = arith.constant 0 : index
    %18 = vector.load %arg6[%c1_16, %c0_17, %c0_18] : memref<2x128x128xi8, #tpu.memory_space<vmem>>, vector<1x128x128xi8>
    %19 = vector.shape_cast %18 : vector<1x128x128xi8> to vector<128x128xi8>
    %20 = arith.sitofp %19 : vector<128x128xi8> to vector<128x128xf32>
    %cst_19 = arith.constant 0.000000e+00 : f32
    %21 = vector.broadcast %cst_19 : f32 to vector<128x128xf32>
    %22 = arith.cmpf ogt, %20, %21 : vector<128x128xf32>
    %cst_20 = arith.constant -1.000000e+30 : f32
    %23 = vector.broadcast %cst_20 : f32 to vector<128x128xf32>
    %24 = arith.select %22, %17, %23 : vector<128x128xi1>, vector<128x128xf32>
    %cst_21 = arith.constant dense<0xFF800000> : vector<128xf32>
    %25 = vector.multi_reduction <maximumf>, %14, %cst_21 [1] : vector<128x128xf32> to vector<128xf32>
    %26 = vector.shape_cast %25 : vector<128xf32> to vector<128x1xf32>
    %cst_22 = arith.constant dense<0xFF800000> : vector<128xf32>
    %27 = vector.multi_reduction <maximumf>, %24, %cst_22 [1] : vector<128x128xf32> to vector<128xf32>
    %28 = vector.shape_cast %27 : vector<128xf32> to vector<128x1xf32>
    %29 = arith.maximumf %26, %28 : vector<128x1xf32>
    %c0_23 = arith.constant 0 : index
    %c0_24 = arith.constant 0 : index
    %30 = vector.load %arg8[%c0_23, %c0_24] : memref<128x1xf32, #tpu.memory_space<vmem>>, vector<128x1xf32>
    %31 = arith.maximumf %30, %29 : vector<128x1xf32>
    %32 = arith.subf %30, %31 : vector<128x1xf32>
    %33 = math.exp %32 : vector<128x1xf32>
    %c0_25 = arith.constant 0 : index
    %c0_26 = arith.constant 0 : index
    %34 = vector.load %arg9[%c0_25, %c0_26] : memref<128x1xf32, #tpu.memory_space<vmem>>, vector<128x1xf32>
    %35 = arith.mulf %33, %34 : vector<128x1xf32>
    %c0_27 = arith.constant 0 : index
    %c0_28 = arith.constant 0 : index
    %36 = vector.load %arg10[%c0_27, %c0_28] : memref<128x8xf32, #tpu.memory_space<vmem>>, vector<128x8xf32>
    %37 = vector.broadcast %33 : vector<128x1xf32> to vector<128x8xf32>
    %38 = arith.mulf %37, %36 : vector<128x8xf32>
    %39 = vector.broadcast %31 : vector<128x1xf32> to vector<128x128xf32>
    %40 = arith.subf %14, %39 : vector<128x128xf32>
    %41 = math.exp %40 : vector<128x128xf32>
    %cst_29 = arith.constant 0.000000e+00 : f32
    %42 = vector.broadcast %cst_29 : f32 to vector<128x128xf32>
    %43 = arith.select %12, %41, %42 : vector<128x128xi1>, vector<128x128xf32>
    %cst_30 = arith.constant dense<0.000000e+00> : vector<128xf32>
    %44 = vector.multi_reduction <add>, %43, %cst_30 [1] : vector<128x128xf32> to vector<128xf32>
    %45 = vector.shape_cast %44 : vector<128xf32> to vector<128x1xf32>
    %46 = arith.addf %35, %45 : vector<128x1xf32>
    %47 = arith.truncf %43 : vector<128x128xf32> to vector<128x128xbf16>
    %c0_31 = arith.constant 0 : index
    %c0_32 = arith.constant 0 : index
    %c0_33 = arith.constant 0 : index
    %c0_34 = arith.constant 0 : index
    %48 = vector.load %arg5[%c0_31, %c0_32, %c0_33, %c0_34] : memref<1x2x128x8xbf16, #tpu.memory_space<vmem>>, vector<1x1x128x8xbf16>
    %49 = vector.shape_cast %48 : vector<1x1x128x8xbf16> to vector<128x8xbf16>
    %cst_35 = arith.constant dense<0.000000e+00> : vector<128x8xf32>
    %50 = tpu.matmul %47, %49, %cst_35 {dimension_numbers = #tpu.dot_dimension_numbers<[1], [0], [0], [1], [0, 0, 1, 1], [], []>} : vector<128x128xbf16>, vector<128x8xbf16>, vector<128x8xf32> -> vector<128x8xf32>
    %51 = arith.addf %38, %50 : vector<128x8xf32>
    %52 = vector.broadcast %31 : vector<128x1xf32> to vector<128x128xf32>
    %53 = arith.subf %24, %52 : vector<128x128xf32>
    %54 = math.exp %53 : vector<128x128xf32>
    %cst_36 = arith.constant 0.000000e+00 : f32
    %55 = vector.broadcast %cst_36 : f32 to vector<128x128xf32>
    %56 = arith.select %22, %54, %55 : vector<128x128xi1>, vector<128x128xf32>
    %cst_37 = arith.constant dense<0.000000e+00> : vector<128xf32>
    %57 = vector.multi_reduction <add>, %56, %cst_37 [1] : vector<128x128xf32> to vector<128xf32>
    %58 = vector.shape_cast %57 : vector<128xf32> to vector<128x1xf32>
    %59 = arith.addf %46, %58 : vector<128x1xf32>
    %60 = arith.truncf %56 : vector<128x128xf32> to vector<128x128xbf16>
    %c0_38 = arith.constant 0 : index
    %c1_39 = arith.constant 1 : index
    %c0_40 = arith.constant 0 : index
    %c0_41 = arith.constant 0 : index
    %61 = vector.load %arg5[%c0_38, %c1_39, %c0_40, %c0_41] : memref<1x2x128x8xbf16, #tpu.memory_space<vmem>>, vector<1x1x128x8xbf16>
    %62 = vector.shape_cast %61 : vector<1x1x128x8xbf16> to vector<128x8xbf16>
    %cst_42 = arith.constant dense<0.000000e+00> : vector<128x8xf32>
    %63 = tpu.matmul %60, %62, %cst_42 {dimension_numbers = #tpu.dot_dimension_numbers<[1], [0], [0], [1], [0, 0, 1, 1], [], []>} : vector<128x128xbf16>, vector<128x8xbf16>, vector<128x8xf32> -> vector<128x8xf32>
    %64 = arith.addf %51, %63 : vector<128x8xf32>
    %c0_43 = arith.constant 0 : index
    %c0_44 = arith.constant 0 : index
    %65 = vector.load %arg8[%c0_43, %c0_44] : memref<128x1xf32, #tpu.memory_space<vmem>>, vector<128x1xf32>
    tpu.vector_store %arg8[%c0_43, %c0_44], %31 {strides = array<i32>} : memref<128x1xf32, #tpu.memory_space<vmem>>, vector<128x1xf32>,
    %c0_45 = arith.constant 0 : index
    %c0_46 = arith.constant 0 : index
    %66 = vector.load %arg9[%c0_45, %c0_46] : memref<128x1xf32, #tpu.memory_space<vmem>>, vector<128x1xf32>
    tpu.vector_store %arg9[%c0_45, %c0_46], %59 {strides = array<i32>} : memref<128x1xf32, #tpu.memory_space<vmem>>, vector<128x1xf32>,
    %c0_47 = arith.constant 0 : index
    %c0_48 = arith.constant 0 : index
    %67 = vector.load %arg10[%c0_47, %c0_48] : memref<128x8xf32, #tpu.memory_space<vmem>>, vector<128x8xf32>
    tpu.vector_store %arg10[%c0_47, %c0_48], %64 {strides = array<i32>} : memref<128x8xf32, #tpu.memory_space<vmem>>, vector<128x8xf32>,
    %c0_i32_49 = arith.constant 0 : i32
    %68 = arith.cmpi eq, %arg2, %c0_i32_49 : i32
    %69 = arith.extui %68 : i1 to i32
    %c0_i32_50 = arith.constant 0 : i32
    %70 = arith.cmpi ne, %69, %c0_i32_50 : i32
    scf.if %70 {
      %c0_51 = arith.constant 0 : index
      %c0_52 = arith.constant 0 : index
      %71 = vector.load %arg9[%c0_51, %c0_52] : memref<128x1xf32, #tpu.memory_space<vmem>>, vector<128x1xf32>
      %cst_53 = arith.constant 0.000000e+00 : f32
      %72 = vector.broadcast %cst_53 : f32 to vector<128x1xf32>
      %73 = arith.cmpf oeq, %71, %72 : vector<128x1xf32>
      %cst_54 = arith.constant 1.000000e+00 : f32
      %74 = vector.broadcast %cst_54 : f32 to vector<128x1xf32>
      %75 = arith.select %73, %74, %71 : vector<128x1xi1>, vector<128x1xf32>
      %c0_55 = arith.constant 0 : index
      %c0_56 = arith.constant 0 : index
      %76 = vector.load %arg10[%c0_55, %c0_56] : memref<128x8xf32, #tpu.memory_space<vmem>>, vector<128x8xf32>
      %77 = tpu.reciprocal %75 {approx = true} : vector<128x1xf32> -> vector<128x1xf32>
      %78 = vector.broadcast %77 : vector<128x1xf32> to vector<128x8xf32>
      %79 = arith.mulf %76, %78 : vector<128x8xf32>
      %c0_57 = arith.constant 0 : index
      %c0_58 = arith.constant 0 : index
      %c0_59 = arith.constant 0 : index
      %80 = vector.load %arg7[%c0_57, %c0_58, %c0_59] : memref<1x128x8xf32, #tpu.memory_space<vmem>>, vector<1x128x8xf32>
      %81 = vector.shape_cast %80 : vector<1x128x8xf32> to vector<128x8xf32>
      %82 = vector.shape_cast %79 : vector<128x8xf32> to vector<1x128x8xf32>
      tpu.vector_store %arg7[%c0_57, %c0_58, %c0_59], %82 {strides = array<i32>} : memref<1x128x8xf32, #tpu.memory_space<vmem>>, vector<1x128x8xf32>,
    } else {
    }
    return
  }
  func.func @transform_0(%arg0: i32, %arg1: i32, %arg2: i32) -> (i32, i32, i32) {
    %c0_i32 = arith.constant 0 : i32
    %c0_i32_0 = arith.constant 0 : i32
    return %arg0, %arg1, %c0_i32 : i32, i32, i32
  }
  func.func @transform_1(%arg0: i32, %arg1: i32, %arg2: i32) -> (i32, i32, i32, i32) {
    %c0_i32 = arith.constant 0 : i32
    %c0_i32_0 = arith.constant 0 : i32
    %c0_i32_1 = arith.constant 0 : i32
    return %arg0, %c0_i32, %arg2, %c0_i32_0 : i32, i32, i32, i32
  }
  func.func @transform_2(%arg0: i32, %arg1: i32, %arg2: i32) -> (i32, i32, i32, i32) {
    %c0_i32 = arith.constant 0 : i32
    %c0_i32_0 = arith.constant 0 : i32
    %c0_i32_1 = arith.constant 0 : i32
    return %arg0, %c0_i32, %arg2, %c0_i32_0 : i32, i32, i32, i32
  }
  func.func @transform_3(%arg0: i32, %arg1: i32, %arg2: i32) -> (i32, i32, i32) {
    %c0_i32 = arith.constant 0 : i32
    %c0_i32_0 = arith.constant 0 : i32
    return %c0_i32, %arg1, %arg2 : i32, i32, i32
  }
  func.func @transform_4(%arg0: i32, %arg1: i32, %arg2: i32) -> (i32, i32, i32) {
    %c0_i32 = arith.constant 0 : i32
    %c0_i32_0 = arith.constant 0 : i32
    return %arg0, %arg1, %c0_i32 : i32, i32, i32
  }
}

module attributes {stable_mosaic.version = 11 : i64} {
  func.func @_proj_kernel(%arg0: i32, %arg1: memref<128x32xf32, #tpu.memory_space<vmem>>, %arg2: memref<3x4x32x8xf32, #tpu.memory_space<vmem>>, %arg3: memref<3x4x1x8xf32, #tpu.memory_space<vmem>>, %arg4: memref<4x2x8x8xf32, #tpu.memory_space<vmem>>, %arg5: memref<4x2x8x8xf32, #tpu.memory_space<vmem>>, %arg6: memref<4x128x8xbf16, #tpu.memory_space<vmem>>, %arg7: memref<4x2x128x8xbf16, #tpu.memory_space<vmem>>, %arg8: memref<4x2x128x8xbf16, #tpu.memory_space<vmem>>) attributes {dimension_semantics = [#tpu.dimension_semantics<parallel>], iteration_bounds = array<i64: 1>, scalar_prefetch = 0 : i64, scratch_operands = 0 : i64, tpu.core_type = #tpu.core_type<tc>, window_params = [{transform_indices = @transform_0, window_bounds = array<i64: 128, 32>}, {pipeline_mode = #tpu.pipeline_mode<synchronous>, transform_indices = @transform_1, window_bounds = array<i64: 3, 4, 32, 8>}, {pipeline_mode = #tpu.pipeline_mode<synchronous>, transform_indices = @transform_2, window_bounds = array<i64: 3, 4, 1, 8>}, {pipeline_mode = #tpu.pipeline_mode<synchronous>, transform_indices = @transform_3, window_bounds = array<i64: 4, 2, 8, 8>}, {pipeline_mode = #tpu.pipeline_mode<synchronous>, transform_indices = @transform_4, window_bounds = array<i64: 4, 2, 8, 8>}, {transform_indices = @transform_5, window_bounds = array<i64: 4, 128, 8>}, {transform_indices = @transform_6, window_bounds = array<i64: 4, 2, 128, 8>}, {transform_indices = @transform_7, window_bounds = array<i64: 4, 2, 128, 8>}]} {
    %c0 = arith.constant 0 : index
    %c0_0 = arith.constant 0 : index
    %0 = vector.load %arg1[%c0, %c0_0] : memref<128x32xf32, #tpu.memory_space<vmem>>, vector<128x32xf32>
    %c0_1 = arith.constant 0 : index
    %c0_2 = arith.constant 0 : index
    %c0_3 = arith.constant 0 : index
    %c0_4 = arith.constant 0 : index
    %1 = vector.load %arg2[%c0_1, %c0_2, %c0_3, %c0_4] : memref<3x4x32x8xf32, #tpu.memory_space<vmem>>, vector<1x1x32x8xf32>
    %2 = vector.shape_cast %1 : vector<1x1x32x8xf32> to vector<32x8xf32>
    %cst = arith.constant dense<0.000000e+00> : vector<128x8xf32>
    %3 = tpu.matmul %0, %2, %cst {dimension_numbers = #tpu.dot_dimension_numbers<[1], [0], [0], [1], [0, 0, 1, 1], [], []>} : vector<128x32xf32>, vector<32x8xf32>, vector<128x8xf32> -> vector<128x8xf32>
    %c0_5 = arith.constant 0 : index
    %c0_6 = arith.constant 0 : index
    %c0_7 = arith.constant 0 : index
    %c0_8 = arith.constant 0 : index
    %4 = vector.load %arg3[%c0_5, %c0_6, %c0_7, %c0_8] : memref<3x4x1x8xf32, #tpu.memory_space<vmem>>, vector<1x1x1x8xf32>
    %5 = vector.shape_cast %4 : vector<1x1x1x8xf32> to vector<1x8xf32>
    %6 = vector.broadcast %5 : vector<1x8xf32> to vector<128x8xf32>
    %7 = arith.addf %3, %6 : vector<128x8xf32>
    %c1 = arith.constant 1 : index
    %c0_9 = arith.constant 0 : index
    %c0_10 = arith.constant 0 : index
    %c0_11 = arith.constant 0 : index
    %8 = vector.load %arg2[%c1, %c0_9, %c0_10, %c0_11] : memref<3x4x32x8xf32, #tpu.memory_space<vmem>>, vector<1x1x32x8xf32>
    %9 = vector.shape_cast %8 : vector<1x1x32x8xf32> to vector<32x8xf32>
    %cst_12 = arith.constant dense<0.000000e+00> : vector<128x8xf32>
    %10 = tpu.matmul %0, %9, %cst_12 {dimension_numbers = #tpu.dot_dimension_numbers<[1], [0], [0], [1], [0, 0, 1, 1], [], []>} : vector<128x32xf32>, vector<32x8xf32>, vector<128x8xf32> -> vector<128x8xf32>
    %c1_13 = arith.constant 1 : index
    %c0_14 = arith.constant 0 : index
    %c0_15 = arith.constant 0 : index
    %c0_16 = arith.constant 0 : index
    %11 = vector.load %arg3[%c1_13, %c0_14, %c0_15, %c0_16] : memref<3x4x1x8xf32, #tpu.memory_space<vmem>>, vector<1x1x1x8xf32>
    %12 = vector.shape_cast %11 : vector<1x1x1x8xf32> to vector<1x8xf32>
    %13 = vector.broadcast %12 : vector<1x8xf32> to vector<128x8xf32>
    %14 = arith.addf %10, %13 : vector<128x8xf32>
    %c2 = arith.constant 2 : index
    %c0_17 = arith.constant 0 : index
    %c0_18 = arith.constant 0 : index
    %c0_19 = arith.constant 0 : index
    %15 = vector.load %arg2[%c2, %c0_17, %c0_18, %c0_19] : memref<3x4x32x8xf32, #tpu.memory_space<vmem>>, vector<1x1x32x8xf32>
    %16 = vector.shape_cast %15 : vector<1x1x32x8xf32> to vector<32x8xf32>
    %cst_20 = arith.constant dense<0.000000e+00> : vector<128x8xf32>
    %17 = tpu.matmul %0, %16, %cst_20 {dimension_numbers = #tpu.dot_dimension_numbers<[1], [0], [0], [1], [0, 0, 1, 1], [], []>} : vector<128x32xf32>, vector<32x8xf32>, vector<128x8xf32> -> vector<128x8xf32>
    %c2_21 = arith.constant 2 : index
    %c0_22 = arith.constant 0 : index
    %c0_23 = arith.constant 0 : index
    %c0_24 = arith.constant 0 : index
    %18 = vector.load %arg3[%c2_21, %c0_22, %c0_23, %c0_24] : memref<3x4x1x8xf32, #tpu.memory_space<vmem>>, vector<1x1x1x8xf32>
    %19 = vector.shape_cast %18 : vector<1x1x1x8xf32> to vector<1x8xf32>
    %20 = vector.broadcast %19 : vector<1x8xf32> to vector<128x8xf32>
    %21 = arith.addf %17, %20 : vector<128x8xf32>
    %22 = arith.truncf %14 : vector<128x8xf32> to vector<128x8xbf16>
    %c0_25 = arith.constant 0 : index
    %c0_26 = arith.constant 0 : index
    %c0_27 = arith.constant 0 : index
    %23 = vector.load %arg6[%c0_25, %c0_26, %c0_27] : memref<4x128x8xbf16, #tpu.memory_space<vmem>>, vector<1x128x8xbf16>
    %24 = vector.shape_cast %23 : vector<1x128x8xbf16> to vector<128x8xbf16>
    %25 = vector.shape_cast %22 : vector<128x8xbf16> to vector<1x128x8xbf16>
    tpu.vector_store %arg6[%c0_25, %c0_26, %c0_27], %25 {strides = array<i32>} : memref<4x128x8xbf16, #tpu.memory_space<vmem>>, vector<1x128x8xbf16>,
    %c0_28 = arith.constant 0 : index
    %c0_29 = arith.constant 0 : index
    %c0_30 = arith.constant 0 : index
    %c0_31 = arith.constant 0 : index
    %26 = vector.load %arg4[%c0_28, %c0_29, %c0_30, %c0_31] : memref<4x2x8x8xf32, #tpu.memory_space<vmem>>, vector<1x1x8x8xf32>
    %27 = vector.shape_cast %26 : vector<1x1x8x8xf32> to vector<8x8xf32>
    %cst_32 = arith.constant dense<0.000000e+00> : vector<128x8xf32>
    %28 = tpu.matmul %7, %27, %cst_32 {dimension_numbers = #tpu.dot_dimension_numbers<[1], [0], [0], [1], [0, 0, 1, 1], [], []>} : vector<128x8xf32>, vector<8x8xf32>, vector<128x8xf32> -> vector<128x8xf32>
    %29 = arith.truncf %28 : vector<128x8xf32> to vector<128x8xbf16>
    %c0_33 = arith.constant 0 : index
    %c0_34 = arith.constant 0 : index
    %c0_35 = arith.constant 0 : index
    %c0_36 = arith.constant 0 : index
    %30 = vector.load %arg7[%c0_33, %c0_34, %c0_35, %c0_36] : memref<4x2x128x8xbf16, #tpu.memory_space<vmem>>, vector<1x1x128x8xbf16>
    %31 = vector.shape_cast %30 : vector<1x1x128x8xbf16> to vector<128x8xbf16>
    %32 = vector.shape_cast %29 : vector<128x8xbf16> to vector<1x1x128x8xbf16>
    tpu.vector_store %arg7[%c0_33, %c0_34, %c0_35, %c0_36], %32 {strides = array<i32>} : memref<4x2x128x8xbf16, #tpu.memory_space<vmem>>, vector<1x1x128x8xbf16>,
    %c0_37 = arith.constant 0 : index
    %c0_38 = arith.constant 0 : index
    %c0_39 = arith.constant 0 : index
    %c0_40 = arith.constant 0 : index
    %33 = vector.load %arg5[%c0_37, %c0_38, %c0_39, %c0_40] : memref<4x2x8x8xf32, #tpu.memory_space<vmem>>, vector<1x1x8x8xf32>
    %34 = vector.shape_cast %33 : vector<1x1x8x8xf32> to vector<8x8xf32>
    %cst_41 = arith.constant dense<0.000000e+00> : vector<128x8xf32>
    %35 = tpu.matmul %21, %34, %cst_41 {dimension_numbers = #tpu.dot_dimension_numbers<[1], [0], [0], [1], [0, 0, 1, 1], [], []>} : vector<128x8xf32>, vector<8x8xf32>, vector<128x8xf32> -> vector<128x8xf32>
    %36 = arith.truncf %35 : vector<128x8xf32> to vector<128x8xbf16>
    %c0_42 = arith.constant 0 : index
    %c0_43 = arith.constant 0 : index
    %c0_44 = arith.constant 0 : index
    %c0_45 = arith.constant 0 : index
    %37 = vector.load %arg8[%c0_42, %c0_43, %c0_44, %c0_45] : memref<4x2x128x8xbf16, #tpu.memory_space<vmem>>, vector<1x1x128x8xbf16>
    %38 = vector.shape_cast %37 : vector<1x1x128x8xbf16> to vector<128x8xbf16>
    %39 = vector.shape_cast %36 : vector<128x8xbf16> to vector<1x1x128x8xbf16>
    tpu.vector_store %arg8[%c0_42, %c0_43, %c0_44, %c0_45], %39 {strides = array<i32>} : memref<4x2x128x8xbf16, #tpu.memory_space<vmem>>, vector<1x1x128x8xbf16>,
    %c0_46 = arith.constant 0 : index
    %c1_47 = arith.constant 1 : index
    %c0_48 = arith.constant 0 : index
    %c0_49 = arith.constant 0 : index
    %40 = vector.load %arg4[%c0_46, %c1_47, %c0_48, %c0_49] : memref<4x2x8x8xf32, #tpu.memory_space<vmem>>, vector<1x1x8x8xf32>
    %41 = vector.shape_cast %40 : vector<1x1x8x8xf32> to vector<8x8xf32>
    %cst_50 = arith.constant dense<0.000000e+00> : vector<128x8xf32>
    %42 = tpu.matmul %7, %41, %cst_50 {dimension_numbers = #tpu.dot_dimension_numbers<[1], [0], [0], [1], [0, 0, 1, 1], [], []>} : vector<128x8xf32>, vector<8x8xf32>, vector<128x8xf32> -> vector<128x8xf32>
    %43 = arith.truncf %42 : vector<128x8xf32> to vector<128x8xbf16>
    %c0_51 = arith.constant 0 : index
    %c1_52 = arith.constant 1 : index
    %c0_53 = arith.constant 0 : index
    %c0_54 = arith.constant 0 : index
    %44 = vector.load %arg7[%c0_51, %c1_52, %c0_53, %c0_54] : memref<4x2x128x8xbf16, #tpu.memory_space<vmem>>, vector<1x1x128x8xbf16>
    %45 = vector.shape_cast %44 : vector<1x1x128x8xbf16> to vector<128x8xbf16>
    %46 = vector.shape_cast %43 : vector<128x8xbf16> to vector<1x1x128x8xbf16>
    tpu.vector_store %arg7[%c0_51, %c1_52, %c0_53, %c0_54], %46 {strides = array<i32>} : memref<4x2x128x8xbf16, #tpu.memory_space<vmem>>, vector<1x1x128x8xbf16>,
    %c0_55 = arith.constant 0 : index
    %c1_56 = arith.constant 1 : index
    %c0_57 = arith.constant 0 : index
    %c0_58 = arith.constant 0 : index
    %47 = vector.load %arg5[%c0_55, %c1_56, %c0_57, %c0_58] : memref<4x2x8x8xf32, #tpu.memory_space<vmem>>, vector<1x1x8x8xf32>
    %48 = vector.shape_cast %47 : vector<1x1x8x8xf32> to vector<8x8xf32>
    %cst_59 = arith.constant dense<0.000000e+00> : vector<128x8xf32>
    %49 = tpu.matmul %21, %48, %cst_59 {dimension_numbers = #tpu.dot_dimension_numbers<[1], [0], [0], [1], [0, 0, 1, 1], [], []>} : vector<128x8xf32>, vector<8x8xf32>, vector<128x8xf32> -> vector<128x8xf32>
    %50 = arith.truncf %49 : vector<128x8xf32> to vector<128x8xbf16>
    %c0_60 = arith.constant 0 : index
    %c1_61 = arith.constant 1 : index
    %c0_62 = arith.constant 0 : index
    %c0_63 = arith.constant 0 : index
    %51 = vector.load %arg8[%c0_60, %c1_61, %c0_62, %c0_63] : memref<4x2x128x8xbf16, #tpu.memory_space<vmem>>, vector<1x1x128x8xbf16>
    %52 = vector.shape_cast %51 : vector<1x1x128x8xbf16> to vector<128x8xbf16>
    %53 = vector.shape_cast %50 : vector<128x8xbf16> to vector<1x1x128x8xbf16>
    tpu.vector_store %arg8[%c0_60, %c1_61, %c0_62, %c0_63], %53 {strides = array<i32>} : memref<4x2x128x8xbf16, #tpu.memory_space<vmem>>, vector<1x1x128x8xbf16>,
    %c0_64 = arith.constant 0 : index
    %c1_65 = arith.constant 1 : index
    %c0_66 = arith.constant 0 : index
    %c0_67 = arith.constant 0 : index
    %54 = vector.load %arg2[%c0_64, %c1_65, %c0_66, %c0_67] : memref<3x4x32x8xf32, #tpu.memory_space<vmem>>, vector<1x1x32x8xf32>
    %55 = vector.shape_cast %54 : vector<1x1x32x8xf32> to vector<32x8xf32>
    %cst_68 = arith.constant dense<0.000000e+00> : vector<128x8xf32>
    %56 = tpu.matmul %0, %55, %cst_68 {dimension_numbers = #tpu.dot_dimension_numbers<[1], [0], [0], [1], [0, 0, 1, 1], [], []>} : vector<128x32xf32>, vector<32x8xf32>, vector<128x8xf32> -> vector<128x8xf32>
    %c0_69 = arith.constant 0 : index
    %c1_70 = arith.constant 1 : index
    %c0_71 = arith.constant 0 : index
    %c0_72 = arith.constant 0 : index
    %57 = vector.load %arg3[%c0_69, %c1_70, %c0_71, %c0_72] : memref<3x4x1x8xf32, #tpu.memory_space<vmem>>, vector<1x1x1x8xf32>
    %58 = vector.shape_cast %57 : vector<1x1x1x8xf32> to vector<1x8xf32>
    %59 = vector.broadcast %58 : vector<1x8xf32> to vector<128x8xf32>
    %60 = arith.addf %56, %59 : vector<128x8xf32>
    %c1_73 = arith.constant 1 : index
    %c1_74 = arith.constant 1 : index
    %c0_75 = arith.constant 0 : index
    %c0_76 = arith.constant 0 : index
    %61 = vector.load %arg2[%c1_73, %c1_74, %c0_75, %c0_76] : memref<3x4x32x8xf32, #tpu.memory_space<vmem>>, vector<1x1x32x8xf32>
    %62 = vector.shape_cast %61 : vector<1x1x32x8xf32> to vector<32x8xf32>
    %cst_77 = arith.constant dense<0.000000e+00> : vector<128x8xf32>
    %63 = tpu.matmul %0, %62, %cst_77 {dimension_numbers = #tpu.dot_dimension_numbers<[1], [0], [0], [1], [0, 0, 1, 1], [], []>} : vector<128x32xf32>, vector<32x8xf32>, vector<128x8xf32> -> vector<128x8xf32>
    %c1_78 = arith.constant 1 : index
    %c1_79 = arith.constant 1 : index
    %c0_80 = arith.constant 0 : index
    %c0_81 = arith.constant 0 : index
    %64 = vector.load %arg3[%c1_78, %c1_79, %c0_80, %c0_81] : memref<3x4x1x8xf32, #tpu.memory_space<vmem>>, vector<1x1x1x8xf32>
    %65 = vector.shape_cast %64 : vector<1x1x1x8xf32> to vector<1x8xf32>
    %66 = vector.broadcast %65 : vector<1x8xf32> to vector<128x8xf32>
    %67 = arith.addf %63, %66 : vector<128x8xf32>
    %c2_82 = arith.constant 2 : index
    %c1_83 = arith.constant 1 : index
    %c0_84 = arith.constant 0 : index
    %c0_85 = arith.constant 0 : index
    %68 = vector.load %arg2[%c2_82, %c1_83, %c0_84, %c0_85] : memref<3x4x32x8xf32, #tpu.memory_space<vmem>>, vector<1x1x32x8xf32>
    %69 = vector.shape_cast %68 : vector<1x1x32x8xf32> to vector<32x8xf32>
    %cst_86 = arith.constant dense<0.000000e+00> : vector<128x8xf32>
    %70 = tpu.matmul %0, %69, %cst_86 {dimension_numbers = #tpu.dot_dimension_numbers<[1], [0], [0], [1], [0, 0, 1, 1], [], []>} : vector<128x32xf32>, vector<32x8xf32>, vector<128x8xf32> -> vector<128x8xf32>
    %c2_87 = arith.constant 2 : index
    %c1_88 = arith.constant 1 : index
    %c0_89 = arith.constant 0 : index
    %c0_90 = arith.constant 0 : index
    %71 = vector.load %arg3[%c2_87, %c1_88, %c0_89, %c0_90] : memref<3x4x1x8xf32, #tpu.memory_space<vmem>>, vector<1x1x1x8xf32>
    %72 = vector.shape_cast %71 : vector<1x1x1x8xf32> to vector<1x8xf32>
    %73 = vector.broadcast %72 : vector<1x8xf32> to vector<128x8xf32>
    %74 = arith.addf %70, %73 : vector<128x8xf32>
    %75 = arith.truncf %67 : vector<128x8xf32> to vector<128x8xbf16>
    %c1_91 = arith.constant 1 : index
    %c0_92 = arith.constant 0 : index
    %c0_93 = arith.constant 0 : index
    %76 = vector.load %arg6[%c1_91, %c0_92, %c0_93] : memref<4x128x8xbf16, #tpu.memory_space<vmem>>, vector<1x128x8xbf16>
    %77 = vector.shape_cast %76 : vector<1x128x8xbf16> to vector<128x8xbf16>
    %78 = vector.shape_cast %75 : vector<128x8xbf16> to vector<1x128x8xbf16>
    tpu.vector_store %arg6[%c1_91, %c0_92, %c0_93], %78 {strides = array<i32>} : memref<4x128x8xbf16, #tpu.memory_space<vmem>>, vector<1x128x8xbf16>,
    %c1_94 = arith.constant 1 : index
    %c0_95 = arith.constant 0 : index
    %c0_96 = arith.constant 0 : index
    %c0_97 = arith.constant 0 : index
    %79 = vector.load %arg4[%c1_94, %c0_95, %c0_96, %c0_97] : memref<4x2x8x8xf32, #tpu.memory_space<vmem>>, vector<1x1x8x8xf32>
    %80 = vector.shape_cast %79 : vector<1x1x8x8xf32> to vector<8x8xf32>
    %cst_98 = arith.constant dense<0.000000e+00> : vector<128x8xf32>
    %81 = tpu.matmul %60, %80, %cst_98 {dimension_numbers = #tpu.dot_dimension_numbers<[1], [0], [0], [1], [0, 0, 1, 1], [], []>} : vector<128x8xf32>, vector<8x8xf32>, vector<128x8xf32> -> vector<128x8xf32>
    %82 = arith.truncf %81 : vector<128x8xf32> to vector<128x8xbf16>
    %c1_99 = arith.constant 1 : index
    %c0_100 = arith.constant 0 : index
    %c0_101 = arith.constant 0 : index
    %c0_102 = arith.constant 0 : index
    %83 = vector.load %arg7[%c1_99, %c0_100, %c0_101, %c0_102] : memref<4x2x128x8xbf16, #tpu.memory_space<vmem>>, vector<1x1x128x8xbf16>
    %84 = vector.shape_cast %83 : vector<1x1x128x8xbf16> to vector<128x8xbf16>
    %85 = vector.shape_cast %82 : vector<128x8xbf16> to vector<1x1x128x8xbf16>
    tpu.vector_store %arg7[%c1_99, %c0_100, %c0_101, %c0_102], %85 {strides = array<i32>} : memref<4x2x128x8xbf16, #tpu.memory_space<vmem>>, vector<1x1x128x8xbf16>,
    %c1_103 = arith.constant 1 : index
    %c0_104 = arith.constant 0 : index
    %c0_105 = arith.constant 0 : index
    %c0_106 = arith.constant 0 : index
    %86 = vector.load %arg5[%c1_103, %c0_104, %c0_105, %c0_106] : memref<4x2x8x8xf32, #tpu.memory_space<vmem>>, vector<1x1x8x8xf32>
    %87 = vector.shape_cast %86 : vector<1x1x8x8xf32> to vector<8x8xf32>
    %cst_107 = arith.constant dense<0.000000e+00> : vector<128x8xf32>
    %88 = tpu.matmul %74, %87, %cst_107 {dimension_numbers = #tpu.dot_dimension_numbers<[1], [0], [0], [1], [0, 0, 1, 1], [], []>} : vector<128x8xf32>, vector<8x8xf32>, vector<128x8xf32> -> vector<128x8xf32>
    %89 = arith.truncf %88 : vector<128x8xf32> to vector<128x8xbf16>
    %c1_108 = arith.constant 1 : index
    %c0_109 = arith.constant 0 : index
    %c0_110 = arith.constant 0 : index
    %c0_111 = arith.constant 0 : index
    %90 = vector.load %arg8[%c1_108, %c0_109, %c0_110, %c0_111] : memref<4x2x128x8xbf16, #tpu.memory_space<vmem>>, vector<1x1x128x8xbf16>
    %91 = vector.shape_cast %90 : vector<1x1x128x8xbf16> to vector<128x8xbf16>
    %92 = vector.shape_cast %89 : vector<128x8xbf16> to vector<1x1x128x8xbf16>
    tpu.vector_store %arg8[%c1_108, %c0_109, %c0_110, %c0_111], %92 {strides = array<i32>} : memref<4x2x128x8xbf16, #tpu.memory_space<vmem>>, vector<1x1x128x8xbf16>,
    %c1_112 = arith.constant 1 : index
    %c1_113 = arith.constant 1 : index
    %c0_114 = arith.constant 0 : index
    %c0_115 = arith.constant 0 : index
    %93 = vector.load %arg4[%c1_112, %c1_113, %c0_114, %c0_115] : memref<4x2x8x8xf32, #tpu.memory_space<vmem>>, vector<1x1x8x8xf32>
    %94 = vector.shape_cast %93 : vector<1x1x8x8xf32> to vector<8x8xf32>
    %cst_116 = arith.constant dense<0.000000e+00> : vector<128x8xf32>
    %95 = tpu.matmul %60, %94, %cst_116 {dimension_numbers = #tpu.dot_dimension_numbers<[1], [0], [0], [1], [0, 0, 1, 1], [], []>} : vector<128x8xf32>, vector<8x8xf32>, vector<128x8xf32> -> vector<128x8xf32>
    %96 = arith.truncf %95 : vector<128x8xf32> to vector<128x8xbf16>
    %c1_117 = arith.constant 1 : index
    %c1_118 = arith.constant 1 : index
    %c0_119 = arith.constant 0 : index
    %c0_120 = arith.constant 0 : index
    %97 = vector.load %arg7[%c1_117, %c1_118, %c0_119, %c0_120] : memref<4x2x128x8xbf16, #tpu.memory_space<vmem>>, vector<1x1x128x8xbf16>
    %98 = vector.shape_cast %97 : vector<1x1x128x8xbf16> to vector<128x8xbf16>
    %99 = vector.shape_cast %96 : vector<128x8xbf16> to vector<1x1x128x8xbf16>
    tpu.vector_store %arg7[%c1_117, %c1_118, %c0_119, %c0_120], %99 {strides = array<i32>} : memref<4x2x128x8xbf16, #tpu.memory_space<vmem>>, vector<1x1x128x8xbf16>,
    %c1_121 = arith.constant 1 : index
    %c1_122 = arith.constant 1 : index
    %c0_123 = arith.constant 0 : index
    %c0_124 = arith.constant 0 : index
    %100 = vector.load %arg5[%c1_121, %c1_122, %c0_123, %c0_124] : memref<4x2x8x8xf32, #tpu.memory_space<vmem>>, vector<1x1x8x8xf32>
    %101 = vector.shape_cast %100 : vector<1x1x8x8xf32> to vector<8x8xf32>
    %cst_125 = arith.constant dense<0.000000e+00> : vector<128x8xf32>
    %102 = tpu.matmul %74, %101, %cst_125 {dimension_numbers = #tpu.dot_dimension_numbers<[1], [0], [0], [1], [0, 0, 1, 1], [], []>} : vector<128x8xf32>, vector<8x8xf32>, vector<128x8xf32> -> vector<128x8xf32>
    %103 = arith.truncf %102 : vector<128x8xf32> to vector<128x8xbf16>
    %c1_126 = arith.constant 1 : index
    %c1_127 = arith.constant 1 : index
    %c0_128 = arith.constant 0 : index
    %c0_129 = arith.constant 0 : index
    %104 = vector.load %arg8[%c1_126, %c1_127, %c0_128, %c0_129] : memref<4x2x128x8xbf16, #tpu.memory_space<vmem>>, vector<1x1x128x8xbf16>
    %105 = vector.shape_cast %104 : vector<1x1x128x8xbf16> to vector<128x8xbf16>
    %106 = vector.shape_cast %103 : vector<128x8xbf16> to vector<1x1x128x8xbf16>
    tpu.vector_store %arg8[%c1_126, %c1_127, %c0_128, %c0_129], %106 {strides = array<i32>} : memref<4x2x128x8xbf16, #tpu.memory_space<vmem>>, vector<1x1x128x8xbf16>,
    %c0_130 = arith.constant 0 : index
    %c2_131 = arith.constant 2 : index
    %c0_132 = arith.constant 0 : index
    %c0_133 = arith.constant 0 : index
    %107 = vector.load %arg2[%c0_130, %c2_131, %c0_132, %c0_133] : memref<3x4x32x8xf32, #tpu.memory_space<vmem>>, vector<1x1x32x8xf32>
    %108 = vector.shape_cast %107 : vector<1x1x32x8xf32> to vector<32x8xf32>
    %cst_134 = arith.constant dense<0.000000e+00> : vector<128x8xf32>
    %109 = tpu.matmul %0, %108, %cst_134 {dimension_numbers = #tpu.dot_dimension_numbers<[1], [0], [0], [1], [0, 0, 1, 1], [], []>} : vector<128x32xf32>, vector<32x8xf32>, vector<128x8xf32> -> vector<128x8xf32>
    %c0_135 = arith.constant 0 : index
    %c2_136 = arith.constant 2 : index
    %c0_137 = arith.constant 0 : index
    %c0_138 = arith.constant 0 : index
    %110 = vector.load %arg3[%c0_135, %c2_136, %c0_137, %c0_138] : memref<3x4x1x8xf32, #tpu.memory_space<vmem>>, vector<1x1x1x8xf32>
    %111 = vector.shape_cast %110 : vector<1x1x1x8xf32> to vector<1x8xf32>
    %112 = vector.broadcast %111 : vector<1x8xf32> to vector<128x8xf32>
    %113 = arith.addf %109, %112 : vector<128x8xf32>
    %c1_139 = arith.constant 1 : index
    %c2_140 = arith.constant 2 : index
    %c0_141 = arith.constant 0 : index
    %c0_142 = arith.constant 0 : index
    %114 = vector.load %arg2[%c1_139, %c2_140, %c0_141, %c0_142] : memref<3x4x32x8xf32, #tpu.memory_space<vmem>>, vector<1x1x32x8xf32>
    %115 = vector.shape_cast %114 : vector<1x1x32x8xf32> to vector<32x8xf32>
    %cst_143 = arith.constant dense<0.000000e+00> : vector<128x8xf32>
    %116 = tpu.matmul %0, %115, %cst_143 {dimension_numbers = #tpu.dot_dimension_numbers<[1], [0], [0], [1], [0, 0, 1, 1], [], []>} : vector<128x32xf32>, vector<32x8xf32>, vector<128x8xf32> -> vector<128x8xf32>
    %c1_144 = arith.constant 1 : index
    %c2_145 = arith.constant 2 : index
    %c0_146 = arith.constant 0 : index
    %c0_147 = arith.constant 0 : index
    %117 = vector.load %arg3[%c1_144, %c2_145, %c0_146, %c0_147] : memref<3x4x1x8xf32, #tpu.memory_space<vmem>>, vector<1x1x1x8xf32>
    %118 = vector.shape_cast %117 : vector<1x1x1x8xf32> to vector<1x8xf32>
    %119 = vector.broadcast %118 : vector<1x8xf32> to vector<128x8xf32>
    %120 = arith.addf %116, %119 : vector<128x8xf32>
    %c2_148 = arith.constant 2 : index
    %c2_149 = arith.constant 2 : index
    %c0_150 = arith.constant 0 : index
    %c0_151 = arith.constant 0 : index
    %121 = vector.load %arg2[%c2_148, %c2_149, %c0_150, %c0_151] : memref<3x4x32x8xf32, #tpu.memory_space<vmem>>, vector<1x1x32x8xf32>
    %122 = vector.shape_cast %121 : vector<1x1x32x8xf32> to vector<32x8xf32>
    %cst_152 = arith.constant dense<0.000000e+00> : vector<128x8xf32>
    %123 = tpu.matmul %0, %122, %cst_152 {dimension_numbers = #tpu.dot_dimension_numbers<[1], [0], [0], [1], [0, 0, 1, 1], [], []>} : vector<128x32xf32>, vector<32x8xf32>, vector<128x8xf32> -> vector<128x8xf32>
    %c2_153 = arith.constant 2 : index
    %c2_154 = arith.constant 2 : index
    %c0_155 = arith.constant 0 : index
    %c0_156 = arith.constant 0 : index
    %124 = vector.load %arg3[%c2_153, %c2_154, %c0_155, %c0_156] : memref<3x4x1x8xf32, #tpu.memory_space<vmem>>, vector<1x1x1x8xf32>
    %125 = vector.shape_cast %124 : vector<1x1x1x8xf32> to vector<1x8xf32>
    %126 = vector.broadcast %125 : vector<1x8xf32> to vector<128x8xf32>
    %127 = arith.addf %123, %126 : vector<128x8xf32>
    %128 = arith.truncf %120 : vector<128x8xf32> to vector<128x8xbf16>
    %c2_157 = arith.constant 2 : index
    %c0_158 = arith.constant 0 : index
    %c0_159 = arith.constant 0 : index
    %129 = vector.load %arg6[%c2_157, %c0_158, %c0_159] : memref<4x128x8xbf16, #tpu.memory_space<vmem>>, vector<1x128x8xbf16>
    %130 = vector.shape_cast %129 : vector<1x128x8xbf16> to vector<128x8xbf16>
    %131 = vector.shape_cast %128 : vector<128x8xbf16> to vector<1x128x8xbf16>
    tpu.vector_store %arg6[%c2_157, %c0_158, %c0_159], %131 {strides = array<i32>} : memref<4x128x8xbf16, #tpu.memory_space<vmem>>, vector<1x128x8xbf16>,
    %c2_160 = arith.constant 2 : index
    %c0_161 = arith.constant 0 : index
    %c0_162 = arith.constant 0 : index
    %c0_163 = arith.constant 0 : index
    %132 = vector.load %arg4[%c2_160, %c0_161, %c0_162, %c0_163] : memref<4x2x8x8xf32, #tpu.memory_space<vmem>>, vector<1x1x8x8xf32>
    %133 = vector.shape_cast %132 : vector<1x1x8x8xf32> to vector<8x8xf32>
    %cst_164 = arith.constant dense<0.000000e+00> : vector<128x8xf32>
    %134 = tpu.matmul %113, %133, %cst_164 {dimension_numbers = #tpu.dot_dimension_numbers<[1], [0], [0], [1], [0, 0, 1, 1], [], []>} : vector<128x8xf32>, vector<8x8xf32>, vector<128x8xf32> -> vector<128x8xf32>
    %135 = arith.truncf %134 : vector<128x8xf32> to vector<128x8xbf16>
    %c2_165 = arith.constant 2 : index
    %c0_166 = arith.constant 0 : index
    %c0_167 = arith.constant 0 : index
    %c0_168 = arith.constant 0 : index
    %136 = vector.load %arg7[%c2_165, %c0_166, %c0_167, %c0_168] : memref<4x2x128x8xbf16, #tpu.memory_space<vmem>>, vector<1x1x128x8xbf16>
    %137 = vector.shape_cast %136 : vector<1x1x128x8xbf16> to vector<128x8xbf16>
    %138 = vector.shape_cast %135 : vector<128x8xbf16> to vector<1x1x128x8xbf16>
    tpu.vector_store %arg7[%c2_165, %c0_166, %c0_167, %c0_168], %138 {strides = array<i32>} : memref<4x2x128x8xbf16, #tpu.memory_space<vmem>>, vector<1x1x128x8xbf16>,
    %c2_169 = arith.constant 2 : index
    %c0_170 = arith.constant 0 : index
    %c0_171 = arith.constant 0 : index
    %c0_172 = arith.constant 0 : index
    %139 = vector.load %arg5[%c2_169, %c0_170, %c0_171, %c0_172] : memref<4x2x8x8xf32, #tpu.memory_space<vmem>>, vector<1x1x8x8xf32>
    %140 = vector.shape_cast %139 : vector<1x1x8x8xf32> to vector<8x8xf32>
    %cst_173 = arith.constant dense<0.000000e+00> : vector<128x8xf32>
    %141 = tpu.matmul %127, %140, %cst_173 {dimension_numbers = #tpu.dot_dimension_numbers<[1], [0], [0], [1], [0, 0, 1, 1], [], []>} : vector<128x8xf32>, vector<8x8xf32>, vector<128x8xf32> -> vector<128x8xf32>
    %142 = arith.truncf %141 : vector<128x8xf32> to vector<128x8xbf16>
    %c2_174 = arith.constant 2 : index
    %c0_175 = arith.constant 0 : index
    %c0_176 = arith.constant 0 : index
    %c0_177 = arith.constant 0 : index
    %143 = vector.load %arg8[%c2_174, %c0_175, %c0_176, %c0_177] : memref<4x2x128x8xbf16, #tpu.memory_space<vmem>>, vector<1x1x128x8xbf16>
    %144 = vector.shape_cast %143 : vector<1x1x128x8xbf16> to vector<128x8xbf16>
    %145 = vector.shape_cast %142 : vector<128x8xbf16> to vector<1x1x128x8xbf16>
    tpu.vector_store %arg8[%c2_174, %c0_175, %c0_176, %c0_177], %145 {strides = array<i32>} : memref<4x2x128x8xbf16, #tpu.memory_space<vmem>>, vector<1x1x128x8xbf16>,
    %c2_178 = arith.constant 2 : index
    %c1_179 = arith.constant 1 : index
    %c0_180 = arith.constant 0 : index
    %c0_181 = arith.constant 0 : index
    %146 = vector.load %arg4[%c2_178, %c1_179, %c0_180, %c0_181] : memref<4x2x8x8xf32, #tpu.memory_space<vmem>>, vector<1x1x8x8xf32>
    %147 = vector.shape_cast %146 : vector<1x1x8x8xf32> to vector<8x8xf32>
    %cst_182 = arith.constant dense<0.000000e+00> : vector<128x8xf32>
    %148 = tpu.matmul %113, %147, %cst_182 {dimension_numbers = #tpu.dot_dimension_numbers<[1], [0], [0], [1], [0, 0, 1, 1], [], []>} : vector<128x8xf32>, vector<8x8xf32>, vector<128x8xf32> -> vector<128x8xf32>
    %149 = arith.truncf %148 : vector<128x8xf32> to vector<128x8xbf16>
    %c2_183 = arith.constant 2 : index
    %c1_184 = arith.constant 1 : index
    %c0_185 = arith.constant 0 : index
    %c0_186 = arith.constant 0 : index
    %150 = vector.load %arg7[%c2_183, %c1_184, %c0_185, %c0_186] : memref<4x2x128x8xbf16, #tpu.memory_space<vmem>>, vector<1x1x128x8xbf16>
    %151 = vector.shape_cast %150 : vector<1x1x128x8xbf16> to vector<128x8xbf16>
    %152 = vector.shape_cast %149 : vector<128x8xbf16> to vector<1x1x128x8xbf16>
    tpu.vector_store %arg7[%c2_183, %c1_184, %c0_185, %c0_186], %152 {strides = array<i32>} : memref<4x2x128x8xbf16, #tpu.memory_space<vmem>>, vector<1x1x128x8xbf16>,
    %c2_187 = arith.constant 2 : index
    %c1_188 = arith.constant 1 : index
    %c0_189 = arith.constant 0 : index
    %c0_190 = arith.constant 0 : index
    %153 = vector.load %arg5[%c2_187, %c1_188, %c0_189, %c0_190] : memref<4x2x8x8xf32, #tpu.memory_space<vmem>>, vector<1x1x8x8xf32>
    %154 = vector.shape_cast %153 : vector<1x1x8x8xf32> to vector<8x8xf32>
    %cst_191 = arith.constant dense<0.000000e+00> : vector<128x8xf32>
    %155 = tpu.matmul %127, %154, %cst_191 {dimension_numbers = #tpu.dot_dimension_numbers<[1], [0], [0], [1], [0, 0, 1, 1], [], []>} : vector<128x8xf32>, vector<8x8xf32>, vector<128x8xf32> -> vector<128x8xf32>
    %156 = arith.truncf %155 : vector<128x8xf32> to vector<128x8xbf16>
    %c2_192 = arith.constant 2 : index
    %c1_193 = arith.constant 1 : index
    %c0_194 = arith.constant 0 : index
    %c0_195 = arith.constant 0 : index
    %157 = vector.load %arg8[%c2_192, %c1_193, %c0_194, %c0_195] : memref<4x2x128x8xbf16, #tpu.memory_space<vmem>>, vector<1x1x128x8xbf16>
    %158 = vector.shape_cast %157 : vector<1x1x128x8xbf16> to vector<128x8xbf16>
    %159 = vector.shape_cast %156 : vector<128x8xbf16> to vector<1x1x128x8xbf16>
    tpu.vector_store %arg8[%c2_192, %c1_193, %c0_194, %c0_195], %159 {strides = array<i32>} : memref<4x2x128x8xbf16, #tpu.memory_space<vmem>>, vector<1x1x128x8xbf16>,
    %c0_196 = arith.constant 0 : index
    %c3 = arith.constant 3 : index
    %c0_197 = arith.constant 0 : index
    %c0_198 = arith.constant 0 : index
    %160 = vector.load %arg2[%c0_196, %c3, %c0_197, %c0_198] : memref<3x4x32x8xf32, #tpu.memory_space<vmem>>, vector<1x1x32x8xf32>
    %161 = vector.shape_cast %160 : vector<1x1x32x8xf32> to vector<32x8xf32>
    %cst_199 = arith.constant dense<0.000000e+00> : vector<128x8xf32>
    %162 = tpu.matmul %0, %161, %cst_199 {dimension_numbers = #tpu.dot_dimension_numbers<[1], [0], [0], [1], [0, 0, 1, 1], [], []>} : vector<128x32xf32>, vector<32x8xf32>, vector<128x8xf32> -> vector<128x8xf32>
    %c0_200 = arith.constant 0 : index
    %c3_201 = arith.constant 3 : index
    %c0_202 = arith.constant 0 : index
    %c0_203 = arith.constant 0 : index
    %163 = vector.load %arg3[%c0_200, %c3_201, %c0_202, %c0_203] : memref<3x4x1x8xf32, #tpu.memory_space<vmem>>, vector<1x1x1x8xf32>
    %164 = vector.shape_cast %163 : vector<1x1x1x8xf32> to vector<1x8xf32>
    %165 = vector.broadcast %164 : vector<1x8xf32> to vector<128x8xf32>
    %166 = arith.addf %162, %165 : vector<128x8xf32>
    %c1_204 = arith.constant 1 : index
    %c3_205 = arith.constant 3 : index
    %c0_206 = arith.constant 0 : index
    %c0_207 = arith.constant 0 : index
    %167 = vector.load %arg2[%c1_204, %c3_205, %c0_206, %c0_207] : memref<3x4x32x8xf32, #tpu.memory_space<vmem>>, vector<1x1x32x8xf32>
    %168 = vector.shape_cast %167 : vector<1x1x32x8xf32> to vector<32x8xf32>
    %cst_208 = arith.constant dense<0.000000e+00> : vector<128x8xf32>
    %169 = tpu.matmul %0, %168, %cst_208 {dimension_numbers = #tpu.dot_dimension_numbers<[1], [0], [0], [1], [0, 0, 1, 1], [], []>} : vector<128x32xf32>, vector<32x8xf32>, vector<128x8xf32> -> vector<128x8xf32>
    %c1_209 = arith.constant 1 : index
    %c3_210 = arith.constant 3 : index
    %c0_211 = arith.constant 0 : index
    %c0_212 = arith.constant 0 : index
    %170 = vector.load %arg3[%c1_209, %c3_210, %c0_211, %c0_212] : memref<3x4x1x8xf32, #tpu.memory_space<vmem>>, vector<1x1x1x8xf32>
    %171 = vector.shape_cast %170 : vector<1x1x1x8xf32> to vector<1x8xf32>
    %172 = vector.broadcast %171 : vector<1x8xf32> to vector<128x8xf32>
    %173 = arith.addf %169, %172 : vector<128x8xf32>
    %c2_213 = arith.constant 2 : index
    %c3_214 = arith.constant 3 : index
    %c0_215 = arith.constant 0 : index
    %c0_216 = arith.constant 0 : index
    %174 = vector.load %arg2[%c2_213, %c3_214, %c0_215, %c0_216] : memref<3x4x32x8xf32, #tpu.memory_space<vmem>>, vector<1x1x32x8xf32>
    %175 = vector.shape_cast %174 : vector<1x1x32x8xf32> to vector<32x8xf32>
    %cst_217 = arith.constant dense<0.000000e+00> : vector<128x8xf32>
    %176 = tpu.matmul %0, %175, %cst_217 {dimension_numbers = #tpu.dot_dimension_numbers<[1], [0], [0], [1], [0, 0, 1, 1], [], []>} : vector<128x32xf32>, vector<32x8xf32>, vector<128x8xf32> -> vector<128x8xf32>
    %c2_218 = arith.constant 2 : index
    %c3_219 = arith.constant 3 : index
    %c0_220 = arith.constant 0 : index
    %c0_221 = arith.constant 0 : index
    %177 = vector.load %arg3[%c2_218, %c3_219, %c0_220, %c0_221] : memref<3x4x1x8xf32, #tpu.memory_space<vmem>>, vector<1x1x1x8xf32>
    %178 = vector.shape_cast %177 : vector<1x1x1x8xf32> to vector<1x8xf32>
    %179 = vector.broadcast %178 : vector<1x8xf32> to vector<128x8xf32>
    %180 = arith.addf %176, %179 : vector<128x8xf32>
    %181 = arith.truncf %173 : vector<128x8xf32> to vector<128x8xbf16>
    %c3_222 = arith.constant 3 : index
    %c0_223 = arith.constant 0 : index
    %c0_224 = arith.constant 0 : index
    %182 = vector.load %arg6[%c3_222, %c0_223, %c0_224] : memref<4x128x8xbf16, #tpu.memory_space<vmem>>, vector<1x128x8xbf16>
    %183 = vector.shape_cast %182 : vector<1x128x8xbf16> to vector<128x8xbf16>
    %184 = vector.shape_cast %181 : vector<128x8xbf16> to vector<1x128x8xbf16>
    tpu.vector_store %arg6[%c3_222, %c0_223, %c0_224], %184 {strides = array<i32>} : memref<4x128x8xbf16, #tpu.memory_space<vmem>>, vector<1x128x8xbf16>,
    %c3_225 = arith.constant 3 : index
    %c0_226 = arith.constant 0 : index
    %c0_227 = arith.constant 0 : index
    %c0_228 = arith.constant 0 : index
    %185 = vector.load %arg4[%c3_225, %c0_226, %c0_227, %c0_228] : memref<4x2x8x8xf32, #tpu.memory_space<vmem>>, vector<1x1x8x8xf32>
    %186 = vector.shape_cast %185 : vector<1x1x8x8xf32> to vector<8x8xf32>
    %cst_229 = arith.constant dense<0.000000e+00> : vector<128x8xf32>
    %187 = tpu.matmul %166, %186, %cst_229 {dimension_numbers = #tpu.dot_dimension_numbers<[1], [0], [0], [1], [0, 0, 1, 1], [], []>} : vector<128x8xf32>, vector<8x8xf32>, vector<128x8xf32> -> vector<128x8xf32>
    %188 = arith.truncf %187 : vector<128x8xf32> to vector<128x8xbf16>
    %c3_230 = arith.constant 3 : index
    %c0_231 = arith.constant 0 : index
    %c0_232 = arith.constant 0 : index
    %c0_233 = arith.constant 0 : index
    %189 = vector.load %arg7[%c3_230, %c0_231, %c0_232, %c0_233] : memref<4x2x128x8xbf16, #tpu.memory_space<vmem>>, vector<1x1x128x8xbf16>
    %190 = vector.shape_cast %189 : vector<1x1x128x8xbf16> to vector<128x8xbf16>
    %191 = vector.shape_cast %188 : vector<128x8xbf16> to vector<1x1x128x8xbf16>
    tpu.vector_store %arg7[%c3_230, %c0_231, %c0_232, %c0_233], %191 {strides = array<i32>} : memref<4x2x128x8xbf16, #tpu.memory_space<vmem>>, vector<1x1x128x8xbf16>,
    %c3_234 = arith.constant 3 : index
    %c0_235 = arith.constant 0 : index
    %c0_236 = arith.constant 0 : index
    %c0_237 = arith.constant 0 : index
    %192 = vector.load %arg5[%c3_234, %c0_235, %c0_236, %c0_237] : memref<4x2x8x8xf32, #tpu.memory_space<vmem>>, vector<1x1x8x8xf32>
    %193 = vector.shape_cast %192 : vector<1x1x8x8xf32> to vector<8x8xf32>
    %cst_238 = arith.constant dense<0.000000e+00> : vector<128x8xf32>
    %194 = tpu.matmul %180, %193, %cst_238 {dimension_numbers = #tpu.dot_dimension_numbers<[1], [0], [0], [1], [0, 0, 1, 1], [], []>} : vector<128x8xf32>, vector<8x8xf32>, vector<128x8xf32> -> vector<128x8xf32>
    %195 = arith.truncf %194 : vector<128x8xf32> to vector<128x8xbf16>
    %c3_239 = arith.constant 3 : index
    %c0_240 = arith.constant 0 : index
    %c0_241 = arith.constant 0 : index
    %c0_242 = arith.constant 0 : index
    %196 = vector.load %arg8[%c3_239, %c0_240, %c0_241, %c0_242] : memref<4x2x128x8xbf16, #tpu.memory_space<vmem>>, vector<1x1x128x8xbf16>
    %197 = vector.shape_cast %196 : vector<1x1x128x8xbf16> to vector<128x8xbf16>
    %198 = vector.shape_cast %195 : vector<128x8xbf16> to vector<1x1x128x8xbf16>
    tpu.vector_store %arg8[%c3_239, %c0_240, %c0_241, %c0_242], %198 {strides = array<i32>} : memref<4x2x128x8xbf16, #tpu.memory_space<vmem>>, vector<1x1x128x8xbf16>,
    %c3_243 = arith.constant 3 : index
    %c1_244 = arith.constant 1 : index
    %c0_245 = arith.constant 0 : index
    %c0_246 = arith.constant 0 : index
    %199 = vector.load %arg4[%c3_243, %c1_244, %c0_245, %c0_246] : memref<4x2x8x8xf32, #tpu.memory_space<vmem>>, vector<1x1x8x8xf32>
    %200 = vector.shape_cast %199 : vector<1x1x8x8xf32> to vector<8x8xf32>
    %cst_247 = arith.constant dense<0.000000e+00> : vector<128x8xf32>
    %201 = tpu.matmul %166, %200, %cst_247 {dimension_numbers = #tpu.dot_dimension_numbers<[1], [0], [0], [1], [0, 0, 1, 1], [], []>} : vector<128x8xf32>, vector<8x8xf32>, vector<128x8xf32> -> vector<128x8xf32>
    %202 = arith.truncf %201 : vector<128x8xf32> to vector<128x8xbf16>
    %c3_248 = arith.constant 3 : index
    %c1_249 = arith.constant 1 : index
    %c0_250 = arith.constant 0 : index
    %c0_251 = arith.constant 0 : index
    %203 = vector.load %arg7[%c3_248, %c1_249, %c0_250, %c0_251] : memref<4x2x128x8xbf16, #tpu.memory_space<vmem>>, vector<1x1x128x8xbf16>
    %204 = vector.shape_cast %203 : vector<1x1x128x8xbf16> to vector<128x8xbf16>
    %205 = vector.shape_cast %202 : vector<128x8xbf16> to vector<1x1x128x8xbf16>
    tpu.vector_store %arg7[%c3_248, %c1_249, %c0_250, %c0_251], %205 {strides = array<i32>} : memref<4x2x128x8xbf16, #tpu.memory_space<vmem>>, vector<1x1x128x8xbf16>,
    %c3_252 = arith.constant 3 : index
    %c1_253 = arith.constant 1 : index
    %c0_254 = arith.constant 0 : index
    %c0_255 = arith.constant 0 : index
    %206 = vector.load %arg5[%c3_252, %c1_253, %c0_254, %c0_255] : memref<4x2x8x8xf32, #tpu.memory_space<vmem>>, vector<1x1x8x8xf32>
    %207 = vector.shape_cast %206 : vector<1x1x8x8xf32> to vector<8x8xf32>
    %cst_256 = arith.constant dense<0.000000e+00> : vector<128x8xf32>
    %208 = tpu.matmul %180, %207, %cst_256 {dimension_numbers = #tpu.dot_dimension_numbers<[1], [0], [0], [1], [0, 0, 1, 1], [], []>} : vector<128x8xf32>, vector<8x8xf32>, vector<128x8xf32> -> vector<128x8xf32>
    %209 = arith.truncf %208 : vector<128x8xf32> to vector<128x8xbf16>
    %c3_257 = arith.constant 3 : index
    %c1_258 = arith.constant 1 : index
    %c0_259 = arith.constant 0 : index
    %c0_260 = arith.constant 0 : index
    %210 = vector.load %arg8[%c3_257, %c1_258, %c0_259, %c0_260] : memref<4x2x128x8xbf16, #tpu.memory_space<vmem>>, vector<1x1x128x8xbf16>
    %211 = vector.shape_cast %210 : vector<1x1x128x8xbf16> to vector<128x8xbf16>
    %212 = vector.shape_cast %209 : vector<128x8xbf16> to vector<1x1x128x8xbf16>
    tpu.vector_store %arg8[%c3_257, %c1_258, %c0_259, %c0_260], %212 {strides = array<i32>} : memref<4x2x128x8xbf16, #tpu.memory_space<vmem>>, vector<1x1x128x8xbf16>,
    return
  }
  func.func @transform_0(%arg0: i32) -> (i32, i32) {
    %c0_i32 = arith.constant 0 : i32
    %c0_i32_0 = arith.constant 0 : i32
    return %arg0, %c0_i32 : i32, i32
  }
  func.func @transform_1(%arg0: i32) -> (i32, i32, i32, i32) {
    %c0_i32 = arith.constant 0 : i32
    %c0_i32_0 = arith.constant 0 : i32
    %c0_i32_1 = arith.constant 0 : i32
    %c0_i32_2 = arith.constant 0 : i32
    %c0_i32_3 = arith.constant 0 : i32
    return %c0_i32, %c0_i32_0, %c0_i32_1, %c0_i32_2 : i32, i32, i32, i32
  }
  func.func @transform_2(%arg0: i32) -> (i32, i32, i32, i32) {
    %c0_i32 = arith.constant 0 : i32
    %c0_i32_0 = arith.constant 0 : i32
    %c0_i32_1 = arith.constant 0 : i32
    %c0_i32_2 = arith.constant 0 : i32
    %c0_i32_3 = arith.constant 0 : i32
    return %c0_i32, %c0_i32_0, %c0_i32_1, %c0_i32_2 : i32, i32, i32, i32
  }
  func.func @transform_3(%arg0: i32) -> (i32, i32, i32, i32) {
    %c0_i32 = arith.constant 0 : i32
    %c0_i32_0 = arith.constant 0 : i32
    %c0_i32_1 = arith.constant 0 : i32
    %c0_i32_2 = arith.constant 0 : i32
    %c0_i32_3 = arith.constant 0 : i32
    return %c0_i32, %c0_i32_0, %c0_i32_1, %c0_i32_2 : i32, i32, i32, i32
  }
  func.func @transform_4(%arg0: i32) -> (i32, i32, i32, i32) {
    %c0_i32 = arith.constant 0 : i32
    %c0_i32_0 = arith.constant 0 : i32
    %c0_i32_1 = arith.constant 0 : i32
    %c0_i32_2 = arith.constant 0 : i32
    %c0_i32_3 = arith.constant 0 : i32
    return %c0_i32, %c0_i32_0, %c0_i32_1, %c0_i32_2 : i32, i32, i32, i32
  }
  func.func @transform_5(%arg0: i32) -> (i32, i32, i32) {
    %c0_i32 = arith.constant 0 : i32
    %c0_i32_0 = arith.constant 0 : i32
    %c0_i32_1 = arith.constant 0 : i32
    return %c0_i32, %arg0, %c0_i32_0 : i32, i32, i32
  }
  func.func @transform_6(%arg0: i32) -> (i32, i32, i32, i32) {
    %c0_i32 = arith.constant 0 : i32
    %c0_i32_0 = arith.constant 0 : i32
    %c0_i32_1 = arith.constant 0 : i32
    %c0_i32_2 = arith.constant 0 : i32
    return %c0_i32, %c0_i32_0, %arg0, %c0_i32_1 : i32, i32, i32, i32
  }
  func.func @transform_7(%arg0: i32) -> (i32, i32, i32, i32) {
    %c0_i32 = arith.constant 0 : i32
    %c0_i32_0 = arith.constant 0 : i32
    %c0_i32_1 = arith.constant 0 : i32
    %c0_i32_2 = arith.constant 0 : i32
    return %c0_i32, %c0_i32_0, %arg0, %c0_i32_1 : i32, i32, i32, i32
  }
}

module attributes {stable_mosaic.version = 11 : i64} {
  func.func @_out_kernel(%arg0: i32, %arg1: memref<4x128x8xf32, #tpu.memory_space<vmem>>, %arg2: memref<4x8x32xf32, #tpu.memory_space<vmem>>, %arg3: memref<1x32xf32, #tpu.memory_space<vmem>>, %arg4: memref<128x32xf32, #tpu.memory_space<vmem>>, %arg5: memref<128x32xf32, #tpu.memory_space<vmem>>) attributes {dimension_semantics = [#tpu.dimension_semantics<parallel>], iteration_bounds = array<i64: 1>, scalar_prefetch = 0 : i64, scratch_operands = 0 : i64, tpu.core_type = #tpu.core_type<tc>, window_params = [{transform_indices = @transform_0, window_bounds = array<i64: 4, 128, 8>}, {pipeline_mode = #tpu.pipeline_mode<synchronous>, transform_indices = @transform_1, window_bounds = array<i64: 4, 8, 32>}, {pipeline_mode = #tpu.pipeline_mode<synchronous>, transform_indices = @transform_2, window_bounds = array<i64: 1, 32>}, {transform_indices = @transform_3, window_bounds = array<i64: 128, 32>}, {transform_indices = @transform_4, window_bounds = array<i64: 128, 32>}]} {
    %c0 = arith.constant 0 : index
    %c0_0 = arith.constant 0 : index
    %0 = vector.load %arg4[%c0, %c0_0] : memref<128x32xf32, #tpu.memory_space<vmem>>, vector<128x32xf32>
    %c0_1 = arith.constant 0 : index
    %c0_2 = arith.constant 0 : index
    %1 = vector.load %arg3[%c0_1, %c0_2] : memref<1x32xf32, #tpu.memory_space<vmem>>, vector<1x32xf32>
    %2 = vector.broadcast %1 : vector<1x32xf32> to vector<128x32xf32>
    %3 = arith.addf %0, %2 : vector<128x32xf32>
    %c0_3 = arith.constant 0 : index
    %c0_4 = arith.constant 0 : index
    %c0_5 = arith.constant 0 : index
    %4 = vector.load %arg1[%c0_3, %c0_4, %c0_5] : memref<4x128x8xf32, #tpu.memory_space<vmem>>, vector<1x128x8xf32>
    %5 = vector.shape_cast %4 : vector<1x128x8xf32> to vector<128x8xf32>
    %cst = arith.constant 5.000000e-01 : f32
    %6 = vector.broadcast %cst : f32 to vector<128x8xf32>
    %7 = arith.mulf %6, %5 : vector<128x8xf32>
    %cst_6 = arith.constant 0.707106769 : f32
    %8 = vector.broadcast %cst_6 : f32 to vector<128x8xf32>
    %9 = arith.mulf %5, %8 : vector<128x8xf32>
    %10 = math.erf %9 : vector<128x8xf32>
    %cst_7 = arith.constant 1.000000e+00 : f32
    %11 = vector.broadcast %cst_7 : f32 to vector<128x8xf32>
    %12 = arith.addf %11, %10 : vector<128x8xf32>
    %13 = arith.mulf %7, %12 : vector<128x8xf32>
    %c0_8 = arith.constant 0 : index
    %c0_9 = arith.constant 0 : index
    %c0_10 = arith.constant 0 : index
    %14 = vector.load %arg2[%c0_8, %c0_9, %c0_10] : memref<4x8x32xf32, #tpu.memory_space<vmem>>, vector<1x8x32xf32>
    %15 = vector.shape_cast %14 : vector<1x8x32xf32> to vector<8x32xf32>
    %cst_11 = arith.constant dense<0.000000e+00> : vector<128x32xf32>
    %16 = tpu.matmul %13, %15, %cst_11 {dimension_numbers = #tpu.dot_dimension_numbers<[1], [0], [0], [1], [0, 0, 1, 1], [], []>} : vector<128x8xf32>, vector<8x32xf32>, vector<128x32xf32> -> vector<128x32xf32>
    %17 = arith.addf %3, %16 : vector<128x32xf32>
    %c1 = arith.constant 1 : index
    %c0_12 = arith.constant 0 : index
    %c0_13 = arith.constant 0 : index
    %18 = vector.load %arg1[%c1, %c0_12, %c0_13] : memref<4x128x8xf32, #tpu.memory_space<vmem>>, vector<1x128x8xf32>
    %19 = vector.shape_cast %18 : vector<1x128x8xf32> to vector<128x8xf32>
    %cst_14 = arith.constant 5.000000e-01 : f32
    %20 = vector.broadcast %cst_14 : f32 to vector<128x8xf32>
    %21 = arith.mulf %20, %19 : vector<128x8xf32>
    %cst_15 = arith.constant 0.707106769 : f32
    %22 = vector.broadcast %cst_15 : f32 to vector<128x8xf32>
    %23 = arith.mulf %19, %22 : vector<128x8xf32>
    %24 = math.erf %23 : vector<128x8xf32>
    %cst_16 = arith.constant 1.000000e+00 : f32
    %25 = vector.broadcast %cst_16 : f32 to vector<128x8xf32>
    %26 = arith.addf %25, %24 : vector<128x8xf32>
    %27 = arith.mulf %21, %26 : vector<128x8xf32>
    %c1_17 = arith.constant 1 : index
    %c0_18 = arith.constant 0 : index
    %c0_19 = arith.constant 0 : index
    %28 = vector.load %arg2[%c1_17, %c0_18, %c0_19] : memref<4x8x32xf32, #tpu.memory_space<vmem>>, vector<1x8x32xf32>
    %29 = vector.shape_cast %28 : vector<1x8x32xf32> to vector<8x32xf32>
    %cst_20 = arith.constant dense<0.000000e+00> : vector<128x32xf32>
    %30 = tpu.matmul %27, %29, %cst_20 {dimension_numbers = #tpu.dot_dimension_numbers<[1], [0], [0], [1], [0, 0, 1, 1], [], []>} : vector<128x8xf32>, vector<8x32xf32>, vector<128x32xf32> -> vector<128x32xf32>
    %31 = arith.addf %17, %30 : vector<128x32xf32>
    %c2 = arith.constant 2 : index
    %c0_21 = arith.constant 0 : index
    %c0_22 = arith.constant 0 : index
    %32 = vector.load %arg1[%c2, %c0_21, %c0_22] : memref<4x128x8xf32, #tpu.memory_space<vmem>>, vector<1x128x8xf32>
    %33 = vector.shape_cast %32 : vector<1x128x8xf32> to vector<128x8xf32>
    %cst_23 = arith.constant 5.000000e-01 : f32
    %34 = vector.broadcast %cst_23 : f32 to vector<128x8xf32>
    %35 = arith.mulf %34, %33 : vector<128x8xf32>
    %cst_24 = arith.constant 0.707106769 : f32
    %36 = vector.broadcast %cst_24 : f32 to vector<128x8xf32>
    %37 = arith.mulf %33, %36 : vector<128x8xf32>
    %38 = math.erf %37 : vector<128x8xf32>
    %cst_25 = arith.constant 1.000000e+00 : f32
    %39 = vector.broadcast %cst_25 : f32 to vector<128x8xf32>
    %40 = arith.addf %39, %38 : vector<128x8xf32>
    %41 = arith.mulf %35, %40 : vector<128x8xf32>
    %c2_26 = arith.constant 2 : index
    %c0_27 = arith.constant 0 : index
    %c0_28 = arith.constant 0 : index
    %42 = vector.load %arg2[%c2_26, %c0_27, %c0_28] : memref<4x8x32xf32, #tpu.memory_space<vmem>>, vector<1x8x32xf32>
    %43 = vector.shape_cast %42 : vector<1x8x32xf32> to vector<8x32xf32>
    %cst_29 = arith.constant dense<0.000000e+00> : vector<128x32xf32>
    %44 = tpu.matmul %41, %43, %cst_29 {dimension_numbers = #tpu.dot_dimension_numbers<[1], [0], [0], [1], [0, 0, 1, 1], [], []>} : vector<128x8xf32>, vector<8x32xf32>, vector<128x32xf32> -> vector<128x32xf32>
    %45 = arith.addf %31, %44 : vector<128x32xf32>
    %c3 = arith.constant 3 : index
    %c0_30 = arith.constant 0 : index
    %c0_31 = arith.constant 0 : index
    %46 = vector.load %arg1[%c3, %c0_30, %c0_31] : memref<4x128x8xf32, #tpu.memory_space<vmem>>, vector<1x128x8xf32>
    %47 = vector.shape_cast %46 : vector<1x128x8xf32> to vector<128x8xf32>
    %cst_32 = arith.constant 5.000000e-01 : f32
    %48 = vector.broadcast %cst_32 : f32 to vector<128x8xf32>
    %49 = arith.mulf %48, %47 : vector<128x8xf32>
    %cst_33 = arith.constant 0.707106769 : f32
    %50 = vector.broadcast %cst_33 : f32 to vector<128x8xf32>
    %51 = arith.mulf %47, %50 : vector<128x8xf32>
    %52 = math.erf %51 : vector<128x8xf32>
    %cst_34 = arith.constant 1.000000e+00 : f32
    %53 = vector.broadcast %cst_34 : f32 to vector<128x8xf32>
    %54 = arith.addf %53, %52 : vector<128x8xf32>
    %55 = arith.mulf %49, %54 : vector<128x8xf32>
    %c3_35 = arith.constant 3 : index
    %c0_36 = arith.constant 0 : index
    %c0_37 = arith.constant 0 : index
    %56 = vector.load %arg2[%c3_35, %c0_36, %c0_37] : memref<4x8x32xf32, #tpu.memory_space<vmem>>, vector<1x8x32xf32>
    %57 = vector.shape_cast %56 : vector<1x8x32xf32> to vector<8x32xf32>
    %cst_38 = arith.constant dense<0.000000e+00> : vector<128x32xf32>
    %58 = tpu.matmul %55, %57, %cst_38 {dimension_numbers = #tpu.dot_dimension_numbers<[1], [0], [0], [1], [0, 0, 1, 1], [], []>} : vector<128x8xf32>, vector<8x32xf32>, vector<128x32xf32> -> vector<128x32xf32>
    %59 = arith.addf %45, %58 : vector<128x32xf32>
    %c0_39 = arith.constant 0 : index
    %c0_40 = arith.constant 0 : index
    %60 = vector.load %arg5[%c0_39, %c0_40] : memref<128x32xf32, #tpu.memory_space<vmem>>, vector<128x32xf32>
    tpu.vector_store %arg5[%c0_39, %c0_40], %59 {strides = array<i32>} : memref<128x32xf32, #tpu.memory_space<vmem>>, vector<128x32xf32>,
    return
  }
  func.func @transform_0(%arg0: i32) -> (i32, i32, i32) {
    %c0_i32 = arith.constant 0 : i32
    %c0_i32_0 = arith.constant 0 : i32
    %c0_i32_1 = arith.constant 0 : i32
    return %c0_i32, %arg0, %c0_i32_0 : i32, i32, i32
  }
  func.func @transform_1(%arg0: i32) -> (i32, i32, i32) {
    %c0_i32 = arith.constant 0 : i32
    %c0_i32_0 = arith.constant 0 : i32
    %c0_i32_1 = arith.constant 0 : i32
    %c0_i32_2 = arith.constant 0 : i32
    return %c0_i32, %c0_i32_0, %c0_i32_1 : i32, i32, i32
  }
  func.func @transform_2(%arg0: i32) -> (i32, i32) {
    %c0_i32 = arith.constant 0 : i32
    %c0_i32_0 = arith.constant 0 : i32
    %c0_i32_1 = arith.constant 0 : i32
    return %c0_i32, %c0_i32_0 : i32, i32
  }
  func.func @transform_3(%arg0: i32) -> (i32, i32) {
    %c0_i32 = arith.constant 0 : i32
    %c0_i32_0 = arith.constant 0 : i32
    return %arg0, %c0_i32 : i32, i32
  }
  func.func @transform_4(%arg0: i32) -> (i32, i32) {
    %c0_i32 = arith.constant 0 : i32
    %c0_i32_0 = arith.constant 0 : i32
    return %arg0, %c0_i32 : i32, i32
  }
}

</mosaic_0001>

<bundles_post_ra>
// kernel: hgt_layer_forward.5
= control target key start
LH: loop header
LB: loop body
LE: loop exit
PB: predicated region body
PF: predicated region fallthrough
CT: control target
= control target key end

     0   :  { %vm153_vm0 = vcmask 64512   ;;  %vm1287_vm1 = vcmask 261120   ;;  %s2448_s1 = inlined_call_operand.vmem [shape: f32[4,8,32], index: 1, kind: input, shape index: {}]   ;;  %s2449_s0 = inlined_call_operand.vmem [shape: f32[4,128,8], index: 0, kind: input, shape index: {}]   ;;  %s2450_s2 = inlined_call_operand.vmem [shape: f32[1,32], index: 2, kind: input, shape index: {}]   ;;  %s2451_s3 = inlined_call_operand.vmem [shape: f32[128,32], index: 3, kind: input, shape index: {}]   ;;  %s2452_s4 = inlined_call_operand.vmem [shape: f32[128,32], index: 4, kind: output, shape index: {}]  }
   0x1   :  { %v152_v0 = vld [vmem:[%s2448_s1] sm:$0xff]  ;;  %v1374_v1 = vld [vmem:[%s2448_s1 + $0x10] sm:$0xff]  ;;  %v1825_v4 = vld [vmem:[%s2448_s1 + $0x8] sm:$0xff] }
   0x2   :  { %v56_v2 = vld [vmem:[%s2449_s0] sm:$0xff]  ;;  %1492 = vmatprep.subr.mxu1 %v152_v0  ;;  %1544 = vmatprep.subr.mxu0 %v1374_v1  ;;  %v57_v6 = vld [vmem:[%s2449_s0 + $0x8] sm:$0xff]  ;;  %v1840_v10 = vld [vmem:[%s2448_s1 + $0x18] sm:$0xff] }
   0x3   :  { %v88_v3 = vmul.f32 0.70710677, %v56_v2  ;;  %v1358_v5 = vld [vmem:[%s2449_s0 + $0x100] sm:$0xff]  ;;  %1493 = vmatpush3.msra.mxu1 %v152_v0  ;;  %1545 = vmatpush3.msra.mxu0 %v1374_v1  ;;  %v89_v8 = vmul.f32 0.70710677, %v57_v6  ;;  %v1359_v9 = vld [vmem:[%s2449_s0 + $0x108] sm:$0xff] }
   0x4   :  { %v704_v7 = vmul.f32 0.70710677, %v1358_v5  ;;  %1518 = vmatprep.subr.mxu1 %v1825_v4  ;;  %v58_v11 = vld [vmem:[%s2449_s0 + $0x10] sm:$0xff]  ;;  %v705_v12 = vmul.f32 0.70710677, %v1359_v9  ;;  %1570 = vmatprep.subr.mxu0 %v1840_v10  ;;  %v59_v14 = vld [vmem:[%s2449_s0 + $0x18] sm:$0xff] }
   0x5   :  { %1660 = verf.f32 %v88_v3  ;;  %v1360_v13 = vld [vmem:[%s2449_s0 + $0x110] sm:$0xff]  ;;  %v90_v15 = vmul.f32 0.70710677, %v58_v11  ;;  %v1361_v17 = vld [vmem:[%s2449_s0 + $0x118] sm:$0xff]  ;;  %v72_v18 = vmul.f32 0.5, %v56_v2  ;;  %v60_v20 = vld [vmem:[%s2449_s0 + $0x20] sm:$0xff] }
   0x6   :  { %1662 = verf.f32 %v704_v7  ;;  %v706_v16 = vmul.f32 0.70710677, %v1360_v13  ;;  %v91_v19 = vmul.f32 0.70710677, %v59_v14  ;;  %v1362_v21 = vld [vmem:[%s2449_s0 + $0x120] sm:$0xff]  ;;  %v688_v22 = vmul.f32 0.5, %v1358_v5 }
   0x7   :  { %1664 = verf.f32 %v89_v8  ;;  %v707_v23 = vmul.f32 0.70710677, %v1361_v17  ;;  %v92_v24 = vmul.f32 0.70710677, %v60_v20  ;;  %v61_v25 = vld [vmem:[%s2449_s0 + $0x28] sm:$0xff]  ;;  %v73_v26 = vmul.f32 0.5, %v57_v6 }
   0x8   :  { %1666 = verf.f32 %v705_v12  ;;  %v1864_v27 = vmul.f32 0.5, %v1359_v9  ;;  %v708_v28 = vmul.f32 0.70710677, %v1362_v21  ;;  %v1363_v29 = vld [vmem:[%s2449_s0 + $0x128] sm:$0xff]  ;;  %v62_v30 = vld [vmem:[%s2449_s0 + $0x30] sm:$0xff]  ;;  %v1872_v31 = vmul.f32 0.5, %v58_v11 }
   0x9   :  { %1668 = verf.f32 %v90_v15  ;;  %v1874_v32 = vmul.f32 0.5, %v1360_v13  ;;  %v93_v33 = vmul.f32 0.70710677, %v61_v25  ;;  %v1364_v34 = vld [vmem:[%s2449_s0 + $0x130] sm:$0xff]  ;;  %v1879_v35 = vmul.f32 0.5, %v59_v14  ;;  %v63_v38 = vld [vmem:[%s2449_s0 + $0x38] sm:$0xff] }
   0xa   :  { %1670 = verf.f32 %v706_v16  ;;  %v1881_v36 = vmul.f32 0.5, %v1361_v17  ;;  %v709_v37 = vmul.f32 0.70710677, %v1363_v29  ;;  %v1886_v39 = vmul.f32 0.5, %v60_v20  ;;  %v1365_v42 = vld [vmem:[%s2449_s0 + $0x138] sm:$0xff]  ;;  %v64_v46 = vld [vmem:[%s2449_s0 + $0x40] sm:$0xff] }
   0xb   :  { %1672 = verf.f32 %v91_v19  ;;  %v1888_v40 = vmul.f32 0.5, %v1362_v21  ;;  %v94_v41 = vmul.f32 0.70710677, %v62_v30  ;;  %v1893_v43 = vmul.f32 0.5, %v61_v25  ;;  %v1907_v51 = vld [vmem:[%s2449_s0 + $0x140] sm:$0xff]  ;;  %v1914_v56 = vld [vmem:[%s2449_s0 + $0x48] sm:$0xff] }
   0xc   :  { %1674 = verf.f32 %v707_v23  ;;  %v1895_v44 = vmul.f32 0.5, %v1363_v29  ;;  %v710_v45 = vmul.f32 0.70710677, %v1364_v34  ;;  %v1900_v48 = vmul.f32 0.5, %v62_v30  ;;  %v1921_v61 = vld [vmem:[%s2449_s0 + $0x148] sm:$0xff]  ;;  %v1927_v2 = vld [vmem:[%s2449_s0 + $0x50] sm:$0xff] }
   0xd   :  { %1676 = verf.f32 %v92_v24  ;;  %v1902_v49 = vmul.f32 0.5, %v1364_v34  ;;  %v95_v50 = vmul.f32 0.70710677, %v63_v38  ;;  %v1909_v54 = vmul.f32 0.5, %v63_v38  ;;  %v1933_v8 = vld [vmem:[%s2449_s0 + $0x150] sm:$0xff]  ;;  %v1940_v14 = vld [vmem:[%s2449_s0 + $0x58] sm:$0xff] }
   0xe   :  { %1678 = verf.f32 %v708_v28  ;;  %v711_v55 = vmul.f32 0.70710677, %v1365_v42  ;;  %v1916_v59 = vmul.f32 0.5, %v1365_v42  ;;  %v96_v60 = vmul.f32 0.70710677, %v64_v46  ;;  %v1951_v23 = vld [vmem:[%s2449_s0 + $0x158] sm:$0xff] }
   0xf   :  { %v1661_v47 = vpop.eup %1660  ;;  %1680 = verf.f32 %v93_v33  ;;  %v712_v1 = vmul.f32 0.70710677, %v1907_v51  ;;  %v97_v7 = vmul.f32 0.70710677, %v1914_v56  ;;  %v713_v13 = vmul.f32 0.70710677, %v1921_v61 }
  0x10   :  { %v1663_v52 = vpop.eup %1662  ;;  %v120_v53 = vadd.f32 1.0, %v1661_v47  ;;  %1682 = verf.f32 %v709_v37  ;;  %v1976_v42 = vld [vmem:[%s2449_s0 + $0x160] sm:$0xff] }
  0x11   :  { %v1665_v57 = vpop.eup %1664  ;;  %v736_v58 = vadd.f32 1.0, %v1663_v52  ;;  %1684 = verf.f32 %v94_v41  ;;  %v696_v41 = vmul.f32 0.5, %v1907_v51 }
  0x12   :  { %v1667_v62 = vpop.eup %1666  ;;  %v136_v63 = vmul.f32 %v120_v53, %v72_v18  ;;  %v121_v0 = vadd.f32 1.0, %v1665_v57  ;;  %1686 = verf.f32 %v710_v45  ;;  %v98_v18 = vmul.f32 0.70710677, %v1927_v2 }
  0x13   :  { %v1669_v3 = vpop.eup %1668  ;;  %v752_v5 = vmul.f32 %v736_v58, %v688_v22  ;;  %v737_v6 = vadd.f32 1.0, %v1667_v62  ;;  %1688 = verf.f32 %v95_v50  ;;  %v714_v22 = vmul.f32 0.70710677, %v1933_v8 }
  0x14   :  { %v1671_v9 = vpop.eup %1670  ;;  %1494 = vmatprep.mubr.msk.f32.mxu1 %vm153_vm0, %v136_v63  ;;  %v137_v11 = vmul.f32 %v121_v0, %v73_v26  ;;  %v122_v12 = vadd.f32 1.0, %v1669_v3  ;;  %1690 = verf.f32 %v711_v55  ;;  %v81_v53 = vmul.f32 0.5, %v1914_v56 }
  0x15   :  { %v1673_v15 = vpop.eup %1672  ;;  %1546 = vmatprep.mubr.msk.f32.mxu0 %vm153_vm0, %v752_v5  ;;  %v753_v16 = vmul.f32 %v737_v6, %v1864_v27  ;;  %v738_v17 = vadd.f32 1.0, %v1671_v9  ;;  %1692 = verf.f32 %v96_v60  ;;  %v99_v27 = vmul.f32 0.70710677, %v1940_v14  ;;  %v1995_v60 = vld [vmem:[%s2449_s0 + $0x168] sm:$0xff] }
  0x16   :  { %v1675_v19 = vpop.eup %1674  ;;  %1495 = vmatmul.mubr.msk.f32.vlgmr.msra.gmra.mrb[0].mxu1 %vm153_vm0, %v137_v11  ;;  %v138_v20 = vmul.f32 %v122_v12, %v1872_v31  ;;  %v123_v21 = vadd.f32 1.0, %v1673_v15  ;;  %1694 = verf.f32 %v712_v1  ;;  %v1960_v31 = vmul.f32 0.5, %v64_v46  ;;  %v2015_v11 = vld [vmem:[%s2449_s0 + $0x170] sm:$0xff] }
  0x17   :  { %v1677_v24 = vpop.eup %1676  ;;  %1519 = vmatpush3.msra.mxu1 %v1825_v4  ;;  %1547 = vmatmul.mubr.msk.f32.vlgmr.msra.gmra.mrb[0].mxu0 %vm153_vm0, %v753_v16  ;;  %v754_v25 = vmul.f32 %v738_v17, %v1874_v32  ;;  %v739_v26 = vadd.f32 1.0, %v1675_v19  ;;  %1696 = verf.f32 %v97_v7  ;;  %v1965_v4 = vld [vmem:[%s2449_s0 + $0x60] sm:$0xff]  ;;  %v716_v58 = vmul.f32 0.70710677, %v1976_v42 }
  0x18   :  { %v1679_v28 = vpop.eup %1678  ;;  %1571 = vmatpush3.msra.mxu0 %v1840_v10  ;;  %1497 = vmatprep.mubr.msk.f32.mxu1 %vm153_vm0, %v138_v20  ;;  %v139_v29 = vmul.f32 %v123_v21, %v1879_v35  ;;  %v124_v30 = vadd.f32 1.0, %v1677_v24  ;;  %1698 = verf.f32 %v713_v13  ;;  %v715_v10 = vmul.f32 0.70710677, %v1951_v23 }
  0x19   :  { %v1681_v32 = vpop.eup %1680  ;;  %1549 = vmatprep.mubr.msk.f32.mxu0 %vm153_vm0, %v754_v25  ;;  %v755_v33 = vmul.f32 %v739_v26, %v1881_v36  ;;  %v740_v34 = vadd.f32 1.0, %v1679_v28  ;;  %1700 = verf.f32 %v98_v18  ;;  %v100_v47 = vmul.f32 0.70710677, %v1965_v4  ;;  %v2042_v28 = vld [vmem:[%s2449_s0 + $0x80] sm:$0xff] }
  0x1a   :  { %v1683_v37 = vpop.eup %1682  ;;  %1498 = vmatmul.mubr.msk.f32.gmra.mrb[2].mxu1 %vm153_vm0, %v139_v29  ;;  %v140_v35 = vmul.f32 %v124_v30, %v1886_v39  ;;  %v125_v38 = vadd.f32 1.0, %v1681_v32  ;;  %1702 = verf.f32 %v714_v22  ;;  %v1984_v39 = vld [vmem:[%s2449_s0 + $0x68] sm:$0xff]  ;;  %v697_v63 = vmul.f32 0.5, %v1921_v61  ;;  %v2034_v22 = vld [vmem:[%s2449_s0 + $0x178] sm:$0xff] }
  0x1b   :  { %v1685_v45 = vpop.eup %1684  ;;  %1550 = vmatmul.mubr.msk.f32.gmra.mrb[2].mxu0 %vm153_vm0, %v755_v33  ;;  %v756_v36 = vmul.f32 %v740_v34, %v1888_v40  ;;  %v741_v46 = vadd.f32 1.0, %v1683_v37  ;;  %1704 = verf.f32 %v99_v27  ;;  %v101_v0 = vmul.f32 0.70710677, %v1984_v39  ;;  %v2051_v37 = vld [vmem:[%s2449_s0 + $0x180] sm:$0xff] }
  0x1c   :  { %v1687_v50 = vpop.eup %1686  ;;  %1500 = vmatprep.mubr.msk.f32.mxu1 %vm153_vm0, %v140_v35  ;;  %v141_v51 = vmul.f32 %v125_v38, %v1893_v43  ;;  %v126_v52 = vadd.f32 1.0, %v1685_v45  ;;  %1706 = verf.f32 %v715_v10  ;;  %v82_v6 = vmul.f32 0.5, %v1927_v2  ;;  %v2058_v45 = vld [vmem:[%s2449_s0 + $0x88] sm:$0xff] }
  0x1d   :  { %v1689_v55 = vpop.eup %1688  ;;  %1552 = vmatprep.mubr.msk.f32.mxu0 %vm153_vm0, %v756_v36  ;;  %v757_v40 = vmul.f32 %v741_v46, %v1895_v44  ;;  %v742_v57 = vadd.f32 1.0, %v1687_v50  ;;  %1708 = verf.f32 %v100_v47  ;;  %v2004_v44 = vld [vmem:[%s2449_s0 + $0x70] sm:$0xff]  ;;  %v717_v9 = vmul.f32 0.70710677, %v1995_v60  ;;  %v2065_v50 = vld [vmem:[%s2449_s0 + $0x188] sm:$0xff] }
  0x1e   :  { %v1691_v62 = vpop.eup %1690  ;;  %1501 = vmatmul.mubr.msk.f32.gmra.mrb[4].mxu1 %vm153_vm0, %v141_v51  ;;  %v142_v43 = vmul.f32 %v126_v52, %v1900_v48  ;;  %v127_v56 = vadd.f32 1.0, %v1689_v55  ;;  %1710 = verf.f32 %v716_v58  ;;  %v698_v13 = vmul.f32 0.5, %v1933_v8 }
  0x1f   :  { %v1693_v1 = vpop.eup %1692  ;;  %1553 = vmatmul.mubr.msk.f32.gmra.mrb[4].mxu0 %vm153_vm0, %v757_v40  ;;  %v758_v3 = vmul.f32 %v742_v57, %v1902_v49  ;;  %v743_v5 = vadd.f32 1.0, %v1691_v62  ;;  %1712 = verf.f32 %v101_v0  ;;  %v102_v15 = vmul.f32 0.70710677, %v2004_v44  ;;  %v2073_v40 = vld [vmem:[%s2449_s0 + $0x90] sm:$0xff] }
  0x20   :  { %v1695_v48 = vpop.eup %1694  ;;  %1503 = vmatprep.mubr.msk.f32.mxu1 %vm153_vm0, %v142_v43  ;;  %v143_v61 = vmul.f32 %v127_v56, %v1909_v54  ;;  %v128_v7 = vadd.f32 1.0, %v1693_v1  ;;  %v2024_v54 = vld [vmem:[%s2449_s0 + $0x78] sm:$0xff]  ;;  %v83_v19 = vmul.f32 0.5, %v1940_v14  ;;  %1714 = verf.f32 %v717_v9 }
  0x21   :  { %v1697_v12 = vpop.eup %1696  ;;  %1555 = vmatprep.mubr.msk.f32.mxu0 %vm153_vm0, %v758_v3  ;;  %v759_v49 = vmul.f32 %v743_v5, %v1916_v59  ;;  %v744_v2 = vadd.f32 1.0, %v1695_v48  ;;  %1716 = verf.f32 %v102_v15  ;;  %v718_v21 = vmul.f32 0.70710677, %v2015_v11  ;;  %v2089_v1 = vld [vmem:[%s2449_s0 + $0x98] sm:$0xff] }
  0x22   :  { %v1699_v16 = vpop.eup %1698  ;;  %1504 = vmatmul.mubr.msk.f32.gmra.mrb[6].mxu1 %vm153_vm0, %v143_v61  ;;  %v144_v17 = vmul.f32 %v128_v7, %v1960_v31  ;;  %v129_v18 = vadd.f32 1.0, %v1697_v12  ;;  %v699_v14 = vmul.f32 0.5, %v1951_v23  ;;  %v103_v27 = vmul.f32 0.70710677, %v2024_v54 }
  0x23   :  { %v1701_v59 = vpop.eup %1700  ;;  %1556 = vmatmul.mubr.msk.f32.gmra.mrb[6].mxu0 %vm153_vm0, %v759_v49  ;;  %v760_v8 = vmul.f32 %v744_v2, %v696_v41  ;;  %v745_v20 = vadd.f32 1.0, %v1699_v16  ;;  %v84_v32 = vmul.f32 0.5, %v1965_v4  ;;  %1718 = verf.f32 %v718_v21  ;;  %v2106_v2 = vld [vmem:[%s2449_s0 + $0xa0] sm:$0xff] }
  0x24   :  { %v1703_v24 = vpop.eup %1702  ;;  %1506 = vmatprep.mubr.msk.f32.mxu1 %vm153_vm0, %v144_v17  ;;  %v145_v25 = vmul.f32 %v129_v18, %v81_v53  ;;  %v130_v26 = vadd.f32 1.0, %v1701_v59  ;;  %1720 = verf.f32 %v103_v27  ;;  %v719_v10 = vmul.f32 0.70710677, %v2034_v22  ;;  %v2119_v18 = vld [vmem:[%s2449_s0 + $0xa8] sm:$0xff] }
  0x25   :  { %v1705_v29 = vpop.eup %1704  ;;  %1558 = vmatprep.mubr.msk.f32.mxu0 %vm153_vm0, %v760_v8  ;;  %v761_v30 = vmul.f32 %v745_v20, %v697_v63  ;;  %v746_v31 = vadd.f32 1.0, %v1703_v24  ;;  %v396_v4 = vmul.f32 0.70710677, %v2042_v28  ;;  %v700_v47 = vmul.f32 0.5, %v1976_v42 }
  0x26   :  { %v1707_v33 = vpop.eup %1706  ;;  %1507 = vmatmul.mubr.msk.f32.gmra.mrb[8].mxu1 %vm153_vm0, %v145_v25  ;;  %v146_v34 = vmul.f32 %v130_v26, %v82_v6  ;;  %v131_v23 = vadd.f32 1.0, %v1705_v29  ;;  %1722 = verf.f32 %v719_v10  ;;  %v85_v53 = vmul.f32 0.5, %v1984_v39  ;;  %v2081_v39 = vld [vmem:[%s2449_s0 + $0x190] sm:$0xff]  ;;  %v2128_v25 = vld [vmem:[%s2449_s0 + $0x1a8] sm:$0xff] }
  0x27   :  { %v1709_v35 = vpop.eup %1708  ;;  %1559 = vmatmul.mubr.msk.f32.gmra.mrb[8].mxu0 %vm153_vm0, %v761_v30  ;;  %v762_v38 = vmul.f32 %v746_v31, %v698_v13  ;;  %v747_v41 = vadd.f32 1.0, %v1707_v33  ;;  %1724 = verf.f32 %v396_v4  ;;  %v1012_v55 = vmul.f32 0.70710677, %v2051_v37  ;;  %v2137_v30 = vld [vmem:[%s2449_s0 + $0xb0] sm:$0xff] }
  0x28   :  { %1509 = vmatprep.mubr.msk.f32.mxu1 %vm153_vm0, %v146_v34  ;;  %v147_v36 = vmul.f32 %v131_v23, %v83_v19  ;;  %v132_v46 = vadd.f32 1.0, %v1709_v35  ;;  %v1711_v51 = vpop.eup %1710  ;;  %v701_v62 = vmul.f32 0.5, %v1995_v60  ;;  %v397_v43 = vmul.f32 0.70710677, %v2058_v45  ;;  %v2143_v23 = vld [vmem:[%s2449_s0 + $0x1b0] sm:$0xff] }
  0x29   :  { %1561 = vmatprep.mubr.msk.f32.mxu0 %vm153_vm0, %v762_v38  ;;  %v763_v52 = vmul.f32 %v747_v41, %v699_v14  ;;  %v1713_v42 = vpop.eup %1712  ;;  %v748_v58 = vadd.f32 1.0, %v1711_v51  ;;  %v86_v63 = vmul.f32 0.5, %v2004_v44  ;;  %1726 = verf.f32 %v1012_v55  ;;  %v2097_v44 = vld [vmem:[%s2449_s0 + $0x198] sm:$0xff] }
  0x2a   :  { %1510 = vmatmul.mubr.msk.f32.gmra.mrb[10].mxu1 %vm153_vm0, %v147_v36  ;;  %v148_v57 = vmul.f32 %v132_v46, %v84_v32  ;;  %v133_v56 = vadd.f32 1.0, %v1713_v42  ;;  %v1013_v0 = vmul.f32 0.70710677, %v2065_v50  ;;  %v1715_v60 = vpop.eup %1714  ;;  %v702_v5 = vmul.f32 0.5, %v2015_v11  ;;  %v2151_v38 = vld [vmem:[%s2449_s0 + $0xb8] sm:$0xff] }
  0x2b   :  { %1562 = vmatmul.mubr.msk.f32.gmra.mrb[10].mxu0 %vm153_vm0, %v763_v52  ;;  %v764_v3 = vmul.f32 %v748_v58, %v700_v47  ;;  %1728 = verf.f32 %v397_v43  ;;  %v398_v6 = vmul.f32 0.70710677, %v2073_v40  ;;  %v1717_v48 = vpop.eup %1716  ;;  %v749_v7 = vadd.f32 1.0, %v1715_v60  ;;  %v2160_v52 = vld [vmem:[%s2449_s0 + $0x1b8] sm:$0xff]  ;;  %v2176_v60 = vld [vmem:[%s2449_s0 + $0x1c0] sm:$0xff] }
  0x2c   :  { %1512 = vmatprep.mubr.msk.f32.mxu1 %vm153_vm0, %v148_v57  ;;  %v149_v61 = vmul.f32 %v133_v56, %v85_v53  ;;  %1730 = verf.f32 %v1013_v0  ;;  %v1014_v9 = vmul.f32 0.70710677, %v2081_v39  ;;  %v134_v12 = vadd.f32 1.0, %v1717_v48  ;;  %v2168_v57 = vld [vmem:[%s2449_s0 + $0xc0] sm:$0xff] }
  0x2d   :  { %1564 = vmatprep.mubr.msk.f32.mxu0 %vm153_vm0, %v764_v3  ;;  %v87_v49 = vmul.f32 0.5, %v2024_v54  ;;  %1732 = verf.f32 %v398_v6  ;;  %v399_v11 = vmul.f32 0.70710677, %v2089_v1  ;;  %v1719_v13 = vpop.eup %1718  ;;  %v765_v15 = vmul.f32 %v749_v7, %v701_v62  ;;  %v2114_v54 = vld [vmem:[%s2449_s0 + $0x1a0] sm:$0xff] }
  0x2e   :  { %1513 = vmatmul.mubr.msk.f32.gmra.mrb[12].mxu1 %vm153_vm0, %v149_v61  ;;  %v703_v16 = vmul.f32 0.5, %v2034_v22  ;;  %1734 = verf.f32 %v1014_v9  ;;  %v1015_v17 = vmul.f32 0.70710677, %v2097_v44  ;;  %v1721_v19 = vpop.eup %1720  ;;  %v150_v59 = vmul.f32 %v134_v12, %v86_v63  ;;  %v2184_v61 = vld [vmem:[%s2449_s0 + $0xc8] sm:$0xff] }
  0x2f   :  { %v750_v8 = vadd.f32 1.0, %v1719_v13  ;;  %v380_v20 = vmul.f32 0.5, %v2042_v28  ;;  %1736 = verf.f32 %v399_v11  ;;  %1565 = vmatmul.mubr.msk.f32.gmra.mrb[12].mxu0 %vm153_vm0, %v765_v15  ;;  %v135_v21 = vadd.f32 1.0, %v1721_v19  ;;  %v2191_v11 = vld [vmem:[%s2449_s0 + $0x1c8] sm:$0xff] }
  0x30   :  { %v996_v22 = vmul.f32 0.5, %v2051_v37  ;;  %1738 = verf.f32 %v1015_v17  ;;  %v400_v24 = vmul.f32 0.70710677, %v2106_v2  ;;  %v1723_v26 = vpop.eup %1722  ;;  %1515 = vmatprep.mubr.msk.f32.mxu1 %vm153_vm0, %v150_v59  ;;  %v381_v27 = vmul.f32 0.5, %v2058_v45 }
  0x31   :  { %v766_v14 = vmul.f32 %v750_v8, %v702_v5  ;;  %v1016_v28 = vmul.f32 0.70710677, %v2114_v54  ;;  %v401_v29 = vmul.f32 0.70710677, %v2119_v18  ;;  %v1725_v31 = vpop.eup %1724  ;;  %v151_v32 = vmul.f32 %v135_v21, %v87_v49 }
  0x32   :  { %v751_v33 = vadd.f32 1.0, %v1723_v26  ;;  %v997_v34 = vmul.f32 0.5, %v2065_v50  ;;  %1740 = verf.f32 %v400_v24  ;;  %v428_v10 = vadd.f32 1.0, %v1725_v31  ;;  %v2209_v26 = vld [vmem:[%s2449_s0 + $0x1d0] sm:$0xff] }
  0x33   :  { %1567 = vmatprep.mubr.msk.f32.mxu0 %vm153_vm0, %v766_v14  ;;  %v382_v37 = vmul.f32 0.5, %v2073_v40  ;;  %1742 = verf.f32 %v1016_v28  ;;  %v1017_v35 = vmul.f32 0.70710677, %v2128_v25  ;;  %v1727_v41 = vpop.eup %1726  ;;  %1516 = vmatmul.mubr.msk.f32.gmra.mrb[14].mxu1 %vm153_vm0, %v151_v32  ;;  %v998_v45 = vmul.f32 0.5, %v2081_v39  ;;  %v2217_v28 = vld [vmem:[%s2449_s0 + $0xd8] sm:$0xff] }
  0x34   :  { %v767_v4 = vmul.f32 %v751_v33, %v703_v16  ;;  %1744 = verf.f32 %v401_v29  ;;  %v402_v36 = vmul.f32 0.70710677, %v2137_v30  ;;  %v444_v47 = vmul.f32 %v428_v10, %v380_v20  ;;  %v2198_v16 = vld [vmem:[%s2449_s0 + $0xd0] sm:$0xff] }
  0x35   :  { %v1729_v46 = vpop.eup %1728  ;;  %v1044_v50 = vadd.f32 1.0, %v1727_v41  ;;  %1746 = verf.f32 %v1017_v35  ;;  %v1018_v51 = vmul.f32 0.70710677, %v2143_v23  ;;  %v383_v40 = vmul.f32 0.5, %v2089_v1  ;;  %v2225_v35 = vld [vmem:[%s2449_s0 + $0x1d8] sm:$0xff] }
  0x36   :  { %v1731_v53 = vpop.eup %1730  ;;  %1568 = vmatmul.mubr.msk.f32.gmra.mrb[14].mxu0 %vm153_vm0, %v767_v4  ;;  %v429_v55 = vadd.f32 1.0, %v1729_v46  ;;  %1748 = verf.f32 %v402_v36  ;;  %v403_v42 = vmul.f32 0.70710677, %v2151_v38  ;;  %1520 = vmatprep.mubr.msk.f32.mxu1 %vm153_vm0, %v444_v47  ;;  %v999_v39 = vmul.f32 0.5, %v2097_v44  ;;  %v2233_v46 = vld [vmem:[%s2449_s0 + $0xe0] sm:$0xff] }
  0x37   :  { %v1733_v58 = vpop.eup %1732  ;;  %v1060_v62 = vmul.f32 %v1044_v50, %v996_v22  ;;  %v1045_v43 = vadd.f32 1.0, %v1731_v53  ;;  %1750 = verf.f32 %v1018_v51  ;;  %v1019_v1 = vmul.f32 0.70710677, %v2160_v52 }
  0x38   :  { %v1735_v56 = vpop.eup %1734  ;;  %v445_v63 = vmul.f32 %v429_v55, %v381_v27  ;;  %v430_v0 = vadd.f32 1.0, %v1733_v58  ;;  %1752 = verf.f32 %v403_v42  ;;  %v384_v48 = vmul.f32 0.5, %v2106_v2  ;;  %v2240_v55 = vld [vmem:[%s2449_s0 + $0x1e0] sm:$0xff]  ;;  %v2247_v58 = vld [vmem:[%s2449_s0 + $0xe8] sm:$0xff] }
  0x39   :  { %v1737_v3 = vpop.eup %1736  ;;  %1572 = vmatprep.mubr.msk.f32.mxu0 %vm153_vm0, %v1060_v62  ;;  %v1061_v5 = vmul.f32 %v1045_v43, %v997_v34  ;;  %v1046_v6 = vadd.f32 1.0, %v1735_v56  ;;  %v404_v44 = vmul.f32 0.70710677, %v2168_v57  ;;  %v1000_v49 = vmul.f32 0.5, %v2114_v54  ;;  %v2255_v56 = vld [vmem:[%s2449_s0 + $0x1e8] sm:$0xff] }
  0x3a   :  { %v1739_v7 = vpop.eup %1738  ;;  %1521 = vmatmul.mubr.msk.f32.vlgmr.msra.gmra.mrb[0].mxu1 %vm153_vm0, %v445_v63  ;;  %v446_v9 = vmul.f32 %v430_v0, %v382_v37  ;;  %v431_v12 = vadd.f32 1.0, %v1737_v3  ;;  %1754 = verf.f32 %v1019_v1  ;;  %v1020_v15 = vmul.f32 0.70710677, %v2176_v60 }
  0x3b   :  { %1573 = vmatmul.mubr.msk.f32.vlgmr.msra.gmra.mrb[0].mxu0 %vm153_vm0, %v1061_v5  ;;  %v1062_v2 = vmul.f32 %v1046_v6, %v998_v45  ;;  %v1047_v13 = vadd.f32 1.0, %v1739_v7  ;;  %1756 = verf.f32 %v404_v44  ;;  %v385_v19 = vmul.f32 0.5, %v2119_v18 }
  0x3c   :  { %v1741_v17 = vpop.eup %1740  ;;  %1523 = vmatprep.mubr.msk.f32.mxu1 %vm153_vm0, %v446_v9  ;;  %v447_v54 = vmul.f32 %v431_v12, %v383_v40  ;;  %v1001_v59 = vmul.f32 0.5, %v2128_v25  ;;  %v405_v8 = vmul.f32 0.70710677, %v2184_v61  ;;  %1758 = verf.f32 %v1020_v15 }
  0x3d   :  { %v1743_v20 = vpop.eup %1742  ;;  %1575 = vmatprep.mubr.msk.f32.mxu0 %vm153_vm0, %v1062_v2  ;;  %v1063_v21 = vmul.f32 %v1047_v13, %v999_v39  ;;  %v432_v22 = vadd.f32 1.0, %v1741_v17  ;;  %v1021_v24 = vmul.f32 0.70710677, %v2191_v11  ;;  %v386_v25 = vmul.f32 0.5, %v2137_v30  ;;  %v2279_v17 = vld [vmem:[%s2449_s0 + $0xf8] sm:$0xff] }
  0x3e   :  { %v1745_v14 = vpop.eup %1744  ;;  %1524 = vmatmul.mubr.msk.f32.gmra.mrb[2].mxu1 %vm153_vm0, %v447_v54  ;;  %v1048_v18 = vadd.f32 1.0, %v1743_v20  ;;  %1760 = verf.f32 %v405_v8  ;;  %v406_v27 = vmul.f32 0.70710677, %v2198_v16  ;;  %v1002_v33 = vmul.f32 0.5, %v2143_v23  ;;  %v1406_v8 = vld [vmem:[%s2449_s0 + $0x1f8] sm:$0xff] }
  0x3f   :  { %v1747_v29 = vpop.eup %1746  ;;  %1576 = vmatmul.mubr.msk.f32.gmra.mrb[2].mxu0 %vm153_vm0, %v1063_v21  ;;  %v448_v31 = vmul.f32 %v432_v22, %v384_v48  ;;  %v433_v32 = vadd.f32 1.0, %v1745_v14  ;;  %1762 = verf.f32 %v1021_v24  ;;  %v1022_v30 = vmul.f32 0.70710677, %v2209_v26  ;;  %v2265_v48 = vld [vmem:[%s2449_s0 + $0xf0] sm:$0xff] }
  0x40   :  { %v1749_v34 = vpop.eup %1748  ;;  %v1064_v10 = vmul.f32 %v1048_v18, %v1000_v49  ;;  %v1049_v37 = vadd.f32 1.0, %v1747_v29  ;;  %1764 = verf.f32 %v406_v27  ;;  %v387_v36 = vmul.f32 0.5, %v2151_v38 }
  0x41   :  { %v1751_v41 = vpop.eup %1750  ;;  %1526 = vmatprep.mubr.msk.f32.mxu1 %vm153_vm0, %v448_v31  ;;  %v449_v4 = vmul.f32 %v433_v32, %v385_v19  ;;  %v434_v45 = vadd.f32 1.0, %v1749_v34  ;;  %v407_v23 = vmul.f32 0.70710677, %v2217_v28  ;;  %v1003_v53 = vmul.f32 0.5, %v2160_v52 }
  0x42   :  { %v1753_v47 = vpop.eup %1752  ;;  %1578 = vmatprep.mubr.msk.f32.mxu0 %vm153_vm0, %v1064_v10  ;;  %v1065_v50 = vmul.f32 %v1049_v37, %v1001_v59  ;;  %v1050_v51 = vadd.f32 1.0, %v1751_v41  ;;  %1766 = verf.f32 %v1022_v30  ;;  %v1023_v42 = vmul.f32 0.70710677, %v2225_v35 }
  0x43   :  { %1527 = vmatmul.mubr.msk.f32.gmra.mrb[4].mxu1 %vm153_vm0, %v449_v4  ;;  %v450_v38 = vmul.f32 %v434_v45, %v386_v25  ;;  %v435_v40 = vadd.f32 1.0, %v1753_v47  ;;  %1768 = verf.f32 %v407_v23  ;;  %v388_v43 = vmul.f32 0.5, %v2168_v57 }
  0x44   :  { %v1755_v62 = vpop.eup %1754  ;;  %1579 = vmatmul.mubr.msk.f32.gmra.mrb[4].mxu0 %vm153_vm0, %v1065_v50  ;;  %v1066_v52 = vmul.f32 %v1050_v51, %v1002_v33  ;;  %v408_v39 = vmul.f32 0.70710677, %v2233_v46  ;;  %1770 = verf.f32 %v1023_v42  ;;  %v1024_v3 = vmul.f32 0.70710677, %v2240_v55 }
  0x45   :  { %v1757_v63 = vpop.eup %1756  ;;  %1529 = vmatprep.mubr.msk.f32.mxu1 %vm153_vm0, %v450_v38  ;;  %v451_v0 = vmul.f32 %v435_v40, %v387_v36  ;;  %v1051_v1 = vadd.f32 1.0, %v1755_v62  ;;  %v1004_v57 = vmul.f32 0.5, %v2176_v60  ;;  %v409_v6 = vmul.f32 0.70710677, %v2247_v58  ;;  %v2273_v60 = vld [vmem:[%s2449_s0 + $0x1f0] sm:$0xff] }
  0x46   :  { %1581 = vmatprep.mubr.msk.f32.mxu0 %vm153_vm0, %v1066_v52  ;;  %v436_v5 = vadd.f32 1.0, %v1757_v63  ;;  %1772 = verf.f32 %v408_v39  ;;  %v1759_v44 = vpop.eup %1758  ;;  %v389_v9 = vmul.f32 0.5, %v2184_v61  ;;  %v1025_v12 = vmul.f32 0.70710677, %v2255_v56 }
  0x47   :  { %1530 = vmatmul.mubr.msk.f32.gmra.mrb[6].mxu1 %vm153_vm0, %v451_v0  ;;  %v1067_v7 = vmul.f32 %v1051_v1, %v1003_v53  ;;  %1774 = verf.f32 %v1024_v3  ;;  %v1052_v13 = vadd.f32 1.0, %v1759_v44  ;;  %v1005_v15 = vmul.f32 0.5, %v2191_v11 }
  0x48   :  { %v1761_v49 = vpop.eup %1760  ;;  %v452_v2 = vmul.f32 %v436_v5, %v388_v43  ;;  %1776 = verf.f32 %v409_v6  ;;  %v390_v19 = vmul.f32 0.5, %v2198_v16  ;;  %v410_v59 = vmul.f32 0.70710677, %v2265_v48 }
  0x49   :  { %v1763_v61 = vpop.eup %1762  ;;  %1582 = vmatmul.mubr.msk.f32.gmra.mrb[6].mxu0 %vm153_vm0, %v1067_v7  ;;  %v437_v54 = vadd.f32 1.0, %v1761_v49  ;;  %1778 = verf.f32 %v1025_v12  ;;  %v1068_v20 = vmul.f32 %v1052_v13, %v1004_v57  ;;  %v1006_v22 = vmul.f32 0.5, %v2209_v26  ;;  %v18_v49 = vld [vmem:[%s2451_s3 + $0x8] sm:$0xff]  ;;  %v17_v13 = vld [vmem:[%s2451_s3] sm:$0xff] }
  0x4a   :  { %v1765_v11 = vpop.eup %1764  ;;  %1532 = vmatprep.mubr.msk.f32.mxu1 %vm153_vm0, %v452_v2  ;;  %v1053_v21 = vadd.f32 1.0, %v1763_v61  ;;  %v1026_v24 = vmul.f32 0.70710677, %v2273_v60  ;;  %1780 = verf.f32 %v410_v59  ;;  %v411_v16 = vmul.f32 0.70710677, %v2279_v17  ;;  %v20_v61 = vld [vmem:[%s2451_s3 + $0x18] sm:$0xff] }
  0x4b   :  { %v453_v14 = vmul.f32 %v437_v54, %v389_v9  ;;  %v438_v18 = vadd.f32 1.0, %v1765_v11  ;;  %1584 = vmatprep.mubr.msk.f32.mxu0 %vm153_vm0, %v1068_v20  ;;  %v391_v29 = vmul.f32 0.5, %v2217_v28  ;;  %v1027_v31 = vmul.f32 0.70710677, %v1406_v8  ;;  %v2321_v2 = vld [vmem:[%s2450_s2] ss:$0 sm:$0xff] }
  0x4c   :  { %v1767_v25 = vpop.eup %1766  ;;  %v1069_v27 = vmul.f32 %v1053_v21, %v1005_v15  ;;  %1782 = verf.f32 %v1026_v24  ;;  %v1007_v10 = vmul.f32 0.5, %v2225_v35  ;;  %v392_v28 = vmul.f32 0.5, %v2233_v46  ;;  %v19_v54 = vld [vmem:[%s2451_s3 + $0x10] sm:$0xff] }
  0x4d   :  { %v1769_v32 = vpop.eup %1768  ;;  %1533 = vmatmul.mubr.msk.f32.gmra.mrb[8].mxu1 %vm153_vm0, %v453_v14  ;;  %v454_v33 = vmul.f32 %v438_v18, %v390_v19  ;;  %v1054_v26 = vadd.f32 1.0, %v1767_v25  ;;  %1784 = verf.f32 %v411_v16  ;;  %v1008_v36 = vmul.f32 0.5, %v2240_v55  ;;  %v22_v18 = vld [vmem:[%s2451_s3 + $0x28] sm:$0xff] }
  0x4e   :  { %1585 = vmatmul.mubr.msk.f32.gmra.mrb[8].mxu0 %vm153_vm0, %v1069_v27  ;;  %v439_v34 = vadd.f32 1.0, %v1769_v32  ;;  %1786 = verf.f32 %v1027_v31  ;;  %v1771_v37 = vpop.eup %1770  ;;  %v393_v50 = vmul.f32 0.5, %v2247_v58  ;;  %v1009_v38 = vmul.f32 0.5, %v2255_v56  ;;  %v21_v27 = vld [vmem:[%s2451_s3 + $0x20] sm:$0xff] }
  0x4f   :  { %1535 = vmatprep.mubr.msk.f32.mxu1 %vm153_vm0, %v454_v33  ;;  %v1070_v30 = vmul.f32 %v1054_v26, %v1006_v22  ;;  %v1055_v45 = vadd.f32 1.0, %v1771_v37  ;;  %v394_v52 = vmul.f32 0.5, %v2265_v48  ;;  %v1010_v39 = vmul.f32 0.5, %v2273_v60 }
  0x50   :  { %v1773_v41 = vpop.eup %1772  ;;  %v455_v4 = vmul.f32 %v439_v34, %v391_v29  ;;  %v395_v1 = vmul.f32 0.5, %v2279_v17  ;;  %v1011_v57 = vmul.f32 0.5, %v1406_v8  ;;  %v41_v15 = vadd.f32 %v2321_v2, %v18_v49 }
  0x51   :  { %v1775_v23 = vpop.eup %1774  ;;  %1587 = vmatprep.mubr.msk.f32.mxu0 %vm153_vm0, %v1070_v30  ;;  %v440_v47 = vadd.f32 1.0, %v1773_v41  ;;  %v1071_v35 = vmul.f32 %v1055_v45, %v1007_v10  ;;  %v40_v17 = vadd.f32 %v2321_v2, %v17_v13  ;;  %v43_v20 = vadd.f32 %v2321_v2, %v20_v61  ;;  %v24_v30 = vld [vmem:[%s2451_s3 + $0x38] sm:$0xff]  ;;  %v23_v41 = vld [vmem:[%s2451_s3 + $0x30] sm:$0xff]  ;;  %v30_v13 = vld [vmem:[%s2451_s3 + $0x68] sm:$0xff] }
  0x52   :  { %v1777_v51 = vpop.eup %1776  ;;  %1536 = vmatmul.mubr.msk.f32.gmra.mrb[10].mxu1 %vm153_vm0, %v455_v4  ;;  %v1056_v53 = vadd.f32 1.0, %v1775_v23  ;;  %v42_v24 = vadd.f32 %v2321_v2, %v19_v54  ;;  %v45_v34 = vadd.f32 %v2321_v2, %v22_v18  ;;  %v44_v37 = vadd.f32 %v2321_v2, %v21_v27  ;;  %v31_v18 = vld [vmem:[%s2451_s3 + $0x70] sm:$0xff] }
  0x53   :  { %v1779_v40 = vpop.eup %1778  ;;  %v456_v46 = vmul.f32 %v440_v47, %v392_v28  ;;  %v441_v42 = vadd.f32 1.0, %v1777_v51  ;;  %1588 = vmatmul.mubr.msk.f32.gmra.mrb[10].mxu0 %vm153_vm0, %v1071_v35  ;;  %v47_v47 = vadd.f32 %v2321_v2, %v24_v30  ;;  %v46_v35 = vadd.f32 %v2321_v2, %v23_v41 }
  0x54   :  { %v1072_v62 = vmul.f32 %v1056_v53, %v1008_v36  ;;  %v1057_v55 = vadd.f32 1.0, %v1779_v40  ;;  %v1781_v43 = vpop.eup %1780 }
  0x55   :  { %1538 = vmatprep.mubr.msk.f32.mxu1 %vm153_vm0, %v456_v46  ;;  %v457_v58 = vmul.f32 %v441_v42, %v393_v50  ;;  %v442_v56 = vadd.f32 1.0, %v1781_v43  ;;  %v26_v46 = vld [vmem:[%s2451_s3 + $0x48] sm:$0xff] }
  0x56   :  { %v1783_v63 = vpop.eup %1782  ;;  %1590 = vmatprep.mubr.msk.f32.mxu0 %vm153_vm0, %v1072_v62  ;;  %v1073_v0 = vmul.f32 %v1057_v55, %v1009_v38  ;;  %v25_v55 = vld [vmem:[%s2451_s3 + $0x40] sm:$0xff] }
  0x57   :  { %v1785_v3 = vpop.eup %1784  ;;  %1539 = vmatmul.mubr.msk.f32.gmra.mrb[12].mxu1 %vm153_vm0, %v457_v58  ;;  %v1058_v5 = vadd.f32 1.0, %v1783_v63  ;;  %v458_v48 = vmul.f32 %v442_v56, %v394_v52  ;;  %v49_v63 = vadd.f32 %v2321_v2, %v26_v46  ;;  %v48_v56 = vadd.f32 %v2321_v2, %v25_v55 }
  0x58   :  { %v1787_v6 = vpop.eup %1786  ;;  %1591 = vmatmul.mubr.msk.f32.gmra.mrb[12].mxu0 %vm153_vm0, %v1073_v0  ;;  %v443_v44 = vadd.f32 1.0, %v1785_v3 }
  0x59   :  { %v1074_v7 = vmul.f32 %v1058_v5, %v1010_v39  ;;  %v1059_v9 = vadd.f32 1.0, %v1787_v6  ;;  %1541 = vmatprep.mubr.msk.f32.mxu1 %vm153_vm0, %v458_v48  ;;  %v27_v5 = vld [vmem:[%s2451_s3 + $0x50] sm:$0xff] }
  0x5a   :  { %v459_v12 = vmul.f32 %v443_v44, %v395_v1  ;;  %v28_v1 = vld [vmem:[%s2451_s3 + $0x58] sm:$0xff] }
  0x5b   :  { %1593 = vmatprep.mubr.msk.f32.mxu0 %vm153_vm0, %v1074_v7  ;;  %v1075_v60 = vmul.f32 %v1059_v9, %v1011_v57  ;;  %v51_v9 = vadd.f32 %v2321_v2, %v28_v1 }
  0x5c   :  { %1542 = vmatmul.mubr.msk.f32.gmra.mrb[14].mxu1 %vm153_vm0, %v459_v12 }
  0x5d   :  { %1594 = vmatmul.mubr.msk.f32.gmra.mrb[14].mxu0 %vm153_vm0, %v1075_v60  ;;  %v50_v60 = vadd.f32 %v2321_v2, %v27_v5 }
 0x10d   :  { %v1522_v19 = vpop.f32.mrb[0].mxu1 }
 0x10e   :  { %v1596_v59 = vadd.f32 %v1522_v19, %v41_v15  ;;  %v1574_v8 = vpop.f32.mrb[0].mxu0  ;;  %v576_v11 = vpop.f32.mrb[1].mxu1 }
 0x10f   :  { %v1598_v21 = vadd.f32 %v576_v11, %v40_v17  ;;  %v1192_v22 = vpop.f32.mrb[1].mxu0  ;;  %v29_v17 = vld [vmem:[%s2451_s3 + $0x60] sm:$0xff] }
 0x110   :  { %v1597_v14 = vadd.f32 %v1596_v59, %v1574_v8  ;;  %v53_v8 = vadd.f32 %v2321_v2, %v30_v13 }
 0x111   :  { %v1599_v16 = vadd.f32 %v1598_v21, %v1192_v22  ;;  %v1525_v25 = vpop.f32.mrb[2].mxu1  ;;  %v52_v21 = vadd.f32 %v2321_v2, %v29_v17 }
 0x112   :  { %1289 = vst.msk [vmem:[%s2452_s4 + $0x8] sm:$0xff] %vm1287_vm1, %v1597_v14  ;;  %v1600_v29 = vadd.f32 %v1525_v25, %v43_v20  ;;  %v1577_v31 = vpop.f32.mrb[2].mxu0  ;;  %v586_v32 = vpop.f32.mrb[3].mxu1 }
 0x113   :  { %1288 = vst.msk [vmem:[%s2452_s4] sm:$0xff] %vm1287_vm1, %v1599_v16  ;;  %v1602_v33 = vadd.f32 %v586_v32, %v42_v24  ;;  %v1202_v26 = vpop.f32.mrb[3].mxu0  ;;  %v32_v24 = vld [vmem:[%s2451_s3 + $0x78] sm:$0xff] }
 0x114   :  { %v1601_v10 = vadd.f32 %v1600_v29, %v1577_v31  ;;  %v55_v32 = vadd.f32 %v2321_v2, %v32_v24 }
 0x115   :  { %v1603_v28 = vadd.f32 %v1602_v33, %v1202_v26  ;;  %v54_v26 = vadd.f32 %v2321_v2, %v31_v18 }
 0x116   :  { %1291 = vst.msk [vmem:[%s2452_s4 + $0x18] sm:$0xff] %vm1287_vm1, %v1601_v10  ;;  %v1528_v4 = vpop.f32.mrb[4].mxu1 }
 0x117   :  { %1290 = vst.msk [vmem:[%s2452_s4 + $0x10] sm:$0xff] %vm1287_vm1, %v1603_v28  ;;  %v1604_v45 = vadd.f32 %v1528_v4, %v45_v34  ;;  %v1580_v36 = vpop.f32.mrb[4].mxu0  ;;  %v596_v23 = vpop.f32.mrb[5].mxu1 }
 0x118   :  { %v1606_v50 = vadd.f32 %v596_v23, %v44_v37  ;;  %v1212_v51 = vpop.f32.mrb[5].mxu0 }
 0x119   :  { %v1605_v53 = vadd.f32 %v1604_v45, %v1580_v36 }
 0x11a   :  { %v1607_v38 = vadd.f32 %v1606_v50, %v1212_v51  ;;  %v1531_v40 = vpop.f32.mrb[6].mxu1 }
 0x11b   :  { %1293 = vst.msk [vmem:[%s2452_s4 + $0x28] sm:$0xff] %vm1287_vm1, %v1605_v53  ;;  %v1608_v42 = vadd.f32 %v1531_v40, %v47_v47  ;;  %v606_v62 = vpop.f32.mrb[7].mxu1 }
 0x11c   :  { %1292 = vst.msk [vmem:[%s2452_s4 + $0x20] sm:$0xff] %vm1287_vm1, %v1607_v38  ;;  %v1583_v52 = vpop.f32.mrb[6].mxu0  ;;  %v1610_v43 = vadd.f32 %v606_v62, %v46_v35 }
 0x11d   :  { %v1609_v58 = vadd.f32 %v1608_v42, %v1583_v52  ;;  %v1222_v39 = vpop.f32.mrb[7].mxu0 }
 0x11e   :  { %v1611_v0 = vadd.f32 %v1610_v43, %v1222_v39 }
 0x11f   :  { %1295 = vst.msk [vmem:[%s2452_s4 + $0x38] sm:$0xff] %vm1287_vm1, %v1609_v58 }
 0x120   :  { %1294 = vst.msk [vmem:[%s2452_s4 + $0x30] sm:$0xff] %vm1287_vm1, %v1611_v0  ;;  %v1534_v3 = vpop.f32.mrb[8].mxu1 }
 0x121   :  { %v1612_v57 = vadd.f32 %v1534_v3, %v49_v63  ;;  %v1586_v6 = vpop.f32.mrb[8].mxu0  ;;  %v616_v48 = vpop.f32.mrb[9].mxu1 }
 0x122   :  { %v1614_v44 = vadd.f32 %v616_v48, %v48_v56  ;;  %v1232_v7 = vpop.f32.mrb[9].mxu0 }
 0x123   :  { %v1613_v12 = vadd.f32 %v1612_v57, %v1586_v6 }
 0x124   :  { %v1615_v49 = vadd.f32 %v1614_v44, %v1232_v7 }
 0x125   :  { %1297 = vst.msk [vmem:[%s2452_s4 + $0x48] sm:$0xff] %vm1287_vm1, %v1613_v12  ;;  %v1537_v15 = vpop.f32.mrb[10].mxu1 }
 0x126   :  { %1296 = vst.msk [vmem:[%s2452_s4 + $0x40] sm:$0xff] %vm1287_vm1, %v1615_v49  ;;  %v1616_v61 = vadd.f32 %v1537_v15, %v51_v9  ;;  %v626_v54 = vpop.f32.mrb[11].mxu1  ;;  %v1589_v19 = vpop.f32.mrb[10].mxu0 }
 0x127   :  { %v1618_v59 = vadd.f32 %v626_v54, %v50_v60  ;;  %v1242_v20 = vpop.f32.mrb[11].mxu0 }
 0x128   :  { %v1617_v11 = vadd.f32 %v1616_v61, %v1589_v19 }
 0x129   :  { %v1619_v22 = vadd.f32 %v1618_v59, %v1242_v20 }
 0x12a   :  { %1299 = vst.msk [vmem:[%s2452_s4 + $0x58] sm:$0xff] %vm1287_vm1, %v1617_v11  ;;  %v1540_v14 = vpop.f32.mrb[12].mxu1 }
 0x12b   :  { %1298 = vst.msk [vmem:[%s2452_s4 + $0x50] sm:$0xff] %vm1287_vm1, %v1619_v22  ;;  %v1620_v16 = vadd.f32 %v1540_v14, %v53_v8  ;;  %v1592_v25 = vpop.f32.mrb[12].mxu0  ;;  %v636_v27 = vpop.f32.mrb[13].mxu1 }
 0x12c   :  { %v1622_v29 = vadd.f32 %v636_v27, %v52_v21  ;;  %v1252_v31 = vpop.f32.mrb[13].mxu0 }
 0x12d   :  { %v1621_v33 = vadd.f32 %v1620_v16, %v1592_v25 }
 0x12e   :  { %v1623_v34 = vadd.f32 %v1622_v29, %v1252_v31 }
 0x12f   :  { %1301 = vst.msk [vmem:[%s2452_s4 + $0x68] sm:$0xff] %vm1287_vm1, %v1621_v33  ;;  %v1543_v10 = vpop.f32.mrb[14].mxu1 }
 0x130   :  { %1300 = vst.msk [vmem:[%s2452_s4 + $0x60] sm:$0xff] %vm1287_vm1, %v1623_v34  ;;  %v1624_v37 = vadd.f32 %v1543_v10, %v55_v32  ;;  %v1595_v30 = vpop.f32.mrb[14].mxu0  ;;  %v646_v28 = vpop.f32.mrb[15].mxu1 }
 0x131   :  { %v1626_v41 = vadd.f32 %v646_v28, %v54_v26  ;;  %v1262_v4 = vpop.f32.mrb[15].mxu0 }
 0x132   :  { %v1625_v45 = vadd.f32 %v1624_v37, %v1595_v30 }
 0x133   :  { %v1627_v36 = vadd.f32 %v1626_v41, %v1262_v4 }
 0x134   :  { %1303 = vst.msk [vmem:[%s2452_s4 + $0x78] sm:$0xff] %vm1287_vm1, %v1625_v45 }
 0x135   :  { %1302 = vst.msk [vmem:[%s2452_s4 + $0x70] sm:$0xff] %vm1287_vm1, %v1627_v36 }

// kernel: hgt_layer_forward.4
= control target key start
LH: loop header
LB: loop body
LE: loop exit
PB: predicated region body
PF: predicated region fallthrough
CT: control target
= control target key end

     0   :  { %s2993_s15 = smov 0   ;;  %s2995_s16 = smov 0   ;;  %s4072_s0 = inlined_call_operand.vmem [shape: bf16[4,128,8], index: 0, kind: input, shape index: {}]   ;;  %s4073_s1 = inlined_call_operand.vmem [shape: bf16[4,2,128,8], index: 1, kind: input, shape index: {}]   ;;  %s4074_s2 = inlined_call_operand.vmem [shape: bf16[4,2,128,8], index: 2, kind: input, shape index: {}]   ;;  %s4075_s3 = inlined_call_operand.vmem [shape: s8[2,128,128], index: 3, kind: input, shape index: {}]   ;;  %s4076_s4 = inlined_call_operand.vmem [shape: f32[4,128,8], index: 4, kind: output, shape index: {}]  }
   0x1   :  { %s2997_s17 = smov 0  }
   0x2 LB: > { %s33_s18 = sadd.s32 1, %s2959_s16  ;;  %p2349_p0 = scmp.ge.s32.totalorder %s2963_s17, 1  ;;  %s2963_s17 = sphi %s2997_s17, %s14_s17   ;;  %s2959_s16 = sphi %s2995_s16, %s4348_s16   ;;  %s2955_s15 = sphi %s2993_s15, %s4347_s15  }
   0x3   : > { %p35_p1 = scmp.ge.s32.totalorder %s33_s18, 4  ;;  %p240_p2 = scmp.lt.s32.totalorder %s2963_s17, 5 }
   0x5   : > { %s4350_s18 = smov (%p35_p1, %s33_s18), 0  ;;  %p241_p3 = pnand %p2349_p0, %p240_p2 }
   0x7   : > { %244 = sbr.rel (%p241_p3) target bundleno = 964 (0x3c4), region = 36 }
   0xe   : > { %p301_p4 = scmp.lt.s32.totalorder %s2955_s15, 3  ;;  %vm4083_vm0 = vcmask 64512   ;;  %v662_v40 = vld [vmem:[%s4075_s3] sm:$0xff]  ;;  %v3120_v56 = vld [vmem:[%s4075_s3 + $0x8] sm:$0xff]  ;;  %vm4154_vm11 = vcmask 7168  }
   0xf   : > { %v2414_v41 = vld [vmem:[%s4075_s3 + $0x20] sm:$0xff]  ;;  %v668_v42 = vunpack.c.2.s8 %v662_v40  ;;  %v669_v48 = vunpack.c.3.s8 %v662_v40  ;;  %v666_v49 = vunpack.c.0.s8 %v662_v40  ;;  %v667_v60 = vunpack.c.1.s8 %v662_v40 }
  0x10   : > { %s4352_s15 = smov (!%p301_p4, %s2955_s15), 3  ;;  %v913_v43 = vunpack.c.0.s8 %v2414_v41  ;;  %v915_v44 = vunpack.c.2.s8 %v2414_v41  ;;  %v916_v52 = vunpack.c.3.s8 %v2414_v41 }
  0x11   : > { %s3011_s19 = sshll.u32 %s4352_s15, 7  ;;  %s2500_s23 = sshll.u32 %s4352_s15, 6  ;;  %v3102_v45 = vcvt.s32.f32 %v668_v42  ;;  %v3111_v51 = vcvt.s32.f32 %v669_v48  ;;  %v3123_v59 = vcvt.s32.f32 %v666_v49 }
  0x12   : > { %s3017_s22 = scalar_lea.vmem %s4073_s1, %s3011_s19  ;;  %s3038_s26 = scalar_lea.vmem %s4072_s0, %s2500_s23  ;;  %v3104_v46 = vcvt.s32.f32 %v913_v43  ;;  %v3106_v47 = vcvt.s32.f32 %v915_v44 }
  0x13   : > { %v2773_v0 = vld [vmem:[%s3017_s22] sm:$0xff]   ;;  %v2775_v3 = vld [vmem:[%s3017_s22 + $0x8] sm:$0xff]   ;;  %v2777_v7 = vld [vmem:[%s3017_s22 + $0x10] sm:$0xff]   ;;  %vm700_vm1 = vcmp.gt.f32.partialorder %v3102_v45, 0.0  ;;  %vm701_vm4 = vcmp.gt.f32.partialorder %v3111_v51, 0.0  ;;  %vm698_vm5 = vcmp.gt.f32.partialorder %v3123_v59, 0.0  ;;  %s3512_s23 = scalar_lea.vmem %s4074_s2, %s3011_s19 }
  0x14   : > { %v2774_v1 = vld [vmem:[%s3017_s22 + $0x40] sm:$0xff]   ;;  %2728 = vmatprep.subr.msk.bf16.mxu0 %vm4083_vm0, %v2773_v0  ;;  %v542_v2 = vsel %vm4083_vm0, %v2773_v0, 0  ;;  %v2776_v5 = vld [vmem:[%s3017_s22 + $0x48] sm:$0xff]   ;;  %v545_v6 = vsel %vm4083_vm0, %v2775_v3, 0  ;;  %v2778_v9 = vld [vmem:[%s3017_s22 + $0x50] sm:$0xff]   ;;  %v548_v11 = vsel %vm4083_vm0, %v2777_v7, 0 }
  0x15   : > { %2736 = vmatprep.subr.msk.bf16.mxu1 %vm4083_vm0, %v2774_v1  ;;  %2569 = vmatpush3.bf16.xpose.msra.mxu0 %v542_v2  ;;  %v788_v4 = vsel %vm4083_vm0, %v2774_v1, 0  ;;  %v791_v8 = vsel %vm4083_vm0, %v2776_v5, 0  ;;  %v2779_v10 = vld [vmem:[%s3017_s22 + $0x18] sm:$0xff]   ;;  %v2789_v12 = vld [vmem:[%s3038_s26] sm:$0xff]   ;;  %v794_v13 = vsel %vm4083_vm0, %v2778_v9, 0  ;;  %v2783_v20 = vld [vmem:[%s3017_s22 + $0x28] sm:$0xff]   ;;  %v3135_v2 = vcvt.s32.f32 %v916_v52 }
  0x16   : > { %2601 = vmatpush3.bf16.xpose.msra.mxu1 %v788_v4  ;;  %2729 = vmatprep.subr.msk.bf16.mxu0 %vm4083_vm0, %v2775_v3  ;;  %v2780_v14 = vld [vmem:[%s3017_s22 + $0x58] sm:$0xff]   ;;  %v551_v15 = vsel %vm4083_vm0, %v2779_v10, 0  ;;  %v2781_v16 = vld [vmem:[%s3017_s22 + $0x20] sm:$0xff]   ;;  %v2784_v22 = vld [vmem:[%s3017_s22 + $0x68] sm:$0xff]   ;;  %v557_v23 = vsel %vm4083_vm0, %v2783_v20, 0  ;;  %vm945_vm2 = vcmp.gt.f32.partialorder %v3104_v46, 0.0  ;;  %v914_v3 = vunpack.c.1.s8 %v2414_v41 }
  0x17   : > { %2737 = vmatprep.subr.msk.bf16.mxu1 %vm4083_vm0, %v2776_v5  ;;  %2584 = vmatprep.mubr.msk.bf16.mxu0 %vm4083_vm0, %v2789_v12  ;;  %v797_v17 = vsel %vm4083_vm0, %v2780_v14, 0  ;;  %v2782_v18 = vld [vmem:[%s3017_s22 + $0x60] sm:$0xff]   ;;  %v554_v19 = vsel %vm4083_vm0, %v2781_v16, 0  ;;  %v2785_v24 = vld [vmem:[%s3017_s22 + $0x30] sm:$0xff]   ;;  %v803_v25 = vsel %vm4083_vm0, %v2784_v22, 0  ;;  %v2787_v28 = vld [vmem:[%s3017_s22 + $0x38] sm:$0xff]   ;;  %v672_v4 = vunpack.c.2.s8 %v3120_v56 }
  0x18   : > { %2616 = vmatprep.mubr.msk.bf16.mxu1 %vm4083_vm0, %v2789_v12  ;;  %v800_v21 = vsel %vm4083_vm0, %v2782_v18, 0  ;;  %v2786_v26 = vld [vmem:[%s3017_s22 + $0x70] sm:$0xff]   ;;  %v560_v27 = vsel %vm4083_vm0, %v2785_v24, 0  ;;  %v2788_v30 = vld [vmem:[%s3017_s22 + $0x78] sm:$0xff]   ;;  %v563_v31 = vsel %vm4083_vm0, %v2787_v28, 0  ;;  %v2790_v33 = vld [vmem:[%s3038_s26 + $0x8] sm:$0xff]  }
  0x19   : > { %v806_v29 = vsel %vm4083_vm0, %v2786_v26, 0  ;;  %v809_v32 = vsel %vm4083_vm0, %v2788_v30, 0  ;;  %v2791_v34 = vld [vmem:[%s3038_s26 + $0x10] sm:$0xff]   ;;  %v2792_v35 = vld [vmem:[%s3038_s26 + $0x18] sm:$0xff]   ;;  %v2793_v36 = vld [vmem:[%s3038_s26 + $0x20] sm:$0xff]   ;;  %vm947_vm3 = vcmp.gt.f32.partialorder %v3106_v47, 0.0 }
  0x1a   : > { %v2794_v37 = vld [vmem:[%s3038_s26 + $0x28] sm:$0xff]   ;;  %v2795_v38 = vld [vmem:[%s3038_s26 + $0x30] sm:$0xff]   ;;  %v2796_v39 = vld [vmem:[%s3038_s26 + $0x38] sm:$0xff]   ;;  %vm948_vm6 = vcmp.gt.f32.partialorder %v3135_v2, 0.0  ;;  %s4029_s26 = scalar_lea.vmem %s4076_s4, %s3011_s19 }
  0x1b   : > { %v3141_v5 = vld [vmem:[%s4075_s3 + $0x28] sm:$0xff] }
  0x1c   : > { %v919_v12 = vunpack.c.2.s8 %v3141_v5  ;;  %v918_v48 = vunpack.c.1.s8 %v3141_v5 }
  0x1d   : > { %2571 = vmatpush3.bf16.xpose.msra.mxu0 %v545_v6  ;;  %v3145_v6 = vcvt.s32.f32 %v667_v60 }
  0x1e   : > { %2603 = vmatpush3.bf16.xpose.msra.mxu1 %v791_v8  ;;  %2730 = vmatprep.subr.msk.bf16.mxu0 %vm4083_vm0, %v2777_v7  ;;  %v673_v7 = vunpack.c.3.s8 %v3120_v56 }
  0x1f   : > { %2738 = vmatprep.subr.msk.bf16.mxu1 %vm4083_vm0, %v2778_v9  ;;  %vm699_vm7 = vcmp.gt.f32.partialorder %v3145_v6, 0.0 }
  0x25   : > { %2573 = vmatpush3.bf16.xpose.msra.mxu0 %v548_v11  ;;  %v3156_v11 = vcvt.s32.f32 %v672_v4 }
  0x26   : > { %2605 = vmatpush3.bf16.xpose.msra.mxu1 %v794_v13  ;;  %2731 = vmatprep.subr.msk.bf16.mxu0 %vm4083_vm0, %v2779_v10  ;;  %v3154_v10 = vcvt.s32.f32 %v914_v3 }
  0x27   : > { %2739 = vmatprep.subr.msk.bf16.mxu1 %vm4083_vm0, %v2780_v14  ;;  %vm704_vm9 = vcmp.gt.f32.partialorder %v3156_v11, 0.0 }
  0x28   : > { %vm946_vm8 = vcmp.gt.f32.partialorder %v3154_v10, 0.0 }
  0x2d   : > { %2575 = vmatpush3.bf16.xpose.msra.mxu0 %v551_v15 }
  0x2e   : > { %2607 = vmatpush3.bf16.xpose.msra.mxu1 %v797_v17  ;;  %2732 = vmatprep.subr.msk.bf16.mxu0 %vm4083_vm0, %v2781_v16 }
  0x2f   : > { %2740 = vmatprep.subr.msk.bf16.mxu1 %vm4083_vm0, %v2782_v18  ;;  %v3169_v18 = vcvt.s32.f32 %v673_v7 }
  0x31   : > { %vm4078_vm10 = vcmp.gt.f32.partialorder %v3169_v18, 0.0 }
  0x35   : > { %2577 = vmatpush3.bf16.xpose.msra.mxu0 %v554_v19  ;;  %v920_v19 = vunpack.c.3.s8 %v3141_v5 }
  0x36   : > { %2609 = vmatpush3.bf16.xpose.msra.mxu1 %v800_v21  ;;  %2733 = vmatprep.subr.msk.bf16.mxu0 %vm4083_vm0, %v2783_v20 }
  0x37   : > { %2741 = vmatprep.subr.msk.bf16.mxu1 %vm4083_vm0, %v2784_v22 }
  0x3d   : > { %2579 = vmatpush3.bf16.xpose.msra.mxu0 %v557_v23 }
  0x3e   : > { %2611 = vmatpush3.bf16.xpose.msra.mxu1 %v803_v25  ;;  %2734 = vmatprep.subr.msk.bf16.mxu0 %vm4083_vm0, %v2785_v24  ;;  %v3183_v24 = vcvt.s32.f32 %v919_v12 }
  0x3f   : > { %2742 = vmatprep.subr.msk.bf16.mxu1 %vm4083_vm0, %v2786_v26  ;;  %v670_v26 = vunpack.c.0.s8 %v3120_v56 }
  0x40   : > { %vm951_vm12 = vcmp.gt.f32.partialorder %v3183_v24, 0.0 }
  0x45   : > { %2581 = vmatpush3.bf16.xpose.msra.mxu0 %v560_v27  ;;  %v3192_v27 = vcvt.s32.f32 %v920_v19 }
  0x46   : > { %2613 = vmatpush3.bf16.xpose.msra.mxu1 %v806_v29  ;;  %2735 = vmatprep.subr.msk.bf16.mxu0 %vm4083_vm0, %v2787_v28 }
  0x47   : > { %2743 = vmatprep.subr.msk.bf16.mxu1 %vm4083_vm0, %v2788_v30  ;;  %v2965_v30 = vmov -1e+30   ;;  %vm4077_vm13 = vcmp.gt.f32.partialorder %v3192_v27, 0.0 }
  0x48   : > { %357 = vst.msk [vmem:[#allocation2 + $0x10] sm:$0xff] %vm4154_vm11, %v2965_v30  ;;  %355 = vst.msk [vmem:[#allocation2] sm:$0xff] %vm4154_vm11, %v2965_v30 }
  0x49   : > { %356 = vst.msk [vmem:[#allocation2 + $0x8] sm:$0xff] %vm4154_vm11, %v2965_v30  ;;  %358 = vst.msk [vmem:[#allocation2 + $0x18] sm:$0xff] %vm4154_vm11, %v2965_v30 }
  0x4a   : > { %359 = vst.msk [vmem:[#allocation2 + $0x20] sm:$0xff] %vm4154_vm11, %v2965_v30  ;;  %360 = vst.msk [vmem:[#allocation2 + $0x28] sm:$0xff] %vm4154_vm11, %v2965_v30 }
  0x4b   : > { %361 = vst.msk [vmem:[#allocation2 + $0x30] sm:$0xff] %vm4154_vm11, %v2965_v30  ;;  %362 = vst.msk [vmem:[#allocation2 + $0x38] sm:$0xff] %vm4154_vm11, %v2965_v30 }
  0x4c   : > { %363 = vst.msk [vmem:[#allocation2 + $0x40] sm:$0xff] %vm4154_vm11, %v2965_v30  ;;  %364 = vst.msk [vmem:[#allocation2 + $0x48] sm:$0xff] %vm4154_vm11, %v2965_v30 }
  0x4d   : > { %2583 = vmatpush3.bf16.xpose.msra.mxu0 %v563_v31  ;;  %365 = vst.msk [vmem:[#allocation2 + $0x50] sm:$0xff] %vm4154_vm11, %v2965_v30  ;;  %366 = vst.msk [vmem:[#allocation2 + $0x58] sm:$0xff] %vm4154_vm11, %v2965_v30  ;;  %v671_v31 = vunpack.c.1.s8 %v3120_v56 }
  0x4e   : > { %2615 = vmatpush3.bf16.xpose.msra.mxu1 %v809_v32  ;;  %367 = vst.msk [vmem:[#allocation2 + $0x60] sm:$0xff] %vm4154_vm11, %v2965_v30  ;;  %368 = vst.msk [vmem:[#allocation2 + $0x68] sm:$0xff] %vm4154_vm11, %v2965_v30 }
  0x4f   : > { %369 = vst.msk [vmem:[#allocation2 + $0x70] sm:$0xff] %vm4154_vm11, %v2965_v30  ;;  %370 = vst.msk [vmem:[#allocation2 + $0x78] sm:$0xff] %vm4154_vm11, %v2965_v30  ;;  %v3250_v44 = vcvt.s32.f32 %v671_v31 }
  0x51   : > { %vm4080_vm15 = vcmp.gt.f32.partialorder %v3250_v44, 0.0 }
  0x54   : > { %2585 = vmatmul.mubr.msk.bf16.vlgmr.msra.gmra.mrb[0].mxu0 %vm4083_vm0, %v2790_v33 }
  0x55   : > { %2617 = vmatmul.mubr.msk.bf16.vlgmr.msra.gmra.mrb[0].mxu1 %vm4083_vm0, %v2790_v33  ;;  %2588 = vmatprep.mubr.msk.bf16.mxu0 %vm4083_vm0, %v2791_v34 }
  0x56   : > { %2620 = vmatprep.mubr.msk.bf16.mxu1 %vm4083_vm0, %v2791_v34 }
  0x5c   : > { %2589 = vmatmul.mubr.msk.bf16.gmra.mrb[4].mxu0 %vm4083_vm0, %v2792_v35 }
  0x5d   : > { %2621 = vmatmul.mubr.msk.bf16.gmra.mrb[4].mxu1 %vm4083_vm0, %v2792_v35  ;;  %2592 = vmatprep.mubr.msk.bf16.mxu0 %vm4083_vm0, %v2793_v36 }
  0x5e   : > { %2624 = vmatprep.mubr.msk.bf16.mxu1 %vm4083_vm0, %v2793_v36  ;;  %v3232_v36 = vld [vmem:[%s4075_s3 + $0x10] sm:$0xff] }
  0x5f   : > { %v676_v49 = vunpack.c.2.s8 %v3232_v36  ;;  %v677_v56 = vunpack.c.3.s8 %v3232_v36  ;;  %v674_v30 = vunpack.c.0.s8 %v3232_v36 }
  0x64   : > { %2593 = vmatmul.mubr.msk.bf16.gmra.mrb[8].mxu0 %vm4083_vm0, %v2794_v37 }
  0x65   : > { %2625 = vmatmul.mubr.msk.bf16.gmra.mrb[8].mxu1 %vm4083_vm0, %v2794_v37  ;;  %2596 = vmatprep.mubr.msk.bf16.mxu0 %vm4083_vm0, %v2795_v38  ;;  %v3236_v37 = vcvt.s32.f32 %v670_v26 }
  0x66   : > { %2628 = vmatprep.mubr.msk.bf16.mxu1 %vm4083_vm0, %v2795_v38  ;;  %v917_v38 = vunpack.c.0.s8 %v3141_v5  ;;  %v3290_v5 = vcvt.s32.f32 %v677_v56  ;;  %v2967_v56 = vmov 0.0  }
  0x67   : > { %vm4079_vm14 = vcmp.gt.f32.partialorder %v3236_v37, 0.0  ;;  %388 = vst.msk [vmem:[#allocation4] sm:$0xff] %vm4083_vm0, %v2967_v56  ;;  %389 = vst.msk [vmem:[#allocation4 + $0x8] sm:$0xff] %vm4083_vm0, %v2967_v56 }
  0x68   : > { %4157 = vst [vmem:[#allocation6_spill] sm:$0xff] %v3290_v5  ;;  %371 = vst.msk [vmem:[#allocation3] sm:$0xff] %vm4154_vm11, %v2967_v56 }
  0x69   : > { %372 = vst.msk [vmem:[#allocation3 + $0x8] sm:$0xff] %vm4154_vm11, %v2967_v56  ;;  %373 = vst.msk [vmem:[#allocation3 + $0x10] sm:$0xff] %vm4154_vm11, %v2967_v56 }
  0x6a   : > { %374 = vst.msk [vmem:[#allocation3 + $0x18] sm:$0xff] %vm4154_vm11, %v2967_v56  ;;  %375 = vst.msk [vmem:[#allocation3 + $0x20] sm:$0xff] %vm4154_vm11, %v2967_v56 }
  0x6b   : > { %376 = vst.msk [vmem:[#allocation3 + $0x28] sm:$0xff] %vm4154_vm11, %v2967_v56  ;;  %377 = vst.msk [vmem:[#allocation3 + $0x30] sm:$0xff] %vm4154_vm11, %v2967_v56 }
  0x6c   : > { %2597 = vmatmul.mubr.msk.bf16.gmra.mrb[12].mxu0 %vm4083_vm0, %v2796_v39  ;;  %378 = vst.msk [vmem:[#allocation3 + $0x38] sm:$0xff] %vm4154_vm11, %v2967_v56  ;;  %379 = vst.msk [vmem:[#allocation3 + $0x40] sm:$0xff] %vm4154_vm11, %v2967_v56 }
  0x6d   : > { %2629 = vmatmul.mubr.msk.bf16.gmra.mrb[12].mxu1 %vm4083_vm0, %v2796_v39  ;;  %380 = vst.msk [vmem:[#allocation3 + $0x48] sm:$0xff] %vm4154_vm11, %v2967_v56  ;;  %381 = vst.msk [vmem:[#allocation3 + $0x50] sm:$0xff] %vm4154_vm11, %v2967_v56 }
  0x6e   : > { %382 = vst.msk [vmem:[#allocation3 + $0x58] sm:$0xff] %vm4154_vm11, %v2967_v56  ;;  %383 = vst.msk [vmem:[#allocation3 + $0x60] sm:$0xff] %vm4154_vm11, %v2967_v56 }
  0x6f   : > { %384 = vst.msk [vmem:[#allocation3 + $0x68] sm:$0xff] %vm4154_vm11, %v2967_v56  ;;  %385 = vst.msk [vmem:[#allocation3 + $0x70] sm:$0xff] %vm4154_vm11, %v2967_v56 }
  0x70   : > { %386 = vst.msk [vmem:[#allocation3 + $0x78] sm:$0xff] %vm4154_vm11, %v2967_v56 }
  0x71   : > { %390 = vst.msk [vmem:[#allocation4 + $0x10] sm:$0xff] %vm4083_vm0, %v2967_v56  ;;  %391 = vst.msk [vmem:[#allocation4 + $0x18] sm:$0xff] %vm4083_vm0, %v2967_v56 }
  0x72   : > { %392 = vst.msk [vmem:[#allocation4 + $0x20] sm:$0xff] %vm4083_vm0, %v2967_v56  ;;  %393 = vst.msk [vmem:[#allocation4 + $0x28] sm:$0xff] %vm4083_vm0, %v2967_v56 }
  0x73   : > { %394 = vst.msk [vmem:[#allocation4 + $0x30] sm:$0xff] %vm4083_vm0, %v2967_v56  ;;  %395 = vst.msk [vmem:[#allocation4 + $0x38] sm:$0xff] %vm4083_vm0, %v2967_v56 }
  0x74   : > { %396 = vst.msk [vmem:[#allocation4 + $0x40] sm:$0xff] %vm4083_vm0, %v2967_v56  ;;  %397 = vst.msk [vmem:[#allocation4 + $0x48] sm:$0xff] %vm4083_vm0, %v2967_v56 }
  0x75   : > { %398 = vst.msk [vmem:[#allocation4 + $0x50] sm:$0xff] %vm4083_vm0, %v2967_v56  ;;  %399 = vst.msk [vmem:[#allocation4 + $0x58] sm:$0xff] %vm4083_vm0, %v2967_v56 }
  0x76   : > { %400 = vst.msk [vmem:[#allocation4 + $0x60] sm:$0xff] %vm4083_vm0, %v2967_v56  ;;  %401 = vst.msk [vmem:[#allocation4 + $0x68] sm:$0xff] %vm4083_vm0, %v2967_v56 }
  0x77   : > { %402 = vst.msk [vmem:[#allocation4 + $0x70] sm:$0xff] %vm4083_vm0, %v2967_v56  ;;  %403 = vst.msk [vmem:[#allocation4 + $0x78] sm:$0xff] %vm4083_vm0, %v2967_v56 }
 0x127   : > { %v2586_v50 = vpop.f32.mrb[0].mxu0 }
 0x128   : > { %v2618_v53 = vpop.f32.mrb[0].mxu1  ;;  %v599_v54 = vpop.f32.mrb[1].mxu0  ;;  %v3115_v55 = vsel %vm700_vm1, %v2586_v50, -1e+30 }
 0x129   : > { %v845_v57 = vpop.f32.mrb[1].mxu1  ;;  %981 = vmax.xlane.f32.xlu0 %v3115_v55  ;;  %v2587_v58 = vpop.f32.mrb[2].mxu0  ;;  %v3131_v0 = vsel %vm947_vm3, %v2618_v53, -1e+30  ;;  %v3161_v13 = vsel %vm698_vm5, %v599_v54, -1e+30  ;;  %v3267_v54 = vcvt.s32.f32 %v917_v38 }
 0x12a   : > { %v2619_v61 = vpop.f32.mrb[2].mxu1  ;;  %v3127_v62 = vsel %vm945_vm2, %v845_v57, -1e+30  ;;  %v602_v63 = vpop.f32.mrb[3].mxu0  ;;  %v3150_v8 = vsel %vm701_vm4, %v2587_v58, -1e+30  ;;  %v3272_v57 = vcvt.s32.f32 %v918_v48  ;;  %v3274_v58 = vcvt.s32.f32 %v676_v49 }
 0x12b   : > { %1009 = vmax.xlane.f32.xlu1 %v3127_v62  ;;  %v848_v1 = vpop.f32.mrb[3].mxu1  ;;  %v3174_v20 = vsel %vm948_vm6, %v2619_v61, -1e+30  ;;  %v3187_v25 = vsel %vm699_vm7, %v602_v63, -1e+30  ;;  %v3263_v53 = vld [vmem:[%s4075_s3 + $0x30] sm:$0xff] }
 0x12c   : > { %v3196_v28 = vsel %vm946_vm8, %v848_v1, -1e+30  ;;  %4156 = vst [vmem:[#allocation5_spill] sm:$0xff] %v3274_v58  ;;  %v923_v60 = vunpack.c.2.s8 %v3263_v53  ;;  %v2966_v63 = vmov 0   ;;  %v924_v7 = vunpack.c.3.s8 %v3263_v53  ;;  %v3342_v49 = vld [vmem:[%s4075_s3 + $0x18] sm:$0xff] }
 0x12d   : > { %1013 = vmax.xlane.f32.xlu0 %v3131_v0  ;;  %2772 = vset.pattern.permute.xlu1 %v2966_v63  ;;  %v678_v56 = vunpack.c.0.s8 %v3342_v49 }
 0x12e   : > { %2771 = vset.pattern.permute.xlu0 %v2966_v63  ;;  %v3309_v19 = vcvt.s32.f32 %v923_v60  ;;  %v922_v60 = vunpack.c.1.s8 %v3263_v53  ;;  %v680_v63 = vunpack.c.2.s8 %v3342_v49 }
 0x12f   : > { %983 = vmax.xlane.f32.xlu1 %v3150_v8  ;;  %v2590_v9 = vpop.f32.mrb[4].mxu0 }
 0x130   : > { %v3163_v14 = vpop.f32.mrb[5].mxu0  ;;  %v2622_v15 = vpop.f32.mrb[4].mxu1  ;;  %v3200_v29 = vsel %vm704_vm9, %v2590_v9, -1e+30  ;;  %4158 = vst [vmem:[#allocation7_spill] sm:$0xff] %v3309_v19 }
 0x131   : > { %977 = vmax.xlane.f32.xlu0 %v3161_v13  ;;  %v2591_v16 = vpop.f32.mrb[6].mxu0  ;;  %v3167_v17 = vpop.f32.mrb[5].mxu1  ;;  %v3243_v41 = vsel %vm951_vm12, %v2622_v15, -1e+30  ;;  %v3282_v1 = vsel %vm4079_vm14, %v3163_v14, -1e+30 }
 0x132   : > { %v3176_v21 = vpop.f32.mrb[7].mxu0  ;;  %v2623_v22 = vpop.f32.mrb[6].mxu1  ;;  %v3223_v33 = vsel %vm4078_vm10, %v2591_v16, -1e+30  ;;  %vm4092_vm10 = vcmp.gt.f32.partialorder %v3272_v57, 0.0  ;;  %vm4082_vm14 = vcmp.gt.f32.partialorder %v3274_v58, 0.0 }
 0x133   : > { %1015 = vmax.xlane.f32.xlu1 %v3174_v20  ;;  %v3181_v23 = vpop.f32.mrb[7].mxu1  ;;  %v3258_v52 = vsel %vm4077_vm13, %v2623_v22, -1e+30  ;;  %vm4081_vm13 = vcmp.gt.f32.partialorder %v3267_v54, 0.0  ;;  %v3300_v14 = vsel %vm4080_vm15, %v3176_v21, -1e+30  ;;  %v3320_v21 = vcvt.s32.f32 %v924_v7 }
 0x134   : > { %v3316_v26 = vsel %vm4081_vm13, %v3167_v17, -1e+30  ;;  %vm4088_vm15 = vcmp.gt.f32.partialorder %v3290_v5, 0.0  ;;  %v3326_v31 = vsel %vm4092_vm10, %v3181_v23, -1e+30  ;;  %vm4084_vm13 = vcmp.gt.f32.partialorder %v3309_v19, 0.0 }
 0x135   : > { %979 = vmax.xlane.f32.xlu0 %v3187_v25  ;;  %4159 = vst [vmem:[#allocation8_spill] sm:$0xff] %v3320_v21  ;;  %v675_v17 = vunpack.c.1.s8 %v3232_v36  ;;  %v3346_v23 = vcvt.s32.f32 %v674_v30 }
 0x137   : > { %1011 = vmax.xlane.f32.xlu1 %v3196_v28  ;;  %v2594_v32 = vpop.f32.mrb[8].mxu0  ;;  %vm4089_vm0 = vcmp.gt.f32.partialorder %v3346_v23, 0.0 }
 0x138   : > { %v3225_v34 = vpop.f32.mrb[9].mxu0  ;;  %v3227_v35 = vpop.f32.mrb[8].mxu1  ;;  %v3330_v38 = vsel %vm4082_vm14, %v2594_v32, -1e+30  ;;  %vm4085_vm14 = vcmp.gt.f32.partialorder %v3320_v21, 0.0  ;;  %v921_v32 = vunpack.c.0.s8 %v3263_v53  ;;  %v3403_v53 = vcvt.s32.f32 %v922_v60 }
 0x139   : > { %989 = vmax.xlane.f32.xlu0 %v3200_v29  ;;  %v2595_v39 = vpop.f32.mrb[10].mxu0  ;;  %v3239_v40 = vpop.f32.mrb[9].mxu1  ;;  %v3384_v36 = vsel %vm4084_vm13, %v3227_v35, -1e+30  ;;  %v681_v35 = vunpack.c.3.s8 %v3342_v49  ;;  %v679_v60 = vunpack.c.1.s8 %v3342_v49 }
 0x13a   : > { %v3245_v42 = vpop.f32.mrb[11].mxu0  ;;  %v3247_v43 = vpop.f32.mrb[10].mxu1  ;;  %v3337_v48 = vsel %vm4088_vm15, %v2595_v39, -1e+30  ;;  %v3387_v39 = vcvt.s32.f32 %v675_v17  ;;  %v3398_v30 = vcvt.s32.f32 %v921_v32  ;;  %4162 = vst [vmem:[#allocation11_spill] sm:$0xff] %v3403_v53  ;;  %v3405_v17 = vcvt.s32.f32 %v680_v63  ;;  %v2417_v32 = vld [vmem:[%s4075_s3 + $0x38] sm:$0xff] }
 0x13b   : > { %991 = vmax.xlane.f32.xlu1 %v3223_v33  ;;  %v3254_v50 = vpop.f32.mrb[11].mxu1  ;;  %v3394_v7 = vsel %vm4085_vm14, %v3247_v43, -1e+30  ;;  %v3411_v43 = vsel %vm4089_vm0, %v3225_v34, -1e+30  ;;  %v3418_v21 = vcvt.s32.f32 %v681_v35  ;;  %vm4098_vm15 = vcmp.gt.f32.partialorder %v3403_v53, 0.0 }
 0x13c   : > { %4160 = vst [vmem:[#allocation9_spill] sm:$0xff] %v3387_v39  ;;  %4161 = vst [vmem:[#allocation10_spill] sm:$0xff] %v3398_v30  ;;  %vm707_vm13 = vcmp.gt.f32.partialorder %v3387_v39, 0.0  ;;  %vm4095_vm14 = vcmp.gt.f32.partialorder %v3398_v30, 0.0  ;;  %vm4099_vm0 = vcmp.gt.f32.partialorder %v3405_v17, 0.0  ;;  %v3429_v34 = vcvt.s32.f32 %v678_v56  ;;  %v2802_v30 = vld [vmem:[%s3512_s23 + $0x50] sm:$0xff]  }
 0x13d   : > { %1021 = vmax.xlane.f32.xlu0 %v3243_v41  ;;  %4163 = vst [vmem:[#allocation12_spill] sm:$0xff] %v3405_v17  ;;  %4164 = vst [vmem:[#allocation13_spill] sm:$0xff] %v3418_v21  ;;  %v3424_v63 = vsel %vm707_vm13, %v3245_v42, -1e+30  ;;  %v925_v19 = vunpack.c.0.s8 %v2417_v32  ;;  %v3434_v35 = vsel %vm4095_vm14, %v3239_v40, -1e+30  ;;  %v3438_v42 = vcvt.s32.f32 %v679_v60 }
 0x13e   : > { %4165 = vst [vmem:[#allocation14_spill] sm:$0xff] %v3429_v34  ;;  %vm4102_vm10 = vcmp.gt.f32.partialorder %v3418_v21, 0.0  ;;  %v926_v49 = vunpack.c.1.s8 %v2417_v32  ;;  %v3443_v5 = vsel %vm4098_vm15, %v3254_v50, -1e+30  ;;  %vm4103_vm14 = vcmp.gt.f32.partialorder %v3429_v34, 0.0  ;;  %v3523_v34 = vld [vmem:[#allocation2] sm:$0xff] }
 0x13f   : > { %1023 = vmax.xlane.f32.xlu1 %v3258_v52  ;;  %v3277_v61 = vpop.f32.mrb[12].mxu0  ;;  %4166 = vst [vmem:[#allocation15_spill] sm:$0xff] %v3438_v42  ;;  %v3452_v40 = vcvt.s32.f32 %v925_v19  ;;  %v927_v58 = vunpack.c.2.s8 %v2417_v32  ;;  %vm711_vm15 = vcmp.gt.f32.partialorder %v3438_v42, 0.0  ;;  %v928_v21 = vunpack.c.3.s8 %v2417_v32  ;;  %v2812_v39 = vld [vmem:[%s3512_s23 + $0x78] sm:$0xff]  }
 0x140   : > { %v3284_v3 = vpop.f32.mrb[13].mxu0  ;;  %v3286_v4 = vpop.f32.mrb[12].mxu1  ;;  %v3448_v56 = vsel %vm4099_vm0, %v3277_v61, -1e+30  ;;  %v3461_v50 = vcvt.s32.f32 %v926_v49  ;;  %v2800_v49 = vld [vmem:[%s3512_s23 + $0x48] sm:$0xff]  }
 0x141   : > { %985 = vmax.xlane.f32.xlu0 %v3282_v1  ;;  %v3293_v9 = vpop.f32.mrb[14].mxu0  ;;  %v3295_v12 = vpop.f32.mrb[13].mxu1  ;;  %4167 = vst [vmem:[#allocation16_spill] sm:$0xff] %v3452_v40  ;;  %v3466_v61 = vsel %vm4103_vm14, %v3284_v3, -1e+30  ;;  %vm4104_vm0 = vcmp.gt.f32.partialorder %v3452_v40, 0.0  ;;  %v3470_v19 = vcvt.s32.f32 %v927_v58  ;;  %v3486_v58 = vcvt.s32.f32 %v928_v21 }
 0x142   : > { %v3302_v15 = vpop.f32.mrb[15].mxu0  ;;  %v3304_v16 = vpop.f32.mrb[14].mxu1  ;;  %v3457_v60 = vsel %vm4102_vm10, %v3293_v9, -1e+30  ;;  %4169 = vst [vmem:[#allocation18_spill] sm:$0xff] %v3461_v50  ;;  %vm958_vm10 = vcmp.gt.f32.partialorder %v3461_v50, 0.0 }
 0x143   : > { %987 = vmax.xlane.f32.xlu1 %v3300_v14  ;;  %v3311_v22 = vpop.f32.mrb[15].mxu1  ;;  %4168 = vst [vmem:[#allocation17_spill] sm:$0xff] %v3457_v60  ;;  %4170 = vst [vmem:[#allocation19_spill] sm:$0xff] %v3470_v19  ;;  %v3475_v9 = vsel %vm711_vm15, %v3302_v15, -1e+30  ;;  %vm959_vm14 = vcmp.gt.f32.partialorder %v3470_v19, 0.0 }
 0x144   : > { %v3482_v3 = vsel %vm4104_vm0, %v3295_v12, -1e+30  ;;  %4171 = vst [vmem:[#allocation20_spill] sm:$0xff] %v3486_v58  ;;  %v3491_v15 = vsel %vm958_vm10, %v3311_v22, -1e+30  ;;  %vm4155_vm0 = vcmp.gt.f32.partialorder %v3486_v58, 0.0 }
 0x145   : > { %1017 = vmax.xlane.f32.xlu0 %v3316_v26  ;;  %v3497_v32 = vsel %vm959_vm14, %v3286_v4, -1e+30  ;;  %v3505_v12 = vsel %vm4155_vm0, %v3304_v16, -1e+30  ;;  %v2797_v4 = vld [vmem:[%s3512_s23] sm:$0xff]   ;;  %v2799_v21 = vld [vmem:[%s3512_s23 + $0x8] sm:$0xff]   ;;  %vm2426_vm0 = vmpackc.low %vm699_vm7, %vm698_vm5 }
 0x146   : > { %4172 = vst [vmem:[#allocation21_spill] sm:$0xff] %v3497_v32  ;;  %4173 = vst [vmem:[#allocation22_spill] sm:$0xff] %v3505_v12  ;;  %v2798_v22 = vld [vmem:[%s3512_s23 + $0x40] sm:$0xff]   ;;  %2632 = vmatprep.subr.bf16.mxu1 %v2797_v4  ;;  %v3518_v19 = vld [vmem:[#allocation2 + $0x10] sm:$0xff] }
 0x147   : > { %1019 = vmax.xlane.f32.xlu1 %v3326_v31  ;;  %2664 = vmatprep.subr.bf16.mxu0 %v2798_v22  ;;  %4174 = vst [vmem:[#allocation23_spill] sm:$0xff] %v3518_v19 }
 0x148   : > { %2633 = vmatpush3.bf16.msra.mxu1 %v2797_v4  ;;  %2665 = vmatpush3.bf16.msra.mxu0 %v2798_v22 }
 0x149   : > { %997 = vmax.xlane.f32.xlu0 %v3330_v38  ;;  %2634 = vmatprep.subr.bf16.mxu1 %v2799_v21 }
 0x14a   : > { %2666 = vmatprep.subr.bf16.mxu0 %v2800_v49 }
 0x14b   : > { %999 = vmax.xlane.f32.xlu1 %v3337_v48 }
 0x14c   : > { %2635 = vmatpush3.bf16.msra.mxu1 %v2799_v21  ;;  %2667 = vmatpush3.bf16.msra.mxu0 %v2800_v49  ;;  %v3530_v49 = vld [vmem:[#allocation2 + $0x18] sm:$0xff] }
 0x14d   : > { %1029 = vmax.xlane.f32.xlu0 %v3384_v36  ;;  %4176 = vst [vmem:[#allocation25_spill] sm:$0xff] %v3530_v49  ;;  %2668 = vmatprep.subr.bf16.mxu0 %v2802_v30 }
 0x14f   : > { %1031 = vmax.xlane.f32.xlu1 %v3394_v7 }
 0x150   : > { %2669 = vmatpush3.bf16.msra.mxu0 %v2802_v30  ;;  %v3560_v30 = vld [vmem:[#allocation2 + $0x30] sm:$0xff] }
 0x151   : > { %993 = vmax.xlane.f32.xlu0 %v3411_v43  ;;  %4180 = vst [vmem:[#allocation29_spill] sm:$0xff] %v3560_v30 }
 0x153   : > { %995 = vmax.xlane.f32.xlu1 %v3424_v63 }
 0x155   : > { %1025 = vmax.xlane.f32.xlu0 %v3434_v35 }
 0x157   : > { %1027 = vmax.xlane.f32.xlu1 %v3443_v5 }
 0x159   : > { %1005 = vmax.xlane.f32.xlu0 %v3448_v56 }
 0x15b   : > { %1007 = vmax.xlane.f32.xlu1 %v3457_v60 }
 0x15d   : > { %1001 = vmax.xlane.f32.xlu0 %v3466_v61 }
 0x15f   : > { %1003 = vmax.xlane.f32.xlu1 %v3475_v9 }
 0x161   : > { %1033 = vmax.xlane.f32.xlu0 %v3482_v3 }
 0x163   : > { %1035 = vmax.xlane.f32.xlu1 %v3491_v15 }
 0x165   : > { %1037 = vmax.xlane.f32.xlu0 %v3497_v32  ;;  %v2808_v32 = vld [vmem:[%s3512_s23 + $0x68] sm:$0xff]  }
 0x167   : > { %1039 = vmax.xlane.f32.xlu1 %v3505_v12 }
 0x1b6   : > { %v982_v16 = vpop.xlane.xlu0 %981 }
 0x1b8   : > { %v1010_v58 = vpop.xlane.xlu1 %1009 }
 0x1ba   : > { %v1014_v17 = vpop.xlane.xlu0 %1013 }
 0x1bb   : > { %v1043_v50 = vmax.f32 %v982_v16, %v1014_v17  ;;  %v2801_v16 = vld [vmem:[%s3512_s23 + $0x10] sm:$0xff]  }
 0x1bc   : > { %v984_v40 = vpop.xlane.xlu1 %983  ;;  %2636 = vmatprep.subr.bf16.mxu1 %v2801_v16 }
 0x1bd   : > { %v3521_v42 = vmax.f32 %v3518_v19, %v1043_v50  ;;  %2637 = vmatpush3.bf16.msra.mxu1 %v2801_v16 }
 0x1be   : > { %v978_v4 = vpop.xlane.xlu0 %977 }
 0x1bf   : > { %4175 = vst [vmem:[#allocation24_spill] sm:$0xff] %v3521_v42  ;;  %1959 = vst.msk [vmem:[#allocation2 + $0x10] sm:$0xff] %vm4154_vm11, %v3521_v42  ;;  %v1041_v21 = vmax.f32 %v978_v4, %v1010_v58  ;;  %1293 = vperm.xlu1 %2772, %v3521_v42   ;;  %v3543_v58 = vld [vmem:[#allocation2 + $0x8] sm:$0xff]  ;;  %v2804_v42 = vld [vmem:[%s3512_s23 + $0x58] sm:$0xff]  }
 0x1c0   : > { %v1016_v53 = vpop.xlane.xlu1 %1015  ;;  %4178 = vst [vmem:[#allocation27_spill] sm:$0xff] %v3543_v58  ;;  %2670 = vmatprep.subr.bf16.mxu0 %v2804_v42 }
 0x1c1   : > { %v3533_v17 = vmax.f32 %v3523_v34, %v1041_v21  ;;  %v1044_v50 = vmax.f32 %v984_v40, %v1016_v53  ;;  %2671 = vmatpush3.bf16.msra.mxu0 %v2804_v42  ;;  %v3587_v42 = vld [vmem:[#allocation2 + $0x28] sm:$0xff] }
 0x1c2   : > { %v980_v12 = vpop.xlane.xlu0 %979  ;;  %4185 = vst [vmem:[#allocation34_spill] sm:$0xff] %v3587_v42 }
 0x1c3   : > { %1957 = vst.msk [vmem:[#allocation2] sm:$0xff] %vm4154_vm11, %v3533_v17  ;;  %v3540_v22 = vmax.f32 %v3530_v49, %v1044_v50  ;;  %1283 = vperm.xlu0 %2771, %v3533_v17   ;;  %v2803_v50 = vld [vmem:[%s3512_s23 + $0x18] sm:$0xff]  }
 0x1c4   : > { %v1012_v4 = vpop.xlane.xlu1 %1011  ;;  %2638 = vmatprep.subr.bf16.mxu1 %v2803_v50 }
 0x1c5   : > { %4177 = vst [vmem:[#allocation26_spill] sm:$0xff] %v3540_v22  ;;  %1960 = vst.msk [vmem:[#allocation2 + $0x18] sm:$0xff] %vm4154_vm11, %v3540_v22  ;;  %v1042_v40 = vmax.f32 %v980_v12, %v1012_v4  ;;  %1298 = vperm.xlu1 %2772, %v3540_v22   ;;  %2639 = vmatpush3.bf16.msra.mxu1 %v2803_v50  ;;  %v2805_v4 = vld [vmem:[%s3512_s23 + $0x20] sm:$0xff]   ;;  %v3564_v22 = vld [vmem:[#allocation2 + $0x38] sm:$0xff] }
 0x1c6   : > { %v990_v21 = vpop.xlane.xlu0 %989  ;;  %4181 = vst [vmem:[#allocation30_spill] sm:$0xff] %v3564_v22  ;;  %2640 = vmatprep.subr.bf16.mxu1 %v2805_v4 }
 0x1c7   : > { %v3553_v19 = vmax.f32 %v3543_v58, %v1042_v40  ;;  %v2806_v40 = vld [vmem:[%s3512_s23 + $0x60] sm:$0xff]  }
 0x1c8   : > { %v992_v60 = vpop.xlane.xlu1 %991  ;;  %2672 = vmatprep.subr.bf16.mxu0 %v2806_v40 }
 0x1c9   : > { %4179 = vst [vmem:[#allocation28_spill] sm:$0xff] %v3553_v19  ;;  %1958 = vst.msk [vmem:[#allocation2 + $0x8] sm:$0xff] %vm4154_vm11, %v3553_v19  ;;  %1288 = vperm.xlu1 %2772, %v3553_v19   ;;  %2641 = vmatpush3.bf16.msra.mxu1 %v2805_v4  ;;  %v2807_v19 = vld [vmem:[%s3512_s23 + $0x28] sm:$0xff]   ;;  %v2810_v4 = vld [vmem:[%s3512_s23 + $0x70] sm:$0xff]  }
 0x1ca   : > { %v1022_v12 = vpop.xlane.xlu0 %1021  ;;  %2673 = vmatpush3.bf16.msra.mxu0 %v2806_v40  ;;  %2642 = vmatprep.subr.bf16.mxu1 %v2807_v19 }
 0x1cb   : > { %v1047_v53 = vmax.f32 %v990_v21, %v1022_v12  ;;  %2674 = vmatprep.subr.bf16.mxu0 %v2808_v32 }
 0x1cc   : > { %v1024_v49 = vpop.xlane.xlu1 %1023 }
 0x1cd   : > { %v3567_v16 = vmax.f32 %v3560_v30, %v1047_v53  ;;  %v1048_v58 = vmax.f32 %v992_v60, %v1024_v49  ;;  %2643 = vmatpush3.bf16.msra.mxu1 %v2807_v19  ;;  %v3583_v49 = vld [vmem:[#allocation2 + $0x20] sm:$0xff]  ;;  %v2811_v30 = vld [vmem:[%s3512_s23 + $0x38] sm:$0xff]  }
 0x1ce   : > { %v986_v50 = vpop.xlane.xlu0 %985  ;;  %4184 = vst [vmem:[#allocation33_spill] sm:$0xff] %v3583_v49  ;;  %2675 = vmatpush3.bf16.msra.mxu0 %v2808_v32 }
 0x1cf   : > { %4182 = vst [vmem:[#allocation31_spill] sm:$0xff] %v3567_v16  ;;  %1963 = vst.msk [vmem:[#allocation2 + $0x30] sm:$0xff] %vm4154_vm11, %v3567_v16  ;;  %v3576_v21 = vmax.f32 %v3564_v22, %v1048_v58  ;;  %1313 = vperm.xlu1 %2772, %v3567_v16   ;;  %v2809_v58 = vld [vmem:[%s3512_s23 + $0x30] sm:$0xff]   ;;  %2676 = vmatprep.subr.bf16.mxu0 %v2810_v4 }
 0x1d0   : > { %v988_v53 = vpop.xlane.xlu1 %987  ;;  %2644 = vmatprep.subr.bf16.mxu1 %v2809_v58 }
 0x1d1   : > { %4183 = vst [vmem:[#allocation32_spill] sm:$0xff] %v3576_v21  ;;  %1964 = vst.msk [vmem:[#allocation2 + $0x38] sm:$0xff] %vm4154_vm11, %v3576_v21  ;;  %2645 = vmatpush3.bf16.msra.mxu1 %v2809_v58 }
 0x1d2   : > { %v1018_v12 = vpop.xlane.xlu0 %1017  ;;  %2677 = vmatpush3.bf16.msra.mxu0 %v2810_v4  ;;  %2646 = vmatprep.subr.bf16.mxu1 %v2811_v30 }
 0x1d3   : > { %v1045_v40 = vmax.f32 %v986_v50, %v1018_v12  ;;  %2678 = vmatprep.subr.bf16.mxu0 %v2812_v39 }
 0x1d4   : > { %v1020_v16 = vpop.xlane.xlu1 %1019 }
 0x1d5   : > { %v3590_v60 = vmax.f32 %v3583_v49, %v1045_v40  ;;  %v1046_v22 = vmax.f32 %v988_v53, %v1020_v16  ;;  %2647 = vmatpush3.bf16.msra.mxu1 %v2811_v30  ;;  %v3606_v53 = vld [vmem:[#allocation2 + $0x50] sm:$0xff] }
 0x1d6   : > { %v998_v19 = vpop.xlane.xlu0 %997  ;;  %4188 = vst [vmem:[#allocation37_spill] sm:$0xff] %v3606_v53  ;;  %2679 = vmatpush3.bf16.msra.mxu0 %v2812_v39 }
 0x1d7   : > { %4186 = vst [vmem:[#allocation35_spill] sm:$0xff] %v3590_v60  ;;  %1961 = vst.msk [vmem:[#allocation2 + $0x20] sm:$0xff] %vm4154_vm11, %v3590_v60  ;;  %v3599_v50 = vmax.f32 %v3587_v42, %v1046_v22  ;;  %1303 = vperm.xlu1 %2772, %v3590_v60   ;;  %v3609_v22 = vld [vmem:[#allocation2 + $0x58] sm:$0xff] }
 0x1d8   : > { %v1000_v12 = vpop.xlane.xlu1 %999  ;;  %4189 = vst [vmem:[#allocation38_spill] sm:$0xff] %v3609_v22 }
 0x1d9   : > { %4187 = vst [vmem:[#allocation36_spill] sm:$0xff] %v3599_v50  ;;  %1962 = vst.msk [vmem:[#allocation2 + $0x28] sm:$0xff] %vm4154_vm11, %v3599_v50 }
 0x1da   : > { %v1030_v58 = vpop.xlane.xlu0 %1029 }
 0x1db   : > { %v1051_v4 = vmax.f32 %v998_v19, %v1030_v58  ;;  %1308 = vperm.xlu1 %2772, %v3599_v50  }
 0x1dc   : > { %v1032_v40 = vpop.xlane.xlu1 %1031 }
 0x1dd   : > { %v3612_v32 = vmax.f32 %v3606_v53, %v1051_v4  ;;  %v1052_v60 = vmax.f32 %v1000_v12, %v1032_v40  ;;  %v3626_v12 = vld [vmem:[#allocation2 + $0x40] sm:$0xff]  ;;  %v3628_v40 = vld [vmem:[#allocation2 + $0x48] sm:$0xff] }
 0x1de   : > { %v994_v49 = vpop.xlane.xlu0 %993  ;;  %4191 = vst [vmem:[#allocation40_spill] sm:$0xff] %v3628_v40 }
 0x1df   : > { %1967 = vst.msk [vmem:[#allocation2 + $0x50] sm:$0xff] %vm4154_vm11, %v3612_v32  ;;  %v3619_v30 = vmax.f32 %v3609_v22, %v1052_v60  ;;  %1318 = vperm.xlu1 %2772, %v3576_v21   ;;  %v3650_v21 = vld [vmem:[#allocation2 + $0x60] sm:$0xff] }
 0x1e0   : > { %v996_v39 = vpop.xlane.xlu1 %995 }
 0x1e1   : > { %4190 = vst [vmem:[#allocation39_spill] sm:$0xff] %v3619_v30  ;;  %1968 = vst.msk [vmem:[#allocation2 + $0x58] sm:$0xff] %vm4154_vm11, %v3619_v30 }
 0x1e2   : > { %v1026_v58 = vpop.xlane.xlu0 %1025 }
 0x1e3   : > { %v1049_v4 = vmax.f32 %v994_v49, %v1026_v58  ;;  %v1089_v49 = vsub.f32 %v3523_v34, %v3533_v17  ;;  %v3652_v17 = vld [vmem:[#allocation2 + $0x68] sm:$0xff] }
 0x1e4   : > { %v1028_v16 = vpop.xlane.xlu1 %1027  ;;  %4194 = vst [vmem:[#allocation43_spill] sm:$0xff] %v3652_v17 }
 0x1e5   : > { %v3631_v53 = vmax.f32 %v3626_v12, %v1049_v4  ;;  %v1050_v60 = vmax.f32 %v996_v39, %v1028_v16  ;;  %v1105_v39 = vmul.f32 1.442695, %v1089_v49 }
 0x1e6   : > { %v1006_v50 = vpop.xlane.xlu0 %1005 }
 0x1e7   : > { %4192 = vst [vmem:[#allocation41_spill] sm:$0xff] %v3631_v53  ;;  %1965 = vst.msk [vmem:[#allocation2 + $0x40] sm:$0xff] %vm4154_vm11, %v3631_v53  ;;  %v3638_v19 = vmax.f32 %v3628_v40, %v1050_v60  ;;  %1323 = vperm.xlu1 %2772, %v3631_v53   ;;  %2813 = vpow2.f32 %v1105_v39 }
 0x1e8   : > { %v1008_v58 = vpop.xlane.xlu1 %1007 }
 0x1e9   : > { %4193 = vst [vmem:[#allocation42_spill] sm:$0xff] %v3638_v19  ;;  %1966 = vst.msk [vmem:[#allocation2 + $0x48] sm:$0xff] %vm4154_vm11, %v3638_v19  ;;  %1328 = vperm.xlu0 %2771, %v3638_v19   ;;  %v3657_v19 = vld [vmem:[#allocation2 + $0x70] sm:$0xff] }
 0x1ea   : > { %v1002_v16 = vpop.xlane.xlu0 %1001 }
 0x1eb   : > { %1333 = vperm.xlu1 %2772, %v3612_v32  }
 0x1ec   : > { %v1004_v60 = vpop.xlane.xlu1 %1003 }
 0x1ed   : > { %1338 = vperm.xlu0 %2771, %v3619_v30  }
 0x1ee   : > { %v1034_v22 = vpop.xlane.xlu0 %1033 }
 0x1ef   : > { %v1053_v34 = vmax.f32 %v1002_v16, %v1034_v22  ;;  %v3667_v16 = vld [vmem:[#allocation2 + $0x78] sm:$0xff] }
 0x1f0   : > { %v1036_v4 = vpop.xlane.xlu1 %1035  ;;  %4196 = vst [vmem:[#allocation45_spill] sm:$0xff] %v3667_v16 }
 0x1f1   : > { %v3655_v40 = vmax.f32 %v3650_v21, %v1053_v34  ;;  %v1054_v42 = vmax.f32 %v1004_v60, %v1036_v4 }
 0x1f2   : > { %v1038_v53 = vpop.xlane.xlu0 %1037 }
 0x1f3   : > { %1969 = vst.msk [vmem:[#allocation2 + $0x60] sm:$0xff] %vm4154_vm11, %v3655_v40  ;;  %v3664_v30 = vmax.f32 %v3652_v17, %v1054_v42  ;;  %v1055_v22 = vmax.f32 %v1006_v50, %v1038_v53  ;;  %1343 = vperm.xlu1 %2772, %v3655_v40  }
 0x1f4   : > { %v1040_v39 = vpop.xlane.xlu1 %1039 }
 0x1f5   : > { %4195 = vst [vmem:[#allocation44_spill] sm:$0xff] %v3664_v30  ;;  %1970 = vst.msk [vmem:[#allocation2 + $0x68] sm:$0xff] %vm4154_vm11, %v3664_v30  ;;  %v3674_v60 = vmax.f32 %v3657_v19, %v1055_v22  ;;  %v1056_v34 = vmax.f32 %v1008_v58, %v1040_v39  ;;  %1348 = vperm.xlu0 %2771, %v3664_v30   ;;  %v3690_v58 = vpop.eup %2813 }
 0x1f6   : > { %4199 = vst [vmem:[#allocation48_spill] sm:$0xff] %v3690_v58 }
 0x1f7   : > { %4197 = vst [vmem:[#allocation46_spill] sm:$0xff] %v3674_v60  ;;  %1971 = vst.msk [vmem:[#allocation2 + $0x70] sm:$0xff] %vm4154_vm11, %v3674_v60  ;;  %v3682_v50 = vmax.f32 %v3667_v16, %v1056_v34  ;;  %1353 = vperm.xlu1 %2772, %v3674_v60  }
 0x1f9   : > { %4198 = vst [vmem:[#allocation47_spill] sm:$0xff] %v3682_v50  ;;  %1972 = vst.msk [vmem:[#allocation2 + $0x78] sm:$0xff] %vm4154_vm11, %v3682_v50  ;;  %1358 = vperm.xlu0 %2771, %v3682_v50  }
 0x1fa   : > { %vm3715_vm11 = vmpackc.low %vm701_vm4, %vm700_vm1 }
 0x1fb   : > { %1187 = vperm.xlu1 %2772, %v3690_v58  }
 0x23e   : > { %v1294_v22 = vpop.permute.xlu1 %1293 }
 0x23f   : > { %v1363_v39 = vsub.f32 %v3115_v55, %v1294_v22  ;;  %v1660_v34 = vsub.f32 %v3131_v0, %v1294_v22 }
 0x241   : > { %v1381_v4 = vmul.f32 1.442695, %v1363_v39  ;;  %v1678_v42 = vmul.f32 1.442695, %v1660_v34 }
 0x242   : > { %v1284_v49 = vpop.permute.xlu0 %1283 }
 0x243   : > { %2815 = vpow2.f32 %v1381_v4  ;;  %v1361_v53 = vsub.f32 %v3161_v13, %v1284_v49  ;;  %v1658_v30 = vsub.f32 %v3127_v62, %v1284_v49 }
 0x244   : > { %2817 = vpow2.f32 %v1678_v42  ;;  %v1299_v17 = vpop.permute.xlu1 %1298 }
 0x245   : > { %v1377_v50 = vmul.f32 1.442695, %v1361_v53  ;;  %v1674_v16 = vmul.f32 1.442695, %v1658_v30  ;;  %v1364_v60 = vsub.f32 %v3150_v8, %v1299_v17  ;;  %v1661_v58 = vsub.f32 %v3174_v20, %v1299_v17 }
 0x247   : > { %2819 = vpow2.f32 %v1377_v50  ;;  %v1383_v55 = vmul.f32 1.442695, %v1364_v60  ;;  %v1680_v0 = vmul.f32 1.442695, %v1661_v58 }
 0x248   : > { %2821 = vpow2.f32 %v1674_v16  ;;  %v1289_v22 = vpop.permute.xlu1 %1288 }
 0x249   : > { %2823 = vpow2.f32 %v1383_v55  ;;  %v1362_v4 = vsub.f32 %v3187_v25, %v1289_v22  ;;  %v1659_v13 = vsub.f32 %v3196_v28, %v1289_v22 }
 0x24a   : > { %2825 = vpow2.f32 %v1680_v0 }
 0x24b   : > { %v1379_v39 = vmul.f32 1.442695, %v1362_v4  ;;  %v1676_v62 = vmul.f32 1.442695, %v1659_v13 }
 0x24d   : > { %v2816_v49 = vpop.eup %2815  ;;  %2827 = vpow2.f32 %v1379_v39 }
 0x24e   : > { %v2818_v30 = vpop.eup %2817  ;;  %2829 = vpow2.f32 %v1676_v62  ;;  %v1314_v8 = vpop.permute.xlu1 %1313  ;;  %v1411_v20 = vsel %vm700_vm1, %v2816_v49, 0.0  ;;  %vm2474_vm1 = vmpackc.low %vm946_vm8, %vm945_vm2 }
 0x24f   : > { %v1367_v17 = vsub.f32 %v3200_v29, %v1314_v8  ;;  %v1664_v16 = vsub.f32 %v3243_v41, %v1314_v8  ;;  %v1708_v25 = vsel %vm947_vm3, %v2818_v30, 0.0  ;;  %1429 = vadd.xlane.f32.xlu0 %v1411_v20 }
 0x250   : > { %1726 = vadd.xlane.f32.xlu1 %v1708_v25 }
 0x251   : > { %v2820_v28 = vpop.eup %2819  ;;  %v1389_v60 = vmul.f32 1.442695, %v1367_v17  ;;  %v1686_v42 = vmul.f32 1.442695, %v1664_v16 }
 0x252   : > { %v2822_v50 = vpop.eup %2821  ;;  %v1409_v53 = vsel %vm698_vm5, %v2820_v28, 0.0 }
 0x253   : > { %v2824_v58 = vpop.eup %2823  ;;  %2831 = vpow2.f32 %v1389_v60  ;;  %v1706_v34 = vsel %vm945_vm2, %v2822_v50, 0.0  ;;  %1425 = vadd.xlane.f32.xlu0 %v1409_v53 }
 0x254   : > { %1722 = vadd.xlane.f32.xlu1 %v1706_v34  ;;  %2833 = vpow2.f32 %v1686_v42  ;;  %v2826_v29 = vpop.eup %2825  ;;  %v1412_v0 = vsel %vm701_vm4, %v2824_v58, 0.0  ;;  %vm2477_vm4 = vmpackc.low %vm948_vm6, %vm947_vm3  ;;  %v2430_v51 = vpack.c.bf16 %v2824_v58, %v2816_v49  ;;  %vm4204_vm3 = vcmp.gt.f32.partialorder %v3250_v44, 0.0 }
 0x255   : > { %v2478_v8 = vpack.c.bf16 %v2826_v29, %v2818_v30  ;;  %v1709_v20 = vsel %vm948_vm6, %v2826_v29, 0.0  ;;  %vm4205_vm6 = vcmp.gt.f32.partialorder %v3267_v54, 0.0 }
 0x256   : > { %v1304_v55 = vpop.permute.xlu1 %1303 }
 0x257   : > { %v2828_v22 = vpop.eup %2827  ;;  %v1365_v4 = vsub.f32 %v3282_v1, %v1304_v55  ;;  %v1662_v13 = vsub.f32 %v3316_v26, %v1304_v55  ;;  %1431 = vadd.xlane.f32.xlu0 %v1412_v0 }
 0x258   : > { %v2830_v45 = vpop.eup %2829  ;;  %v1410_v39 = vsel %vm699_vm7, %v2828_v22, 0.0  ;;  %v2427_v62 = vpack.c.bf16 %v2828_v22, %v2820_v28  ;;  %vm4206_vm7 = vmmov %vm4205_vm6 }
 0x259   : > { %v1385_v59 = vmul.f32 1.442695, %v1365_v4  ;;  %v1682_v1 = vmul.f32 1.442695, %v1662_v13  ;;  %1427 = vadd.xlane.f32.xlu1 %v1410_v39  ;;  %v2475_v26 = vpack.c.bf16 %v2830_v45, %v2822_v50 }
 0x25a   : > { %2648 = vmatprep.mubr.msk.bf16.mxu1 %vm2426_vm0, %v2427_v62  ;;  %v1309_v6 = vpop.permute.xlu1 %1308  ;;  %vm4202_vm0 = vcmp.gt.f32.partialorder %v3236_v37, 0.0 }
 0x25b   : > { %2835 = vpow2.f32 %v1385_v59  ;;  %2680 = vmatprep.mubr.msk.bf16.mxu0 %vm2474_vm1, %v2475_v26  ;;  %2649 = vmatmul.mubr.msk.bf16.vlgmr.msra.gmra.mrb[16].mxu1 %vm3715_vm11, %v2430_v51  ;;  %v1366_v46 = vsub.f32 %v3300_v14, %v1309_v6  ;;  %v1663_v47 = vsub.f32 %v3326_v31, %v1309_v6  ;;  %v1707_v31 = vsel %vm946_vm8, %v2830_v45, 0.0  ;;  %vm4203_vm2 = vmmov %vm4202_vm0 }
 0x25c   : > { %2681 = vmatmul.mubr.msk.bf16.vlgmr.msra.gmra.mrb[16].mxu0 %vm2477_vm4, %v2478_v8  ;;  %1728 = vadd.xlane.f32.xlu0 %v1709_v20  ;;  %2837 = vpow2.f32 %v1682_v1  ;;  %vm2432_vm5 = vmpackc.low %vm4204_vm3, %vm4203_vm2  ;;  %vm4207_vm8 = vcmp.gt.f32.partialorder %v3272_v57, 0.0  ;;  %vm4208_vm1 = vcmp.gt.f32.partialorder %v3169_v18, 0.0  ;;  %vm4210_vm2 = vcmp.gt.f32.partialorder %v3192_v27, 0.0 }
 0x25d   : > { %v3743_v49 = vpop.eup %2831  ;;  %v1387_v30 = vmul.f32 1.442695, %v1366_v46  ;;  %v1684_v17 = vmul.f32 1.442695, %v1663_v47  ;;  %vm2480_vm11 = vmpackc.low %vm4207_vm8, %vm4206_vm7 }
 0x25e   : > { %v1319_v16 = vpop.permute.xlu1 %1318  ;;  %v1415_v25 = vsel %vm704_vm9, %v3743_v49, 0.0  ;;  %v3748_v28 = vpop.eup %2833  ;;  %vm2435_vm4 = vmpackc.low %vm4208_vm1, %vm704_vm9 }
 0x25f   : > { %2839 = vpow2.f32 %v1387_v30  ;;  %v1368_v14 = vsub.f32 %v3223_v33, %v1319_v16  ;;  %v1665_v2 = vsub.f32 %v3258_v52, %v1319_v16  ;;  %1437 = vadd.xlane.f32.xlu1 %v1415_v25  ;;  %v1712_v50 = vsel %vm951_vm12, %v3748_v28, 0.0  ;;  %vm2483_vm3 = vmpackc.low %vm4210_vm2, %vm951_vm12 }
 0x260   : > { %2841 = vpow2.f32 %v1684_v17  ;;  %1724 = vadd.xlane.f32.xlu0 %v1707_v31  ;;  %vm4211_vm9 = vmmov %vm4210_vm2  ;;  %vm4212_vm12 = vcmp.gt.f32.partialorder %v3250_v44, 0.0  ;;  %v4217_v44 = vld [vmem:[#allocation21_spill] sm:$0xff] }
 0x261   : > { %v1391_v60 = vmul.f32 1.442695, %v1368_v14  ;;  %v1688_v42 = vmul.f32 1.442695, %v1665_v2  ;;  %vm4218_vm7 = vmmov %vm4207_vm8 }
 0x263   : > { %2843 = vpow2.f32 %v1391_v60  ;;  %1734 = vadd.xlane.f32.xlu1 %v1712_v50 }
 0x264   : > { %2845 = vpow2.f32 %v1688_v42 }
 0x265   : > { %v2836_v53 = vpop.eup %2835 }
 0x266   : > { %v1324_v58 = vpop.permute.xlu1 %1323  ;;  %v1413_v33 = vsel %vm4202_vm0, %v2836_v53, 0.0  ;;  %v2838_v52 = vpop.eup %2837  ;;  %vm4209_vm0 = vmmov %vm4208_vm1 }
 0x267   : > { %v1369_v10 = vsub.f32 %v3411_v43, %v1324_v58  ;;  %v1666_v34 = vsub.f32 %v3434_v35, %v1324_v58  ;;  %1433 = vadd.xlane.f32.xlu1 %v1413_v33  ;;  %v1710_v43 = vsel %vm4205_vm6, %v2838_v52, 0.0 }
 0x268   : > { %v1329_v29 = vpop.permute.xlu0 %1328 }
 0x269   : > { %v2840_v41 = vpop.eup %2839  ;;  %v1393_v55 = vmul.f32 1.442695, %v1369_v10  ;;  %v1690_v0 = vmul.f32 1.442695, %v1666_v34  ;;  %v1370_v22 = vsub.f32 %v3424_v63, %v1329_v29  ;;  %v1667_v4 = vsub.f32 %v3443_v5, %v1329_v29  ;;  %v4220_v34 = vld [vmem:[#allocation22_spill] sm:$0xff] }
 0x26a   : > { %v3767_v13 = vpop.eup %2841  ;;  %v1334_v45 = vpop.permute.xlu1 %1333  ;;  %v2433_v35 = vpack.c.bf16 %v2840_v41, %v2836_v53  ;;  %v1414_v27 = vsel %vm4212_vm12, %v2840_v41, 0.0  ;;  %v4221_v41 = vld [vmem:[#allocation10_spill] sm:$0xff] }
 0x26b   : > { %2847 = vpow2.f32 %v1393_v55  ;;  %v1395_v39 = vmul.f32 1.442695, %v1370_v22  ;;  %v1692_v62 = vmul.f32 1.442695, %v1667_v4  ;;  %v1371_v51 = vsub.f32 %v3330_v38, %v1334_v45  ;;  %1730 = vadd.xlane.f32.xlu1 %v1710_v43  ;;  %v4223_v55 = vld [vmem:[#allocation11_spill] sm:$0xff] }
 0x26c   : > { %2849 = vpow2.f32 %v1690_v0  ;;  %v1668_v37 = vsub.f32 %v3384_v36, %v1334_v45  ;;  %v1339_v5 = vpop.permute.xlu0 %1338  ;;  %2652 = vmatprep.mubr.msk.bf16.mxu1 %vm2432_vm5, %v2433_v35  ;;  %v2481_v63 = vpack.c.bf16 %v3767_v13, %v2838_v52  ;;  %vm4213_vm5 = vcmp.gt.f32.partialorder %v3346_v23, 0.0  ;;  %v4219_v52 = vld [vmem:[#allocation17_spill] sm:$0xff]  ;;  %v4266_v0 = vld [vmem:[#allocation28_spill] sm:$0xff] }
 0x26d   : > { %v2844_v59 = vpop.eup %2843  ;;  %2851 = vpow2.f32 %v1395_v39  ;;  %v1397_v1 = vmul.f32 1.442695, %v1371_v51  ;;  %v1372_v26 = vsub.f32 %v3337_v48, %v1339_v5  ;;  %v1669_v38 = vsub.f32 %v3394_v7, %v1339_v5  ;;  %vm3807_vm6 = vmpackc.low %vm707_vm13, %vm4213_vm5  ;;  %v4232_v5 = vld [vmem:[#allocation7_spill] sm:$0xff] }
 0x26e   : > { %v2846_v54 = vpop.eup %2845  ;;  %2853 = vpow2.f32 %v1692_v62  ;;  %v1694_v8 = vmul.f32 1.442695, %v1668_v37  ;;  %2684 = vmatprep.mubr.msk.bf16.mxu0 %vm2480_vm11, %v2481_v63  ;;  %v1416_v36 = vsel %vm4209_vm0, %v2844_v59, 0.0  ;;  %v2436_v6 = vpack.c.bf16 %v2844_v59, %v3743_v49  ;;  %v4230_v62 = vld [vmem:[#allocation6_spill] sm:$0xff]  ;;  %v4234_v63 = vld [vmem:[#allocation8_spill] sm:$0xff] }
 0x26f   : > { %2855 = vpow2.f32 %v1397_v1  ;;  %v1399_v48 = vmul.f32 1.442695, %v1372_v26  ;;  %v1696_v11 = vmul.f32 1.442695, %v1669_v38  ;;  %1439 = vadd.xlane.f32.xlu0 %v1416_v36  ;;  %v2484_v7 = vpack.c.bf16 %v2846_v54, %v3748_v28 }
 0x270   : > { %2857 = vpow2.f32 %v1694_v8  ;;  %2653 = vmatmul.mubr.msk.bf16.gmra.mrb[20].mxu1 %vm2435_vm4, %v2436_v6  ;;  %v1713_v46 = vsel %vm4211_vm9, %v2846_v54, 0.0  ;;  %vm4222_vm8 = vcmp.gt.f32.partialorder %v4221_v41, 0.0  ;;  %vm4224_vm11 = vcmp.gt.f32.partialorder %v4223_v55, 0.0 }
 0x271   : > { %2859 = vpow2.f32 %v1399_v48  ;;  %2685 = vmatmul.mubr.msk.bf16.gmra.mrb[20].mxu0 %vm2483_vm3, %v2484_v7  ;;  %vm3823_vm1 = vmpackc.low %vm4224_vm11, %vm4222_vm8  ;;  %vm4231_vm2 = vcmp.gt.f32.partialorder %v4230_v62, 0.0  ;;  %vm4233_vm9 = vcmp.gt.f32.partialorder %v4232_v5, 0.0  ;;  %vm4235_vm12 = vcmp.gt.f32.partialorder %v4234_v63, 0.0  ;;  %v4240_v48 = vld [vmem:[#allocation14_spill] sm:$0xff] }
 0x272   : > { %2861 = vpow2.f32 %v1696_v11  ;;  %v1344_v18 = vpop.permute.xlu1 %1343  ;;  %vm2489_vm5 = vmpackc.low %vm4235_vm12, %vm4233_vm9  ;;  %vm4239_vm11 = vcmp.gt.f32.partialorder %v3346_v23, 0.0  ;;  %v4281_v11 = vld [vmem:[#allocation30_spill] sm:$0xff] }
 0x273   : > { %v1373_v24 = vsub.f32 %v3466_v61, %v1344_v18  ;;  %v1670_v47 = vsub.f32 %v3482_v3, %v1344_v18  ;;  %1736 = vadd.xlane.f32.xlu0 %v1713_v46  ;;  %vm4238_vm8 = vmmov %vm4235_vm12  ;;  %v4243_v46 = vld [vmem:[#allocation16_spill] sm:$0xff] }
 0x274   : > { %v1349_v20 = vpop.permute.xlu0 %1348 }
 0x275   : > { %v2848_v49 = vpop.eup %2847  ;;  %v1401_v30 = vmul.f32 1.442695, %v1373_v24  ;;  %v1698_v17 = vmul.f32 1.442695, %v1670_v47  ;;  %v1374_v16 = vsub.f32 %v3475_v9, %v1349_v20  ;;  %v1671_v25 = vsub.f32 %v3491_v15, %v1349_v20 }
 0x276   : > { %v3798_v28 = vpop.eup %2849  ;;  %v1354_v14 = vpop.permute.xlu1 %1353  ;;  %v1417_v6 = vsel %vm4239_vm11, %v2848_v49, 0.0 }
 0x277   : > { %v2852_v2 = vpop.eup %2851  ;;  %2863 = vpow2.f32 %v1401_v30  ;;  %v1403_v61 = vmul.f32 1.442695, %v1374_v16  ;;  %v1700_v31 = vmul.f32 1.442695, %v1671_v25  ;;  %v1375_v3 = vsub.f32 %v3448_v56, %v1354_v14  ;;  %1435 = vadd.xlane.f32.xlu0 %v1414_v27  ;;  %v4247_v16 = vld [vmem:[#allocation12_spill] sm:$0xff]  ;;  %v4249_v25 = vld [vmem:[#allocation13_spill] sm:$0xff] }
 0x278   : > { %v3811_v15 = vpop.eup %2853  ;;  %2865 = vpow2.f32 %v1698_v17  ;;  %v1672_v42 = vsub.f32 %v4217_v44, %v1354_v14  ;;  %v1359_v50 = vpop.permute.xlu0 %1358  ;;  %v2439_v53 = vpack.c.bf16 %v2852_v2, %v2848_v49  ;;  %v1711_v56 = vsel %vm4218_vm7, %v3767_v13, 0.0  ;;  %v4227_v13 = vld [vmem:[#allocation5_spill] sm:$0xff]  ;;  %vm4237_vm7 = vmmov %vm4233_vm9 }
 0x279   : > { %v2856_v58 = vpop.eup %2855  ;;  %2867 = vpow2.f32 %v1403_v61  ;;  %v1405_v33 = vmul.f32 1.442695, %v1375_v3  ;;  %v1376_v10 = vsub.f32 %v4219_v52, %v1359_v50  ;;  %v1673_v29 = vsub.f32 %v4220_v34, %v1359_v50  ;;  %v4263_v34 = vld [vmem:[#allocation35_spill] sm:$0xff] }
 0x27a   : > { %v2858_v22 = vpop.eup %2857  ;;  %2869 = vpow2.f32 %v1700_v31  ;;  %v1702_v4 = vmul.f32 1.442695, %v1672_v42  ;;  %2656 = vmatprep.mubr.msk.bf16.mxu1 %vm3807_vm6, %v2439_v53  ;;  %v2487_v57 = vpack.c.bf16 %v3811_v15, %v3798_v28  ;;  %vm4228_vm4 = vcmp.gt.f32.partialorder %v4227_v13, 0.0  ;;  %vm4236_vm6 = vmmov %vm4231_vm2  ;;  %v4252_v31 = vld [vmem:[#allocation20_spill] sm:$0xff]  ;;  %v4258_v53 = vld [vmem:[#allocation23_spill] sm:$0xff] }
 0x27b   : > { %v1419_v45 = vsel %vm4228_vm4, %v2856_v58, 0.0  ;;  %v2860_v43 = vpop.eup %2859  ;;  %2871 = vpow2.f32 %v1405_v33  ;;  %v1407_v35 = vmul.f32 1.442695, %v1376_v10  ;;  %v1704_v39 = vmul.f32 1.442695, %v1673_v29  ;;  %1732 = vadd.xlane.f32.xlu0 %v1711_v56  ;;  %vm4229_vm0 = vmmov %vm4228_vm4  ;;  %v4259_v56 = vld [vmem:[#allocation24_spill] sm:$0xff] }
 0x27c   : > { %1445 = vadd.xlane.f32.xlu1 %v1419_v45  ;;  %vm2441_vm3 = vmpackc.low %vm4231_vm2, %vm4229_vm0  ;;  %v2862_v51 = vpop.eup %2861  ;;  %2873 = vpow2.f32 %v1702_v4  ;;  %2688 = vmatprep.mubr.msk.bf16.mxu0 %vm3823_vm1, %v2487_v57  ;;  %v2442_v37 = vpack.c.bf16 %v2860_v43, %v2856_v58  ;;  %v1420_v1 = vsel %vm4236_vm6, %v2860_v43, 0.0  ;;  %v1716_v26 = vsel %vm4237_vm7, %v2858_v22, 0.0  ;;  %v4262_v10 = vld [vmem:[#allocation33_spill] sm:$0xff]  ;;  %v4269_v13 = vld [vmem:[#allocation31_spill] sm:$0xff] }
 0x27d   : > { %2875 = vpow2.f32 %v1407_v35  ;;  %v2490_v59 = vpack.c.bf16 %v2862_v51, %v2858_v22  ;;  %v1717_v8 = vsel %vm4238_vm8, %v2862_v51, 0.0  ;;  %vm4241_vm1 = vcmp.gt.f32.partialorder %v4240_v48, 0.0  ;;  %v4268_v57 = vld [vmem:[#allocation29_spill] sm:$0xff] }
 0x27e   : > { %2877 = vpow2.f32 %v1704_v39  ;;  %2657 = vmatmul.mubr.msk.bf16.gmra.mrb[24].mxu1 %vm2441_vm3, %v2442_v37  ;;  %vm2444_vm4 = vmpackc.low %vm711_vm15, %vm4241_vm1  ;;  %vm4244_vm0 = vcmp.gt.f32.partialorder %v4243_v46, 0.0  ;;  %v1418_v23 = vsel %vm707_vm13, %v2852_v2, 0.0  ;;  %vm4246_vm3 = vcmp.gt.f32.partialorder %v4221_v41, 0.0  ;;  %v4271_v35 = vld [vmem:[#allocation25_spill] sm:$0xff]  ;;  %v4272_v39 = vld [vmem:[#allocation26_spill] sm:$0xff] }
 0x27f   : > { %2689 = vmatmul.mubr.msk.bf16.gmra.mrb[24].mxu0 %vm2489_vm5, %v2490_v59  ;;  %1447 = vadd.xlane.f32.xlu0 %v1420_v1  ;;  %vm2492_vm2 = vmpackc.low %vm958_vm10, %vm4244_vm0  ;;  %v1714_v17 = vsel %vm4246_vm3, %v3798_v28, 0.0  ;;  %vm4248_vm9 = vcmp.gt.f32.partialorder %v4247_v16, 0.0  ;;  %vm4250_vm12 = vcmp.gt.f32.partialorder %v4249_v25, 0.0  ;;  %vm4253_vm6 = vcmp.gt.f32.partialorder %v4252_v31, 0.0  ;;  %v4274_v37 = vld [vmem:[#allocation41_spill] sm:$0xff]  ;;  %v4276_v1 = vld [vmem:[#allocation34_spill] sm:$0xff] }
 0x280   : > { %1742 = vadd.xlane.f32.xlu1 %v1716_v26  ;;  %vm2447_vm5 = vmpackc.low %vm4250_vm12, %vm4248_vm9  ;;  %vm4254_vm7 = vcmp.gt.f32.partialorder %v4223_v55, 0.0  ;;  %v4260_v58 = vsub.f32 %v4258_v53, %v4259_v56  ;;  %v4264_v29 = vsub.f32 %v4262_v10, %v4263_v34  ;;  %v4265_v55 = vld [vmem:[#allocation27_spill] sm:$0xff]  ;;  %v4270_v45 = vsub.f32 %v4268_v57, %v4269_v13  ;;  %v4277_v26 = vld [vmem:[#allocation36_spill] sm:$0xff] }
 0x281   : > { %v2864_v38 = vpop.eup %2863  ;;  %vm2495_vm13 = vmpackc.low %vm4253_vm6, %vm959_vm14  ;;  %v1715_v3 = vsel %vm4254_vm7, %v3811_v15, 0.0  ;;  %v4267_v22 = vsub.f32 %v4265_v55, %v4266_v0  ;;  %v4273_v62 = vsub.f32 %v4271_v35, %v4272_v39  ;;  %v4275_v5 = vsub.f32 %v3626_v12, %v4274_v37  ;;  %v1140_v37 = vld [vmem:[#allocation3 + $0x18] sm:$0xff] }
 0x282   : > { %v2866_v54 = vpop.eup %2865  ;;  %vm4255_vm8 = vmmov %vm4248_vm9  ;;  %v1421_v15 = vsel %vm4241_vm1, %v2864_v38, 0.0  ;;  %v1109_v33 = vmul.f32 1.442695, %v4260_v58  ;;  %v1113_v41 = vmul.f32 1.442695, %v4264_v29  ;;  %v4284_v12 = vsub.f32 %v3650_v21, %v3655_v40  ;;  %v1139_v29 = vld [vmem:[#allocation3 + $0x10] sm:$0xff] }
 0x283   : > { %v2868_v36 = vpop.eup %2867  ;;  %1744 = vadd.xlane.f32.xlu0 %v1717_v8  ;;  %vm4256_vm11 = vmmov %vm4250_vm12  ;;  %v1107_v4 = vmul.f32 1.442695, %v4267_v22  ;;  %v1117_v43 = vmul.f32 1.442695, %v4270_v45  ;;  %v1111_v51 = vmul.f32 1.442695, %v4273_v62 }
 0x284   : > { %v2870_v7 = vpop.eup %2869  ;;  %1441 = vadd.xlane.f32.xlu1 %v1417_v6  ;;  %v2445_v18 = vpack.c.bf16 %v2868_v36, %v2864_v38  ;;  %v1422_v44 = vsel %vm711_vm15, %v2868_v36, 0.0  ;;  %2879 = vpow2.f32 %v1109_v33  ;;  %v1121_v63 = vmul.f32 1.442695, %v4275_v5  ;;  %v4279_v8 = vld [vmem:[#allocation37_spill] sm:$0xff]  ;;  %v4299_v45 = vld [vmem:[#allocation48_spill] sm:$0xff] }
 0x285   : > { %v2872_v47 = vpop.eup %2871  ;;  %v2493_v20 = vpack.c.bf16 %v2870_v7, %v2866_v54  ;;  %v1719_v42 = vsel %vm958_vm10, %v2870_v7, 0.0  ;;  %2881 = vpow2.f32 %v1113_v41  ;;  %v4278_v38 = vsub.f32 %v4276_v1, %v4277_v26  ;;  %v4282_v7 = vld [vmem:[#allocation32_spill] sm:$0xff]  ;;  %v3975_v41 = vpop.permute.xlu1 %1187  ;;  %v1137_v22 = vld [vmem:[#allocation3] sm:$0xff]  ;;  %v1138_v1 = vld [vmem:[#allocation3 + $0x8] sm:$0xff] }
 0x286   : > { %v2874_v30 = vpop.eup %2873  ;;  %2660 = vmatprep.mubr.msk.bf16.mxu1 %vm2444_vm4, %v2445_v18  ;;  %v1423_v28 = vsel %vm4255_vm8, %v2872_v47, 0.0  ;;  %vm4257_vm4 = vmmov %vm4244_vm0  ;;  %2883 = vpow2.f32 %v1107_v4  ;;  %v4280_v36 = vsub.f32 %v4279_v8, %v3612_v32  ;;  %v4283_v18 = vsub.f32 %v4281_v11, %v4282_v7  ;;  %v4285_v32 = vld [vmem:[#allocation40_spill] sm:$0xff]  ;;  %v1143_v11 = vld [vmem:[#allocation3 + $0x30] sm:$0xff] }
 0x287   : > { %v2876_v49 = vpop.eup %2875  ;;  %2692 = vmatprep.mubr.msk.bf16.mxu0 %vm2492_vm2, %v2493_v20  ;;  %1443 = vadd.xlane.f32.xlu0 %v1418_v23  ;;  %v1720_v9 = vsel %vm959_vm14, %v2874_v30, 0.0  ;;  %v1718_v50 = vsel %vm4257_vm4, %v2866_v54, 0.0  ;;  %vm4261_vm14 = vmmov %vm4253_vm6  ;;  %2885 = vpow2.f32 %v1117_v43  ;;  %v1115_v54 = vmul.f32 1.442695, %v4278_v38 }
 0x288   : > { %v2878_v14 = vpop.eup %2877  ;;  %1738 = vadd.xlane.f32.xlu1 %v1714_v17  ;;  %v2448_v27 = vpack.c.bf16 %v2876_v49, %v2872_v47  ;;  %v1424_v60 = vsel %vm4256_vm11, %v2876_v49, 0.0  ;;  %2887 = vpow2.f32 %v1111_v51  ;;  %v1125_v6 = vmul.f32 1.442695, %v4280_v36  ;;  %v4288_v17 = vld [vmem:[#allocation46_spill] sm:$0xff] }
 0x289   : > { %v2496_v2 = vpack.c.bf16 %v2878_v14, %v2874_v30  ;;  %v1721_v52 = vsel %vm4261_vm14, %v2878_v14, 0.0  ;;  %2889 = vpow2.f32 %v1121_v63  ;;  %v1119_v46 = vmul.f32 1.442695, %v4283_v18  ;;  %v4286_v30 = vld [vmem:[#allocation42_spill] sm:$0xff] }
 0x28a   : > { %2661 = vmatmul.mubr.msk.bf16.gmra.mrb[28].mxu1 %vm2447_vm5, %v2448_v27  ;;  %2891 = vpow2.f32 %v1115_v54  ;;  %v1129_v24 = vmul.f32 1.442695, %v4284_v12  ;;  %v4287_v23 = vsub.f32 %v4285_v32, %v4286_v30  ;;  %v4289_v16 = vsub.f32 %v3657_v19, %v4288_v17  ;;  %v4290_v14 = vld [vmem:[#allocation38_spill] sm:$0xff]  ;;  %v4291_v27 = vld [vmem:[#allocation39_spill] sm:$0xff]  ;;  %v1141_v17 = vld [vmem:[#allocation3 + $0x20] sm:$0xff] }
 0x28b   : > { %2693 = vmatmul.mubr.msk.bf16.gmra.mrb[28].mxu0 %vm2495_vm13, %v2496_v2  ;;  %1740 = vadd.xlane.f32.xlu0 %v1715_v3  ;;  %2893 = vpow2.f32 %v1125_v6  ;;  %v4292_v61 = vsub.f32 %v4290_v14, %v4291_v27  ;;  %v4293_v2 = vld [vmem:[#allocation45_spill] sm:$0xff]  ;;  %v4294_v3 = vld [vmem:[#allocation47_spill] sm:$0xff]  ;;  %v1153_v43 = vmul.f32 %v4299_v45, %v1137_v22  ;;  %vm4300_vm10 = vcmask 7168  }
 0x28c   : > { %1453 = vadd.xlane.f32.xlu1 %v1423_v28  ;;  %2895 = vpow2.f32 %v1119_v46  ;;  %v1123_v49 = vmul.f32 1.442695, %v4287_v23  ;;  %v1133_v25 = vmul.f32 1.442695, %v4289_v16  ;;  %v4295_v28 = vsub.f32 %v4293_v2, %v4294_v3  ;;  %vm4301_vm15 = vmmov %vm4300_vm10 }
 0x28d   : > { %2897 = vpow2.f32 %v1129_v24  ;;  %v1127_v31 = vmul.f32 1.442695, %v4292_v61  ;;  %vm4302_vm2 = vmmov %vm4300_vm10 }
 0x28e   : > { %v2880_v59 = vpop.eup %2879  ;;  %2899 = vpow2.f32 %v1123_v49  ;;  %vm4303_vm9 = vmmov %vm4302_vm2 }
 0x28f   : > { %1455 = vadd.xlane.f32.xlu0 %v1424_v60  ;;  %v3915_v48 = vpop.eup %2881  ;;  %2901 = vpow2.f32 %v1133_v25  ;;  %v1135_v60 = vmul.f32 1.442695, %v4295_v28  ;;  %v1155_v55 = vmul.f32 %v2880_v59, %v1139_v29  ;;  %vm4304_vm12 = vmmov %vm4302_vm2 }
 0x290   : > { %1750 = vadd.xlane.f32.xlu1 %v1720_v9  ;;  %v3924_v47 = vpop.eup %2883  ;;  %2903 = vpow2.f32 %v1127_v31  ;;  %v1157_v14 = vmul.f32 %v3915_v48, %v1141_v17  ;;  %vm4305_vm7 = vmmov %vm4302_vm2 }
 0x291   : > { %v3926_v20 = vpop.eup %2885  ;;  %2905 = vpow2.f32 %v1135_v60  ;;  %v1154_v36 = vmul.f32 %v3924_v47, %v1138_v1  ;;  %vm4306_vm11 = vmmov %vm4302_vm2 }
 0x292   : > { %v2888_v21 = vpop.eup %2887  ;;  %v1159_v24 = vmul.f32 %v3926_v20, %v1143_v11  ;;  %vm4307_vm1 = vmmov %vm4302_vm2  ;;  %v1145_v11 = vld [vmem:[#allocation3 + $0x40] sm:$0xff] }
 0x293   : > { %1451 = vadd.xlane.f32.xlu0 %v1422_v44  ;;  %v3936_v40 = vpop.eup %2889  ;;  %v4296_v44 = vld [vmem:[#allocation43_spill] sm:$0xff]  ;;  %v1156_v63 = vmul.f32 %v2888_v21, %v1140_v37  ;;  %vm4308_vm14 = vmmov %vm4307_vm1 }
 0x294   : > { %1449 = vadd.xlane.f32.xlu1 %v1421_v15  ;;  %v3945_v9 = vpop.eup %2891  ;;  %v4297_v15 = vld [vmem:[#allocation44_spill] sm:$0xff] }
 0x295   : > { %v3947_v19 = vpop.eup %2893 }
 0x296   : > { %v3954_v53 = vpop.eup %2895 }
 0x297   : > { %1748 = vadd.xlane.f32.xlu0 %v1719_v42  ;;  %v4298_v42 = vsub.f32 %v4296_v44, %v4297_v15  ;;  %v3956_v56 = vpop.eup %2897  ;;  %v1144_v44 = vld [vmem:[#allocation3 + $0x38] sm:$0xff] }
 0x298   : > { %1746 = vadd.xlane.f32.xlu1 %v1718_v50  ;;  %v3960_v58 = vpop.eup %2899 }
 0x299   : > { %v1131_v50 = vmul.f32 1.442695, %v4298_v42  ;;  %v3962_v33 = vpop.eup %2901 }
 0x29b   : > { %1752 = vadd.xlane.f32.xlu0 %v1721_v52  ;;  %2907 = vpow2.f32 %v1131_v50  ;;  %v3966_v52 = vpop.eup %2903 }
 0x29c   : > { %v3968_v10 = vpop.eup %2905 }
 0x2a5   : > { %v3972_v34 = vpop.eup %2907 }
 0x2a9   : > { %1197 = vperm.xlu1 %2772, %v2880_v59  }
 0x2ad   : > { %1207 = vperm.xlu1 %2772, %v3915_v48   ;;  %v1160_v48 = vmul.f32 %v3954_v53, %v1144_v44  ;;  %v1150_v44 = vld [vmem:[#allocation3 + $0x68] sm:$0xff] }
 0x2b1   : > { %1217 = vperm.xlu1 %2772, %v3926_v20   ;;  %1192 = vperm.xlu0 %2771, %v3924_v47  }
 0x2b5   : > { %1227 = vperm.xlu1 %2772, %v3936_v40   ;;  %1202 = vperm.xlu0 %2771, %v2888_v21  }
 0x2b9   : > { %1237 = vperm.xlu1 %2772, %v3947_v19   ;;  %1212 = vperm.xlu0 %2771, %v3945_v9  }
 0x2bd   : > { %1247 = vperm.xlu1 %2772, %v3956_v56   ;;  %1222 = vperm.xlu0 %2771, %v3954_v53   ;;  %v1147_v53 = vld [vmem:[#allocation3 + $0x50] sm:$0xff] }
 0x2c1   : > { %1257 = vperm.xlu1 %2772, %v3962_v33   ;;  %1232 = vperm.xlu0 %2771, %v3960_v58  }
 0x2c5   : > { %1262 = vperm.xlu1 %2772, %v3968_v10   ;;  %1242 = vperm.xlu0 %2771, %v3966_v52  }
 0x2c9   : > { %1252 = vperm.xlu0 %2771, %v3972_v34  }
 0x2dc   : > { %v1430_v0 = vpop.xlane.xlu0 %1429 }
 0x2dd   : > { %v1459_v4 = vadd.f32 %v1430_v0, %v1155_v55  ;;  %v1727_v57 = vpop.xlane.xlu1 %1726 }
 0x2df   : > { %v1756_v13 = vadd.f32 %v1727_v57, %v1459_v4  ;;  %v1142_v4 = vld [vmem:[#allocation3 + $0x28] sm:$0xff] }
 0x2e0   : > { %v1426_v35 = vpop.xlane.xlu0 %1425 }
 0x2e1   : > { %1975 = vst.msk [vmem:[#allocation3 + $0x10] sm:$0xff] %vm4300_vm10, %v1756_v13  ;;  %v1457_v39 = vadd.f32 %v1426_v35, %v1153_v43  ;;  %v1723_v62 = vpop.xlane.xlu1 %1722  ;;  %v1158_v43 = vmul.f32 %v3945_v9, %v1142_v4  ;;  %vm4309_vm10 = vmmov %vm4307_vm1 }
 0x2e3   : > { %v1754_v51 = vadd.f32 %v1723_v62, %v1457_v39 }
 0x2e4   : > { %v1432_v5 = vpop.xlane.xlu0 %1431 }
 0x2e5   : > { %1973 = vst.msk [vmem:[#allocation3] sm:$0xff] %vm4301_vm15, %v1754_v51  ;;  %v1460_v26 = vadd.f32 %v1432_v5, %v1156_v63  ;;  %v1163_v5 = vmul.f32 %v3947_v19, %v1147_v53  ;;  %v1148_v63 = vld [vmem:[#allocation3 + $0x58] sm:$0xff] }
 0x2e6   : > { %v1428_v38 = vpop.xlane.xlu1 %1427  ;;  %v1164_v9 = vmul.f32 %v3966_v52, %v1148_v63  ;;  %v1171_v63 = vld [vmem:[#allocation4 + $0x10] sm:$0xff] }
 0x2e7   : > { %v1458_v7 = vadd.f32 %v1428_v38, %v1154_v36 }
 0x2e8   : > { %v2010_v59 = vld [vmem:[#allocation3 + $0x10] sm:$0xff] }
 0x2e9   : > { %vm2026_vm0 = vcmp.eq.f32.partialorder %v2010_v59, 0.0  ;;  %v1729_v54 = vpop.xlane.xlu0 %1728 }
 0x2ea   : > { %v2042_v8 = vsel %vm2026_vm0, 1.0, %v2010_v59  ;;  %v1757_v6 = vadd.f32 %v1729_v54, %v1460_v26 }
 0x2eb   : > { %2909 = vrcp.f32 %v2042_v8 }
 0x2ec   : > { %1976 = vst.msk [vmem:[#allocation3 + $0x18] sm:$0xff] %vm4302_vm2, %v1757_v6  ;;  %v1438_v18 = vpop.xlane.xlu1 %1437  ;;  %v2008_v46 = vld [vmem:[#allocation3] sm:$0xff]  ;;  %vm4310_vm2 = vmmov %vm4307_vm1 }
 0x2ed   : > { %v1725_v12 = vpop.xlane.xlu0 %1724  ;;  %vm2024_vm3 = vcmp.eq.f32.partialorder %v2008_v46, 0.0  ;;  %v1463_v23 = vadd.f32 %v1438_v18, %v1159_v24 }
 0x2ee   : > { %v1755_v32 = vadd.f32 %v1725_v12, %v1458_v7  ;;  %v2040_v30 = vsel %vm2024_vm3, 1.0, %v2008_v46  ;;  %v1161_v46 = vmul.f32 %v3936_v40, %v1145_v11  ;;  %v1146_v12 = vld [vmem:[#allocation3 + $0x48] sm:$0xff] }
 0x2ef   : > { %2911 = vrcp.f32 %v2040_v30 }
 0x2f0   : > { %1974 = vst.msk [vmem:[#allocation3 + $0x8] sm:$0xff] %vm4303_vm9, %v1755_v32  ;;  %v1735_v49 = vpop.xlane.xlu1 %1734  ;;  %vm4311_vm9 = vmmov %vm4307_vm1 }
 0x2f1   : > { %v1760_v47 = vadd.f32 %v1735_v49, %v1463_v23  ;;  %v1162_v23 = vmul.f32 %v3960_v58, %v1146_v12 }
 0x2f3   : > { %1979 = vst.msk [vmem:[#allocation3 + $0x30] sm:$0xff] %vm4304_vm12, %v1760_v47  ;;  %v2011_v16 = vld [vmem:[#allocation3 + $0x18] sm:$0xff] }
 0x2f4   : > { %v1434_v25 = vpop.xlane.xlu1 %1433  ;;  %vm2027_vm5 = vcmp.eq.f32.partialorder %v2011_v16, 0.0 }
 0x2f5   : > { %v2910_v21 = vpop.eup %2909  ;;  %v2043_v27 = vsel %vm2027_vm5, 1.0, %v2011_v16  ;;  %v1461_v61 = vadd.f32 %v1434_v25, %v1157_v14  ;;  %vm4312_vm5 = vmmov %vm4307_vm1 }
 0x2f6   : > { %2100 = vperm.xlu1 %2772, %v2910_v21   ;;  %2913 = vrcp.f32 %v2043_v27  ;;  %v1151_v21 = vld [vmem:[#allocation3 + $0x70] sm:$0xff] }
 0x2f7   : > { %v2009_v20 = vld [vmem:[#allocation3 + $0x8] sm:$0xff] }
 0x2f8   : > { %vm2025_vm6 = vcmp.eq.f32.partialorder %v2009_v20, 0.0  ;;  %v1731_v31 = vpop.xlane.xlu1 %1730 }
 0x2f9   : > { %v2912_v2 = vpop.eup %2911  ;;  %v2041_v3 = vsel %vm2025_vm6, 1.0, %v2009_v20  ;;  %v1758_v28 = vadd.f32 %v1731_v31, %v1461_v61  ;;  %v1167_v31 = vmul.f32 %v3962_v33, %v1151_v21  ;;  %v1166_v33 = vmul.f32 %v3972_v34, %v1150_v44 }
 0x2fa   : > { %2915 = vrcp.f32 %v2041_v3  ;;  %v2014_v60 = vld [vmem:[#allocation3 + $0x30] sm:$0xff]  ;;  %2090 = vperm.xlu0 %2771, %v2912_v2  }
 0x2fb   : > { %vm2030_vm13 = vcmp.eq.f32.partialorder %v2014_v60, 0.0  ;;  %1977 = vst.msk [vmem:[#allocation3 + $0x20] sm:$0xff] %vm4305_vm7, %v1758_v28  ;;  %vm4314_vm7 = vmmov %vm4307_vm1 }
 0x2fc   : > { %v2046_v15 = vsel %vm2030_vm13, 1.0, %v2014_v60  ;;  %v1440_v42 = vpop.xlane.xlu0 %1439  ;;  %vm4313_vm13 = vmmov %vm4307_vm1 }
 0x2fd   : > { %2917 = vrcp.f32 %v2046_v15  ;;  %v1464_v50 = vadd.f32 %v1440_v42, %v1160_v48  ;;  %v1149_v48 = vld [vmem:[#allocation3 + $0x60] sm:$0xff] }
 0x2fe   : > { %v1165_v4 = vmul.f32 %v3956_v56, %v1149_v48  ;;  %v1175_v48 = vld [vmem:[#allocation4 + $0x30] sm:$0xff] }
 0x300   : > { %v2914_v29 = vpop.eup %2913  ;;  %v1737_v55 = vpop.xlane.xlu0 %1736 }
 0x301   : > { %v1761_v0 = vadd.f32 %v1737_v55, %v1464_v50  ;;  %2105 = vperm.xlu0 %2771, %v2914_v29  }
 0x302   : > { %v2012_v22 = vld [vmem:[#allocation3 + $0x20] sm:$0xff] }
 0x303   : > { %vm2028_vm8 = vcmp.eq.f32.partialorder %v2012_v22, 0.0  ;;  %1980 = vst.msk [vmem:[#allocation3 + $0x38] sm:$0xff] %vm4306_vm11, %v1761_v0 }
 0x304   : > { %v2916_v57 = vpop.eup %2915  ;;  %v2044_v13 = vsel %vm2028_vm8, 1.0, %v2012_v22  ;;  %v1436_v45 = vpop.xlane.xlu0 %1435  ;;  %v1152_v22 = vld [vmem:[#allocation3 + $0x78] sm:$0xff]  ;;  %vm4315_vm8 = vmmov %vm4307_vm1 }
 0x305   : > { %2919 = vrcp.f32 %v2044_v13  ;;  %2095 = vperm.xlu1 %2772, %v2916_v57   ;;  %v1462_v39 = vadd.f32 %v1436_v45, %v1158_v43 }
 0x307   : > { %v2918_v35 = vpop.eup %2917 }
 0x308   : > { %v1733_v62 = vpop.xlane.xlu0 %1732 }
 0x309   : > { %v1446_v51 = vpop.xlane.xlu1 %1445  ;;  %v1759_v37 = vadd.f32 %v1733_v62, %v1462_v39  ;;  %2120 = vperm.xlu1 %2772, %v2918_v35   ;;  %v1168_v39 = vmul.f32 %v3968_v10, %v1152_v22 }
 0x30a   : > { %v2015_v1 = vld [vmem:[#allocation3 + $0x38] sm:$0xff]  ;;  %v1467_v59 = vadd.f32 %v1446_v51, %v1163_v5 }
 0x30b   : > { %1978 = vst.msk [vmem:[#allocation3 + $0x28] sm:$0xff] %vm4307_vm1, %v1759_v37  ;;  %vm2031_vm4 = vcmp.eq.f32.partialorder %v2015_v1, 0.0 }
 0x30c   : > { %v1448_v26 = vpop.xlane.xlu0 %1447  ;;  %v2047_v38 = vsel %vm2031_vm4, 1.0, %v2015_v1 }
 0x30d   : > { %v1743_v54 = vpop.xlane.xlu1 %1742  ;;  %2921 = vrcp.f32 %v2047_v38  ;;  %v1468_v6 = vadd.f32 %v1448_v26, %v1164_v9 }
 0x30e   : > { %v1764_v8 = vadd.f32 %v1743_v54, %v1467_v59  ;;  %v1169_v59 = vld [vmem:[#allocation4] sm:$0xff] }
 0x30f   : > { %v2920_v36 = vpop.eup %2919  ;;  %v1265_v9 = vmul.f32 %v3975_v41, %v1169_v59 }
 0x310   : > { %1983 = vst.msk [vmem:[#allocation3 + $0x50] sm:$0xff] %vm4308_vm14, %v1764_v8  ;;  %v1745_v7 = vpop.xlane.xlu0 %1744  ;;  %2110 = vperm.xlu1 %2772, %v2920_v36  }
 0x311   : > { %v1765_v19 = vadd.f32 %v1745_v7, %v1468_v6  ;;  %v1442_v18 = vpop.xlane.xlu1 %1441 }
 0x312   : > { %v2013_v24 = vld [vmem:[#allocation3 + $0x28] sm:$0xff]  ;;  %v1465_v52 = vadd.f32 %v1442_v18, %v1161_v46 }
 0x313   : > { %1984 = vst.msk [vmem:[#allocation3 + $0x58] sm:$0xff] %vm4309_vm10, %v1765_v19  ;;  %vm2029_vm15 = vcmp.eq.f32.partialorder %v2013_v24, 0.0  ;;  %vm4316_vm10 = vcmask 64512  }
 0x314   : > { %v1444_v32 = vpop.xlane.xlu0 %1443  ;;  %v2045_v30 = vsel %vm2029_vm15, 1.0, %v2013_v24  ;;  %vm4317_vm15 = vmmov %vm4316_vm10 }
 0x315   : > { %v1739_v49 = vpop.xlane.xlu1 %1738  ;;  %2923 = vrcp.f32 %v2045_v30  ;;  %v1466_v25 = vadd.f32 %v1444_v32, %v1162_v23 }
 0x316   : > { %v1762_v47 = vadd.f32 %v1739_v49, %v1465_v52  ;;  %v1170_v52 = vld [vmem:[#allocation4 + $0x8] sm:$0xff] }
 0x317   : > { %v2922_v17 = vpop.eup %2921  ;;  %v2018_v16 = vld [vmem:[#allocation3 + $0x50] sm:$0xff] }
 0x318   : > { %vm2034_vm0 = vcmp.eq.f32.partialorder %v2018_v16, 0.0  ;;  %1981 = vst.msk [vmem:[#allocation3 + $0x40] sm:$0xff] %vm4310_vm2, %v1762_v47  ;;  %v1741_v40 = vpop.xlane.xlu0 %1740  ;;  %2125 = vperm.xlu0 %2771, %v2922_v17  }
 0x319   : > { %v2050_v14 = vsel %vm2034_vm0, 1.0, %v2018_v16  ;;  %v1763_v27 = vadd.f32 %v1741_v40, %v1466_v25  ;;  %v1454_v20 = vpop.xlane.xlu1 %1453  ;;  %vm4318_vm0 = vmmov %vm4316_vm10 }
 0x31a   : > { %2925 = vrcp.f32 %v2050_v14  ;;  %v2019_v61 = vld [vmem:[#allocation3 + $0x58] sm:$0xff]  ;;  %v1471_v2 = vadd.f32 %v1454_v20, %v1167_v31  ;;  %vm4319_vm2 = vmmov %vm4318_vm0 }
 0x31b   : > { %vm2035_vm3 = vcmp.eq.f32.partialorder %v2019_v61, 0.0  ;;  %1982 = vst.msk [vmem:[#allocation3 + $0x48] sm:$0xff] %vm4311_vm9, %v1763_v27  ;;  %v1172_v14 = vld [vmem:[#allocation4 + $0x18] sm:$0xff]  ;;  %vm4321_vm9 = vmmov %vm4318_vm0 }
 0x31c   : > { %v2051_v58 = vsel %vm2035_vm3, 1.0, %v2019_v61  ;;  %v1456_v3 = vpop.xlane.xlu0 %1455  ;;  %vm4320_vm3 = vmmov %vm4318_vm0 }
 0x31d   : > { %2927 = vrcp.f32 %v2051_v58  ;;  %v1751_v28 = vpop.xlane.xlu1 %1750  ;;  %v1472_v37 = vadd.f32 %v1456_v3, %v1168_v39 }
 0x31e   : > { %v1768_v60 = vadd.f32 %v1751_v28, %v1471_v2 }
 0x31f   : > { %v2924_v15 = vpop.eup %2923  ;;  %v2016_v42 = vld [vmem:[#allocation3 + $0x40] sm:$0xff] }
 0x320   : > { %vm2032_vm12 = vcmp.eq.f32.partialorder %v2016_v42, 0.0  ;;  %1987 = vst.msk [vmem:[#allocation3 + $0x70] sm:$0xff] %vm4312_vm5, %v1768_v60  ;;  %v1452_v50 = vpop.xlane.xlu0 %1451  ;;  %2115 = vperm.xlu0 %2771, %v2924_v15   ;;  %vm4323_vm5 = vmmov %vm4318_vm0 }
 0x321   : > { %v2048_v29 = vsel %vm2032_vm12, 1.0, %v2016_v42  ;;  %v1450_v55 = vpop.xlane.xlu1 %1449  ;;  %v1470_v57 = vadd.f32 %v1452_v50, %v1166_v33  ;;  %v1176_v33 = vld [vmem:[#allocation4 + $0x38] sm:$0xff]  ;;  %vm4322_vm12 = vmmov %vm4318_vm0 }
 0x322   : > { %2929 = vrcp.f32 %v2048_v29  ;;  %v2017_v0 = vld [vmem:[#allocation3 + $0x48] sm:$0xff]  ;;  %v1469_v43 = vadd.f32 %v1450_v55, %v1165_v4  ;;  %v1173_v29 = vld [vmem:[#allocation4 + $0x20] sm:$0xff] }
 0x323   : > { %vm2033_vm6 = vcmp.eq.f32.partialorder %v2017_v0, 0.0 }
 0x324   : > { %v2926_v13 = vpop.eup %2925  ;;  %v2049_v45 = vsel %vm2033_vm6, 1.0, %v2017_v0  ;;  %v1749_v35 = vpop.xlane.xlu0 %1748  ;;  %vm4324_vm6 = vmmov %vm4318_vm0 }
 0x325   : > { %2931 = vrcp.f32 %v2049_v45  ;;  %v1767_v53 = vadd.f32 %v1749_v35, %v1470_v57  ;;  %2140 = vperm.xlu1 %2772, %v2926_v13   ;;  %v1747_v62 = vpop.xlane.xlu1 %1746  ;;  %v1174_v57 = vld [vmem:[#allocation4 + $0x28] sm:$0xff] }
 0x326   : > { %v1766_v51 = vadd.f32 %v1747_v62, %v1469_v43 }
 0x327   : > { %v2928_v34 = vpop.eup %2927  ;;  %1986 = vst.msk [vmem:[#allocation3 + $0x68] sm:$0xff] %vm4313_vm13, %v1767_v53  ;;  %v2022_v10 = vld [vmem:[#allocation3 + $0x70] sm:$0xff]  ;;  %vm4325_vm13 = vmmov %vm4318_vm0 }
 0x328   : > { %1985 = vst.msk [vmem:[#allocation3 + $0x60] sm:$0xff] %vm4314_vm7, %v1766_v51  ;;  %v1753_v56 = vpop.xlane.xlu0 %1752  ;;  %2145 = vperm.xlu0 %2771, %v2928_v34   ;;  %vm2038_vm1 = vcmp.eq.f32.partialorder %v2022_v10, 0.0  ;;  %vm4326_vm7 = vmmov %vm4318_vm0 }
 0x329   : > { %v1769_v5 = vadd.f32 %v1753_v56, %v1472_v37  ;;  %v1198_v1 = vpop.permute.xlu1 %1197  ;;  %v2054_v25 = vsel %vm2038_vm1, 1.0, %v2022_v10  ;;  %vm4329_vm1 = vmmov %vm4318_vm0 }
 0x32a   : > { %v1267_v38 = vmul.f32 %v1198_v1, %v1171_v63 }
 0x32b   : > { %1988 = vst.msk [vmem:[#allocation3 + $0x78] sm:$0xff] %vm4315_vm8, %v1769_v5  ;;  %vm4327_vm8 = vmmov %vm4318_vm0 }
 0x32c   : > { %v2930_v26 = vpop.eup %2929 }
 0x32d   : > { %2130 = vperm.xlu1 %2772, %v2930_v26   ;;  %v1208_v61 = vpop.permute.xlu1 %1207 }
 0x32e   : > { %v2021_v54 = vld [vmem:[#allocation3 + $0x68] sm:$0xff]  ;;  %v2650_v8 = vpop.f32.mrb[16].mxu1  ;;  %v1269_v22 = vmul.f32 %v1208_v61, %v1173_v29 }
 0x32f   : > { %v2932_v36 = vpop.eup %2931  ;;  %vm2037_vm11 = vcmp.eq.f32.partialorder %v2021_v54, 0.0  ;;  %v2020_v6 = vld [vmem:[#allocation3 + $0x60] sm:$0xff]  ;;  %v1644_v11 = vadd.f32 %v2650_v8, %v1267_v38  ;;  %v2682_v7 = vpop.f32.mrb[16].mxu0  ;;  %v1179_v8 = vld [vmem:[#allocation4 + $0x50] sm:$0xff] }
 0x330   : > { %v1579_v19 = vpop.f32.mrb[17].mxu1  ;;  %v2053_v18 = vsel %vm2037_vm11, 1.0, %v2021_v54  ;;  %vm2036_vm4 = vcmp.eq.f32.partialorder %v2020_v6, 0.0  ;;  %v1877_v12 = vpop.f32.mrb[17].mxu0  ;;  %2135 = vperm.xlu0 %2771, %v2932_v36   ;;  %v1177_v36 = vld [vmem:[#allocation4 + $0x40] sm:$0xff]  ;;  %vm4328_vm11 = vmmov %vm4318_vm0 }
 0x331   : > { %v1642_v46 = vadd.f32 %v1579_v19, %v1265_v9  ;;  %v2651_v24 = vpop.f32.mrb[18].mxu1  ;;  %2933 = vrcp.f32 %v2053_v18  ;;  %v2052_v32 = vsel %vm2036_vm4, 1.0, %v2020_v6  ;;  %v1942_v30 = vadd.f32 %v2682_v7, %v1644_v11  ;;  %v2683_v41 = vpop.f32.mrb[18].mxu0  ;;  %v1180_v11 = vld [vmem:[#allocation4 + $0x58] sm:$0xff]  ;;  %v1178_v18 = vld [vmem:[#allocation4 + $0x48] sm:$0xff]  ;;  %vm4330_vm4 = vmmov %vm4318_vm0 }
 0x332   : > { %v1582_v23 = vpop.f32.mrb[19].mxu1  ;;  %2935 = vrcp.f32 %v2052_v32  ;;  %v2023_v49 = vld [vmem:[#allocation3 + $0x78] sm:$0xff]  ;;  %v1880_v17 = vpop.f32.mrb[19].mxu0 }
 0x333   : > { %v1940_v47 = vadd.f32 %v1877_v12, %v1642_v46  ;;  %v1193_v16 = vpop.permute.xlu0 %1192  ;;  %vm2039_vm14 = vcmp.eq.f32.partialorder %v2023_v49, 0.0  ;;  %1991 = vst.msk [vmem:[#allocation4 + $0x10] sm:$0xff] %vm4316_vm10, %v1942_v30  ;;  %v1218_v15 = vpop.permute.xlu1 %1217  ;;  %vm4332_vm10 = vmmov %vm4318_vm0 }
 0x334   : > { %v1266_v21 = vmul.f32 %v1193_v16, %v1170_v52  ;;  %v2055_v40 = vsel %vm2039_vm14, 1.0, %v2023_v49  ;;  %v1271_v0 = vmul.f32 %v1218_v15, %v1175_v48  ;;  %vm4331_vm14 = vmmov %vm4318_vm0 }
 0x335   : > { %1989 = vst.msk [vmem:[#allocation4] sm:$0xff] %vm4317_vm15, %v1940_v47  ;;  %2937 = vrcp.f32 %v2055_v40  ;;  %vm4333_vm15 = vmmov %vm4318_vm0 }
 0x336   : > { %v1643_v27 = vadd.f32 %v1582_v23, %v1266_v21  ;;  %2939 = vrcp.f32 %v2054_v25 }
 0x337   : > { %v1203_v20 = vpop.permute.xlu0 %1202  ;;  %v1228_v4 = vpop.permute.xlu1 %1227 }
 0x338   : > { %v1941_v31 = vadd.f32 %v1880_v17, %v1643_v27  ;;  %v1268_v58 = vmul.f32 %v1203_v20, %v1172_v14  ;;  %v1273_v46 = vmul.f32 %v1228_v4, %v1177_v36 }
 0x33a   : > { %1990 = vst.msk [vmem:[#allocation4 + $0x8] sm:$0xff] %vm4318_vm0, %v1941_v31  ;;  %v1645_v2 = vadd.f32 %v2651_v24, %v1268_v58  ;;  %v1183_v58 = vld [vmem:[#allocation4 + $0x70] sm:$0xff] }
 0x33b   : > { %v2934_v3 = vpop.eup %2933  ;;  %v1213_v60 = vpop.permute.xlu0 %1212 }
 0x33c   : > { %v1943_v28 = vadd.f32 %v2683_v41, %v1645_v2  ;;  %v2936_v44 = vpop.eup %2935  ;;  %2155 = vperm.xlu0 %2771, %v2934_v3   ;;  %v1270_v34 = vmul.f32 %v1213_v60, %v1174_v57  ;;  %v1238_v38 = vpop.permute.xlu1 %1237  ;;  %v1181_v2 = vld [vmem:[#allocation4 + $0x60] sm:$0xff]  ;;  %v1184_v3 = vld [vmem:[#allocation4 + $0x78] sm:$0xff] }
 0x33d   : > { %2150 = vperm.xlu1 %2772, %v2936_v44   ;;  %v1275_v19 = vmul.f32 %v1238_v38, %v1179_v8  ;;  %v1182_v44 = vld [vmem:[#allocation4 + $0x68] sm:$0xff] }
 0x33e   : > { %1992 = vst.msk [vmem:[#allocation4 + $0x18] sm:$0xff] %vm4319_vm2, %v1943_v28  ;;  %vm4334_vm2 = vmmov %vm4318_vm0 }
 0x33f   : > { %v2938_v42 = vpop.eup %2937  ;;  %v1223_v55 = vpop.permute.xlu0 %1222 }
 0x340   : > { %v2940_v50 = vpop.eup %2939  ;;  %2165 = vperm.xlu0 %2771, %v2938_v42   ;;  %v1272_v45 = vmul.f32 %v1223_v55, %v1176_v33  ;;  %v1248_v6 = vpop.permute.xlu1 %1247 }
 0x341   : > { %2160 = vperm.xlu1 %2772, %v2940_v50   ;;  %v1277_v42 = vmul.f32 %v1248_v6, %v1181_v2 }
 0x343   : > { %v2654_v13 = vpop.f32.mrb[20].mxu1  ;;  %v1233_v9 = vpop.permute.xlu0 %1232 }
 0x344   : > { %v1648_v43 = vadd.f32 %v2654_v13, %v1271_v0  ;;  %v2686_v35 = vpop.f32.mrb[20].mxu0  ;;  %v1595_v39 = vpop.f32.mrb[21].mxu1  ;;  %v1274_v41 = vmul.f32 %v1233_v9, %v1178_v18  ;;  %v2057_v9 = vld [vmem:[#allocation4 + $0x8] sm:$0xff] }
 0x345   : > { %v1646_v53 = vadd.f32 %v1595_v39, %v1269_v22  ;;  %v1893_v62 = vpop.f32.mrb[21].mxu0  ;;  %v2655_v51 = vpop.f32.mrb[22].mxu1 }
 0x346   : > { %v1946_v37 = vadd.f32 %v2686_v35, %v1648_v43  ;;  %v1649_v56 = vadd.f32 %v2655_v51, %v1272_v45  ;;  %v2687_v5 = vpop.f32.mrb[22].mxu0  ;;  %v1598_v1 = vpop.f32.mrb[23].mxu1 }
 0x347   : > { %v1944_v63 = vadd.f32 %v1893_v62, %v1646_v53  ;;  %v1647_v26 = vadd.f32 %v1598_v1, %v1270_v34  ;;  %v1896_v10 = vpop.f32.mrb[23].mxu0  ;;  %v1243_v7 = vpop.permute.xlu0 %1242 }
 0x348   : > { %1995 = vst.msk [vmem:[#allocation4 + $0x30] sm:$0xff] %vm4320_vm3, %v1946_v37  ;;  %v1947_v59 = vadd.f32 %v2687_v5, %v1649_v56  ;;  %v1276_v24 = vmul.f32 %v1243_v7, %v1180_v11  ;;  %v1258_v40 = vpop.permute.xlu1 %1257  ;;  %v2058_v37 = vld [vmem:[#allocation4 + $0x10] sm:$0xff]  ;;  %vm4335_vm3 = vmmov %vm4318_vm0 }
 0x349   : > { %1993 = vst.msk [vmem:[#allocation4 + $0x20] sm:$0xff] %vm4321_vm9, %v1944_v63  ;;  %v1945_v54 = vadd.f32 %v1896_v10, %v1647_v26  ;;  %v1279_v60 = vmul.f32 %v1258_v40, %v1183_v58  ;;  %v2056_v63 = vld [vmem:[#allocation4] sm:$0xff]  ;;  %v2059_v26 = vld [vmem:[#allocation4 + $0x18] sm:$0xff]  ;;  %vm4336_vm9 = vmmov %vm4318_vm0 }
 0x34a   : > { %1996 = vst.msk [vmem:[#allocation4 + $0x38] sm:$0xff] %vm4322_vm12, %v1947_v59  ;;  %vm4337_vm12 = vmmov %vm4318_vm0 }
 0x34b   : > { %1994 = vst.msk [vmem:[#allocation4 + $0x28] sm:$0xff] %vm4323_vm5, %v1945_v54  ;;  %v1253_v15 = vpop.permute.xlu0 %1252  ;;  %vm4338_vm5 = vmmov %vm4318_vm0 }
 0x34c   : > { %v1263_v28 = vpop.permute.xlu1 %1262  ;;  %v1278_v0 = vmul.f32 %v1253_v15, %v1182_v44 }
 0x34d   : > { %v1280_v50 = vmul.f32 %v1263_v28, %v1184_v3 }
 0x34f   : > { %v2062_v36 = vld [vmem:[#allocation4 + $0x30] sm:$0xff] }
 0x350   : > { %v2060_v7 = vld [vmem:[#allocation4 + $0x20] sm:$0xff] }
 0x351   : > { %v2658_v12 = vpop.f32.mrb[24].mxu1 }
 0x352   : > { %v1652_v52 = vadd.f32 %v2658_v12, %v1275_v19  ;;  %v2690_v32 = vpop.f32.mrb[24].mxu0  ;;  %v1611_v30 = vpop.f32.mrb[25].mxu1 }
 0x353   : > { %v1650_v23 = vadd.f32 %v1611_v30, %v1273_v46  ;;  %v1909_v49 = vpop.f32.mrb[25].mxu0  ;;  %v2659_v47 = vpop.f32.mrb[26].mxu1  ;;  %v2063_v46 = vld [vmem:[#allocation4 + $0x38] sm:$0xff] }
 0x354   : > { %v1950_v17 = vadd.f32 %v2690_v32, %v1652_v52  ;;  %v1653_v16 = vadd.f32 %v2659_v47, %v1276_v24  ;;  %v2691_v25 = vpop.f32.mrb[26].mxu0  ;;  %v1614_v21 = vpop.f32.mrb[27].mxu1  ;;  %v2061_v52 = vld [vmem:[#allocation4 + $0x28] sm:$0xff] }
 0x355   : > { %v1948_v14 = vadd.f32 %v1909_v49, %v1650_v23  ;;  %v1651_v27 = vadd.f32 %v1614_v21, %v1274_v41  ;;  %v1912_v20 = vpop.f32.mrb[27].mxu0 }
 0x356   : > { %1999 = vst.msk [vmem:[#allocation4 + $0x50] sm:$0xff] %vm4324_vm6, %v1950_v17  ;;  %v1951_v61 = vadd.f32 %v2691_v25, %v1653_v16  ;;  %vm4339_vm6 = vmmov %vm4318_vm0 }
 0x357   : > { %1997 = vst.msk [vmem:[#allocation4 + $0x40] sm:$0xff] %vm4325_vm13, %v1948_v14  ;;  %v1949_v31 = vadd.f32 %v1912_v20, %v1651_v27  ;;  %vm4340_vm13 = vmmov %vm4318_vm0 }
 0x358   : > { %2000 = vst.msk [vmem:[#allocation4 + $0x58] sm:$0xff] %vm4326_vm7, %v1951_v61  ;;  %vm4341_vm7 = vmmov %vm4318_vm0 }
 0x359   : > { %1998 = vst.msk [vmem:[#allocation4 + $0x48] sm:$0xff] %vm4327_vm8, %v1949_v31  ;;  %vm4342_vm8 = vmmov %vm4318_vm0 }
 0x35d   : > { %v2662_v48 = vpop.f32.mrb[28].mxu1  ;;  %v2066_v41 = vld [vmem:[#allocation4 + $0x50] sm:$0xff] }
 0x35e   : > { %v1656_v29 = vadd.f32 %v2662_v48, %v1279_v60  ;;  %v2694_v33 = vpop.f32.mrb[28].mxu0  ;;  %v1627_v55 = vpop.f32.mrb[29].mxu1  ;;  %v2064_v25 = vld [vmem:[#allocation4 + $0x40] sm:$0xff] }
 0x35f   : > { %v1654_v22 = vadd.f32 %v1627_v55, %v1277_v42  ;;  %v1925_v4 = vpop.f32.mrb[29].mxu0  ;;  %v2663_v57 = vpop.f32.mrb[30].mxu1  ;;  %v2067_v47 = vld [vmem:[#allocation4 + $0x58] sm:$0xff] }
 0x360   : > { %v1954_v13 = vadd.f32 %v2694_v33, %v1656_v29  ;;  %v1657_v45 = vadd.f32 %v2663_v57, %v1280_v50  ;;  %v2695_v43 = vpop.f32.mrb[30].mxu0  ;;  %v1630_v35 = vpop.f32.mrb[31].mxu1  ;;  %v2065_v14 = vld [vmem:[#allocation4 + $0x48] sm:$0xff] }
 0x361   : > { %v1952_v39 = vadd.f32 %v1925_v4, %v1654_v22  ;;  %v1655_v53 = vadd.f32 %v1630_v35, %v1278_v0  ;;  %v1928_v62 = vpop.f32.mrb[31].mxu0 }
 0x362   : > { %2003 = vst.msk [vmem:[#allocation4 + $0x70] sm:$0xff] %vm4328_vm11, %v1954_v13  ;;  %v1955_v51 = vadd.f32 %v2695_v43, %v1657_v45  ;;  %vm4343_vm11 = vmmov %vm4318_vm0 }
 0x363   : > { %2001 = vst.msk [vmem:[#allocation4 + $0x60] sm:$0xff] %vm4329_vm1, %v1952_v39  ;;  %v1953_v34 = vadd.f32 %v1928_v62, %v1655_v53  ;;  %vm4344_vm1 = vmmov %vm4318_vm0 }
 0x364   : > { %2004 = vst.msk [vmem:[#allocation4 + $0x78] sm:$0xff] %vm4330_vm4, %v1955_v51  ;;  %vm4345_vm4 = vmmov %vm4318_vm0 }
 0x365   : > { %2002 = vst.msk [vmem:[#allocation4 + $0x68] sm:$0xff] %vm4331_vm14, %v1953_v34  ;;  %vm4346_vm14 = vmmov %vm4318_vm0 }
 0x369   : > { %v2070_v42 = vld [vmem:[#allocation4 + $0x70] sm:$0xff] }
 0x36a   : > { %v2068_v2 = vld [vmem:[#allocation4 + $0x60] sm:$0xff] }
 0x36b   : > { %v2071_v44 = vld [vmem:[#allocation4 + $0x78] sm:$0xff] }
 0x36c   : > { %v2069_v61 = vld [vmem:[#allocation4 + $0x68] sm:$0xff] }
 0x375   : > { %v2101_v56 = vpop.permute.xlu1 %2100 }
 0x376   : > { %v2170_v5 = vmul.f32 %v2101_v56, %v2058_v37 }
 0x378   : > { %2186 = vst.msk [vmem:[%s4029_s26 + $0x10] sm:$0xff] %vm4332_vm10, %v2170_v5 }
 0x379   : > { %v2091_v1 = vpop.permute.xlu0 %2090 }
 0x37a   : > { %v2168_v59 = vmul.f32 %v2091_v1, %v2056_v63 }
 0x37c   : > { %2184 = vst.msk [vmem:[%s4029_s26] sm:$0xff] %vm4333_vm15, %v2168_v59 }
 0x380   : > { %v2106_v10 = vpop.permute.xlu0 %2105 }
 0x381   : > { %v2171_v38 = vmul.f32 %v2106_v10, %v2059_v26 }
 0x383   : > { %2187 = vst.msk [vmem:[%s4029_s26 + $0x18] sm:$0xff] %vm4318_vm0, %v2171_v38 }
 0x384   : > { %v2096_v54 = vpop.permute.xlu1 %2095 }
 0x385   : > { %v2169_v8 = vmul.f32 %v2096_v54, %v2057_v9 }
 0x387   : > { %2185 = vst.msk [vmem:[%s4029_s26 + $0x8] sm:$0xff] %vm4334_vm2, %v2169_v8 }
 0x388   : > { %v2121_v6 = vpop.permute.xlu1 %2120 }
 0x389   : > { %v2174_v11 = vmul.f32 %v2121_v6, %v2062_v36 }
 0x38b   : > { %2190 = vst.msk [vmem:[%s4029_s26 + $0x30] sm:$0xff] %vm4335_vm3, %v2174_v11 }
 0x38f   : > { %v2111_v19 = vpop.permute.xlu1 %2110 }
 0x390   : > { %v2172_v18 = vmul.f32 %v2111_v19, %v2060_v7 }
 0x392   : > { %2188 = vst.msk [vmem:[%s4029_s26 + $0x20] sm:$0xff] %vm4336_vm9, %v2172_v18 }
 0x397   : > { %v2126_v12 = vpop.permute.xlu0 %2125 }
 0x398   : > { %v2175_v24 = vmul.f32 %v2126_v12, %v2063_v46 }
 0x39a   : > { %2191 = vst.msk [vmem:[%s4029_s26 + $0x38] sm:$0xff] %vm4337_vm12, %v2175_v24 }
 0x39f   : > { %v2116_v32 = vpop.permute.xlu0 %2115 }
 0x3a0   : > { %v2173_v30 = vmul.f32 %v2116_v32, %v2061_v52 }
 0x3a2   : > { %2189 = vst.msk [vmem:[%s4029_s26 + $0x28] sm:$0xff] %vm4338_vm5, %v2173_v30 }
 0x3a4   : > { %v2141_v23 = vpop.permute.xlu1 %2140 }
 0x3a5   : > { %v2178_v49 = vmul.f32 %v2141_v23, %v2066_v41 }
 0x3a7   : > { %2194 = vst.msk [vmem:[%s4029_s26 + $0x50] sm:$0xff] %vm4339_vm6, %v2178_v49  ;;  %v2146_v17 = vpop.permute.xlu0 %2145 }
 0x3a8   : > { %v2179_v16 = vmul.f32 %v2146_v17, %v2067_v47 }
 0x3aa   : > { %2195 = vst.msk [vmem:[%s4029_s26 + $0x58] sm:$0xff] %vm4340_vm13, %v2179_v16 }
 0x3ac   : > { %v2131_v21 = vpop.permute.xlu1 %2130 }
 0x3ad   : > { %v2176_v40 = vmul.f32 %v2131_v21, %v2064_v25 }
 0x3af   : > { %2192 = vst.msk [vmem:[%s4029_s26 + $0x40] sm:$0xff] %vm4341_vm7, %v2176_v40  ;;  %v2136_v27 = vpop.permute.xlu0 %2135 }
 0x3b0   : > { %v2177_v20 = vmul.f32 %v2136_v27, %v2065_v14 }
 0x3b2   : > { %2193 = vst.msk [vmem:[%s4029_s26 + $0x48] sm:$0xff] %vm4342_vm8, %v2177_v20 }
 0x3bb   : > { %v2156_v31 = vpop.permute.xlu0 %2155 }
 0x3bc   : > { %v2181_v58 = vmul.f32 %v2156_v31, %v2069_v61  ;;  %v2151_v3 = vpop.permute.xlu1 %2150 }
 0x3bd   : > { %v2180_v28 = vmul.f32 %v2151_v3, %v2068_v2 }
 0x3be   : > { %2197 = vst.msk [vmem:[%s4029_s26 + $0x68] sm:$0xff] %vm4343_vm11, %v2181_v58 }
 0x3bf   : > { %2196 = vst.msk [vmem:[%s4029_s26 + $0x60] sm:$0xff] %vm4344_vm1, %v2180_v28  ;;  %v2166_v60 = vpop.permute.xlu0 %2165 }
 0x3c0   : > { %v2183_v15 = vmul.f32 %v2166_v60, %v2071_v44  ;;  %v2161_v48 = vpop.permute.xlu1 %2160 }
 0x3c1   : > { %v2182_v50 = vmul.f32 %v2161_v48, %v2070_v42 }
 0x3c2   : > { %2199 = vst.msk [vmem:[%s4029_s26 + $0x78] sm:$0xff] %vm4345_vm4, %v2183_v15 }
 0x3c3   : > { %2198 = vst.msk [vmem:[%s4029_s26 + $0x70] sm:$0xff] %vm4346_vm14, %v2182_v50 }
 0x3c4 PF: > { %s14_s17 = sadd.s32 1, %s2963_s17   ;;  %s4347_s15 = smov %s2959_s16 }
 0x3c5   : > { %p11_p5 = scmp.ge.s32.totalorder %s14_s17, 6   ;;  %s4348_s16 = smov %s4350_s18 }
 0x3c7   :  { %13 = sbr.rel (!%p11_p5) target bundleno = 2 (0x2), region = 86 }

// kernel: hgt_layer_forward.3
= control target key start
LH: loop header
LB: loop body
LE: loop exit
PB: predicated region body
PF: predicated region fallthrough
CT: control target
= control target key end

     0   :  { %vm50_vm0 = vcmask 261120   ;;  %vm642_vm1 = vcmask 64512   ;;  %vm624_vm2 = vcmask 60416   ;;  %s12300_s1 = inlined_call_operand.vmem [shape: f32[3,4,32,8], index: 1, kind: input, shape index: {}]   ;;  %s12301_s0 = inlined_call_operand.vmem [shape: f32[128,32], index: 0, kind: input, shape index: {}]   ;;  %s12302_s3 = inlined_call_operand.vmem [shape: f32[4,2,8,8], index: 3, kind: input, shape index: {}]   ;;  %s12303_s4 = inlined_call_operand.vmem [shape: f32[4,2,8,8], index: 4, kind: input, shape index: {}]   ;;  %s12304_s2 = inlined_call_operand.vmem [shape: f32[3,4,1,8], index: 2, kind: input, shape index: {}]   ;;  %s12305_s5 = inlined_call_operand.vmem [shape: bf16[4,128,8], index: 5, kind: output, shape index: {0}]   ;;  %s12306_s6 = inlined_call_operand.vmem [shape: bf16[4,2,128,8], index: 6, kind: output, shape index: {1}]   ;;  %s12307_s7 = inlined_call_operand.vmem [shape: bf16[4,2,128,8], index: 7, kind: output, shape index: {2}]  }
   0x1   :  { %v39_v0 = vld [vmem:[%s12300_s1] sm:$0xff]  ;;  %v40_v1 = vld [vmem:[%s12300_s1 + $0x8] sm:$0xff]  ;;  %v41_v2 = vld [vmem:[%s12300_s1 + $0x10] sm:$0xff] }
   0x2   :  { %v9100_v3 = vpack.c.bf16 %v40_v1, %v39_v0  ;;  %v42_v4 = vld [vmem:[%s12300_s1 + $0x18] sm:$0xff]  ;;  %v9283_v5 = vld [vmem:[%s12301_s0] sm:$0xff]  ;;  %v9292_v7 = vld [vmem:[%s12301_s0 + $0x8] sm:$0xff] }
   0x3   :  { %v9104_v6 = vpack.c.bf16 %v42_v4, %v41_v2  ;;  %8308 = vmatprep.mubr.msk.f32.mxu0 %vm50_vm0, %v9283_v5  ;;  %8340 = vmatprep.mubr.msk.f32.mxu1 %vm50_vm0, %v9283_v5  ;;  %v6386_v8 = vld [vmem:[%s12300_s1 + $0x100] sm:$0xff]  ;;  %v6387_v9 = vld [vmem:[%s12300_s1 + $0x108] sm:$0xff]  ;;  %v6388_v10 = vld [vmem:[%s12300_s1 + $0x110] sm:$0xff] }
   0x4   :  { %9101 = vmatprep.subr.bf16.mxu0 %v9100_v3  ;;  %v6389_v11 = vld [vmem:[%s12300_s1 + $0x118] sm:$0xff]  ;;  %v9116_v12 = vpack.c.bf16 %v6387_v9, %v6386_v8  ;;  %v6364_v13 = vld [vmem:[%s12300_s1 + $0x80] sm:$0xff]  ;;  %v6365_v14 = vld [vmem:[%s12300_s1 + $0x88] sm:$0xff] }
   0x5   :  { %9103 = vmatpush3.bf16.msra.mxu0 %v9100_v3  ;;  %v6366_v15 = vld [vmem:[%s12300_s1 + $0x90] sm:$0xff]  ;;  %v9120_v17 = vpack.c.bf16 %v6389_v11, %v6388_v10  ;;  %v9108_v18 = vpack.c.bf16 %v6365_v14, %v6364_v13  ;;  %v6367_v19 = vld [vmem:[%s12300_s1 + $0x98] sm:$0xff]  ;;  %v9335_v22 = vld [vmem:[%s12301_s0 + $0x20] sm:$0xff] }
   0x6   :  { %9105 = vmatprep.subr.bf16.mxu0 %v9104_v6  ;;  %v9318_v16 = vld [vmem:[%s12301_s0 + $0x10] sm:$0xff]  ;;  %v9112_v20 = vpack.c.bf16 %v6367_v19, %v6366_v15  ;;  %v9330_v21 = vld [vmem:[%s12301_s0 + $0x18] sm:$0xff]  ;;  %v641_v23 = vld [vmem:[%s12302_s3] sm:$0xff] }
   0x7   :  { %9109 = vmatprep.subr.bf16.mxu1 %v9108_v18  ;;  %v9347_v24 = vld [vmem:[%s12301_s0 + $0x28] sm:$0xff]  ;;  %v9352_v25 = vld [vmem:[%s12301_s0 + $0x30] sm:$0xff]  ;;  %v9361_v26 = vld [vmem:[%s12301_s0 + $0x38] sm:$0xff] }
   0x8   :  { %9111 = vmatpush3.bf16.msra.mxu1 %v9108_v18  ;;  %v9368_v27 = vld [vmem:[%s12301_s0 + $0x40] sm:$0xff]  ;;  %v9379_v28 = vld [vmem:[%s12301_s0 + $0x48] sm:$0xff]  ;;  %v9386_v29 = vld [vmem:[%s12301_s0 + $0x50] sm:$0xff] }
   0x9   :  { %9107 = vmatpush3.bf16.msra.mxu0 %v9104_v6  ;;  %9113 = vmatprep.subr.bf16.mxu1 %v9112_v20  ;;  %v9397_v30 = vld [vmem:[%s12301_s0 + $0x58] sm:$0xff]  ;;  %v9404_v31 = vld [vmem:[%s12301_s0 + $0x60] sm:$0xff]  ;;  %v9415_v32 = vld [vmem:[%s12301_s0 + $0x68] sm:$0xff] }
   0xa   :  { %9117 = vmatprep.subr.bf16.mxu0 %v9116_v12  ;;  %v9422_v33 = vld [vmem:[%s12301_s0 + $0x70] sm:$0xff]  ;;  %v9433_v34 = vld [vmem:[%s12301_s0 + $0x78] sm:$0xff]  ;;  %v6488_v35 = vld [vmem:[%s12302_s3 + $0x8] sm:$0xff] }
   0xb   :  { %v916_v36 = vld [vmem:[%s12303_s4] sm:$0xff]  ;;  %v9492_v37 = vld [vmem:[%s12303_s4 + $0x8] sm:$0xff] }
   0xc   :  { %8309 = vmatmul.mubr.msk.f32.vlgmr.msra.gmra.mrb[0].mxu0 %vm50_vm0, %v9292_v7  ;;  %9115 = vmatpush3.bf16.msra.mxu1 %v9112_v20  ;;  %v9498_v38 = vld [vmem:[%s12304_s2] ss:$0 sm:$0xff]  ;;  %v6587_v41 = vld [vmem:[%s12300_s1 + $0x28] sm:$0xff]  ;;  %v9528_v50 = vld [vmem:[%s12304_s2 + $0x4] ss:$0 sm:$0xff] }
   0xd   :  { %8311 = vmatprep.mubr.msk.f32.mxu0 %vm50_vm0, %v9318_v16  ;;  %9119 = vmatpush3.bf16.msra.mxu0 %v9116_v12  ;;  %v6586_v40 = vld [vmem:[%s12300_s1 + $0x20] sm:$0xff] }
   0xe   :  { %9121 = vmatprep.subr.bf16.mxu0 %v9120_v17  ;;  %8396 = vmatprep.subr.mxu1 %v641_v23  ;;  %v9512_v45 = vpack.c.bf16 %v6587_v41, %v6586_v40 }
   0xf   :  { %8341 = vmatmul.mubr.msk.f32.vlgmr.msra.gmra.mrb[0].mxu1 %vm50_vm0, %v9292_v7 }
  0x10   :  { %8312 = vmatmul.mubr.msk.f32.gmra.mrb[2].mxu0 %vm50_vm0, %v9330_v21  ;;  %8397 = vmatpush3.msra.mxu1 %v641_v23 }
  0x11   :  { %8314 = vmatprep.mubr.msk.f32.mxu0 %vm50_vm0, %v9335_v22  ;;  %9123 = vmatpush3.bf16.msra.mxu0 %v9120_v17 }
  0x12   :  { %8343 = vmatprep.mubr.msk.f32.mxu1 %vm50_vm0, %v9318_v16  ;;  %8448 = vmatprep.subr.mxu1 %v6488_v35 }
  0x13   :  { %8344 = vmatmul.mubr.msk.f32.gmra.mrb[2].mxu1 %vm50_vm0, %v9330_v21  ;;  %8422 = vmatprep.subr.mxu0 %v916_v36 }
  0x14   :  { %8315 = vmatmul.mubr.msk.f32.gmra.mrb[4].mxu0 %vm50_vm0, %v9347_v24  ;;  %8346 = vmatprep.mubr.msk.f32.mxu1 %vm50_vm0, %v9335_v22 }
  0x15   :  { %8317 = vmatprep.mubr.msk.f32.mxu0 %vm50_vm0, %v9352_v25 }
  0x17   :  { %8347 = vmatmul.mubr.msk.f32.gmra.mrb[4].mxu1 %vm50_vm0, %v9347_v24 }
  0x18   :  { %8318 = vmatmul.mubr.msk.f32.gmra.mrb[6].mxu0 %vm50_vm0, %v9361_v26  ;;  %8349 = vmatprep.mubr.msk.f32.mxu1 %vm50_vm0, %v9352_v25 }
  0x19   :  { %8320 = vmatprep.mubr.msk.f32.mxu0 %vm50_vm0, %v9368_v27 }
  0x1b   :  { %8350 = vmatmul.mubr.msk.f32.gmra.mrb[6].mxu1 %vm50_vm0, %v9361_v26 }
  0x1c   :  { %8321 = vmatmul.mubr.msk.f32.gmra.mrb[8].mxu0 %vm50_vm0, %v9379_v28  ;;  %8352 = vmatprep.mubr.msk.f32.mxu1 %vm50_vm0, %v9368_v27 }
  0x1d   :  { %8323 = vmatprep.mubr.msk.f32.mxu0 %vm50_vm0, %v9386_v29 }
  0x1f   :  { %8353 = vmatmul.mubr.msk.f32.gmra.mrb[8].mxu1 %vm50_vm0, %v9379_v28 }
  0x20   :  { %8324 = vmatmul.mubr.msk.f32.gmra.mrb[10].mxu0 %vm50_vm0, %v9397_v30  ;;  %8355 = vmatprep.mubr.msk.f32.mxu1 %vm50_vm0, %v9386_v29 }
  0x21   :  { %8326 = vmatprep.mubr.msk.f32.mxu0 %vm50_vm0, %v9404_v31 }
  0x23   :  { %8356 = vmatmul.mubr.msk.f32.gmra.mrb[10].mxu1 %vm50_vm0, %v9397_v30 }
  0x24   :  { %8327 = vmatmul.mubr.msk.f32.gmra.mrb[12].mxu0 %vm50_vm0, %v9415_v32  ;;  %8358 = vmatprep.mubr.msk.f32.mxu1 %vm50_vm0, %v9404_v31 }
  0x25   :  { %8329 = vmatprep.mubr.msk.f32.mxu0 %vm50_vm0, %v9422_v33 }
  0x27   :  { %8359 = vmatmul.mubr.msk.f32.gmra.mrb[12].mxu1 %vm50_vm0, %v9415_v32 }
  0x28   :  { %8330 = vmatmul.mubr.msk.f32.gmra.mrb[14].mxu0 %vm50_vm0, %v9433_v34  ;;  %8361 = vmatprep.mubr.msk.f32.mxu1 %vm50_vm0, %v9422_v33 }
  0x29   :  { %8372 = vmatprep.mubr.msk.f32.mxu0 %vm50_vm0, %v9283_v5 }
  0x2b   :  { %8362 = vmatmul.mubr.msk.f32.gmra.mrb[14].mxu1 %vm50_vm0, %v9433_v34 }
  0x2c   :  { %8373 = vmatmul.mubr.msk.f32.vlgmr.msra.gmra.mrb[16].mxu0 %vm50_vm0, %v9292_v7 }
  0x2d   :  { %8375 = vmatprep.mubr.msk.f32.mxu0 %vm50_vm0, %v9318_v16  ;;  %8423 = vmatpush3.msra.mxu0 %v916_v36 }
  0x2e   :  { %8474 = vmatprep.subr.mxu0 %v9492_v37 }
  0x30   :  { %8376 = vmatmul.mubr.msk.f32.gmra.mrb[18].mxu0 %vm50_vm0, %v9330_v21 }
  0x31   :  { %8378 = vmatprep.mubr.msk.f32.mxu0 %vm50_vm0, %v9335_v22 }
  0x34   :  { %8379 = vmatmul.mubr.msk.f32.gmra.mrb[20].mxu0 %vm50_vm0, %v9347_v24 }
  0x35   :  { %8381 = vmatprep.mubr.msk.f32.mxu0 %vm50_vm0, %v9352_v25 }
  0x38   :  { %8382 = vmatmul.mubr.msk.f32.gmra.mrb[22].mxu0 %vm50_vm0, %v9361_v26 }
  0x39   :  { %8384 = vmatprep.mubr.msk.f32.mxu0 %vm50_vm0, %v9368_v27 }
  0x3c   :  { %8385 = vmatmul.mubr.msk.f32.gmra.mrb[24].mxu0 %vm50_vm0, %v9379_v28 }
  0x3d   :  { %8387 = vmatprep.mubr.msk.f32.mxu0 %vm50_vm0, %v9386_v29 }
  0x40   :  { %8388 = vmatmul.mubr.msk.f32.gmra.mrb[26].mxu0 %vm50_vm0, %v9397_v30 }
  0x41   :  { %8390 = vmatprep.mubr.msk.f32.mxu0 %vm50_vm0, %v9404_v31 }
  0x44   :  { %8391 = vmatmul.mubr.msk.f32.gmra.mrb[28].mxu0 %vm50_vm0, %v9415_v32 }
  0x45   :  { %8393 = vmatprep.mubr.msk.f32.mxu0 %vm50_vm0, %v9422_v33 }
  0x48   :  { %8394 = vmatmul.mubr.msk.f32.gmra.mrb[30].mxu0 %vm50_vm0, %v9433_v34 }
  0xdf   :  { %v8310_v39 = vpop.f32.mrb[0].mxu0 }
  0xe0   :  { %v165_v42 = vpop.f32.mrb[1].mxu0  ;;  %v9510_v44 = vadd.f32 %v8310_v39, %v9498_v38 }
  0xe1   :  { %v9507_v43 = vadd.f32 %v9498_v38, %v165_v42 }
  0xe2   :  { %v8342_v53 = vpop.f32.mrb[0].mxu1 }
  0xe3   :  { %v8313_v46 = vpop.f32.mrb[2].mxu0  ;;  %8398 = vmatprep.mubr.msk.f32.mxu1 %vm642_vm1, %v9507_v43  ;;  %v329_v55 = vadd.f32 %v8342_v53, %v9528_v50  ;;  %v323_v56 = vpop.f32.mrb[1].mxu1 }
  0xe4   :  { %v175_v47 = vpop.f32.mrb[3].mxu0  ;;  %8399 = vmatmul.mubr.msk.f32.vlgmr.msra.gmra.mrb[16].mxu1 %vm642_vm1, %v9510_v44  ;;  %v9522_v49 = vadd.f32 %v8313_v46, %v9498_v38  ;;  %v324_v58 = vadd.f32 %v9528_v50, %v323_v56 }
  0xe5   :  { %v9519_v48 = vadd.f32 %v9498_v38, %v175_v47  ;;  %8449 = vmatpush3.msra.mxu1 %v6488_v35  ;;  %v7469_v60 = vpack.c.bf16 %v329_v55, %v329_v55 }
  0xe6   :  { %9125 = vmatprep.subr.bf16.mxu1 %v9512_v45  ;;  %v7468_v62 = vpack.c.bf16 %v324_v58, %v324_v58  ;;  %v8345_v63 = vpop.f32.mrb[2].mxu1 }
  0xe7   :  { %v8316_v51 = vpop.f32.mrb[4].mxu0  ;;  %8401 = vmatprep.mubr.msk.f32.mxu1 %vm642_vm1, %v9519_v48  ;;  %626 = vst.msk [vmem:[%s12305_s5 + $0x4] sm:$0xf] %vm624_vm2, %v7469_v60  ;;  %v339_v1 = vadd.f32 %v8345_v63, %v9528_v50  ;;  %v333_v2 = vpop.f32.mrb[3].mxu1 }
  0xe8   :  { %v185_v52 = vpop.f32.mrb[5].mxu0  ;;  %8402 = vmatmul.mubr.msk.f32.gmra.mrb[18].mxu1 %vm642_vm1, %v9522_v49  ;;  %v9539_v57 = vadd.f32 %v8316_v51, %v9498_v38  ;;  %625 = vst.msk [vmem:[%s12305_s5] sm:$0xf] %vm624_vm2, %v7468_v62  ;;  %v334_v4 = vadd.f32 %v9528_v50, %v333_v2 }
  0xe9   :  { %v9535_v54 = vadd.f32 %v9498_v38, %v185_v52  ;;  %v7471_v8 = vpack.c.bf16 %v339_v1, %v339_v1 }
  0xea   :  { %v7470_v10 = vpack.c.bf16 %v334_v4, %v334_v4  ;;  %v8348_v11 = vpop.f32.mrb[4].mxu1 }
  0xeb   :  { %v8319_v59 = vpop.f32.mrb[6].mxu0  ;;  %8404 = vmatprep.mubr.msk.f32.mxu1 %vm642_vm1, %v9535_v54  ;;  %628 = vst.msk [vmem:[%s12305_s5 + $0xc] sm:$0xf] %vm624_vm2, %v7471_v8  ;;  %v349_v13 = vadd.f32 %v8348_v11, %v9528_v50  ;;  %v343_v14 = vpop.f32.mrb[5].mxu1 }
  0xec   :  { %v195_v61 = vpop.f32.mrb[7].mxu0  ;;  %8405 = vmatmul.mubr.msk.f32.gmra.mrb[20].mxu1 %vm642_vm1, %v9539_v57  ;;  %v9555_v3 = vadd.f32 %v8319_v59, %v9498_v38  ;;  %627 = vst.msk [vmem:[%s12305_s5 + $0x8] sm:$0xf] %vm624_vm2, %v7470_v10  ;;  %v344_v17 = vadd.f32 %v9528_v50, %v343_v14  ;;  %v6589_v14 = vld [vmem:[%s12300_s1 + $0x38] sm:$0xff] }
  0xed   :  { %v9547_v0 = vadd.f32 %v9498_v38, %v195_v61  ;;  %v7473_v19 = vpack.c.bf16 %v349_v13, %v349_v13  ;;  %v6588_v13 = vld [vmem:[%s12300_s1 + $0x30] sm:$0xff] }
  0xee   :  { %v7472_v23 = vpack.c.bf16 %v344_v17, %v344_v17  ;;  %v8351_v35 = vpop.f32.mrb[6].mxu1 }
  0xef   :  { %v8322_v6 = vpop.f32.mrb[8].mxu0  ;;  %8407 = vmatprep.mubr.msk.f32.mxu1 %vm642_vm1, %v9547_v0  ;;  %630 = vst.msk [vmem:[%s12305_s5 + $0x14] sm:$0xf] %vm624_vm2, %v7473_v19  ;;  %v359_v39 = vadd.f32 %v8351_v35, %v9528_v50  ;;  %v353_v40 = vpop.f32.mrb[7].mxu1 }
  0xf0   :  { %v205_v9 = vpop.f32.mrb[9].mxu0  ;;  %8408 = vmatmul.mubr.msk.f32.gmra.mrb[22].mxu1 %vm642_vm1, %v9555_v3  ;;  %v9575_v15 = vadd.f32 %v8322_v6, %v9498_v38  ;;  %629 = vst.msk [vmem:[%s12305_s5 + $0x10] sm:$0xf] %vm624_vm2, %v7472_v23  ;;  %v354_v42 = vadd.f32 %v9528_v50, %v353_v40  ;;  %v9632_v6 = vld [vmem:[%s12304_s2 + $0x8] ss:$0 sm:$0xff] }
  0xf1   :  { %v9567_v12 = vadd.f32 %v9498_v38, %v205_v9  ;;  %v7475_v47 = vpack.c.bf16 %v359_v39, %v359_v39 }
  0xf2   :  { %v7474_v52 = vpack.c.bf16 %v354_v42, %v354_v42  ;;  %v8354_v53 = vpop.f32.mrb[8].mxu1  ;;  %v9128_v42 = vpack.c.bf16 %v6589_v14, %v6588_v13 }
  0xf3   :  { %v8325_v18 = vpop.f32.mrb[10].mxu0  ;;  %8410 = vmatprep.mubr.msk.f32.mxu1 %vm642_vm1, %v9567_v12  ;;  %632 = vst.msk [vmem:[%s12305_s5 + $0x1c] sm:$0xf] %vm624_vm2, %v7475_v47  ;;  %v369_v56 = vadd.f32 %v8354_v53, %v9528_v50  ;;  %v363_v58 = vpop.f32.mrb[9].mxu1 }
  0xf4   :  { %v215_v20 = vpop.f32.mrb[11].mxu0  ;;  %8411 = vmatmul.mubr.msk.f32.gmra.mrb[24].mxu1 %vm642_vm1, %v9575_v15  ;;  %v9595_v41 = vadd.f32 %v8325_v18, %v9498_v38  ;;  %631 = vst.msk [vmem:[%s12305_s5 + $0x18] sm:$0xf] %vm624_vm2, %v7474_v52  ;;  %v364_v60 = vadd.f32 %v9528_v50, %v363_v58  ;;  %v6631_v52 = vld [vmem:[%s12300_s1 + $0x128] sm:$0xff] }
  0xf5   :  { %v9587_v36 = vadd.f32 %v9498_v38, %v215_v20  ;;  %v7477_v62 = vpack.c.bf16 %v369_v56, %v369_v56 }
  0xf6   :  { %v7476_v1 = vpack.c.bf16 %v364_v60, %v364_v60  ;;  %v8357_v2 = vpop.f32.mrb[10].mxu1 }
  0xf7   :  { %v8328_v46 = vpop.f32.mrb[12].mxu0  ;;  %8413 = vmatprep.mubr.msk.f32.mxu1 %vm642_vm1, %v9587_v36  ;;  %634 = vst.msk [vmem:[%s12305_s5 + $0x24] sm:$0xf] %vm624_vm2, %v7477_v62  ;;  %v379_v8 = vadd.f32 %v8357_v2, %v9528_v50  ;;  %v373_v9 = vpop.f32.mrb[11].mxu1 }
  0xf8   :  { %v225_v51 = vpop.f32.mrb[13].mxu0  ;;  %8414 = vmatmul.mubr.msk.f32.gmra.mrb[26].mxu1 %vm642_vm1, %v9595_v41  ;;  %v9615_v59 = vadd.f32 %v8328_v46, %v9498_v38  ;;  %633 = vst.msk [vmem:[%s12305_s5 + $0x20] sm:$0xf] %vm624_vm2, %v7476_v1  ;;  %v374_v11 = vadd.f32 %v9528_v50, %v373_v9 }
  0xf9   :  { %v9607_v55 = vadd.f32 %v9498_v38, %v225_v51  ;;  %v7479_v17 = vpack.c.bf16 %v379_v8, %v379_v8  ;;  %v6630_v51 = vld [vmem:[%s12300_s1 + $0x120] sm:$0xff] }
  0xfa   :  { %v7478_v20 = vpack.c.bf16 %v374_v11, %v374_v11  ;;  %v8360_v23 = vpop.f32.mrb[12].mxu1 }
  0xfb   :  { %v8331_v61 = vpop.f32.mrb[14].mxu0  ;;  %8416 = vmatprep.mubr.msk.f32.mxu1 %vm642_vm1, %v9607_v55  ;;  %636 = vst.msk [vmem:[%s12305_s5 + $0x2c] sm:$0xf] %vm624_vm2, %v7479_v17  ;;  %v389_v39 = vadd.f32 %v8360_v23, %v9528_v50  ;;  %v383_v40 = vpop.f32.mrb[13].mxu1 }
  0xfc   :  { %v235_v63 = vpop.f32.mrb[15].mxu0  ;;  %8417 = vmatmul.mubr.msk.f32.gmra.mrb[28].mxu1 %vm642_vm1, %v9615_v59  ;;  %v9640_v10 = vadd.f32 %v8331_v61, %v9498_v38  ;;  %635 = vst.msk [vmem:[%s12305_s5 + $0x28] sm:$0xf] %vm624_vm2, %v7478_v20  ;;  %v384_v46 = vadd.f32 %v9528_v50, %v383_v40 }
  0xfd   :  { %v9627_v4 = vadd.f32 %v9498_v38, %v235_v63  ;;  %v7481_v47 = vpack.c.bf16 %v389_v39, %v389_v39 }
  0xfe   :  { %v7480_v58 = vpack.c.bf16 %v384_v46, %v384_v46  ;;  %v8363_v60 = vpop.f32.mrb[14].mxu1 }
  0xff   :  { %8419 = vmatprep.mubr.msk.f32.mxu1 %vm642_vm1, %v9627_v4  ;;  %v8374_v38 = vpop.f32.mrb[16].mxu0  ;;  %638 = vst.msk [vmem:[%s12305_s5 + $0x34] sm:$0xf] %vm624_vm2, %v7481_v47  ;;  %v393_v62 = vpop.f32.mrb[15].mxu1 }
 0x100   :  { %8420 = vmatmul.mubr.msk.f32.gmra.mrb[30].mxu1 %vm642_vm1, %v9640_v10  ;;  %v9658_v18 = vadd.f32 %v8374_v38, %v9632_v6  ;;  %v481_v19 = vpop.f32.mrb[17].mxu0  ;;  %637 = vst.msk [vmem:[%s12305_s5 + $0x30] sm:$0xf] %vm624_vm2, %v7480_v58 }
 0x101   :  { %8450 = vmatprep.mubr.msk.f32.mxu1 %vm642_vm1, %v9507_v43  ;;  %v9663_v35 = vadd.f32 %v9632_v6, %v481_v19 }
 0x103   :  { %v8377_v43 = vpop.f32.mrb[18].mxu0  ;;  %8424 = vmatprep.mubr.msk.f32.mxu0 %vm642_vm1, %v9663_v35 }
 0x104   :  { %8451 = vmatmul.mubr.msk.f32.vlgmr.msra.gmra.mrb[32].mxu1 %vm642_vm1, %v9510_v44  ;;  %v9686_v53 = vadd.f32 %v8377_v43, %v9632_v6  ;;  %v491_v56 = vpop.f32.mrb[19].mxu0  ;;  %8425 = vmatmul.mubr.msk.f32.vlgmr.msra.gmra.mrb[32].mxu0 %vm642_vm1, %v9658_v18  ;;  %v399_v44 = vadd.f32 %v8363_v60, %v9528_v50 }
 0x105   :  { %9127 = vmatpush3.bf16.msra.mxu1 %v9512_v45  ;;  %8453 = vmatprep.mubr.msk.f32.mxu1 %vm642_vm1, %v9519_v48  ;;  %v9694_v61 = vadd.f32 %v9632_v6, %v491_v56  ;;  %v9706_v45 = vpack.c.bf16 %v6631_v52, %v6630_v51  ;;  %v394_v48 = vadd.f32 %v9528_v50, %v393_v62 }
 0x106   :  { %9129 = vmatprep.subr.bf16.mxu1 %v9128_v42  ;;  %8475 = vmatpush3.msra.mxu0 %v9492_v37  ;;  %v7483_v1 = vpack.c.bf16 %v399_v44, %v399_v44 }
 0x107   :  { %v8380_v63 = vpop.f32.mrb[20].mxu0  ;;  %8427 = vmatprep.mubr.msk.f32.mxu0 %vm642_vm1, %v9694_v61  ;;  %v7482_v8 = vpack.c.bf16 %v394_v48, %v394_v48 }
 0x108   :  { %8454 = vmatmul.mubr.msk.f32.gmra.mrb[34].mxu1 %vm642_vm1, %v9522_v49  ;;  %v9714_v2 = vadd.f32 %v8380_v63, %v9632_v6  ;;  %v501_v37 = vpop.f32.mrb[21].mxu0  ;;  %8428 = vmatmul.mubr.msk.f32.gmra.mrb[34].mxu0 %vm642_vm1, %v9686_v53  ;;  %640 = vst.msk [vmem:[%s12305_s5 + $0x3c] sm:$0xf] %vm624_vm2, %v7483_v1 }
 0x109   :  { %8456 = vmatprep.mubr.msk.f32.mxu1 %vm642_vm1, %v9535_v54  ;;  %9131 = vmatpush3.bf16.msra.mxu1 %v9128_v42  ;;  %v502_v50 = vadd.f32 %v9632_v6, %v501_v37  ;;  %639 = vst.msk [vmem:[%s12305_s5 + $0x38] sm:$0xf] %vm624_vm2, %v7482_v8 }
 0x10a   :  { %9141 = vmatprep.subr.bf16.mxu1 %v9706_v45 }
 0x10b   :  { %v8383_v49 = vpop.f32.mrb[22].mxu0  ;;  %8430 = vmatprep.mubr.msk.f32.mxu0 %vm642_vm1, %v502_v50 }
 0x10c   :  { %8457 = vmatmul.mubr.msk.f32.gmra.mrb[36].mxu1 %vm642_vm1, %v9539_v57  ;;  %v517_v54 = vadd.f32 %v8383_v49, %v9632_v6  ;;  %v511_v9 = vpop.f32.mrb[23].mxu0  ;;  %8431 = vmatmul.mubr.msk.f32.gmra.mrb[36].mxu0 %vm642_vm1, %v9714_v2 }
 0x10d   :  { %8459 = vmatprep.mubr.msk.f32.mxu1 %vm642_vm1, %v9547_v0  ;;  %v512_v11 = vadd.f32 %v9632_v6, %v511_v9 }
 0x10f   :  { %v8386_v13 = vpop.f32.mrb[24].mxu0  ;;  %8433 = vmatprep.mubr.msk.f32.mxu0 %vm642_vm1, %v512_v11 }
 0x110   :  { %8460 = vmatmul.mubr.msk.f32.gmra.mrb[38].mxu1 %vm642_vm1, %v9555_v3  ;;  %v527_v14 = vadd.f32 %v8386_v13, %v9632_v6  ;;  %v521_v57 = vpop.f32.mrb[25].mxu0  ;;  %8434 = vmatmul.mubr.msk.f32.gmra.mrb[38].mxu0 %vm642_vm1, %v517_v54  ;;  %v9990_v13 = vld [vmem:[%s12303_s4 + $0x18] sm:$0xff] }
 0x111   :  { %8462 = vmatprep.mubr.msk.f32.mxu1 %vm642_vm1, %v9567_v12  ;;  %v522_v38 = vadd.f32 %v9632_v6, %v521_v57 }
 0x113   :  { %v8389_v17 = vpop.f32.mrb[26].mxu0  ;;  %8436 = vmatprep.mubr.msk.f32.mxu0 %vm642_vm1, %v522_v38 }
 0x114   :  { %8463 = vmatmul.mubr.msk.f32.gmra.mrb[40].mxu1 %vm642_vm1, %v9575_v15  ;;  %v537_v0 = vadd.f32 %v8389_v17, %v9632_v6  ;;  %v531_v19 = vpop.f32.mrb[27].mxu0  ;;  %8437 = vmatmul.mubr.msk.f32.gmra.mrb[40].mxu0 %vm642_vm1, %v527_v14 }
 0x115   :  { %8465 = vmatprep.mubr.msk.f32.mxu1 %vm642_vm1, %v9587_v36  ;;  %v532_v3 = vadd.f32 %v9632_v6, %v531_v19 }
 0x117   :  { %v8392_v20 = vpop.f32.mrb[28].mxu0  ;;  %8439 = vmatprep.mubr.msk.f32.mxu0 %vm642_vm1, %v532_v3 }
 0x118   :  { %8466 = vmatmul.mubr.msk.f32.gmra.mrb[42].mxu1 %vm642_vm1, %v9595_v41  ;;  %v547_v12 = vadd.f32 %v8392_v20, %v9632_v6  ;;  %v541_v23 = vpop.f32.mrb[29].mxu0  ;;  %8440 = vmatmul.mubr.msk.f32.gmra.mrb[42].mxu0 %vm642_vm1, %v537_v0 }
 0x119   :  { %8468 = vmatprep.mubr.msk.f32.mxu1 %vm642_vm1, %v9607_v55  ;;  %v542_v15 = vadd.f32 %v9632_v6, %v541_v23  ;;  %v6632_v55 = vld [vmem:[%s12300_s1 + $0x130] sm:$0xff] }
 0x11b   :  { %v8395_v39 = vpop.f32.mrb[30].mxu0  ;;  %8442 = vmatprep.mubr.msk.f32.mxu0 %vm642_vm1, %v542_v15 }
 0x11c   :  { %8469 = vmatmul.mubr.msk.f32.gmra.mrb[44].mxu1 %vm642_vm1, %v9615_v59  ;;  %v557_v36 = vadd.f32 %v8395_v39, %v9632_v6  ;;  %v551_v40 = vpop.f32.mrb[31].mxu0  ;;  %8443 = vmatmul.mubr.msk.f32.gmra.mrb[44].mxu0 %vm642_vm1, %v547_v12  ;;  %v6633_v59 = vld [vmem:[%s12300_s1 + $0x138] sm:$0xff] }
 0x11d   :  { %8471 = vmatprep.mubr.msk.f32.mxu1 %vm642_vm1, %v9627_v4  ;;  %v552_v41 = vadd.f32 %v9632_v6, %v551_v40  ;;  %v9144_v4 = vpack.c.bf16 %v6633_v59, %v6632_v55  ;;  %v6608_v6 = vld [vmem:[%s12300_s1 + $0xa0] sm:$0xff] }
 0x11f   :  { %8445 = vmatprep.mubr.msk.f32.mxu0 %vm642_vm1, %v552_v41 }
 0x120   :  { %8472 = vmatmul.mubr.msk.f32.gmra.mrb[46].mxu1 %vm642_vm1, %v9640_v10  ;;  %8446 = vmatmul.mubr.msk.f32.gmra.mrb[46].mxu0 %vm642_vm1, %v557_v36  ;;  %v6609_v10 = vld [vmem:[%s12300_s1 + $0xa8] sm:$0xff] }
 0x121   :  { %8508 = vmatprep.mubr.msk.f32.mxu1 %vm50_vm0, %v9283_v5  ;;  %8476 = vmatprep.mubr.msk.f32.mxu0 %vm642_vm1, %v9663_v35  ;;  %v6611_v35 = vld [vmem:[%s12300_s1 + $0xb8] sm:$0xff] }
 0x124   :  { %8509 = vmatmul.mubr.msk.f32.vlgmr.msra.gmra.mrb[48].mxu1 %vm50_vm0, %v9292_v7  ;;  %8477 = vmatmul.mubr.msk.f32.vlgmr.msra.gmra.mrb[48].mxu0 %vm642_vm1, %v9658_v18  ;;  %v9132_v18 = vpack.c.bf16 %v6609_v10, %v6608_v6 }
 0x125   :  { %8511 = vmatprep.mubr.msk.f32.mxu1 %vm50_vm0, %v9318_v16  ;;  %8479 = vmatprep.mubr.msk.f32.mxu0 %vm642_vm1, %v9694_v61 }
 0x126   :  { %9143 = vmatpush3.bf16.msra.mxu1 %v9706_v45  ;;  %9133 = vmatprep.subr.bf16.mxu0 %v9132_v18 }
 0x127   :  { %9145 = vmatprep.subr.bf16.mxu1 %v9144_v4  ;;  %9135 = vmatpush3.bf16.msra.mxu0 %v9132_v18 }
 0x128   :  { %8512 = vmatmul.mubr.msk.f32.gmra.mrb[50].mxu1 %vm50_vm0, %v9330_v21  ;;  %8480 = vmatmul.mubr.msk.f32.gmra.mrb[50].mxu0 %vm642_vm1, %v9686_v53 }
 0x129   :  { %8514 = vmatprep.mubr.msk.f32.mxu1 %vm50_vm0, %v9335_v22  ;;  %8482 = vmatprep.mubr.msk.f32.mxu0 %vm642_vm1, %v502_v50 }
 0x12a   :  { %9147 = vmatpush3.bf16.msra.mxu1 %v9144_v4 }
 0x12c   :  { %8515 = vmatmul.mubr.msk.f32.gmra.mrb[52].mxu1 %vm50_vm0, %v9347_v24  ;;  %8483 = vmatmul.mubr.msk.f32.gmra.mrb[52].mxu0 %vm642_vm1, %v9714_v2 }
 0x12d   :  { %8517 = vmatprep.mubr.msk.f32.mxu1 %vm50_vm0, %v9352_v25  ;;  %8485 = vmatprep.mubr.msk.f32.mxu0 %vm642_vm1, %v512_v11  ;;  %v6733_v11 = vld [vmem:[%s12303_s4 + $0x10] sm:$0xff] }
 0x12e   :  { %8622 = vmatprep.subr.mxu1 %v6733_v11 }
 0x130   :  { %8518 = vmatmul.mubr.msk.f32.gmra.mrb[54].mxu1 %vm50_vm0, %v9361_v26  ;;  %8486 = vmatmul.mubr.msk.f32.gmra.mrb[54].mxu0 %vm642_vm1, %v517_v54 }
 0x131   :  { %8520 = vmatprep.mubr.msk.f32.mxu1 %vm50_vm0, %v9368_v27  ;;  %8488 = vmatprep.mubr.msk.f32.mxu0 %vm642_vm1, %v522_v38 }
 0x134   :  { %8521 = vmatmul.mubr.msk.f32.gmra.mrb[56].mxu1 %vm50_vm0, %v9379_v28  ;;  %8489 = vmatmul.mubr.msk.f32.gmra.mrb[56].mxu0 %vm642_vm1, %v527_v14 }
 0x135   :  { %8523 = vmatprep.mubr.msk.f32.mxu1 %vm50_vm0, %v9386_v29  ;;  %8491 = vmatprep.mubr.msk.f32.mxu0 %vm642_vm1, %v532_v3 }
 0x138   :  { %8524 = vmatmul.mubr.msk.f32.gmra.mrb[58].mxu1 %vm50_vm0, %v9397_v30  ;;  %8492 = vmatmul.mubr.msk.f32.gmra.mrb[58].mxu0 %vm642_vm1, %v537_v0 }
 0x139   :  { %8526 = vmatprep.mubr.msk.f32.mxu1 %vm50_vm0, %v9404_v31  ;;  %8494 = vmatprep.mubr.msk.f32.mxu0 %vm642_vm1, %v542_v15 }
 0x13c   :  { %8527 = vmatmul.mubr.msk.f32.gmra.mrb[60].mxu1 %vm50_vm0, %v9415_v32  ;;  %8495 = vmatmul.mubr.msk.f32.gmra.mrb[60].mxu0 %vm642_vm1, %v547_v12 }
 0x13d   :  { %8529 = vmatprep.mubr.msk.f32.mxu1 %vm50_vm0, %v9422_v33  ;;  %8497 = vmatprep.mubr.msk.f32.mxu0 %vm642_vm1, %v552_v41 }
 0x140   :  { %8530 = vmatmul.mubr.msk.f32.gmra.mrb[62].mxu1 %vm50_vm0, %v9433_v34  ;;  %8498 = vmatmul.mubr.msk.f32.gmra.mrb[62].mxu0 %vm642_vm1, %v557_v36 }
 0x141   :  { %8572 = vmatprep.mubr.msk.f32.mxu1 %vm50_vm0, %v9283_v5  ;;  %8540 = vmatprep.mubr.msk.f32.mxu0 %vm50_vm0, %v9283_v5  ;;  %v6610_v5 = vld [vmem:[%s12300_s1 + $0xb0] sm:$0xff] }
 0x142   :  { %v9136_v42 = vpack.c.bf16 %v6611_v35, %v6610_v5 }
 0x144   :  { %8573 = vmatmul.mubr.msk.f32.vlgmr.msra.gmra.mrb[64].mxu1 %vm50_vm0, %v9292_v7  ;;  %9137 = vmatprep.subr.bf16.mxu0 %v9136_v42 }
 0x145   :  { %8575 = vmatprep.mubr.msk.f32.mxu1 %vm50_vm0, %v9318_v16  ;;  %9139 = vmatpush3.bf16.msra.mxu0 %v9136_v42 }
 0x146   :  { %8623 = vmatpush3.msra.mxu1 %v6733_v11 }
 0x147   :  { %8674 = vmatprep.subr.mxu1 %v9990_v13 }
 0x148   :  { %8576 = vmatmul.mubr.msk.f32.gmra.mrb[66].mxu1 %vm50_vm0, %v9330_v21  ;;  %8541 = vmatmul.mubr.msk.f32.vlgmr.msra.gmra.mrb[64].mxu0 %vm50_vm0, %v9292_v7  ;;  %v6684_v7 = vld [vmem:[%s12302_s3 + $0x10] sm:$0xff] }
 0x149   :  { %8578 = vmatprep.mubr.msk.f32.mxu1 %vm50_vm0, %v9335_v22  ;;  %8543 = vmatprep.mubr.msk.f32.mxu0 %vm50_vm0, %v9318_v16  ;;  %v9917_v16 = vld [vmem:[%s12302_s3 + $0x18] sm:$0xff] }
 0x14a   :  { %8596 = vmatprep.subr.mxu0 %v6684_v7 }
 0x14b   :  { %8597 = vmatpush3.msra.mxu0 %v6684_v7 }
 0x14c   :  { %8579 = vmatmul.mubr.msk.f32.gmra.mrb[68].mxu1 %vm50_vm0, %v9347_v24  ;;  %8544 = vmatmul.mubr.msk.f32.gmra.mrb[66].mxu0 %vm50_vm0, %v9330_v21 }
 0x14d   :  { %8581 = vmatprep.mubr.msk.f32.mxu1 %vm50_vm0, %v9352_v25  ;;  %8546 = vmatprep.mubr.msk.f32.mxu0 %vm50_vm0, %v9335_v22 }
 0x14e   :  { %8648 = vmatprep.subr.mxu0 %v9917_v16 }
 0x150   :  { %8582 = vmatmul.mubr.msk.f32.gmra.mrb[70].mxu1 %vm50_vm0, %v9361_v26  ;;  %8547 = vmatmul.mubr.msk.f32.gmra.mrb[68].mxu0 %vm50_vm0, %v9347_v24 }
 0x151   :  { %8584 = vmatprep.mubr.msk.f32.mxu1 %vm50_vm0, %v9368_v27  ;;  %8549 = vmatprep.mubr.msk.f32.mxu0 %vm50_vm0, %v9352_v25 }
 0x154   :  { %8585 = vmatmul.mubr.msk.f32.gmra.mrb[72].mxu1 %vm50_vm0, %v9379_v28  ;;  %8550 = vmatmul.mubr.msk.f32.gmra.mrb[70].mxu0 %vm50_vm0, %v9361_v26 }
 0x155   :  { %8587 = vmatprep.mubr.msk.f32.mxu1 %vm50_vm0, %v9386_v29  ;;  %8552 = vmatprep.mubr.msk.f32.mxu0 %vm50_vm0, %v9368_v27 }
 0x158   :  { %8588 = vmatmul.mubr.msk.f32.gmra.mrb[74].mxu1 %vm50_vm0, %v9397_v30  ;;  %8553 = vmatmul.mubr.msk.f32.gmra.mrb[72].mxu0 %vm50_vm0, %v9379_v28 }
 0x159   :  { %8590 = vmatprep.mubr.msk.f32.mxu1 %vm50_vm0, %v9404_v31  ;;  %8555 = vmatprep.mubr.msk.f32.mxu0 %vm50_vm0, %v9386_v29 }
 0x15c   :  { %8591 = vmatmul.mubr.msk.f32.gmra.mrb[76].mxu1 %vm50_vm0, %v9415_v32  ;;  %8556 = vmatmul.mubr.msk.f32.gmra.mrb[74].mxu0 %vm50_vm0, %v9397_v30 }
 0x15d   :  { %8593 = vmatprep.mubr.msk.f32.mxu1 %vm50_vm0, %v9422_v33  ;;  %8558 = vmatprep.mubr.msk.f32.mxu0 %vm50_vm0, %v9404_v31 }
 0x160   :  { %8594 = vmatmul.mubr.msk.f32.gmra.mrb[78].mxu1 %vm50_vm0, %v9433_v34  ;;  %8559 = vmatmul.mubr.msk.f32.gmra.mrb[76].mxu0 %vm50_vm0, %v9415_v32 }
 0x161   :  { %8561 = vmatprep.mubr.msk.f32.mxu0 %vm50_vm0, %v9422_v33 }
 0x164   :  { %8562 = vmatmul.mubr.msk.f32.gmra.mrb[78].mxu0 %vm50_vm0, %v9433_v34 }
 0x1b7   :  { %v8400_v21 = vpop.f32.mrb[16].mxu1 }
 0x1b8   :  { %v7485_v22 = vpack.c.bf16 %v8400_v21, %v8400_v21  ;;  %v757_v24 = vpop.f32.mrb[17].mxu1 }
 0x1b9   :  { %v7484_v25 = vpack.c.bf16 %v757_v24, %v757_v24 }
 0x1ba   :  { %901 = vst.msk [vmem:[%s12306_s6 + $0x4] sm:$0xf] %vm624_vm2, %v7485_v22 }
 0x1bb   :  { %900 = vst.msk [vmem:[%s12306_s6] sm:$0xf] %vm624_vm2, %v7484_v25  ;;  %v8403_v26 = vpop.f32.mrb[18].mxu1 }
 0x1bc   :  { %v7487_v27 = vpack.c.bf16 %v8403_v26, %v8403_v26  ;;  %v767_v28 = vpop.f32.mrb[19].mxu1 }
 0x1bd   :  { %v7486_v29 = vpack.c.bf16 %v767_v28, %v767_v28 }
 0x1be   :  { %903 = vst.msk [vmem:[%s12306_s6 + $0xc] sm:$0xf] %vm624_vm2, %v7487_v27 }
 0x1bf   :  { %902 = vst.msk [vmem:[%s12306_s6 + $0x8] sm:$0xf] %vm624_vm2, %v7486_v29  ;;  %v8406_v30 = vpop.f32.mrb[20].mxu1 }
 0x1c0   :  { %v7489_v31 = vpack.c.bf16 %v8406_v30, %v8406_v30  ;;  %v777_v32 = vpop.f32.mrb[21].mxu1 }
 0x1c1   :  { %v7488_v33 = vpack.c.bf16 %v777_v32, %v777_v32 }
 0x1c2   :  { %905 = vst.msk [vmem:[%s12306_s6 + $0x14] sm:$0xf] %vm624_vm2, %v7489_v31 }
 0x1c3   :  { %904 = vst.msk [vmem:[%s12306_s6 + $0x10] sm:$0xf] %vm624_vm2, %v7488_v33  ;;  %v8409_v34 = vpop.f32.mrb[22].mxu1 }
 0x1c4   :  { %v7491_v46 = vpack.c.bf16 %v8409_v34, %v8409_v34  ;;  %v787_v43 = vpop.f32.mrb[23].mxu1 }
 0x1c5   :  { %v7490_v47 = vpack.c.bf16 %v787_v43, %v787_v43 }
 0x1c6   :  { %907 = vst.msk [vmem:[%s12306_s6 + $0x1c] sm:$0xf] %vm624_vm2, %v7491_v46 }
 0x1c7   :  { %906 = vst.msk [vmem:[%s12306_s6 + $0x18] sm:$0xf] %vm624_vm2, %v7490_v47  ;;  %v8412_v51 = vpop.f32.mrb[24].mxu1 }
 0x1c8   :  { %v7493_v52 = vpack.c.bf16 %v8412_v51, %v8412_v51  ;;  %v797_v53 = vpop.f32.mrb[25].mxu1 }
 0x1c9   :  { %v7492_v56 = vpack.c.bf16 %v797_v53, %v797_v53 }
 0x1ca   :  { %909 = vst.msk [vmem:[%s12306_s6 + $0x24] sm:$0xf] %vm624_vm2, %v7493_v52 }
 0x1cb   :  { %908 = vst.msk [vmem:[%s12306_s6 + $0x20] sm:$0xf] %vm624_vm2, %v7492_v56  ;;  %v8415_v58 = vpop.f32.mrb[26].mxu1 }
 0x1cc   :  { %v7495_v60 = vpack.c.bf16 %v8415_v58, %v8415_v58  ;;  %v807_v61 = vpop.f32.mrb[27].mxu1 }
 0x1cd   :  { %v7494_v44 = vpack.c.bf16 %v807_v61, %v807_v61 }
 0x1ce   :  { %911 = vst.msk [vmem:[%s12306_s6 + $0x2c] sm:$0xf] %vm624_vm2, %v7495_v60 }
 0x1cf   :  { %910 = vst.msk [vmem:[%s12306_s6 + $0x28] sm:$0xf] %vm624_vm2, %v7494_v44  ;;  %v8418_v62 = vpop.f32.mrb[28].mxu1 }
 0x1d0   :  { %v7497_v45 = vpack.c.bf16 %v8418_v62, %v8418_v62  ;;  %v817_v48 = vpop.f32.mrb[29].mxu1 }
 0x1d1   :  { %v7496_v63 = vpack.c.bf16 %v817_v48, %v817_v48 }
 0x1d2   :  { %913 = vst.msk [vmem:[%s12306_s6 + $0x34] sm:$0xf] %vm624_vm2, %v7497_v45 }
 0x1d3   :  { %912 = vst.msk [vmem:[%s12306_s6 + $0x30] sm:$0xf] %vm624_vm2, %v7496_v63  ;;  %v8421_v1 = vpop.f32.mrb[30].mxu1 }
 0x1d4   :  { %v7499_v2 = vpack.c.bf16 %v8421_v1, %v8421_v1  ;;  %v827_v37 = vpop.f32.mrb[31].mxu1 }
 0x1d5   :  { %v7498_v8 = vpack.c.bf16 %v827_v37, %v827_v37 }
 0x1d6   :  { %915 = vst.msk [vmem:[%s12306_s6 + $0x3c] sm:$0xf] %vm624_vm2, %v7499_v2 }
 0x1d7   :  { %914 = vst.msk [vmem:[%s12306_s6 + $0x38] sm:$0xf] %vm624_vm2, %v7498_v8  ;;  %v8452_v50 = vpop.f32.mrb[32].mxu1  ;;  %v8426_v9 = vpop.f32.mrb[32].mxu0 }
 0x1d8   :  { %v7517_v49 = vpack.c.bf16 %v8452_v50, %v8452_v50  ;;  %v1258_v54 = vpop.f32.mrb[33].mxu1  ;;  %v7501_v57 = vpack.c.bf16 %v8426_v9, %v8426_v9  ;;  %v1031_v38 = vpop.f32.mrb[33].mxu0  ;;  %v10112_v9 = vld [vmem:[%s12304_s2 + $0x1] ss:$0 sm:$0xff] }
 0x1d9   :  { %v7516_v14 = vpack.c.bf16 %v1258_v54, %v1258_v54  ;;  %v7500_v17 = vpack.c.bf16 %v1031_v38, %v1031_v38 }
 0x1da   :  { %6522 = vst.msk [vmem:[%s12306_s6 + $0x44] sm:$0xf] %vm624_vm2, %v7517_v49  ;;  %1175 = vst.msk [vmem:[%s12307_s7 + $0x4] sm:$0xf] %vm624_vm2, %v7501_v57  ;;  %v6881_v57 = vld [vmem:[%s12300_s1 + $0x48] sm:$0xff] }
 0x1db   :  { %6521 = vst.msk [vmem:[%s12306_s6 + $0x40] sm:$0xf] %vm624_vm2, %v7516_v14  ;;  %v8455_v0 = vpop.f32.mrb[34].mxu1  ;;  %v8429_v19 = vpop.f32.mrb[34].mxu0  ;;  %1174 = vst.msk [vmem:[%s12307_s7] sm:$0xf] %vm624_vm2, %v7500_v17 }
 0x1dc   :  { %v7519_v3 = vpack.c.bf16 %v8455_v0, %v8455_v0  ;;  %v1268_v20 = vpop.f32.mrb[35].mxu1  ;;  %v7503_v12 = vpack.c.bf16 %v8429_v19, %v8429_v19  ;;  %v1041_v23 = vpop.f32.mrb[35].mxu0  ;;  %v6880_v14 = vld [vmem:[%s12300_s1 + $0x40] sm:$0xff] }
 0x1dd   :  { %v7518_v15 = vpack.c.bf16 %v1268_v20, %v1268_v20  ;;  %v7502_v39 = vpack.c.bf16 %v1041_v23, %v1041_v23  ;;  %v10138_v23 = vpack.c.bf16 %v6881_v57, %v6880_v14 }
 0x1de   :  { %6524 = vst.msk [vmem:[%s12306_s6 + $0x4c] sm:$0xf] %vm624_vm2, %v7519_v3  ;;  %1177 = vst.msk [vmem:[%s12307_s7 + $0xc] sm:$0xf] %vm624_vm2, %v7503_v12 }
 0x1df   :  { %6523 = vst.msk [vmem:[%s12306_s6 + $0x48] sm:$0xf] %vm624_vm2, %v7518_v15  ;;  %v8458_v36 = vpop.f32.mrb[36].mxu1  ;;  %1176 = vst.msk [vmem:[%s12307_s7 + $0x8] sm:$0xf] %vm624_vm2, %v7502_v39  ;;  %v8432_v40 = vpop.f32.mrb[36].mxu0 }
 0x1e0   :  { %v7521_v41 = vpack.c.bf16 %v8458_v36, %v8458_v36  ;;  %v1278_v55 = vpop.f32.mrb[37].mxu1  ;;  %v7505_v59 = vpack.c.bf16 %v8432_v40, %v8432_v40  ;;  %v1051_v4 = vpop.f32.mrb[37].mxu0 }
 0x1e1   :  { %v7520_v6 = vpack.c.bf16 %v1278_v55, %v1278_v55  ;;  %v7504_v10 = vpack.c.bf16 %v1051_v4, %v1051_v4 }
 0x1e2   :  { %6526 = vst.msk [vmem:[%s12306_s6 + $0x54] sm:$0xf] %vm624_vm2, %v7521_v41  ;;  %1179 = vst.msk [vmem:[%s12307_s7 + $0x14] sm:$0xf] %vm624_vm2, %v7505_v59 }
 0x1e3   :  { %6525 = vst.msk [vmem:[%s12306_s6 + $0x50] sm:$0xf] %vm624_vm2, %v7520_v6  ;;  %v8461_v18 = vpop.f32.mrb[38].mxu1  ;;  %1178 = vst.msk [vmem:[%s12307_s7 + $0x10] sm:$0xf] %vm624_vm2, %v7504_v10  ;;  %v8435_v5 = vpop.f32.mrb[38].mxu0 }
 0x1e4   :  { %v7523_v35 = vpack.c.bf16 %v8461_v18, %v8461_v18  ;;  %v1288_v42 = vpop.f32.mrb[39].mxu1  ;;  %v7507_v7 = vpack.c.bf16 %v8435_v5, %v8435_v5  ;;  %v1061_v21 = vpop.f32.mrb[39].mxu0 }
 0x1e5   :  { %v7522_v22 = vpack.c.bf16 %v1288_v42, %v1288_v42  ;;  %v7506_v24 = vpack.c.bf16 %v1061_v21, %v1061_v21 }
 0x1e6   :  { %6528 = vst.msk [vmem:[%s12306_s6 + $0x5c] sm:$0xf] %vm624_vm2, %v7523_v35  ;;  %1181 = vst.msk [vmem:[%s12307_s7 + $0x1c] sm:$0xf] %vm624_vm2, %v7507_v7 }
 0x1e7   :  { %6527 = vst.msk [vmem:[%s12306_s6 + $0x58] sm:$0xf] %vm624_vm2, %v7522_v22  ;;  %v8464_v25 = vpop.f32.mrb[40].mxu1  ;;  %1180 = vst.msk [vmem:[%s12307_s7 + $0x18] sm:$0xf] %vm624_vm2, %v7506_v24  ;;  %v8438_v26 = vpop.f32.mrb[40].mxu0 }
 0x1e8   :  { %v7525_v27 = vpack.c.bf16 %v8464_v25, %v8464_v25  ;;  %v1298_v28 = vpop.f32.mrb[41].mxu1  ;;  %v7509_v29 = vpack.c.bf16 %v8438_v26, %v8438_v26  ;;  %v1071_v30 = vpop.f32.mrb[41].mxu0 }
 0x1e9   :  { %v7524_v31 = vpack.c.bf16 %v1298_v28, %v1298_v28  ;;  %v7508_v32 = vpack.c.bf16 %v1071_v30, %v1071_v30 }
 0x1ea   :  { %6530 = vst.msk [vmem:[%s12306_s6 + $0x64] sm:$0xf] %vm624_vm2, %v7525_v27  ;;  %1183 = vst.msk [vmem:[%s12307_s7 + $0x24] sm:$0xf] %vm624_vm2, %v7509_v29 }
 0x1eb   :  { %6529 = vst.msk [vmem:[%s12306_s6 + $0x60] sm:$0xf] %vm624_vm2, %v7524_v31  ;;  %v8467_v33 = vpop.f32.mrb[42].mxu1  ;;  %1182 = vst.msk [vmem:[%s12307_s7 + $0x20] sm:$0xf] %vm624_vm2, %v7508_v32  ;;  %v8441_v34 = vpop.f32.mrb[42].mxu0 }
 0x1ec   :  { %v7527_v46 = vpack.c.bf16 %v8467_v33, %v8467_v33  ;;  %v1308_v43 = vpop.f32.mrb[43].mxu1  ;;  %v7511_v47 = vpack.c.bf16 %v8441_v34, %v8441_v34  ;;  %v1081_v51 = vpop.f32.mrb[43].mxu0 }
 0x1ed   :  { %v7526_v52 = vpack.c.bf16 %v1308_v43, %v1308_v43  ;;  %v7510_v53 = vpack.c.bf16 %v1081_v51, %v1081_v51 }
 0x1ee   :  { %6532 = vst.msk [vmem:[%s12306_s6 + $0x6c] sm:$0xf] %vm624_vm2, %v7527_v46  ;;  %1185 = vst.msk [vmem:[%s12307_s7 + $0x2c] sm:$0xf] %vm624_vm2, %v7511_v47 }
 0x1ef   :  { %6531 = vst.msk [vmem:[%s12306_s6 + $0x68] sm:$0xf] %vm624_vm2, %v7526_v52  ;;  %v8470_v56 = vpop.f32.mrb[44].mxu1  ;;  %1184 = vst.msk [vmem:[%s12307_s7 + $0x28] sm:$0xf] %vm624_vm2, %v7510_v53  ;;  %v8444_v58 = vpop.f32.mrb[44].mxu0 }
 0x1f0   :  { %v7529_v60 = vpack.c.bf16 %v8470_v56, %v8470_v56  ;;  %v1318_v61 = vpop.f32.mrb[45].mxu1  ;;  %v7513_v44 = vpack.c.bf16 %v8444_v58, %v8444_v58  ;;  %v1091_v62 = vpop.f32.mrb[45].mxu0 }
 0x1f1   :  { %v7528_v45 = vpack.c.bf16 %v1318_v61, %v1318_v61  ;;  %v7512_v48 = vpack.c.bf16 %v1091_v62, %v1091_v62 }
 0x1f2   :  { %6534 = vst.msk [vmem:[%s12306_s6 + $0x74] sm:$0xf] %vm624_vm2, %v7529_v60  ;;  %1187 = vst.msk [vmem:[%s12307_s7 + $0x34] sm:$0xf] %vm624_vm2, %v7513_v44 }
 0x1f3   :  { %6533 = vst.msk [vmem:[%s12306_s6 + $0x70] sm:$0xf] %vm624_vm2, %v7528_v45  ;;  %v8473_v63 = vpop.f32.mrb[46].mxu1  ;;  %1186 = vst.msk [vmem:[%s12307_s7 + $0x30] sm:$0xf] %vm624_vm2, %v7512_v48  ;;  %v8447_v1 = vpop.f32.mrb[46].mxu0 }
 0x1f4   :  { %v7531_v2 = vpack.c.bf16 %v8473_v63, %v8473_v63  ;;  %v1328_v37 = vpop.f32.mrb[47].mxu1  ;;  %v7515_v8 = vpack.c.bf16 %v8447_v1, %v8447_v1  ;;  %v1101_v50 = vpop.f32.mrb[47].mxu0 }
 0x1f5   :  { %v7530_v49 = vpack.c.bf16 %v1328_v37, %v1328_v37  ;;  %v7514_v54 = vpack.c.bf16 %v1101_v50, %v1101_v50 }
 0x1f6   :  { %6536 = vst.msk [vmem:[%s12306_s6 + $0x7c] sm:$0xf] %vm624_vm2, %v7531_v2  ;;  %1189 = vst.msk [vmem:[%s12307_s7 + $0x3c] sm:$0xf] %vm624_vm2, %v7515_v8 }
 0x1f7   :  { %6535 = vst.msk [vmem:[%s12306_s6 + $0x78] sm:$0xf] %vm624_vm2, %v7530_v49  ;;  %v8510_v11 = vpop.f32.mrb[48].mxu1  ;;  %1188 = vst.msk [vmem:[%s12307_s7 + $0x38] sm:$0xf] %vm624_vm2, %v7514_v54  ;;  %v8478_v38 = vpop.f32.mrb[48].mxu0 }
 0x1f8   :  { %v1725_v17 = vpop.f32.mrb[49].mxu1  ;;  %v7533_v0 = vpack.c.bf16 %v8478_v38, %v8478_v38  ;;  %v1486_v19 = vpop.f32.mrb[49].mxu0  ;;  %v10136_v12 = vadd.f32 %v8510_v11, %v10112_v9 }
 0x1f9   :  { %v10133_v3 = vadd.f32 %v10112_v9, %v1725_v17  ;;  %v7532_v20 = vpack.c.bf16 %v1486_v19, %v1486_v19  ;;  %v10268_v17 = vld [vmem:[%s12304_s2 + $0x9] ss:$0 sm:$0xff]  ;;  %v6882_v19 = vld [vmem:[%s12300_s1 + $0x50] sm:$0xff] }
 0x1fa   :  { %6571 = vst.msk [vmem:[%s12307_s7 + $0x44] sm:$0xf] %vm624_vm2, %v7533_v0 }
 0x1fb   :  { %v8513_v15 = vpop.f32.mrb[50].mxu1  ;;  %8598 = vmatprep.mubr.msk.f32.mxu0 %vm642_vm1, %v10133_v3  ;;  %6570 = vst.msk [vmem:[%s12307_s7 + $0x40] sm:$0xf] %vm624_vm2, %v7532_v20  ;;  %v8481_v39 = vpop.f32.mrb[50].mxu0  ;;  %v6883_v20 = vld [vmem:[%s12300_s1 + $0x58] sm:$0xff] }
 0x1fc   :  { %v1735_v36 = vpop.f32.mrb[51].mxu1  ;;  %8599 = vmatmul.mubr.msk.f32.vlgmr.msra.gmra.mrb[80].mxu0 %vm642_vm1, %v10136_v12  ;;  %v7535_v40 = vpack.c.bf16 %v8481_v39, %v8481_v39  ;;  %v1496_v41 = vpop.f32.mrb[51].mxu0  ;;  %v10157_v4 = vadd.f32 %v8513_v15, %v10112_v9 }
 0x1fd   :  { %v10153_v55 = vadd.f32 %v10112_v9, %v1735_v36  ;;  %8649 = vmatpush3.msra.mxu0 %v9917_v16  ;;  %v7534_v59 = vpack.c.bf16 %v1496_v41, %v1496_v41 }
 0x1fe   :  { %9149 = vmatprep.subr.bf16.mxu0 %v10138_v23  ;;  %6573 = vst.msk [vmem:[%s12307_s7 + $0x4c] sm:$0xf] %vm624_vm2, %v7535_v40  ;;  %v9152_v40 = vpack.c.bf16 %v6883_v20, %v6882_v19 }
 0x1ff   :  { %v8516_v6 = vpop.f32.mrb[52].mxu1  ;;  %8601 = vmatprep.mubr.msk.f32.mxu0 %vm642_vm1, %v10153_v55  ;;  %6572 = vst.msk [vmem:[%s12307_s7 + $0x48] sm:$0xf] %vm624_vm2, %v7534_v59  ;;  %v8484_v16 = vpop.f32.mrb[52].mxu0 }
 0x200   :  { %v1745_v10 = vpop.f32.mrb[53].mxu1  ;;  %8602 = vmatmul.mubr.msk.f32.gmra.mrb[82].mxu0 %vm642_vm1, %v10157_v4  ;;  %v7537_v18 = vpack.c.bf16 %v8484_v16, %v8484_v16  ;;  %v1506_v5 = vpop.f32.mrb[53].mxu0  ;;  %v10176_v7 = vadd.f32 %v8516_v6, %v10112_v9 }
 0x201   :  { %v10173_v35 = vadd.f32 %v10112_v9, %v1745_v10  ;;  %v7536_v42 = vpack.c.bf16 %v1506_v5, %v1506_v5  ;;  %v10346_v5 = vld [vmem:[%s12304_s2 + $0x5] ss:$0 sm:$0xff] }
 0x202   :  { %6575 = vst.msk [vmem:[%s12307_s7 + $0x54] sm:$0xf] %vm624_vm2, %v7537_v18 }
 0x203   :  { %v8519_v21 = vpop.f32.mrb[54].mxu1  ;;  %8604 = vmatprep.mubr.msk.f32.mxu0 %vm642_vm1, %v10173_v35  ;;  %6574 = vst.msk [vmem:[%s12307_s7 + $0x50] sm:$0xf] %vm624_vm2, %v7536_v42  ;;  %v8487_v22 = vpop.f32.mrb[54].mxu0 }
 0x204   :  { %v1755_v24 = vpop.f32.mrb[55].mxu1  ;;  %8605 = vmatmul.mubr.msk.f32.gmra.mrb[84].mxu0 %vm642_vm1, %v10176_v7  ;;  %v7539_v25 = vpack.c.bf16 %v8487_v22, %v8487_v22  ;;  %v1516_v26 = vpop.f32.mrb[55].mxu0  ;;  %v10194_v29 = vadd.f32 %v8519_v21, %v10112_v9 }
 0x205   :  { %v10191_v27 = vadd.f32 %v10112_v9, %v1755_v24  ;;  %v7538_v28 = vpack.c.bf16 %v1516_v26, %v1516_v26 }
 0x206   :  { %6577 = vst.msk [vmem:[%s12307_s7 + $0x5c] sm:$0xf] %vm624_vm2, %v7539_v25 }
 0x207   :  { %v8522_v30 = vpop.f32.mrb[56].mxu1  ;;  %8607 = vmatprep.mubr.msk.f32.mxu0 %vm642_vm1, %v10191_v27  ;;  %6576 = vst.msk [vmem:[%s12307_s7 + $0x58] sm:$0xf] %vm624_vm2, %v7538_v28  ;;  %v8490_v31 = vpop.f32.mrb[56].mxu0 }
 0x208   :  { %v1765_v32 = vpop.f32.mrb[57].mxu1  ;;  %8608 = vmatmul.mubr.msk.f32.gmra.mrb[86].mxu0 %vm642_vm1, %v10194_v29  ;;  %v7541_v33 = vpack.c.bf16 %v8490_v31, %v8490_v31  ;;  %v1526_v34 = vpop.f32.mrb[57].mxu0  ;;  %v10212_v47 = vadd.f32 %v8522_v30, %v10112_v9 }
 0x209   :  { %v10209_v46 = vadd.f32 %v10112_v9, %v1765_v32  ;;  %v7540_v43 = vpack.c.bf16 %v1526_v34, %v1526_v34 }
 0x20a   :  { %6579 = vst.msk [vmem:[%s12307_s7 + $0x64] sm:$0xf] %vm624_vm2, %v7541_v33 }
 0x20b   :  { %v8525_v51 = vpop.f32.mrb[58].mxu1  ;;  %8610 = vmatprep.mubr.msk.f32.mxu0 %vm642_vm1, %v10209_v46  ;;  %6578 = vst.msk [vmem:[%s12307_s7 + $0x60] sm:$0xf] %vm624_vm2, %v7540_v43  ;;  %v8493_v52 = vpop.f32.mrb[58].mxu0 }
 0x20c   :  { %v1775_v53 = vpop.f32.mrb[59].mxu1  ;;  %8611 = vmatmul.mubr.msk.f32.gmra.mrb[88].mxu0 %vm642_vm1, %v10212_v47  ;;  %v7543_v56 = vpack.c.bf16 %v8493_v52, %v8493_v52  ;;  %v1536_v58 = vpop.f32.mrb[59].mxu0  ;;  %v10230_v44 = vadd.f32 %v8525_v51, %v10112_v9 }
 0x20d   :  { %v10227_v60 = vadd.f32 %v10112_v9, %v1775_v53  ;;  %v7542_v61 = vpack.c.bf16 %v1536_v58, %v1536_v58 }
 0x20e   :  { %6581 = vst.msk [vmem:[%s12307_s7 + $0x6c] sm:$0xf] %vm624_vm2, %v7543_v56 }
 0x20f   :  { %v8528_v62 = vpop.f32.mrb[60].mxu1  ;;  %8613 = vmatprep.mubr.msk.f32.mxu0 %vm642_vm1, %v10227_v60  ;;  %6580 = vst.msk [vmem:[%s12307_s7 + $0x68] sm:$0xf] %vm624_vm2, %v7542_v61  ;;  %v8496_v45 = vpop.f32.mrb[60].mxu0 }
 0x210   :  { %v1785_v48 = vpop.f32.mrb[61].mxu1  ;;  %8614 = vmatmul.mubr.msk.f32.gmra.mrb[90].mxu0 %vm642_vm1, %v10230_v44  ;;  %v7545_v63 = vpack.c.bf16 %v8496_v45, %v8496_v45  ;;  %v1546_v1 = vpop.f32.mrb[61].mxu0  ;;  %v10248_v8 = vadd.f32 %v8528_v62, %v10112_v9 }
 0x211   :  { %v10245_v2 = vadd.f32 %v10112_v9, %v1785_v48  ;;  %v7544_v37 = vpack.c.bf16 %v1546_v1, %v1546_v1 }
 0x212   :  { %6583 = vst.msk [vmem:[%s12307_s7 + $0x74] sm:$0xf] %vm624_vm2, %v7545_v63 }
 0x213   :  { %v8531_v50 = vpop.f32.mrb[62].mxu1  ;;  %8616 = vmatprep.mubr.msk.f32.mxu0 %vm642_vm1, %v10245_v2  ;;  %6582 = vst.msk [vmem:[%s12307_s7 + $0x70] sm:$0xf] %vm624_vm2, %v7544_v37  ;;  %v8499_v49 = vpop.f32.mrb[62].mxu0 }
 0x214   :  { %v1795_v54 = vpop.f32.mrb[63].mxu1  ;;  %8617 = vmatmul.mubr.msk.f32.gmra.mrb[92].mxu0 %vm642_vm1, %v10248_v8  ;;  %v7547_v11 = vpack.c.bf16 %v8499_v49, %v8499_v49  ;;  %v1556_v14 = vpop.f32.mrb[63].mxu0  ;;  %v10271_v0 = vadd.f32 %v8531_v50, %v10112_v9 }
 0x215   :  { %v10263_v57 = vadd.f32 %v10112_v9, %v1795_v54  ;;  %v7546_v38 = vpack.c.bf16 %v1556_v14, %v1556_v14 }
 0x216   :  { %6585 = vst.msk [vmem:[%s12307_s7 + $0x7c] sm:$0xf] %vm624_vm2, %v7547_v11 }
 0x217   :  { %8619 = vmatprep.mubr.msk.f32.mxu0 %vm642_vm1, %v10263_v57  ;;  %6584 = vst.msk [vmem:[%s12307_s7 + $0x78] sm:$0xf] %vm624_vm2, %v7546_v38  ;;  %v8574_v9 = vpop.f32.mrb[64].mxu1  ;;  %v10445_v38 = vld [vmem:[%s12301_s0] sm:$0xff] }
 0x218   :  { %8620 = vmatmul.mubr.msk.f32.gmra.mrb[94].mxu0 %vm642_vm1, %v10271_v0  ;;  %v10292_v15 = vadd.f32 %v8574_v9, %v10268_v17  ;;  %v2041_v39 = vpop.f32.mrb[65].mxu1  ;;  %v10464_v9 = vld [vmem:[%s12301_s0 + $0x8] sm:$0xff] }
 0x219   :  { %8650 = vmatprep.mubr.msk.f32.mxu0 %vm642_vm1, %v10133_v3  ;;  %v10297_v36 = vadd.f32 %v10268_v17, %v2041_v39 }
 0x21b   :  { %v8577_v41 = vpop.f32.mrb[66].mxu1  ;;  %8624 = vmatprep.mubr.msk.f32.mxu1 %vm642_vm1, %v10297_v36  ;;  %v8542_v21 = vpop.f32.mrb[64].mxu0 }
 0x21c   :  { %8651 = vmatmul.mubr.msk.f32.vlgmr.msra.gmra.mrb[96].mxu0 %vm642_vm1, %v10136_v12  ;;  %v10304_v59 = vadd.f32 %v8577_v41, %v10268_v17  ;;  %v2051_v6 = vpop.f32.mrb[67].mxu1  ;;  %8625 = vmatmul.mubr.msk.f32.vlgmr.msra.gmra.mrb[80].mxu1 %vm642_vm1, %v10292_v15  ;;  %v1889_v24 = vadd.f32 %v8542_v21, %v10346_v5  ;;  %v1883_v25 = vpop.f32.mrb[65].mxu0 }
 0x21d   :  { %9151 = vmatpush3.bf16.msra.mxu0 %v10138_v23  ;;  %8653 = vmatprep.mubr.msk.f32.mxu0 %vm642_vm1, %v10153_v55  ;;  %v10312_v3 = vadd.f32 %v10268_v17, %v2051_v6  ;;  %v1884_v26 = vadd.f32 %v10346_v5, %v1883_v25 }
 0x21e   :  { %9153 = vmatprep.subr.bf16.mxu0 %v9152_v40  ;;  %8675 = vmatpush3.msra.mxu1 %v9990_v13  ;;  %v7549_v28 = vpack.c.bf16 %v1889_v24, %v1889_v24 }
 0x21f   :  { %v8580_v16 = vpop.f32.mrb[68].mxu1  ;;  %8627 = vmatprep.mubr.msk.f32.mxu1 %vm642_vm1, %v10312_v3  ;;  %v7548_v31 = vpack.c.bf16 %v1884_v26, %v1884_v26  ;;  %v8545_v32 = vpop.f32.mrb[66].mxu0  ;;  %v10529_v26 = vld [vmem:[%s12301_s0 + $0x30] sm:$0xff] }
 0x220   :  { %8654 = vmatmul.mubr.msk.f32.gmra.mrb[98].mxu0 %vm642_vm1, %v10157_v4  ;;  %v10320_v12 = vadd.f32 %v8580_v16, %v10268_v17  ;;  %v2061_v23 = vpop.f32.mrb[69].mxu1  ;;  %8628 = vmatmul.mubr.msk.f32.gmra.mrb[82].mxu1 %vm642_vm1, %v10304_v59  ;;  %6669 = vst.msk [vmem:[%s12305_s5 + $0x44] sm:$0xf] %vm624_vm2, %v7549_v28  ;;  %v1899_v34 = vadd.f32 %v8545_v32, %v10346_v5  ;;  %v10557_v32 = vld [vmem:[%s12301_s0 + $0x40] sm:$0xff] }
 0x221   :  { %8656 = vmatprep.mubr.msk.f32.mxu0 %vm642_vm1, %v10173_v35  ;;  %9155 = vmatpush3.bf16.msra.mxu0 %v9152_v40  ;;  %v10327_v13 = vadd.f32 %v10268_v17, %v2061_v23  ;;  %6668 = vst.msk [vmem:[%s12305_s5 + $0x40] sm:$0xf] %vm624_vm2, %v7548_v31  ;;  %v10473_v40 = vld [vmem:[%s12301_s0 + $0x10] sm:$0xff] }
 0x222   :  { %v7551_v51 = vpack.c.bf16 %v1899_v34, %v1899_v34  ;;  %v6902_v34 = vld [vmem:[%s12300_s1 + $0xc0] sm:$0xff] }
 0x223   :  { %v8583_v55 = vpop.f32.mrb[70].mxu1  ;;  %8630 = vmatprep.mubr.msk.f32.mxu1 %vm642_vm1, %v10327_v13 }
 0x224   :  { %8657 = vmatmul.mubr.msk.f32.gmra.mrb[100].mxu0 %vm642_vm1, %v10176_v7  ;;  %v10334_v4 = vadd.f32 %v8583_v55, %v10268_v17  ;;  %v2071_v10 = vpop.f32.mrb[71].mxu1  ;;  %8631 = vmatmul.mubr.msk.f32.gmra.mrb[84].mxu1 %vm642_vm1, %v10320_v12  ;;  %6671 = vst.msk [vmem:[%s12305_s5 + $0x4c] sm:$0xf] %vm624_vm2, %v7551_v51  ;;  %v6904_v51 = vld [vmem:[%s12300_s1 + $0xd0] sm:$0xff] }
 0x225   :  { %8659 = vmatprep.mubr.msk.f32.mxu0 %vm642_vm1, %v10191_v27  ;;  %v10341_v18 = vadd.f32 %v10268_v17, %v2071_v10  ;;  %v10501_v10 = vld [vmem:[%s12301_s0 + $0x20] sm:$0xff] }
 0x227   :  { %v8586_v35 = vpop.f32.mrb[72].mxu1  ;;  %8633 = vmatprep.mubr.msk.f32.mxu1 %vm642_vm1, %v10341_v18 }
 0x228   :  { %8660 = vmatmul.mubr.msk.f32.gmra.mrb[102].mxu0 %vm642_vm1, %v10194_v29  ;;  %v10353_v42 = vadd.f32 %v8586_v35, %v10268_v17  ;;  %v2081_v7 = vpop.f32.mrb[73].mxu1  ;;  %8634 = vmatmul.mubr.msk.f32.gmra.mrb[86].mxu1 %vm642_vm1, %v10334_v4 }
 0x229   :  { %8662 = vmatprep.mubr.msk.f32.mxu0 %vm642_vm1, %v10209_v46  ;;  %v10360_v22 = vadd.f32 %v10268_v17, %v2081_v7  ;;  %v1893_v46 = vpop.f32.mrb[67].mxu0 }
 0x22a   :  { %v1894_v43 = vadd.f32 %v10346_v5, %v1893_v46  ;;  %v8548_v58 = vpop.f32.mrb[68].mxu0  ;;  %v6903_v46 = vld [vmem:[%s12300_s1 + $0xc8] sm:$0xff] }
 0x22b   :  { %v8589_v27 = vpop.f32.mrb[74].mxu1  ;;  %8636 = vmatprep.mubr.msk.f32.mxu1 %vm642_vm1, %v10360_v22  ;;  %v1909_v61 = vadd.f32 %v8548_v58, %v10346_v5  ;;  %v6925_v58 = vld [vmem:[%s12300_s1 + $0x148] sm:$0xff] }
 0x22c   :  { %8663 = vmatmul.mubr.msk.f32.gmra.mrb[104].mxu0 %vm642_vm1, %v10212_v47  ;;  %v10369_v29 = vadd.f32 %v8589_v27, %v10268_v17  ;;  %v2091_v30 = vpop.f32.mrb[75].mxu1  ;;  %8637 = vmatmul.mubr.msk.f32.gmra.mrb[88].mxu1 %vm642_vm1, %v10353_v42  ;;  %v7550_v56 = vpack.c.bf16 %v1894_v43, %v1894_v43  ;;  %v9156_v43 = vpack.c.bf16 %v6903_v46, %v6902_v34 }
 0x22d   :  { %8665 = vmatprep.mubr.msk.f32.mxu0 %vm642_vm1, %v10227_v60  ;;  %v10376_v33 = vadd.f32 %v10268_v17, %v2091_v30  ;;  %v7553_v48 = vpack.c.bf16 %v1909_v61, %v1909_v61  ;;  %v6926_v61 = vld [vmem:[%s12300_s1 + $0x150] sm:$0xff] }
 0x22e   :  { %6670 = vst.msk [vmem:[%s12305_s5 + $0x48] sm:$0xf] %vm624_vm2, %v7550_v56  ;;  %9157 = vmatprep.subr.bf16.mxu1 %v9156_v43 }
 0x22f   :  { %v8592_v47 = vpop.f32.mrb[76].mxu1  ;;  %8639 = vmatprep.mubr.msk.f32.mxu1 %vm642_vm1, %v10376_v33  ;;  %6673 = vst.msk [vmem:[%s12305_s5 + $0x54] sm:$0xf] %vm624_vm2, %v7553_v48  ;;  %v10728_v48 = vld [vmem:[%s12302_s3 + $0x28] sm:$0xff] }
 0x230   :  { %8666 = vmatmul.mubr.msk.f32.gmra.mrb[106].mxu0 %vm642_vm1, %v10230_v44  ;;  %v10393_v52 = vadd.f32 %v8592_v47, %v10268_v17  ;;  %v2101_v53 = vpop.f32.mrb[77].mxu1  ;;  %8640 = vmatmul.mubr.msk.f32.gmra.mrb[90].mxu1 %vm642_vm1, %v10369_v29  ;;  %v1903_v44 = vpop.f32.mrb[69].mxu0  ;;  %v10634_v47 = vld [vmem:[%s12301_s0 + $0x78] sm:$0xff] }
 0x231   :  { %8668 = vmatprep.mubr.msk.f32.mxu0 %vm642_vm1, %v10245_v2  ;;  %v10400_v60 = vadd.f32 %v10268_v17, %v2101_v53  ;;  %v1904_v62 = vadd.f32 %v10346_v5, %v1903_v44  ;;  %v8551_v37 = vpop.f32.mrb[70].mxu0  ;;  %v6924_v53 = vld [vmem:[%s12300_s1 + $0x140] sm:$0xff]  ;;  %v6927_v44 = vld [vmem:[%s12300_s1 + $0x158] sm:$0xff] }
 0x232   :  { %v1913_v49 = vpop.f32.mrb[71].mxu0 }
 0x233   :  { %v8595_v45 = vpop.f32.mrb[78].mxu1  ;;  %8642 = vmatprep.mubr.msk.f32.mxu1 %vm642_vm1, %v10400_v60  ;;  %v7552_v2 = vpack.c.bf16 %v1904_v62, %v1904_v62  ;;  %v1914_v54 = vadd.f32 %v10346_v5, %v1913_v49  ;;  %v9168_v62 = vpack.c.bf16 %v6927_v44, %v6926_v61 }
 0x234   :  { %8669 = vmatmul.mubr.msk.f32.gmra.mrb[108].mxu0 %vm642_vm1, %v10248_v8  ;;  %v10417_v63 = vadd.f32 %v8595_v45, %v10268_v17  ;;  %v2111_v1 = vpop.f32.mrb[79].mxu1  ;;  %8643 = vmatmul.mubr.msk.f32.gmra.mrb[92].mxu1 %vm642_vm1, %v10393_v52  ;;  %v1919_v8 = vadd.f32 %v8551_v37, %v10346_v5  ;;  %v6978_v45 = vld [vmem:[%s12302_s3 + $0x20] sm:$0xff] }
 0x235   :  { %8671 = vmatprep.mubr.msk.f32.mxu0 %vm642_vm1, %v10263_v57  ;;  %v10424_v50 = vadd.f32 %v10268_v17, %v2111_v1  ;;  %6672 = vst.msk [vmem:[%s12305_s5 + $0x50] sm:$0xf] %vm624_vm2, %v7552_v2  ;;  %v7554_v14 = vpack.c.bf16 %v1914_v54, %v1914_v54  ;;  %v8554_v57 = vpop.f32.mrb[72].mxu0 }
 0x236   :  { %v7555_v11 = vpack.c.bf16 %v1919_v8, %v1919_v8  ;;  %v1929_v17 = vadd.f32 %v8554_v57, %v10346_v5 }
 0x237   :  { %8645 = vmatprep.mubr.msk.f32.mxu1 %vm642_vm1, %v10424_v50  ;;  %6674 = vst.msk [vmem:[%s12305_s5 + $0x58] sm:$0xf] %vm624_vm2, %v7554_v14 }
 0x238   :  { %8672 = vmatmul.mubr.msk.f32.gmra.mrb[110].mxu0 %vm642_vm1, %v10271_v0  ;;  %8646 = vmatmul.mubr.msk.f32.gmra.mrb[94].mxu1 %vm642_vm1, %v10417_v63  ;;  %6675 = vst.msk [vmem:[%s12305_s5 + $0x5c] sm:$0xf] %vm624_vm2, %v7555_v11  ;;  %v1923_v0 = vpop.f32.mrb[73].mxu0  ;;  %v7557_v20 = vpack.c.bf16 %v1929_v17, %v1929_v17 }
 0x239   :  { %8708 = vmatprep.mubr.msk.f32.mxu0 %vm50_vm0, %v10445_v38  ;;  %8676 = vmatprep.mubr.msk.f32.mxu1 %vm642_vm1, %v10297_v36  ;;  %v1924_v19 = vadd.f32 %v10346_v5, %v1923_v0  ;;  %v8557_v36 = vpop.f32.mrb[74].mxu0 }
 0x23a   :  { %6677 = vst.msk [vmem:[%s12305_s5 + $0x64] sm:$0xf] %vm624_vm2, %v7557_v20  ;;  %v1933_v41 = vpop.f32.mrb[75].mxu0 }
 0x23b   :  { %v7556_v39 = vpack.c.bf16 %v1924_v19, %v1924_v19  ;;  %v1934_v6 = vadd.f32 %v10346_v5, %v1933_v41  ;;  %v8560_v55 = vpop.f32.mrb[76].mxu0 }
 0x23c   :  { %8709 = vmatmul.mubr.msk.f32.vlgmr.msra.gmra.mrb[112].mxu0 %vm50_vm0, %v10464_v9  ;;  %8677 = vmatmul.mubr.msk.f32.vlgmr.msra.gmra.mrb[96].mxu1 %vm642_vm1, %v10292_v15  ;;  %v1939_v15 = vadd.f32 %v8557_v36, %v10346_v5  ;;  %v1943_v35 = vpop.f32.mrb[77].mxu0 }
 0x23d   :  { %8711 = vmatprep.mubr.msk.f32.mxu0 %vm50_vm0, %v10473_v40  ;;  %8679 = vmatprep.mubr.msk.f32.mxu1 %vm642_vm1, %v10312_v3  ;;  %6676 = vst.msk [vmem:[%s12305_s5 + $0x60] sm:$0xf] %vm624_vm2, %v7556_v39  ;;  %v10492_v3 = vld [vmem:[%s12301_s0 + $0x18] sm:$0xff]  ;;  %v7558_v23 = vpack.c.bf16 %v1934_v6, %v1934_v6  ;;  %v1944_v7 = vadd.f32 %v10346_v5, %v1943_v35  ;;  %v8563_v25 = vpop.f32.mrb[78].mxu0 }
 0x23e   :  { %v7559_v16 = vpack.c.bf16 %v1939_v15, %v1939_v15  ;;  %v1953_v27 = vpop.f32.mrb[79].mxu0  ;;  %9159 = vmatpush3.bf16.msra.mxu1 %v9156_v43 }
 0x23f   :  { %6678 = vst.msk [vmem:[%s12305_s5 + $0x68] sm:$0xf] %vm624_vm2, %v7558_v23  ;;  %v7560_v24 = vpack.c.bf16 %v1944_v7, %v1944_v7  ;;  %v1954_v28 = vadd.f32 %v10346_v5, %v1953_v27 }
 0x240   :  { %8712 = vmatmul.mubr.msk.f32.gmra.mrb[114].mxu0 %vm50_vm0, %v10492_v3  ;;  %8680 = vmatmul.mubr.msk.f32.gmra.mrb[98].mxu1 %vm642_vm1, %v10304_v59  ;;  %6679 = vst.msk [vmem:[%s12305_s5 + $0x6c] sm:$0xf] %vm624_vm2, %v7559_v16  ;;  %v1949_v59 = vadd.f32 %v8560_v55, %v10346_v5 }
 0x241   :  { %8714 = vmatprep.mubr.msk.f32.mxu0 %vm50_vm0, %v10501_v10  ;;  %8682 = vmatprep.mubr.msk.f32.mxu1 %vm642_vm1, %v10327_v13  ;;  %v10520_v13 = vld [vmem:[%s12301_s0 + $0x28] sm:$0xff]  ;;  %6680 = vst.msk [vmem:[%s12305_s5 + $0x70] sm:$0xf] %vm624_vm2, %v7560_v24  ;;  %v7562_v31 = vpack.c.bf16 %v1954_v28, %v1954_v28 }
 0x242   :  { %v7561_v21 = vpack.c.bf16 %v1949_v59, %v1949_v59 }
 0x243   :  { %6682 = vst.msk [vmem:[%s12305_s5 + $0x78] sm:$0xf] %vm624_vm2, %v7562_v31 }
 0x244   :  { %8715 = vmatmul.mubr.msk.f32.gmra.mrb[116].mxu0 %vm50_vm0, %v10520_v13  ;;  %8683 = vmatmul.mubr.msk.f32.gmra.mrb[100].mxu1 %vm642_vm1, %v10320_v12  ;;  %6681 = vst.msk [vmem:[%s12305_s5 + $0x74] sm:$0xf] %vm624_vm2, %v7561_v21  ;;  %v1959_v12 = vadd.f32 %v8563_v25, %v10346_v5  ;;  %v10583_v5 = vld [vmem:[%s12301_s0 + $0x50] sm:$0xff] }
 0x245   :  { %8717 = vmatprep.mubr.msk.f32.mxu0 %vm50_vm0, %v10529_v26  ;;  %8685 = vmatprep.mubr.msk.f32.mxu1 %vm642_vm1, %v10341_v18  ;;  %v10548_v18 = vld [vmem:[%s12301_s0 + $0x38] sm:$0xff] }
 0x246   :  { %v7563_v30 = vpack.c.bf16 %v1959_v12, %v1959_v12 }
 0x248   :  { %8718 = vmatmul.mubr.msk.f32.gmra.mrb[118].mxu0 %vm50_vm0, %v10548_v18  ;;  %8686 = vmatmul.mubr.msk.f32.gmra.mrb[102].mxu1 %vm642_vm1, %v10334_v4  ;;  %6683 = vst.msk [vmem:[%s12305_s5 + $0x7c] sm:$0xf] %vm624_vm2, %v7563_v30  ;;  %v10574_v4 = vld [vmem:[%s12301_s0 + $0x48] sm:$0xff] }
 0x249   :  { %8720 = vmatprep.mubr.msk.f32.mxu0 %vm50_vm0, %v10557_v32  ;;  %8688 = vmatprep.mubr.msk.f32.mxu1 %vm642_vm1, %v10360_v22  ;;  %v10592_v22 = vld [vmem:[%s12301_s0 + $0x58] sm:$0xff] }
 0x24c   :  { %8721 = vmatmul.mubr.msk.f32.gmra.mrb[120].mxu0 %vm50_vm0, %v10574_v4  ;;  %8689 = vmatmul.mubr.msk.f32.gmra.mrb[104].mxu1 %vm642_vm1, %v10353_v42  ;;  %v10601_v42 = vld [vmem:[%s12301_s0 + $0x60] sm:$0xff] }
 0x24d   :  { %8723 = vmatprep.mubr.msk.f32.mxu0 %vm50_vm0, %v10583_v5  ;;  %8691 = vmatprep.mubr.msk.f32.mxu1 %vm642_vm1, %v10376_v33  ;;  %v10610_v33 = vld [vmem:[%s12301_s0 + $0x68] sm:$0xff] }
 0x250   :  { %8724 = vmatmul.mubr.msk.f32.gmra.mrb[122].mxu0 %vm50_vm0, %v10592_v22  ;;  %8692 = vmatmul.mubr.msk.f32.gmra.mrb[106].mxu1 %vm642_vm1, %v10369_v29  ;;  %v10619_v29 = vld [vmem:[%s12301_s0 + $0x70] sm:$0xff] }
 0x251   :  { %8726 = vmatprep.mubr.msk.f32.mxu0 %vm50_vm0, %v10601_v42  ;;  %8694 = vmatprep.mubr.msk.f32.mxu1 %vm642_vm1, %v10400_v60  ;;  %v9164_v60 = vpack.c.bf16 %v6925_v58, %v6924_v53 }
 0x253   :  { %9165 = vmatprep.subr.bf16.mxu0 %v9164_v60 }
 0x254   :  { %8727 = vmatmul.mubr.msk.f32.gmra.mrb[124].mxu0 %vm50_vm0, %v10610_v33  ;;  %8695 = vmatmul.mubr.msk.f32.gmra.mrb[108].mxu1 %vm642_vm1, %v10393_v52  ;;  %v6905_v52 = vld [vmem:[%s12300_s1 + $0xd8] sm:$0xff] }
 0x255   :  { %8729 = vmatprep.mubr.msk.f32.mxu0 %vm50_vm0, %v10619_v29  ;;  %8697 = vmatprep.mubr.msk.f32.mxu1 %vm642_vm1, %v10424_v50  ;;  %v9160_v56 = vpack.c.bf16 %v6905_v52, %v6904_v51 }
 0x256   :  { %9167 = vmatpush3.bf16.msra.mxu0 %v9164_v60 }
 0x257   :  { %9161 = vmatprep.subr.bf16.mxu1 %v9160_v56  ;;  %9169 = vmatprep.subr.bf16.mxu0 %v9168_v62 }
 0x258   :  { %8730 = vmatmul.mubr.msk.f32.gmra.mrb[126].mxu0 %vm50_vm0, %v10634_v47  ;;  %8698 = vmatmul.mubr.msk.f32.gmra.mrb[110].mxu1 %vm642_vm1, %v10417_v63 }
 0x259   :  { %8772 = vmatprep.mubr.msk.f32.mxu0 %vm50_vm0, %v10445_v38  ;;  %8740 = vmatprep.mubr.msk.f32.mxu1 %vm50_vm0, %v10445_v38 }
 0x25a   :  { %9163 = vmatpush3.bf16.msra.mxu1 %v9160_v56  ;;  %9171 = vmatpush3.bf16.msra.mxu0 %v9168_v62 }
 0x25b   :  { %8796 = vmatprep.subr.mxu1 %v6978_v45 }
 0x25d   :  { %8741 = vmatmul.mubr.msk.f32.vlgmr.msra.gmra.mrb[112].mxu1 %vm50_vm0, %v10464_v9  ;;  %8773 = vmatmul.mubr.msk.f32.vlgmr.msra.gmra.mrb[128].mxu0 %vm50_vm0, %v10464_v9 }
 0x25e   :  { %8743 = vmatprep.mubr.msk.f32.mxu1 %vm50_vm0, %v10473_v40  ;;  %8775 = vmatprep.mubr.msk.f32.mxu0 %vm50_vm0, %v10473_v40 }
 0x25f   :  { %8797 = vmatpush3.msra.mxu1 %v6978_v45 }
 0x260   :  { %8848 = vmatprep.subr.mxu1 %v10728_v48 }
 0x261   :  { %8744 = vmatmul.mubr.msk.f32.gmra.mrb[114].mxu1 %vm50_vm0, %v10492_v3  ;;  %8776 = vmatmul.mubr.msk.f32.gmra.mrb[130].mxu0 %vm50_vm0, %v10492_v3 }
 0x262   :  { %8746 = vmatprep.mubr.msk.f32.mxu1 %vm50_vm0, %v10501_v10  ;;  %8778 = vmatprep.mubr.msk.f32.mxu0 %vm50_vm0, %v10501_v10 }
 0x265   :  { %8747 = vmatmul.mubr.msk.f32.gmra.mrb[116].mxu1 %vm50_vm0, %v10520_v13  ;;  %8779 = vmatmul.mubr.msk.f32.gmra.mrb[132].mxu0 %vm50_vm0, %v10520_v13 }
 0x266   :  { %8749 = vmatprep.mubr.msk.f32.mxu1 %vm50_vm0, %v10529_v26  ;;  %8781 = vmatprep.mubr.msk.f32.mxu0 %vm50_vm0, %v10529_v26 }
 0x269   :  { %8750 = vmatmul.mubr.msk.f32.gmra.mrb[118].mxu1 %vm50_vm0, %v10548_v18  ;;  %8782 = vmatmul.mubr.msk.f32.gmra.mrb[134].mxu0 %vm50_vm0, %v10548_v18 }
 0x26a   :  { %8752 = vmatprep.mubr.msk.f32.mxu1 %vm50_vm0, %v10557_v32  ;;  %8784 = vmatprep.mubr.msk.f32.mxu0 %vm50_vm0, %v10557_v32 }
 0x26d   :  { %8753 = vmatmul.mubr.msk.f32.gmra.mrb[120].mxu1 %vm50_vm0, %v10574_v4  ;;  %8785 = vmatmul.mubr.msk.f32.gmra.mrb[136].mxu0 %vm50_vm0, %v10574_v4 }
 0x26e   :  { %8755 = vmatprep.mubr.msk.f32.mxu1 %vm50_vm0, %v10583_v5  ;;  %8787 = vmatprep.mubr.msk.f32.mxu0 %vm50_vm0, %v10583_v5 }
 0x271   :  { %8756 = vmatmul.mubr.msk.f32.gmra.mrb[122].mxu1 %vm50_vm0, %v10592_v22  ;;  %8788 = vmatmul.mubr.msk.f32.gmra.mrb[138].mxu0 %vm50_vm0, %v10592_v22 }
 0x272   :  { %8758 = vmatprep.mubr.msk.f32.mxu1 %vm50_vm0, %v10601_v42  ;;  %8790 = vmatprep.mubr.msk.f32.mxu0 %vm50_vm0, %v10601_v42 }
 0x275   :  { %8759 = vmatmul.mubr.msk.f32.gmra.mrb[124].mxu1 %vm50_vm0, %v10610_v33  ;;  %8791 = vmatmul.mubr.msk.f32.gmra.mrb[140].mxu0 %vm50_vm0, %v10610_v33 }
 0x276   :  { %8761 = vmatprep.mubr.msk.f32.mxu1 %vm50_vm0, %v10619_v29  ;;  %8793 = vmatprep.mubr.msk.f32.mxu0 %vm50_vm0, %v10619_v29 }
 0x279   :  { %8762 = vmatmul.mubr.msk.f32.gmra.mrb[126].mxu1 %vm50_vm0, %v10634_v47  ;;  %8794 = vmatmul.mubr.msk.f32.gmra.mrb[142].mxu0 %vm50_vm0, %v10634_v47 }
 0x2cf   :  { %v8600_v63 = vpop.f32.mrb[80].mxu0 }
 0x2d0   :  { %v7565_v1 = vpack.c.bf16 %v8600_v63, %v8600_v63  ;;  %v2317_v2 = vpop.f32.mrb[81].mxu0 }
 0x2d1   :  { %v7564_v37 = vpack.c.bf16 %v2317_v2, %v2317_v2 }
 0x2d2   :  { %6718 = vst.msk [vmem:[%s12306_s6 + $0x84] sm:$0xf] %vm624_vm2, %v7565_v1 }
 0x2d3   :  { %6717 = vst.msk [vmem:[%s12306_s6 + $0x80] sm:$0xf] %vm624_vm2, %v7564_v37  ;;  %v8603_v50 = vpop.f32.mrb[82].mxu0 }
 0x2d4   :  { %v7567_v8 = vpack.c.bf16 %v8603_v50, %v8603_v50  ;;  %v2327_v49 = vpop.f32.mrb[83].mxu0 }
 0x2d5   :  { %v7566_v54 = vpack.c.bf16 %v2327_v49, %v2327_v49 }
 0x2d6   :  { %6720 = vst.msk [vmem:[%s12306_s6 + $0x8c] sm:$0xf] %vm624_vm2, %v7567_v8 }
 0x2d7   :  { %6719 = vst.msk [vmem:[%s12306_s6 + $0x88] sm:$0xf] %vm624_vm2, %v7566_v54  ;;  %v8606_v11 = vpop.f32.mrb[84].mxu0 }
 0x2d8   :  { %v7569_v14 = vpack.c.bf16 %v8606_v11, %v8606_v11  ;;  %v2337_v57 = vpop.f32.mrb[85].mxu0 }
 0x2d9   :  { %v7568_v17 = vpack.c.bf16 %v2337_v57, %v2337_v57 }
 0x2da   :  { %6722 = vst.msk [vmem:[%s12306_s6 + $0x94] sm:$0xf] %vm624_vm2, %v7569_v14 }
 0x2db   :  { %6721 = vst.msk [vmem:[%s12306_s6 + $0x90] sm:$0xf] %vm624_vm2, %v7568_v17  ;;  %v8609_v0 = vpop.f32.mrb[86].mxu0 }
 0x2dc   :  { %v7571_v19 = vpack.c.bf16 %v8609_v0, %v8609_v0  ;;  %v2347_v20 = vpop.f32.mrb[87].mxu0 }
 0x2dd   :  { %v7570_v39 = vpack.c.bf16 %v2347_v20, %v2347_v20 }
 0x2de   :  { %6724 = vst.msk [vmem:[%s12306_s6 + $0x9c] sm:$0xf] %vm624_vm2, %v7571_v19 }
 0x2df   :  { %6723 = vst.msk [vmem:[%s12306_s6 + $0x98] sm:$0xf] %vm624_vm2, %v7570_v39  ;;  %v8612_v36 = vpop.f32.mrb[88].mxu0 }
 0x2e0   :  { %v7573_v15 = vpack.c.bf16 %v8612_v36, %v8612_v36  ;;  %v2357_v41 = vpop.f32.mrb[89].mxu0 }
 0x2e1   :  { %v7572_v6 = vpack.c.bf16 %v2357_v41, %v2357_v41 }
 0x2e2   :  { %6726 = vst.msk [vmem:[%s12306_s6 + $0xa4] sm:$0xf] %vm624_vm2, %v7573_v15 }
 0x2e3   :  { %6725 = vst.msk [vmem:[%s12306_s6 + $0xa0] sm:$0xf] %vm624_vm2, %v7572_v6  ;;  %v8615_v16 = vpop.f32.mrb[90].mxu0 }
 0x2e4   :  { %v7575_v23 = vpack.c.bf16 %v8615_v16, %v8615_v16  ;;  %v2367_v55 = vpop.f32.mrb[91].mxu0 }
 0x2e5   :  { %v7574_v59 = vpack.c.bf16 %v2367_v55, %v2367_v55 }
 0x2e6   :  { %6728 = vst.msk [vmem:[%s12306_s6 + $0xac] sm:$0xf] %vm624_vm2, %v7575_v23 }
 0x2e7   :  { %6727 = vst.msk [vmem:[%s12306_s6 + $0xa8] sm:$0xf] %vm624_vm2, %v7574_v59  ;;  %v8618_v35 = vpop.f32.mrb[92].mxu0 }
 0x2e8   :  { %v7577_v7 = vpack.c.bf16 %v8618_v35, %v8618_v35  ;;  %v2377_v21 = vpop.f32.mrb[93].mxu0 }
 0x2e9   :  { %v7576_v24 = vpack.c.bf16 %v2377_v21, %v2377_v21 }
 0x2ea   :  { %6730 = vst.msk [vmem:[%s12306_s6 + $0xb4] sm:$0xf] %vm624_vm2, %v7577_v7 }
 0x2eb   :  { %6729 = vst.msk [vmem:[%s12306_s6 + $0xb0] sm:$0xf] %vm624_vm2, %v7576_v24  ;;  %v8621_v25 = vpop.f32.mrb[94].mxu0 }
 0x2ec   :  { %v7579_v12 = vpack.c.bf16 %v8621_v25, %v8621_v25  ;;  %v2387_v27 = vpop.f32.mrb[95].mxu0 }
 0x2ed   :  { %v7578_v28 = vpack.c.bf16 %v2387_v27, %v2387_v27 }
 0x2ee   :  { %6732 = vst.msk [vmem:[%s12306_s6 + $0xbc] sm:$0xf] %vm624_vm2, %v7579_v12 }
 0x2ef   :  { %6731 = vst.msk [vmem:[%s12306_s6 + $0xb8] sm:$0xf] %vm624_vm2, %v7578_v28  ;;  %v8652_v30 = vpop.f32.mrb[96].mxu0  ;;  %v8626_v43 = vpop.f32.mrb[80].mxu1 }
 0x2f0   :  { %v7597_v31 = vpack.c.bf16 %v8652_v30, %v8652_v30  ;;  %v2821_v34 = vpop.f32.mrb[97].mxu0  ;;  %v7581_v51 = vpack.c.bf16 %v8626_v43, %v8626_v43  ;;  %v2593_v58 = vpop.f32.mrb[81].mxu1 }
 0x2f1   :  { %v7596_v46 = vpack.c.bf16 %v2821_v34, %v2821_v34  ;;  %v7580_v61 = vpack.c.bf16 %v2593_v58, %v2593_v58 }
 0x2f2   :  { %6816 = vst.msk [vmem:[%s12306_s6 + $0xc4] sm:$0xf] %vm624_vm2, %v7597_v31  ;;  %6767 = vst.msk [vmem:[%s12307_s7 + $0x84] sm:$0xf] %vm624_vm2, %v7581_v51 }
 0x2f3   :  { %6815 = vst.msk [vmem:[%s12306_s6 + $0xc0] sm:$0xf] %vm624_vm2, %v7596_v46  ;;  %v8655_v52 = vpop.f32.mrb[98].mxu0  ;;  %v8629_v44 = vpop.f32.mrb[82].mxu1  ;;  %6766 = vst.msk [vmem:[%s12307_s7 + $0x80] sm:$0xf] %vm624_vm2, %v7580_v61 }
 0x2f4   :  { %v7599_v53 = vpack.c.bf16 %v8655_v52, %v8655_v52  ;;  %v2831_v56 = vpop.f32.mrb[99].mxu0  ;;  %v7583_v62 = vpack.c.bf16 %v8629_v44, %v8629_v44  ;;  %v2603_v45 = vpop.f32.mrb[83].mxu1 }
 0x2f5   :  { %v7598_v60 = vpack.c.bf16 %v2831_v56, %v2831_v56  ;;  %v7582_v1 = vpack.c.bf16 %v2603_v45, %v2603_v45 }
 0x2f6   :  { %6818 = vst.msk [vmem:[%s12306_s6 + $0xcc] sm:$0xf] %vm624_vm2, %v7599_v53  ;;  %6769 = vst.msk [vmem:[%s12307_s7 + $0x8c] sm:$0xf] %vm624_vm2, %v7583_v62 }
 0x2f7   :  { %6817 = vst.msk [vmem:[%s12306_s6 + $0xc8] sm:$0xf] %vm624_vm2, %v7598_v60  ;;  %v8658_v63 = vpop.f32.mrb[100].mxu0  ;;  %v8632_v2 = vpop.f32.mrb[84].mxu1  ;;  %6768 = vst.msk [vmem:[%s12307_s7 + $0x88] sm:$0xf] %vm624_vm2, %v7582_v1 }
 0x2f8   :  { %v7601_v37 = vpack.c.bf16 %v8658_v63, %v8658_v63  ;;  %v2841_v50 = vpop.f32.mrb[101].mxu0  ;;  %v7585_v8 = vpack.c.bf16 %v8632_v2, %v8632_v2  ;;  %v2613_v49 = vpop.f32.mrb[85].mxu1  ;;  %v10914_v2 = vld [vmem:[%s12304_s2 + $0x2] ss:$0 sm:$0xff] }
 0x2f9   :  { %v7600_v54 = vpack.c.bf16 %v2841_v50, %v2841_v50  ;;  %v7584_v11 = vpack.c.bf16 %v2613_v49, %v2613_v49  ;;  %v7174_v50 = vld [vmem:[%s12300_s1 + $0x60] sm:$0xff] }
 0x2fa   :  { %6820 = vst.msk [vmem:[%s12306_s6 + $0xd4] sm:$0xf] %vm624_vm2, %v7601_v37  ;;  %6771 = vst.msk [vmem:[%s12307_s7 + $0x94] sm:$0xf] %vm624_vm2, %v7585_v8  ;;  %v7175_v8 = vld [vmem:[%s12300_s1 + $0x68] sm:$0xff] }
 0x2fb   :  { %6819 = vst.msk [vmem:[%s12306_s6 + $0xd0] sm:$0xf] %vm624_vm2, %v7600_v54  ;;  %v8661_v14 = vpop.f32.mrb[102].mxu0  ;;  %6770 = vst.msk [vmem:[%s12307_s7 + $0x90] sm:$0xf] %vm624_vm2, %v7584_v11  ;;  %v8635_v57 = vpop.f32.mrb[86].mxu1 }
 0x2fc   :  { %v7603_v17 = vpack.c.bf16 %v8661_v14, %v8661_v14  ;;  %v2851_v0 = vpop.f32.mrb[103].mxu0  ;;  %v7587_v19 = vpack.c.bf16 %v8635_v57, %v8635_v57  ;;  %v2623_v20 = vpop.f32.mrb[87].mxu1 }
 0x2fd   :  { %v7602_v39 = vpack.c.bf16 %v2851_v0, %v2851_v0  ;;  %v7586_v36 = vpack.c.bf16 %v2623_v20, %v2623_v20  ;;  %v7027_v0 = vld [vmem:[%s12303_s4 + $0x20] sm:$0xff]  ;;  %v10943_v20 = vpack.c.bf16 %v7175_v8, %v7174_v50 }
 0x2fe   :  { %6822 = vst.msk [vmem:[%s12306_s6 + $0xdc] sm:$0xf] %vm624_vm2, %v7603_v17  ;;  %6773 = vst.msk [vmem:[%s12307_s7 + $0x9c] sm:$0xf] %vm624_vm2, %v7587_v19  ;;  %8822 = vmatprep.subr.mxu0 %v7027_v0 }
 0x2ff   :  { %6821 = vst.msk [vmem:[%s12306_s6 + $0xd8] sm:$0xf] %vm624_vm2, %v7602_v39  ;;  %v8664_v15 = vpop.f32.mrb[104].mxu0  ;;  %6772 = vst.msk [vmem:[%s12307_s7 + $0x98] sm:$0xf] %vm624_vm2, %v7586_v36  ;;  %v8638_v41 = vpop.f32.mrb[88].mxu1  ;;  %8823 = vmatpush3.msra.mxu0 %v7027_v0 }
 0x300   :  { %v7605_v6 = vpack.c.bf16 %v8664_v15, %v8664_v15  ;;  %v2861_v16 = vpop.f32.mrb[105].mxu0  ;;  %v7589_v23 = vpack.c.bf16 %v8638_v41, %v8638_v41  ;;  %v2633_v55 = vpop.f32.mrb[89].mxu1 }
 0x301   :  { %v7604_v59 = vpack.c.bf16 %v2861_v16, %v2861_v16  ;;  %v7588_v35 = vpack.c.bf16 %v2633_v55, %v2633_v55 }
 0x302   :  { %6824 = vst.msk [vmem:[%s12306_s6 + $0xe4] sm:$0xf] %vm624_vm2, %v7605_v6  ;;  %6775 = vst.msk [vmem:[%s12307_s7 + $0xa4] sm:$0xf] %vm624_vm2, %v7589_v23 }
 0x303   :  { %6823 = vst.msk [vmem:[%s12306_s6 + $0xe0] sm:$0xf] %vm624_vm2, %v7604_v59  ;;  %v8667_v7 = vpop.f32.mrb[106].mxu0  ;;  %6774 = vst.msk [vmem:[%s12307_s7 + $0xa0] sm:$0xf] %vm624_vm2, %v7588_v35  ;;  %v8641_v21 = vpop.f32.mrb[90].mxu1 }
 0x304   :  { %v7607_v24 = vpack.c.bf16 %v8667_v7, %v8667_v7  ;;  %v2871_v25 = vpop.f32.mrb[107].mxu0  ;;  %v7591_v12 = vpack.c.bf16 %v8641_v21, %v8641_v21  ;;  %v2643_v27 = vpop.f32.mrb[91].mxu1 }
 0x305   :  { %v7606_v28 = vpack.c.bf16 %v2871_v25, %v2871_v25  ;;  %v7590_v30 = vpack.c.bf16 %v2643_v27, %v2643_v27 }
 0x306   :  { %6826 = vst.msk [vmem:[%s12306_s6 + $0xec] sm:$0xf] %vm624_vm2, %v7607_v24  ;;  %6777 = vst.msk [vmem:[%s12307_s7 + $0xac] sm:$0xf] %vm624_vm2, %v7591_v12 }
 0x307   :  { %6825 = vst.msk [vmem:[%s12306_s6 + $0xe8] sm:$0xf] %vm624_vm2, %v7606_v28  ;;  %v8670_v31 = vpop.f32.mrb[108].mxu0  ;;  %6776 = vst.msk [vmem:[%s12307_s7 + $0xa8] sm:$0xf] %vm624_vm2, %v7590_v30  ;;  %v8644_v34 = vpop.f32.mrb[92].mxu1 }
 0x308   :  { %v7609_v46 = vpack.c.bf16 %v8670_v31, %v8670_v31  ;;  %v2881_v43 = vpop.f32.mrb[109].mxu0  ;;  %v7593_v51 = vpack.c.bf16 %v8644_v34, %v8644_v34  ;;  %v2653_v52 = vpop.f32.mrb[93].mxu1 }
 0x309   :  { %v7608_v53 = vpack.c.bf16 %v2881_v43, %v2881_v43  ;;  %v7592_v56 = vpack.c.bf16 %v2653_v52, %v2653_v52 }
 0x30a   :  { %6828 = vst.msk [vmem:[%s12306_s6 + $0xf4] sm:$0xf] %vm624_vm2, %v7609_v46  ;;  %6779 = vst.msk [vmem:[%s12307_s7 + $0xb4] sm:$0xf] %vm624_vm2, %v7593_v51 }
 0x30b   :  { %6827 = vst.msk [vmem:[%s12306_s6 + $0xf0] sm:$0xf] %vm624_vm2, %v7608_v53  ;;  %v8673_v58 = vpop.f32.mrb[110].mxu0  ;;  %6778 = vst.msk [vmem:[%s12307_s7 + $0xb0] sm:$0xf] %vm624_vm2, %v7592_v56  ;;  %v8647_v60 = vpop.f32.mrb[94].mxu1 }
 0x30c   :  { %v7611_v61 = vpack.c.bf16 %v8673_v58, %v8673_v58  ;;  %v2891_v44 = vpop.f32.mrb[111].mxu0  ;;  %v7595_v62 = vpack.c.bf16 %v8647_v60, %v8647_v60  ;;  %v2663_v45 = vpop.f32.mrb[95].mxu1 }
 0x30d   :  { %v7610_v63 = vpack.c.bf16 %v2891_v44, %v2891_v44  ;;  %v7594_v1 = vpack.c.bf16 %v2663_v45, %v2663_v45 }
 0x30e   :  { %6830 = vst.msk [vmem:[%s12306_s6 + $0xfc] sm:$0xf] %vm624_vm2, %v7611_v61  ;;  %6781 = vst.msk [vmem:[%s12307_s7 + $0xbc] sm:$0xf] %vm624_vm2, %v7595_v62 }
 0x30f   :  { %6829 = vst.msk [vmem:[%s12306_s6 + $0xf8] sm:$0xf] %vm624_vm2, %v7610_v63  ;;  %v8710_v37 = vpop.f32.mrb[112].mxu0  ;;  %6780 = vst.msk [vmem:[%s12307_s7 + $0xb8] sm:$0xf] %vm624_vm2, %v7594_v1  ;;  %v8678_v49 = vpop.f32.mrb[96].mxu1 }
 0x310   :  { %v3288_v54 = vpop.f32.mrb[113].mxu0  ;;  %v7613_v11 = vpack.c.bf16 %v8678_v49, %v8678_v49  ;;  %v3049_v14 = vpop.f32.mrb[97].mxu1  ;;  %v10941_v19 = vadd.f32 %v8710_v37, %v10914_v2 }
 0x311   :  { %v10935_v57 = vadd.f32 %v10914_v2, %v3288_v54  ;;  %v7612_v17 = vpack.c.bf16 %v3049_v14, %v3049_v14 }
 0x312   :  { %6865 = vst.msk [vmem:[%s12307_s7 + $0xc4] sm:$0xf] %vm624_vm2, %v7613_v11 }
 0x313   :  { %v8713_v39 = vpop.f32.mrb[114].mxu0  ;;  %8798 = vmatprep.mubr.msk.f32.mxu1 %vm642_vm1, %v10935_v57  ;;  %6864 = vst.msk [vmem:[%s12307_s7 + $0xc0] sm:$0xf] %vm624_vm2, %v7612_v17  ;;  %v8681_v36 = vpop.f32.mrb[98].mxu1 }
 0x314   :  { %v3298_v15 = vpop.f32.mrb[115].mxu0  ;;  %8799 = vmatmul.mubr.msk.f32.vlgmr.msra.gmra.mrb[128].mxu1 %vm642_vm1, %v10941_v19  ;;  %v7615_v41 = vpack.c.bf16 %v8681_v36, %v8681_v36  ;;  %v3059_v6 = vpop.f32.mrb[99].mxu1  ;;  %v10962_v55 = vadd.f32 %v8713_v39, %v10914_v2 }
 0x315   :  { %v10958_v16 = vadd.f32 %v10914_v2, %v3298_v15  ;;  %8849 = vmatpush3.msra.mxu1 %v10728_v48  ;;  %v7614_v23 = vpack.c.bf16 %v3059_v6, %v3059_v6 }
 0x316   :  { %9173 = vmatprep.subr.bf16.mxu1 %v10943_v20  ;;  %6867 = vst.msk [vmem:[%s12307_s7 + $0xcc] sm:$0xf] %vm624_vm2, %v7615_v41 }
 0x317   :  { %v8716_v59 = vpop.f32.mrb[116].mxu0  ;;  %8801 = vmatprep.mubr.msk.f32.mxu1 %vm642_vm1, %v10958_v16  ;;  %6866 = vst.msk [vmem:[%s12307_s7 + $0xc8] sm:$0xf] %vm624_vm2, %v7614_v23  ;;  %v8684_v48 = vpop.f32.mrb[100].mxu1 }
 0x318   :  { %v3308_v35 = vpop.f32.mrb[117].mxu0  ;;  %8802 = vmatmul.mubr.msk.f32.gmra.mrb[130].mxu1 %vm642_vm1, %v10962_v55  ;;  %v7617_v7 = vpack.c.bf16 %v8684_v48, %v8684_v48  ;;  %v3069_v21 = vpop.f32.mrb[101].mxu1  ;;  %v10981_v12 = vadd.f32 %v8716_v59, %v10914_v2 }
 0x319   :  { %v10978_v24 = vadd.f32 %v10914_v2, %v3308_v35  ;;  %v7616_v25 = vpack.c.bf16 %v3069_v21, %v3069_v21 }
 0x31a   :  { %6869 = vst.msk [vmem:[%s12307_s7 + $0xd4] sm:$0xf] %vm624_vm2, %v7617_v7 }
 0x31b   :  { %v8719_v27 = vpop.f32.mrb[118].mxu0  ;;  %8804 = vmatprep.mubr.msk.f32.mxu1 %vm642_vm1, %v10978_v24  ;;  %6868 = vst.msk [vmem:[%s12307_s7 + $0xd0] sm:$0xf] %vm624_vm2, %v7616_v25  ;;  %v8687_v28 = vpop.f32.mrb[102].mxu1 }
 0x31c   :  { %v3318_v30 = vpop.f32.mrb[119].mxu0  ;;  %8805 = vmatmul.mubr.msk.f32.gmra.mrb[132].mxu1 %vm642_vm1, %v10981_v12  ;;  %v7619_v31 = vpack.c.bf16 %v8687_v28, %v8687_v28  ;;  %v3079_v34 = vpop.f32.mrb[103].mxu1  ;;  %v10999_v51 = vadd.f32 %v8719_v27, %v10914_v2  ;;  %v7176_v27 = vld [vmem:[%s12300_s1 + $0x70] sm:$0xff]  ;;  %v7177_v28 = vld [vmem:[%s12300_s1 + $0x78] sm:$0xff] }
 0x31d   :  { %v10996_v46 = vadd.f32 %v10914_v2, %v3318_v30  ;;  %v7618_v43 = vpack.c.bf16 %v3079_v34, %v3079_v34  ;;  %v7218_v30 = vld [vmem:[%s12300_s1 + $0x160] sm:$0xff] }
 0x31e   :  { %6871 = vst.msk [vmem:[%s12307_s7 + $0xdc] sm:$0xf] %vm624_vm2, %v7619_v31  ;;  %v7219_v31 = vld [vmem:[%s12300_s1 + $0x168] sm:$0xff] }
 0x31f   :  { %v8722_v52 = vpop.f32.mrb[120].mxu0  ;;  %8807 = vmatprep.mubr.msk.f32.mxu1 %vm642_vm1, %v10996_v46  ;;  %6870 = vst.msk [vmem:[%s12307_s7 + $0xd8] sm:$0xf] %vm624_vm2, %v7618_v43  ;;  %v8690_v53 = vpop.f32.mrb[104].mxu1  ;;  %v11098_v34 = vpack.c.bf16 %v7219_v31, %v7218_v30 }
 0x320   :  { %v3328_v56 = vpop.f32.mrb[121].mxu0  ;;  %8808 = vmatmul.mubr.msk.f32.gmra.mrb[134].mxu1 %vm642_vm1, %v10999_v51  ;;  %v7621_v58 = vpack.c.bf16 %v8690_v53, %v8690_v53  ;;  %v3089_v60 = vpop.f32.mrb[105].mxu1  ;;  %v11017_v62 = vadd.f32 %v8722_v52, %v10914_v2 }
 0x321   :  { %v11014_v61 = vadd.f32 %v10914_v2, %v3328_v56  ;;  %v7620_v44 = vpack.c.bf16 %v3089_v60, %v3089_v60 }
 0x322   :  { %6873 = vst.msk [vmem:[%s12307_s7 + $0xe4] sm:$0xf] %vm624_vm2, %v7621_v58 }
 0x323   :  { %v8725_v45 = vpop.f32.mrb[122].mxu0  ;;  %8810 = vmatprep.mubr.msk.f32.mxu1 %vm642_vm1, %v11014_v61  ;;  %6872 = vst.msk [vmem:[%s12307_s7 + $0xe0] sm:$0xf] %vm624_vm2, %v7620_v44  ;;  %v8693_v63 = vpop.f32.mrb[106].mxu1 }
 0x324   :  { %v3338_v1 = vpop.f32.mrb[123].mxu0  ;;  %8811 = vmatmul.mubr.msk.f32.gmra.mrb[136].mxu1 %vm642_vm1, %v11017_v62  ;;  %v7623_v37 = vpack.c.bf16 %v8693_v63, %v8693_v63  ;;  %v3099_v50 = vpop.f32.mrb[107].mxu1  ;;  %v11033_v54 = vadd.f32 %v8725_v45, %v10914_v2 }
 0x325   :  { %v3339_v8 = vadd.f32 %v10914_v2, %v3338_v1  ;;  %v7622_v49 = vpack.c.bf16 %v3099_v50, %v3099_v50 }
 0x326   :  { %6875 = vst.msk [vmem:[%s12307_s7 + $0xec] sm:$0xf] %vm624_vm2, %v7623_v37 }
 0x327   :  { %v8728_v11 = vpop.f32.mrb[124].mxu0  ;;  %8813 = vmatprep.mubr.msk.f32.mxu1 %vm642_vm1, %v3339_v8  ;;  %6874 = vst.msk [vmem:[%s12307_s7 + $0xe8] sm:$0xf] %vm624_vm2, %v7622_v49  ;;  %v8696_v14 = vpop.f32.mrb[108].mxu1 }
 0x328   :  { %v3348_v17 = vpop.f32.mrb[125].mxu0  ;;  %8814 = vmatmul.mubr.msk.f32.gmra.mrb[138].mxu1 %vm642_vm1, %v11033_v54  ;;  %v7625_v0 = vpack.c.bf16 %v8696_v14, %v8696_v14  ;;  %v3109_v39 = vpop.f32.mrb[109].mxu1  ;;  %v11048_v41 = vadd.f32 %v8728_v11, %v10914_v2 }
 0x329   :  { %v3349_v36 = vadd.f32 %v10914_v2, %v3348_v17  ;;  %v7624_v15 = vpack.c.bf16 %v3109_v39, %v3109_v39 }
 0x32a   :  { %6877 = vst.msk [vmem:[%s12307_s7 + $0xf4] sm:$0xf] %vm624_vm2, %v7625_v0 }
 0x32b   :  { %v8731_v6 = vpop.f32.mrb[126].mxu0  ;;  %8816 = vmatprep.mubr.msk.f32.mxu1 %vm642_vm1, %v3349_v36  ;;  %6876 = vst.msk [vmem:[%s12307_s7 + $0xf0] sm:$0xf] %vm624_vm2, %v7624_v15  ;;  %v8699_v23 = vpop.f32.mrb[110].mxu1 }
 0x32c   :  { %v3358_v59 = vpop.f32.mrb[127].mxu0  ;;  %8817 = vmatmul.mubr.msk.f32.gmra.mrb[140].mxu1 %vm642_vm1, %v11048_v41  ;;  %v7627_v48 = vpack.c.bf16 %v8699_v23, %v8699_v23  ;;  %v3119_v35 = vpop.f32.mrb[111].mxu1  ;;  %v11065_v25 = vadd.f32 %v8731_v6, %v10914_v2  ;;  %v7220_v23 = vld [vmem:[%s12300_s1 + $0x170] sm:$0xff] }
 0x32d   :  { %v11062_v7 = vadd.f32 %v10914_v2, %v3358_v59  ;;  %v7626_v21 = vpack.c.bf16 %v3119_v35, %v3119_v35  ;;  %v9176_v2 = vpack.c.bf16 %v7177_v28, %v7176_v27  ;;  %v7221_v59 = vld [vmem:[%s12300_s1 + $0x178] sm:$0xff] }
 0x32e   :  { %6879 = vst.msk [vmem:[%s12307_s7 + $0xfc] sm:$0xf] %vm624_vm2, %v7627_v48  ;;  %v9192_v30 = vpack.c.bf16 %v7221_v59, %v7220_v23  ;;  %v7125_v59 = vld [vmem:[%s12303_s4 + $0x28] sm:$0xff] }
 0x32f   :  { %8819 = vmatprep.mubr.msk.f32.mxu1 %vm642_vm1, %v11062_v7  ;;  %6878 = vst.msk [vmem:[%s12307_s7 + $0xf8] sm:$0xf] %vm624_vm2, %v7626_v21  ;;  %8874 = vmatprep.subr.mxu0 %v7125_v59 }
 0x330   :  { %8820 = vmatmul.mubr.msk.f32.gmra.mrb[142].mxu1 %vm642_vm1, %v11065_v25 }
 0x331   :  { %8850 = vmatprep.mubr.msk.f32.mxu1 %vm642_vm1, %v10935_v57  ;;  %v11112_v57 = vld [vmem:[%s12304_s2 + $0x6] ss:$0 sm:$0xff] }
 0x334   :  { %8851 = vmatmul.mubr.msk.f32.vlgmr.msra.gmra.mrb[144].mxu1 %vm642_vm1, %v10941_v19  ;;  %v8742_v19 = vpop.f32.mrb[112].mxu1 }
 0x335   :  { %9175 = vmatpush3.bf16.msra.mxu1 %v10943_v20  ;;  %8853 = vmatprep.mubr.msk.f32.mxu1 %vm642_vm1, %v10958_v16  ;;  %v3452_v20 = vadd.f32 %v8742_v19, %v11112_v57  ;;  %v3446_v16 = vpop.f32.mrb[113].mxu1 }
 0x336   :  { %9177 = vmatprep.subr.bf16.mxu1 %v9176_v2  ;;  %v8745_v43 = vpop.f32.mrb[114].mxu1 }
 0x337   :  { %v3462_v52 = vadd.f32 %v8745_v43, %v11112_v57  ;;  %v3456_v53 = vpop.f32.mrb[115].mxu1 }
 0x338   :  { %8854 = vmatmul.mubr.msk.f32.gmra.mrb[146].mxu1 %vm642_vm1, %v10962_v55  ;;  %v3447_v55 = vadd.f32 %v11112_v57, %v3446_v16  ;;  %v3457_v60 = vadd.f32 %v11112_v57, %v3456_v53  ;;  %v8748_v45 = vpop.f32.mrb[116].mxu1 }
 0x339   :  { %8856 = vmatprep.mubr.msk.f32.mxu1 %vm642_vm1, %v10978_v24  ;;  %9179 = vmatpush3.bf16.msra.mxu1 %v9176_v2  ;;  %v11123_v24 = vld [vmem:[%s12304_s2 + $0xa] ss:$0 sm:$0xff]  ;;  %v7631_v44 = vpack.c.bf16 %v3462_v52, %v3462_v52  ;;  %v3472_v1 = vadd.f32 %v8748_v45, %v11112_v57  ;;  %v3466_v37 = vpop.f32.mrb[117].mxu1 }
 0x33a   :  { %9189 = vmatprep.subr.bf16.mxu1 %v11098_v34  ;;  %v3467_v49 = vadd.f32 %v11112_v57, %v3466_v37 }
 0x33b   :  { %6965 = vst.msk [vmem:[%s12305_s5 + $0x8c] sm:$0xf] %vm624_vm2, %v7631_v44  ;;  %v7633_v11 = vpack.c.bf16 %v3472_v1, %v3472_v1 }
 0x33c   :  { %8857 = vmatmul.mubr.msk.f32.gmra.mrb[148].mxu1 %vm642_vm1, %v10981_v12  ;;  %v7629_v12 = vpack.c.bf16 %v3452_v20, %v3452_v20  ;;  %v7632_v14 = vpack.c.bf16 %v3467_v49, %v3467_v49  ;;  %v8751_v17 = vpop.f32.mrb[118].mxu1 }
 0x33d   :  { %8859 = vmatprep.mubr.msk.f32.mxu1 %vm642_vm1, %v10996_v46  ;;  %v7628_v46 = vpack.c.bf16 %v3447_v55, %v3447_v55  ;;  %6967 = vst.msk [vmem:[%s12305_s5 + $0x94] sm:$0xf] %vm624_vm2, %v7633_v11  ;;  %v3482_v39 = vadd.f32 %v8751_v17, %v11112_v57 }
 0x33e   :  { %6963 = vst.msk [vmem:[%s12305_s5 + $0x84] sm:$0xf] %vm624_vm2, %v7629_v12  ;;  %6966 = vst.msk [vmem:[%s12305_s5 + $0x90] sm:$0xf] %vm624_vm2, %v7632_v14 }
 0x33f   :  { %6962 = vst.msk [vmem:[%s12305_s5 + $0x80] sm:$0xf] %vm624_vm2, %v7628_v46  ;;  %v7635_v35 = vpack.c.bf16 %v3482_v39, %v3482_v39 }
 0x340   :  { %8860 = vmatmul.mubr.msk.f32.gmra.mrb[150].mxu1 %vm642_vm1, %v10999_v51  ;;  %v8774_v51 = vpop.f32.mrb[128].mxu0 }
 0x341   :  { %8862 = vmatprep.mubr.msk.f32.mxu1 %vm642_vm1, %v11014_v61  ;;  %v11134_v56 = vadd.f32 %v8774_v51, %v11123_v24  ;;  %v3604_v58 = vpop.f32.mrb[129].mxu0  ;;  %6969 = vst.msk [vmem:[%s12305_s5 + $0x9c] sm:$0xf] %vm624_vm2, %v7635_v35  ;;  %v9222_v35 = vld [vmem:[%s12301_s0 + $0x70] sm:$0xff] }
 0x342   :  { %v11142_v61 = vadd.f32 %v11123_v24, %v3604_v58  ;;  %v8777_v63 = vpop.f32.mrb[130].mxu0 }
 0x343   :  { %v11155_v50 = vadd.f32 %v8777_v63, %v11123_v24 }
 0x344   :  { %8863 = vmatmul.mubr.msk.f32.gmra.mrb[152].mxu1 %vm642_vm1, %v11017_v62  ;;  %v7630_v62 = vpack.c.bf16 %v3457_v60, %v3457_v60  ;;  %8824 = vmatprep.mubr.msk.f32.mxu0 %vm642_vm1, %v11142_v61 }
 0x345   :  { %8865 = vmatprep.mubr.msk.f32.mxu1 %vm642_vm1, %v3339_v8  ;;  %v3614_v8 = vpop.f32.mrb[131].mxu0  ;;  %8825 = vmatmul.mubr.msk.f32.vlgmr.msra.gmra.mrb[144].mxu0 %vm642_vm1, %v11134_v56 }
 0x346   :  { %6964 = vst.msk [vmem:[%s12305_s5 + $0x88] sm:$0xf] %vm624_vm2, %v7630_v62  ;;  %v8780_v0 = vpop.f32.mrb[132].mxu0  ;;  %8875 = vmatpush3.msra.mxu0 %v7125_v59 }
 0x347   :  { %v11179_v15 = vadd.f32 %v8780_v0, %v11123_v24 }
 0x348   :  { %8866 = vmatmul.mubr.msk.f32.gmra.mrb[154].mxu1 %vm642_vm1, %v11033_v54  ;;  %v11165_v54 = vadd.f32 %v11123_v24, %v3614_v8 }
 0x349   :  { %8868 = vmatprep.mubr.msk.f32.mxu1 %vm642_vm1, %v3349_v36  ;;  %v3476_v36 = vpop.f32.mrb[119].mxu1 }
 0x34a   :  { %8827 = vmatprep.mubr.msk.f32.mxu0 %vm642_vm1, %v11165_v54  ;;  %v3477_v6 = vadd.f32 %v11112_v57, %v3476_v36  ;;  %v8754_v21 = vpop.f32.mrb[120].mxu1 }
 0x34b   :  { %8828 = vmatmul.mubr.msk.f32.gmra.mrb[146].mxu0 %vm642_vm1, %v11155_v50  ;;  %v3492_v28 = vadd.f32 %v8754_v21, %v11112_v57  ;;  %v3486_v2 = vpop.f32.mrb[121].mxu1  ;;  %v9224_v21 = vld [vmem:[%s12301_s0 + $0x38] sm:$0xff] }
 0x34c   :  { %8869 = vmatmul.mubr.msk.f32.gmra.mrb[156].mxu1 %vm642_vm1, %v11048_v41  ;;  %v3624_v41 = vpop.f32.mrb[133].mxu0  ;;  %v8757_v55 = vpop.f32.mrb[122].mxu1 }
 0x34d   :  { %8871 = vmatprep.mubr.msk.f32.mxu1 %vm642_vm1, %v11062_v7  ;;  %v11195_v48 = vadd.f32 %v11123_v24, %v3624_v41  ;;  %v7634_v7 = vpack.c.bf16 %v3477_v6, %v3477_v6  ;;  %v8783_v27 = vpop.f32.mrb[134].mxu0  ;;  %v7637_v20 = vpack.c.bf16 %v3492_v28, %v3492_v28  ;;  %v3502_v46 = vadd.f32 %v8757_v55, %v11112_v57  ;;  %v3496_v43 = vpop.f32.mrb[123].mxu1  ;;  %v9226_v28 = vld [vmem:[%s12301_s0 + $0x48] sm:$0xff] }
 0x34e   :  { %v3634_v31 = vpop.f32.mrb[135].mxu0  ;;  %v8760_v58 = vpop.f32.mrb[124].mxu1 }
 0x34f   :  { %8830 = vmatprep.mubr.msk.f32.mxu0 %vm642_vm1, %v11195_v48  ;;  %6968 = vst.msk [vmem:[%s12305_s5 + $0x98] sm:$0xf] %vm624_vm2, %v7634_v7  ;;  %v11219_v19 = vadd.f32 %v11123_v24, %v3634_v31  ;;  %v8786_v12 = vpop.f32.mrb[136].mxu0  ;;  %6971 = vst.msk [vmem:[%s12305_s5 + $0xa4] sm:$0xf] %vm624_vm2, %v7637_v20  ;;  %v7639_v52 = vpack.c.bf16 %v3502_v46, %v3502_v46  ;;  %v3512_v44 = vadd.f32 %v8760_v58, %v11112_v57  ;;  %v3506_v62 = vpop.f32.mrb[125].mxu1 }
 0x350   :  { %8872 = vmatmul.mubr.msk.f32.gmra.mrb[158].mxu1 %vm642_vm1, %v11065_v25  ;;  %8831 = vmatmul.mubr.msk.f32.gmra.mrb[148].mxu0 %vm642_vm1, %v11179_v15  ;;  %v11216_v25 = vadd.f32 %v8783_v27, %v11123_v24  ;;  %v8763_v8 = vpop.f32.mrb[126].mxu1  ;;  %v9223_v7 = vld [vmem:[%s12301_s0 + $0x78] sm:$0xff]  ;;  %v9225_v27 = vld [vmem:[%s12301_s0 + $0x40] sm:$0xff]  ;;  %v7321_v31 = vld [vmem:[%s12303_s4 + $0x30] sm:$0xff] }
 0x351   :  { %8908 = vmatprep.mubr.msk.f32.mxu1 %vm50_vm0, %v10445_v38  ;;  %v3487_v38 = vadd.f32 %v11112_v57, %v3486_v2  ;;  %8833 = vmatprep.mubr.msk.f32.mxu0 %vm642_vm1, %v11219_v19  ;;  %6973 = vst.msk [vmem:[%s12305_s5 + $0xac] sm:$0xf] %vm624_vm2, %v7639_v52  ;;  %v7641_v1 = vpack.c.bf16 %v3512_v44, %v3512_v44  ;;  %v3516_v14 = vpop.f32.mrb[127].mxu1  ;;  %v9227_v2 = vld [vmem:[%s12301_s0 + $0x50] sm:$0xff] }
 0x352   :  { %v3522_v11 = vadd.f32 %v8763_v8, %v11112_v57 }
 0x353   :  { %v7636_v16 = vpack.c.bf16 %v3487_v38, %v3487_v38  ;;  %6975 = vst.msk [vmem:[%s12305_s5 + $0xb4] sm:$0xf] %vm624_vm2, %v7641_v1  ;;  %v11458_v38 = vld [vmem:[%s12302_s3 + $0x38] sm:$0xff] }
 0x354   :  { %8909 = vmatmul.mubr.msk.f32.vlgmr.msra.gmra.mrb[160].mxu1 %vm50_vm0, %v10464_v9  ;;  %v3644_v9 = vpop.f32.mrb[137].mxu0  ;;  %8834 = vmatmul.mubr.msk.f32.gmra.mrb[150].mxu0 %vm642_vm1, %v11216_v25  ;;  %v7643_v39 = vpack.c.bf16 %v3522_v11, %v3522_v11 }
 0x355   :  { %9191 = vmatpush3.bf16.msra.mxu1 %v11098_v34  ;;  %8911 = vmatprep.mubr.msk.f32.mxu1 %vm50_vm0, %v10473_v40  ;;  %6970 = vst.msk [vmem:[%s12305_s5 + $0xa0] sm:$0xf] %vm624_vm2, %v7636_v16  ;;  %v3497_v40 = vadd.f32 %v11112_v57, %v3496_v43  ;;  %v11239_v34 = vadd.f32 %v8786_v12, %v11123_v24  ;;  %v8789_v60 = vpop.f32.mrb[138].mxu0 }
 0x356   :  { %9193 = vmatprep.subr.bf16.mxu1 %v9192_v30  ;;  %v11242_v51 = vadd.f32 %v11123_v24, %v3644_v9  ;;  %v3654_v45 = vpop.f32.mrb[139].mxu0  ;;  %6977 = vst.msk [vmem:[%s12305_s5 + $0xbc] sm:$0xf] %vm624_vm2, %v7643_v39 }
 0x357   :  { %v7638_v53 = vpack.c.bf16 %v3497_v40, %v3497_v40  ;;  %v11266_v63 = vadd.f32 %v11123_v24, %v3654_v45  ;;  %v8792_v49 = vpop.f32.mrb[140].mxu0 }
 0x358   :  { %8912 = vmatmul.mubr.msk.f32.gmra.mrb[162].mxu1 %vm50_vm0, %v10492_v3  ;;  %8836 = vmatprep.mubr.msk.f32.mxu0 %vm642_vm1, %v11242_v51  ;;  %v3507_v3 = vadd.f32 %v11112_v57, %v3506_v62  ;;  %v3664_v17 = vpop.f32.mrb[141].mxu0 }
 0x359   :  { %8914 = vmatprep.mubr.msk.f32.mxu1 %vm50_vm0, %v10501_v10  ;;  %9195 = vmatpush3.bf16.msra.mxu1 %v9192_v30  ;;  %6972 = vst.msk [vmem:[%s12305_s5 + $0xa8] sm:$0xf] %vm624_vm2, %v7638_v53  ;;  %v11263_v10 = vadd.f32 %v8789_v60, %v11123_v24  ;;  %v3665_v0 = vadd.f32 %v11123_v24, %v3664_v17  ;;  %v8795_v41 = vpop.f32.mrb[142].mxu0  ;;  %v7272_v30 = vld [vmem:[%s12302_s3 + $0x30] sm:$0xff] }
 0x35a   :  { %8837 = vmatmul.mubr.msk.f32.gmra.mrb[152].mxu0 %vm642_vm1, %v11239_v34  ;;  %v7640_v37 = vpack.c.bf16 %v3507_v3, %v3507_v3  ;;  %v3680_v6 = vadd.f32 %v8795_v41, %v11123_v24  ;;  %9022 = vmatprep.subr.mxu1 %v7321_v31 }
 0x35b   :  { %8839 = vmatprep.mubr.msk.f32.mxu0 %vm642_vm1, %v11266_v63 }
 0x35c   :  { %8915 = vmatmul.mubr.msk.f32.gmra.mrb[164].mxu1 %vm50_vm0, %v10520_v13  ;;  %6974 = vst.msk [vmem:[%s12305_s5 + $0xb0] sm:$0xf] %vm624_vm2, %v7640_v37  ;;  %v3517_v13 = vadd.f32 %v11112_v57, %v3516_v14  ;;  %v3674_v57 = vpop.f32.mrb[143].mxu0 }
 0x35d   :  { %8917 = vmatprep.mubr.msk.f32.mxu1 %vm50_vm0, %v10529_v26  ;;  %v3670_v26 = vadd.f32 %v8792_v49, %v11123_v24  ;;  %v3675_v23 = vadd.f32 %v11123_v24, %v3674_v57  ;;  %v9217_v24 = vld [vmem:[%s12301_s0 + $0x28] sm:$0xff] }
 0x35e   :  { %8840 = vmatmul.mubr.msk.f32.gmra.mrb[154].mxu0 %vm642_vm1, %v11263_v10  ;;  %v7642_v36 = vpack.c.bf16 %v3517_v13, %v3517_v13 }
 0x35f   :  { %8842 = vmatprep.mubr.msk.f32.mxu0 %vm642_vm1, %v3665_v0 }
 0x360   :  { %8918 = vmatmul.mubr.msk.f32.gmra.mrb[166].mxu1 %vm50_vm0, %v10548_v18  ;;  %6976 = vst.msk [vmem:[%s12305_s5 + $0xb8] sm:$0xf] %vm624_vm2, %v7642_v36 }
 0x361   :  { %8920 = vmatprep.mubr.msk.f32.mxu1 %vm50_vm0, %v10557_v32 }
 0x362   :  { %8843 = vmatmul.mubr.msk.f32.gmra.mrb[156].mxu0 %vm642_vm1, %v3670_v26 }
 0x363   :  { %8845 = vmatprep.mubr.msk.f32.mxu0 %vm642_vm1, %v3675_v23 }
 0x364   :  { %8921 = vmatmul.mubr.msk.f32.gmra.mrb[168].mxu1 %vm50_vm0, %v10574_v4 }
 0x365   :  { %8923 = vmatprep.mubr.msk.f32.mxu1 %vm50_vm0, %v10583_v5 }
 0x366   :  { %8846 = vmatmul.mubr.msk.f32.gmra.mrb[158].mxu0 %vm642_vm1, %v3680_v6 }
 0x367   :  { %8876 = vmatprep.mubr.msk.f32.mxu0 %vm642_vm1, %v11142_v61  ;;  %v7196_v61 = vld [vmem:[%s12300_s1 + $0xe0] sm:$0xff] }
 0x368   :  { %8924 = vmatmul.mubr.msk.f32.gmra.mrb[170].mxu1 %vm50_vm0, %v10592_v22  ;;  %v9212_v22 = vld [vmem:[%s12301_s0] sm:$0xff] }
 0x369   :  { %8926 = vmatprep.mubr.msk.f32.mxu1 %vm50_vm0, %v10601_v42  ;;  %v9213_v42 = vld [vmem:[%s12301_s0 + $0x8] sm:$0xff] }
 0x36a   :  { %8877 = vmatmul.mubr.msk.f32.vlgmr.msra.gmra.mrb[160].mxu0 %vm642_vm1, %v11134_v56  ;;  %v9218_v56 = vld [vmem:[%s12301_s0 + $0x30] sm:$0xff] }
 0x36b   :  { %8879 = vmatprep.mubr.msk.f32.mxu0 %vm642_vm1, %v11165_v54 }
 0x36c   :  { %8927 = vmatmul.mubr.msk.f32.gmra.mrb[172].mxu1 %vm50_vm0, %v10610_v33  ;;  %v9214_v33 = vld [vmem:[%s12301_s0 + $0x10] sm:$0xff] }
 0x36d   :  { %8929 = vmatprep.mubr.msk.f32.mxu1 %vm50_vm0, %v10619_v29  ;;  %v9215_v29 = vld [vmem:[%s12301_s0 + $0x18] sm:$0xff] }
 0x36e   :  { %8880 = vmatmul.mubr.msk.f32.gmra.mrb[162].mxu0 %vm642_vm1, %v11155_v50  ;;  %v7197_v50 = vld [vmem:[%s12300_s1 + $0xe8] sm:$0xff] }
 0x36f   :  { %8882 = vmatprep.mubr.msk.f32.mxu0 %vm642_vm1, %v11195_v48  ;;  %v9180_v54 = vpack.c.bf16 %v7197_v50, %v7196_v61  ;;  %v9221_v48 = vld [vmem:[%s12301_s0 + $0x68] sm:$0xff] }
 0x370   :  { %8930 = vmatmul.mubr.msk.f32.gmra.mrb[174].mxu1 %vm50_vm0, %v10634_v47  ;;  %v9216_v47 = vld [vmem:[%s12301_s0 + $0x20] sm:$0xff] }
 0x371   :  { %8972 = vmatprep.mubr.msk.f32.mxu1 %vm50_vm0, %v9212_v22  ;;  %9181 = vmatprep.subr.bf16.mxu0 %v9180_v54 }
 0x372   :  { %8883 = vmatmul.mubr.msk.f32.gmra.mrb[164].mxu0 %vm642_vm1, %v11179_v15 }
 0x373   :  { %8885 = vmatprep.mubr.msk.f32.mxu0 %vm642_vm1, %v11219_v19  ;;  %9183 = vmatpush3.bf16.msra.mxu0 %v9180_v54 }
 0x374   :  { %8973 = vmatmul.mubr.msk.f32.vlgmr.msra.gmra.mrb[176].mxu1 %vm50_vm0, %v9213_v42 }
 0x375   :  { %8975 = vmatprep.mubr.msk.f32.mxu1 %vm50_vm0, %v9214_v33  ;;  %9023 = vmatpush3.msra.mxu1 %v7321_v31 }
 0x376   :  { %8886 = vmatmul.mubr.msk.f32.gmra.mrb[166].mxu0 %vm642_vm1, %v11216_v25  ;;  %v11464_v25 = vld [vmem:[%s12303_s4 + $0x38] sm:$0xff] }
 0x377   :  { %8888 = vmatprep.mubr.msk.f32.mxu0 %vm642_vm1, %v11242_v51  ;;  %9074 = vmatprep.subr.mxu1 %v11464_v25 }
 0x378   :  { %8976 = vmatmul.mubr.msk.f32.gmra.mrb[178].mxu1 %vm50_vm0, %v9215_v29 }
 0x379   :  { %8978 = vmatprep.mubr.msk.f32.mxu1 %vm50_vm0, %v9216_v47 }
 0x37a   :  { %8889 = vmatmul.mubr.msk.f32.gmra.mrb[168].mxu0 %vm642_vm1, %v11239_v34 }
 0x37b   :  { %8891 = vmatprep.mubr.msk.f32.mxu0 %vm642_vm1, %v11266_v63 }
 0x37c   :  { %8979 = vmatmul.mubr.msk.f32.gmra.mrb[180].mxu1 %vm50_vm0, %v9217_v24 }
 0x37d   :  { %8981 = vmatprep.mubr.msk.f32.mxu1 %vm50_vm0, %v9218_v56 }
 0x37e   :  { %8892 = vmatmul.mubr.msk.f32.gmra.mrb[170].mxu0 %vm642_vm1, %v11263_v10 }
 0x37f   :  { %8894 = vmatprep.mubr.msk.f32.mxu0 %vm642_vm1, %v3665_v0 }
 0x380   :  { %8982 = vmatmul.mubr.msk.f32.gmra.mrb[182].mxu1 %vm50_vm0, %v10548_v18  ;;  %v7198_v18 = vld [vmem:[%s12300_s1 + $0xf0] sm:$0xff] }
 0x381   :  { %8984 = vmatprep.mubr.msk.f32.mxu1 %vm50_vm0, %v10557_v32  ;;  %v7199_v32 = vld [vmem:[%s12300_s1 + $0xf8] sm:$0xff] }
 0x382   :  { %8895 = vmatmul.mubr.msk.f32.gmra.mrb[172].mxu0 %vm642_vm1, %v3670_v26  ;;  %v9184_v15 = vpack.c.bf16 %v7199_v32, %v7198_v18 }
 0x383   :  { %8897 = vmatprep.mubr.msk.f32.mxu0 %vm642_vm1, %v3675_v23 }
 0x384   :  { %8985 = vmatmul.mubr.msk.f32.gmra.mrb[184].mxu1 %vm50_vm0, %v10574_v4  ;;  %v9219_v4 = vld [vmem:[%s12301_s0 + $0x58] sm:$0xff]  ;;  %9185 = vmatprep.subr.bf16.mxu0 %v9184_v15 }
 0x385   :  { %8987 = vmatprep.mubr.msk.f32.mxu1 %vm50_vm0, %v10583_v5  ;;  %v9220_v5 = vld [vmem:[%s12301_s0 + $0x60] sm:$0xff]  ;;  %9187 = vmatpush3.bf16.msra.mxu0 %v9184_v15 }
 0x386   :  { %8898 = vmatmul.mubr.msk.f32.gmra.mrb[174].mxu0 %vm642_vm1, %v3680_v6  ;;  %8996 = vmatprep.subr.mxu0 %v7272_v30 }
 0x387   :  { %8940 = vmatprep.mubr.msk.f32.mxu0 %vm50_vm0, %v9212_v22 }
 0x388   :  { %8988 = vmatmul.mubr.msk.f32.gmra.mrb[186].mxu1 %vm50_vm0, %v9219_v4 }
 0x389   :  { %8990 = vmatprep.mubr.msk.f32.mxu1 %vm50_vm0, %v9220_v5 }
 0x38a   :  { %8941 = vmatmul.mubr.msk.f32.vlgmr.msra.gmra.mrb[176].mxu0 %vm50_vm0, %v9213_v42 }
 0x38b   :  { %8943 = vmatprep.mubr.msk.f32.mxu0 %vm50_vm0, %v9214_v33  ;;  %8997 = vmatpush3.msra.mxu0 %v7272_v30 }
 0x38c   :  { %8991 = vmatmul.mubr.msk.f32.gmra.mrb[188].mxu1 %vm50_vm0, %v9221_v48  ;;  %9048 = vmatprep.subr.mxu0 %v11458_v38 }
 0x38d   :  { %8993 = vmatprep.mubr.msk.f32.mxu1 %vm50_vm0, %v9222_v35 }
 0x38e   :  { %8944 = vmatmul.mubr.msk.f32.gmra.mrb[178].mxu0 %vm50_vm0, %v9215_v29 }
 0x38f   :  { %8946 = vmatprep.mubr.msk.f32.mxu0 %vm50_vm0, %v9216_v47 }
 0x390   :  { %8994 = vmatmul.mubr.msk.f32.gmra.mrb[190].mxu1 %vm50_vm0, %v9223_v7 }
 0x392   :  { %8947 = vmatmul.mubr.msk.f32.gmra.mrb[180].mxu0 %vm50_vm0, %v9217_v24 }
 0x393   :  { %8949 = vmatprep.mubr.msk.f32.mxu0 %vm50_vm0, %v9218_v56 }
 0x396   :  { %8950 = vmatmul.mubr.msk.f32.gmra.mrb[182].mxu0 %vm50_vm0, %v9224_v21 }
 0x397   :  { %8952 = vmatprep.mubr.msk.f32.mxu0 %vm50_vm0, %v9225_v27 }
 0x39a   :  { %8953 = vmatmul.mubr.msk.f32.gmra.mrb[184].mxu0 %vm50_vm0, %v9226_v28 }
 0x39b   :  { %8955 = vmatprep.mubr.msk.f32.mxu0 %vm50_vm0, %v9227_v2 }
 0x39e   :  { %8956 = vmatmul.mubr.msk.f32.gmra.mrb[186].mxu0 %vm50_vm0, %v9219_v4 }
 0x39f   :  { %8958 = vmatprep.mubr.msk.f32.mxu0 %vm50_vm0, %v9220_v5 }
 0x3a2   :  { %8959 = vmatmul.mubr.msk.f32.gmra.mrb[188].mxu0 %vm50_vm0, %v9221_v48 }
 0x3a3   :  { %8961 = vmatprep.mubr.msk.f32.mxu0 %vm50_vm0, %v9222_v35 }
 0x3a6   :  { %8962 = vmatmul.mubr.msk.f32.gmra.mrb[190].mxu0 %vm50_vm0, %v9223_v7 }
 0x3e7   :  { %v8800_v19 = vpop.f32.mrb[128].mxu1 }
 0x3e8   :  { %v7645_v20 = vpack.c.bf16 %v8800_v19, %v8800_v19  ;;  %v3880_v16 = vpop.f32.mrb[129].mxu1 }
 0x3e9   :  { %v7644_v55 = vpack.c.bf16 %v3880_v16, %v3880_v16 }
 0x3ea   :  { %7012 = vst.msk [vmem:[%s12306_s6 + $0x104] sm:$0xf] %vm624_vm2, %v7645_v20 }
 0x3eb   :  { %7011 = vst.msk [vmem:[%s12306_s6 + $0x100] sm:$0xf] %vm624_vm2, %v7644_v55  ;;  %v8803_v12 = vpop.f32.mrb[130].mxu1 }
 0x3ec   :  { %v7647_v46 = vpack.c.bf16 %v8803_v12, %v8803_v12  ;;  %v3890_v43 = vpop.f32.mrb[131].mxu1 }
 0x3ed   :  { %v7646_v9 = vpack.c.bf16 %v3890_v43, %v3890_v43 }
 0x3ee   :  { %7014 = vst.msk [vmem:[%s12306_s6 + $0x10c] sm:$0xf] %vm624_vm2, %v7647_v46 }
 0x3ef   :  { %7013 = vst.msk [vmem:[%s12306_s6 + $0x108] sm:$0xf] %vm624_vm2, %v7646_v9  ;;  %v8806_v40 = vpop.f32.mrb[132].mxu1 }
 0x3f0   :  { %v7649_v34 = vpack.c.bf16 %v8806_v40, %v8806_v40  ;;  %v3900_v51 = vpop.f32.mrb[133].mxu1 }
 0x3f1   :  { %v7648_v52 = vpack.c.bf16 %v3900_v51, %v3900_v51 }
 0x3f2   :  { %7016 = vst.msk [vmem:[%s12306_s6 + $0x114] sm:$0xf] %vm624_vm2, %v7649_v34 }
 0x3f3   :  { %7015 = vst.msk [vmem:[%s12306_s6 + $0x110] sm:$0xf] %vm624_vm2, %v7648_v52  ;;  %v8809_v53 = vpop.f32.mrb[134].mxu1  ;;  %v11610_v52 = vld [vmem:[%s12304_s2 + $0x3] ss:$0 sm:$0xff] }
 0x3f4   :  { %v7651_v58 = vpack.c.bf16 %v8809_v53, %v8809_v53  ;;  %v3910_v60 = vpop.f32.mrb[135].mxu1 }
 0x3f5   :  { %v7650_v44 = vpack.c.bf16 %v3910_v60, %v3910_v60 }
 0x3f6   :  { %7018 = vst.msk [vmem:[%s12306_s6 + $0x11c] sm:$0xf] %vm624_vm2, %v7651_v58 }
 0x3f7   :  { %7017 = vst.msk [vmem:[%s12306_s6 + $0x118] sm:$0xf] %vm624_vm2, %v7650_v44  ;;  %v8812_v62 = vpop.f32.mrb[136].mxu1 }
 0x3f8   :  { %v7653_v45 = vpack.c.bf16 %v8812_v62, %v8812_v62  ;;  %v3920_v3 = vpop.f32.mrb[137].mxu1 }
 0x3f9   :  { %v7652_v10 = vpack.c.bf16 %v3920_v3, %v3920_v3 }
 0x3fa   :  { %7020 = vst.msk [vmem:[%s12306_s6 + $0x124] sm:$0xf] %vm624_vm2, %v7653_v45 }
 0x3fb   :  { %7019 = vst.msk [vmem:[%s12306_s6 + $0x120] sm:$0xf] %vm624_vm2, %v7652_v10  ;;  %v8815_v63 = vpop.f32.mrb[138].mxu1 }
 0x3fc   :  { %v7655_v1 = vpack.c.bf16 %v8815_v63, %v8815_v63  ;;  %v3930_v37 = vpop.f32.mrb[139].mxu1 }
 0x3fd   :  { %v7654_v8 = vpack.c.bf16 %v3930_v37, %v3930_v37 }
 0x3fe   :  { %7022 = vst.msk [vmem:[%s12306_s6 + $0x12c] sm:$0xf] %vm624_vm2, %v7655_v1 }
 0x3ff   :  { %7021 = vst.msk [vmem:[%s12306_s6 + $0x128] sm:$0xf] %vm624_vm2, %v7654_v8  ;;  %v8818_v49 = vpop.f32.mrb[140].mxu1 }
 0x400   :  { %v7657_v11 = vpack.c.bf16 %v8818_v49, %v8818_v49  ;;  %v3940_v14 = vpop.f32.mrb[141].mxu1 }
 0x401   :  { %v7656_v17 = vpack.c.bf16 %v3940_v14, %v3940_v14 }
 0x402   :  { %7024 = vst.msk [vmem:[%s12306_s6 + $0x134] sm:$0xf] %vm624_vm2, %v7657_v11 }
 0x403   :  { %7023 = vst.msk [vmem:[%s12306_s6 + $0x130] sm:$0xf] %vm624_vm2, %v7656_v17  ;;  %v8821_v13 = vpop.f32.mrb[142].mxu1 }
 0x404   :  { %v7659_v26 = vpack.c.bf16 %v8821_v13, %v8821_v13  ;;  %v3950_v0 = vpop.f32.mrb[143].mxu1 }
 0x405   :  { %v7658_v39 = vpack.c.bf16 %v3950_v0, %v3950_v0 }
 0x406   :  { %7026 = vst.msk [vmem:[%s12306_s6 + $0x13c] sm:$0xf] %vm624_vm2, %v7659_v26 }
 0x407   :  { %7025 = vst.msk [vmem:[%s12306_s6 + $0x138] sm:$0xf] %vm624_vm2, %v7658_v39  ;;  %v8852_v36 = vpop.f32.mrb[144].mxu1 }
 0x408   :  { %v7677_v41 = vpack.c.bf16 %v8852_v36, %v8852_v36  ;;  %v4384_v57 = vpop.f32.mrb[145].mxu1 }
 0x409   :  { %v7676_v6 = vpack.c.bf16 %v4384_v57, %v4384_v57 }
 0x40a   :  { %7110 = vst.msk [vmem:[%s12306_s6 + $0x144] sm:$0xf] %vm624_vm2, %v7677_v41 }
 0x40b   :  { %7109 = vst.msk [vmem:[%s12306_s6 + $0x140] sm:$0xf] %vm624_vm2, %v7676_v6  ;;  %v8855_v23 = vpop.f32.mrb[146].mxu1 }
 0x40c   :  { %v7679_v59 = vpack.c.bf16 %v8855_v23, %v8855_v23  ;;  %v4394_v22 = vpop.f32.mrb[147].mxu1 }
 0x40d   :  { %v7678_v42 = vpack.c.bf16 %v4394_v22, %v4394_v22 }
 0x40e   :  { %7112 = vst.msk [vmem:[%s12306_s6 + $0x14c] sm:$0xf] %vm624_vm2, %v7679_v59 }
 0x40f   :  { %7111 = vst.msk [vmem:[%s12306_s6 + $0x148] sm:$0xf] %vm624_vm2, %v7678_v42  ;;  %v8858_v33 = vpop.f32.mrb[148].mxu1 }
 0x410   :  { %v7681_v29 = vpack.c.bf16 %v8858_v33, %v8858_v33  ;;  %v4404_v47 = vpop.f32.mrb[149].mxu1 }
 0x411   :  { %v7680_v24 = vpack.c.bf16 %v4404_v47, %v4404_v47 }
 0x412   :  { %7114 = vst.msk [vmem:[%s12306_s6 + $0x154] sm:$0xf] %vm624_vm2, %v7681_v29 }
 0x413   :  { %7113 = vst.msk [vmem:[%s12306_s6 + $0x150] sm:$0xf] %vm624_vm2, %v7680_v24  ;;  %v8861_v56 = vpop.f32.mrb[150].mxu1 }
 0x414   :  { %v7683_v61 = vpack.c.bf16 %v8861_v56, %v8861_v56  ;;  %v4414_v50 = vpop.f32.mrb[151].mxu1 }
 0x415   :  { %v7682_v54 = vpack.c.bf16 %v4414_v50, %v4414_v50 }
 0x416   :  { %7116 = vst.msk [vmem:[%s12306_s6 + $0x15c] sm:$0xf] %vm624_vm2, %v7683_v61 }
 0x417   :  { %7115 = vst.msk [vmem:[%s12306_s6 + $0x158] sm:$0xf] %vm624_vm2, %v7682_v54  ;;  %v8864_v18 = vpop.f32.mrb[152].mxu1 }
 0x418   :  { %v7685_v32 = vpack.c.bf16 %v8864_v18, %v8864_v18  ;;  %v4424_v15 = vpop.f32.mrb[153].mxu1  ;;  %v8826_v21 = vpop.f32.mrb[144].mxu0 }
 0x419   :  { %v7684_v4 = vpack.c.bf16 %v4424_v15, %v4424_v15  ;;  %v7661_v27 = vpack.c.bf16 %v8826_v21, %v8826_v21  ;;  %v4156_v28 = vpop.f32.mrb[145].mxu0 }
 0x41a   :  { %7118 = vst.msk [vmem:[%s12306_s6 + $0x164] sm:$0xf] %vm624_vm2, %v7685_v32  ;;  %v7660_v30 = vpack.c.bf16 %v4156_v28, %v4156_v28 }
 0x41b   :  { %7117 = vst.msk [vmem:[%s12306_s6 + $0x160] sm:$0xf] %vm624_vm2, %v7684_v4  ;;  %v8867_v5 = vpop.f32.mrb[154].mxu1  ;;  %7061 = vst.msk [vmem:[%s12307_s7 + $0x104] sm:$0xf] %vm624_vm2, %v7661_v27 }
 0x41c   :  { %v7687_v48 = vpack.c.bf16 %v8867_v5, %v8867_v5  ;;  %v4434_v35 = vpop.f32.mrb[155].mxu1  ;;  %7060 = vst.msk [vmem:[%s12307_s7 + $0x100] sm:$0xf] %vm624_vm2, %v7660_v30 }
 0x41d   :  { %v7686_v7 = vpack.c.bf16 %v4434_v35, %v4434_v35 }
 0x41e   :  { %7120 = vst.msk [vmem:[%s12306_s6 + $0x16c] sm:$0xf] %vm624_vm2, %v7687_v48  ;;  %v8829_v16 = vpop.f32.mrb[146].mxu0 }
 0x41f   :  { %7119 = vst.msk [vmem:[%s12306_s6 + $0x168] sm:$0xf] %vm624_vm2, %v7686_v7  ;;  %v8870_v2 = vpop.f32.mrb[156].mxu1  ;;  %v7663_v55 = vpack.c.bf16 %v8829_v16, %v8829_v16  ;;  %v4166_v12 = vpop.f32.mrb[147].mxu0 }
 0x420   :  { %v7689_v31 = vpack.c.bf16 %v8870_v2, %v8870_v2  ;;  %v4444_v19 = vpop.f32.mrb[157].mxu1  ;;  %v7662_v43 = vpack.c.bf16 %v4166_v12, %v4166_v12 }
 0x421   :  { %v7688_v20 = vpack.c.bf16 %v4444_v19, %v4444_v19  ;;  %7063 = vst.msk [vmem:[%s12307_s7 + $0x10c] sm:$0xf] %vm624_vm2, %v7663_v55 }
 0x422   :  { %7122 = vst.msk [vmem:[%s12306_s6 + $0x174] sm:$0xf] %vm624_vm2, %v7689_v31  ;;  %7062 = vst.msk [vmem:[%s12307_s7 + $0x108] sm:$0xf] %vm624_vm2, %v7662_v43 }
 0x423   :  { %7121 = vst.msk [vmem:[%s12306_s6 + $0x170] sm:$0xf] %vm624_vm2, %v7688_v20  ;;  %v8873_v46 = vpop.f32.mrb[158].mxu1  ;;  %v8832_v51 = vpop.f32.mrb[148].mxu0 }
 0x424   :  { %v7691_v9 = vpack.c.bf16 %v8873_v46, %v8873_v46  ;;  %v4454_v40 = vpop.f32.mrb[159].mxu1  ;;  %v7665_v53 = vpack.c.bf16 %v8832_v51, %v8832_v51  ;;  %v4176_v58 = vpop.f32.mrb[149].mxu0 }
 0x425   :  { %v7690_v34 = vpack.c.bf16 %v4454_v40, %v4454_v40  ;;  %v7664_v44 = vpack.c.bf16 %v4176_v58, %v4176_v58  ;;  %v11756_v58 = vld [vmem:[%s12304_s2 + $0xb] ss:$0 sm:$0xff] }
 0x426   :  { %7124 = vst.msk [vmem:[%s12306_s6 + $0x17c] sm:$0xf] %vm624_vm2, %v7691_v9  ;;  %7065 = vst.msk [vmem:[%s12307_s7 + $0x114] sm:$0xf] %vm624_vm2, %v7665_v53 }
 0x427   :  { %7123 = vst.msk [vmem:[%s12306_s6 + $0x178] sm:$0xf] %vm624_vm2, %v7690_v34  ;;  %v8910_v60 = vpop.f32.mrb[160].mxu1  ;;  %7064 = vst.msk [vmem:[%s12307_s7 + $0x110] sm:$0xf] %vm624_vm2, %v7664_v44  ;;  %v8835_v10 = vpop.f32.mrb[150].mxu0 }
 0x428   :  { %v4851_v62 = vpop.f32.mrb[161].mxu1  ;;  %v11628_v3 = vadd.f32 %v8910_v60, %v11610_v52  ;;  %v7667_v1 = vpack.c.bf16 %v8835_v10, %v8835_v10  ;;  %v4186_v37 = vpop.f32.mrb[151].mxu0 }
 0x429   :  { %v11621_v45 = vadd.f32 %v11610_v52, %v4851_v62  ;;  %v7666_v49 = vpack.c.bf16 %v4186_v37, %v4186_v37 }
 0x42a   :  { %7067 = vst.msk [vmem:[%s12307_s7 + $0x11c] sm:$0xf] %vm624_vm2, %v7667_v1 }
 0x42b   :  { %v8913_v63 = vpop.f32.mrb[162].mxu1  ;;  %8998 = vmatprep.mubr.msk.f32.mxu0 %vm642_vm1, %v11621_v45  ;;  %7066 = vst.msk [vmem:[%s12307_s7 + $0x118] sm:$0xf] %vm624_vm2, %v7666_v49 }
 0x42c   :  { %v4861_v8 = vpop.f32.mrb[163].mxu1  ;;  %8999 = vmatmul.mubr.msk.f32.vlgmr.msra.gmra.mrb[192].mxu0 %vm642_vm1, %v11628_v3  ;;  %v11643_v14 = vadd.f32 %v8913_v63, %v11610_v52 }
 0x42d   :  { %v11635_v11 = vadd.f32 %v11610_v52, %v4861_v8  ;;  %9049 = vmatpush3.msra.mxu0 %v11458_v38  ;;  %v8838_v17 = vpop.f32.mrb[152].mxu0 }
 0x42e   :  { %v7669_v26 = vpack.c.bf16 %v8838_v17, %v8838_v17  ;;  %v4196_v38 = vpop.f32.mrb[153].mxu0 }
 0x42f   :  { %v8916_v13 = vpop.f32.mrb[164].mxu1  ;;  %9001 = vmatprep.mubr.msk.f32.mxu0 %vm642_vm1, %v11635_v11  ;;  %v7668_v39 = vpack.c.bf16 %v4196_v38, %v4196_v38 }
 0x430   :  { %v4871_v0 = vpop.f32.mrb[165].mxu1  ;;  %9002 = vmatmul.mubr.msk.f32.gmra.mrb[194].mxu0 %vm642_vm1, %v11643_v14  ;;  %7069 = vst.msk [vmem:[%s12307_s7 + $0x124] sm:$0xf] %vm624_vm2, %v7669_v26  ;;  %v11661_v41 = vadd.f32 %v8916_v13, %v11610_v52 }
 0x431   :  { %v11654_v36 = vadd.f32 %v11610_v52, %v4871_v0  ;;  %7068 = vst.msk [vmem:[%s12307_s7 + $0x120] sm:$0xf] %vm624_vm2, %v7668_v39  ;;  %v8841_v57 = vpop.f32.mrb[154].mxu0 }
 0x432   :  { %v7671_v23 = vpack.c.bf16 %v8841_v57, %v8841_v57  ;;  %v4206_v59 = vpop.f32.mrb[155].mxu0 }
 0x433   :  { %v8919_v6 = vpop.f32.mrb[166].mxu1  ;;  %9004 = vmatprep.mubr.msk.f32.mxu0 %vm642_vm1, %v11654_v36  ;;  %v7670_v42 = vpack.c.bf16 %v4206_v59, %v4206_v59 }
 0x434   :  { %v4881_v22 = vpop.f32.mrb[167].mxu1  ;;  %9005 = vmatmul.mubr.msk.f32.gmra.mrb[196].mxu0 %vm642_vm1, %v11661_v41  ;;  %7071 = vst.msk [vmem:[%s12307_s7 + $0x12c] sm:$0xf] %vm624_vm2, %v7671_v23  ;;  %v11679_v29 = vadd.f32 %v8919_v6, %v11610_v52 }
 0x435   :  { %v11672_v33 = vadd.f32 %v11610_v52, %v4881_v22  ;;  %7070 = vst.msk [vmem:[%s12307_s7 + $0x128] sm:$0xf] %vm624_vm2, %v7670_v42  ;;  %v8844_v47 = vpop.f32.mrb[156].mxu0 }
 0x436   :  { %v7673_v56 = vpack.c.bf16 %v8844_v47, %v8844_v47  ;;  %v4216_v61 = vpop.f32.mrb[157].mxu0 }
 0x437   :  { %v8922_v24 = vpop.f32.mrb[168].mxu1  ;;  %9007 = vmatprep.mubr.msk.f32.mxu0 %vm642_vm1, %v11672_v33  ;;  %v7672_v54 = vpack.c.bf16 %v4216_v61, %v4216_v61 }
 0x438   :  { %v4891_v50 = vpop.f32.mrb[169].mxu1  ;;  %9008 = vmatmul.mubr.msk.f32.gmra.mrb[198].mxu0 %vm642_vm1, %v11679_v29  ;;  %7073 = vst.msk [vmem:[%s12307_s7 + $0x134] sm:$0xf] %vm624_vm2, %v7673_v56  ;;  %v11697_v32 = vadd.f32 %v8922_v24, %v11610_v52 }
 0x439   :  { %v11690_v18 = vadd.f32 %v11610_v52, %v4891_v50  ;;  %7072 = vst.msk [vmem:[%s12307_s7 + $0x130] sm:$0xf] %vm624_vm2, %v7672_v54  ;;  %v8847_v15 = vpop.f32.mrb[158].mxu0 }
 0x43a   :  { %v7675_v5 = vpack.c.bf16 %v8847_v15, %v8847_v15  ;;  %v4226_v48 = vpop.f32.mrb[159].mxu0 }
 0x43b   :  { %v8925_v4 = vpop.f32.mrb[170].mxu1  ;;  %9010 = vmatprep.mubr.msk.f32.mxu0 %vm642_vm1, %v11690_v18  ;;  %v7674_v7 = vpack.c.bf16 %v4226_v48, %v4226_v48 }
 0x43c   :  { %v4901_v35 = vpop.f32.mrb[171].mxu1  ;;  %9011 = vmatmul.mubr.msk.f32.gmra.mrb[200].mxu0 %vm642_vm1, %v11697_v32  ;;  %7075 = vst.msk [vmem:[%s12307_s7 + $0x13c] sm:$0xf] %vm624_vm2, %v7675_v5  ;;  %v11715_v27 = vadd.f32 %v8925_v4, %v11610_v52 }
 0x43d   :  { %v11708_v21 = vadd.f32 %v11610_v52, %v4901_v35  ;;  %7074 = vst.msk [vmem:[%s12307_s7 + $0x138] sm:$0xf] %vm624_vm2, %v7674_v7  ;;  %v8878_v28 = vpop.f32.mrb[160].mxu0 }
 0x43e   :  { %v7693_v30 = vpack.c.bf16 %v8878_v28, %v8878_v28  ;;  %v4612_v31 = vpop.f32.mrb[161].mxu0 }
 0x43f   :  { %v8928_v2 = vpop.f32.mrb[172].mxu1  ;;  %9013 = vmatprep.mubr.msk.f32.mxu0 %vm642_vm1, %v11708_v21  ;;  %v7692_v20 = vpack.c.bf16 %v4612_v31, %v4612_v31 }
 0x440   :  { %v4911_v19 = vpop.f32.mrb[173].mxu1  ;;  %9014 = vmatmul.mubr.msk.f32.gmra.mrb[202].mxu0 %vm642_vm1, %v11715_v27  ;;  %7159 = vst.msk [vmem:[%s12307_s7 + $0x144] sm:$0xf] %vm624_vm2, %v7693_v30  ;;  %v11733_v55 = vadd.f32 %v8928_v2, %v11610_v52 }
 0x441   :  { %v11726_v16 = vadd.f32 %v11610_v52, %v4911_v19  ;;  %7158 = vst.msk [vmem:[%s12307_s7 + $0x140] sm:$0xf] %vm624_vm2, %v7692_v20  ;;  %v8881_v12 = vpop.f32.mrb[162].mxu0 }
 0x442   :  { %v7695_v43 = vpack.c.bf16 %v8881_v12, %v8881_v12  ;;  %v4622_v9 = vpop.f32.mrb[163].mxu0 }
 0x443   :  { %v8931_v46 = vpop.f32.mrb[174].mxu1  ;;  %9016 = vmatprep.mubr.msk.f32.mxu0 %vm642_vm1, %v11726_v16  ;;  %v7694_v34 = vpack.c.bf16 %v4622_v9, %v4622_v9 }
 0x444   :  { %v4921_v40 = vpop.f32.mrb[175].mxu1  ;;  %9017 = vmatmul.mubr.msk.f32.gmra.mrb[204].mxu0 %vm642_vm1, %v11733_v55  ;;  %7161 = vst.msk [vmem:[%s12307_s7 + $0x14c] sm:$0xf] %vm624_vm2, %v7695_v43  ;;  %v11751_v53 = vadd.f32 %v8931_v46, %v11610_v52 }
 0x445   :  { %v11744_v51 = vadd.f32 %v11610_v52, %v4921_v40  ;;  %7160 = vst.msk [vmem:[%s12307_s7 + $0x148] sm:$0xf] %vm624_vm2, %v7694_v34  ;;  %v8884_v60 = vpop.f32.mrb[164].mxu0 }
 0x446   :  { %v7697_v62 = vpack.c.bf16 %v8884_v60, %v8884_v60  ;;  %v4632_v10 = vpop.f32.mrb[165].mxu0 }
 0x447   :  { %v8974_v44 = vpop.f32.mrb[176].mxu1  ;;  %9019 = vmatprep.mubr.msk.f32.mxu0 %vm642_vm1, %v11744_v51  ;;  %v7696_v52 = vpack.c.bf16 %v4632_v10, %v4632_v10 }
 0x448   :  { %v5167_v63 = vpop.f32.mrb[177].mxu1  ;;  %9020 = vmatmul.mubr.msk.f32.gmra.mrb[206].mxu0 %vm642_vm1, %v11751_v53  ;;  %7163 = vst.msk [vmem:[%s12307_s7 + $0x154] sm:$0xf] %vm624_vm2, %v7697_v62  ;;  %v11776_v37 = vadd.f32 %v8974_v44, %v11756_v58 }
 0x449   :  { %v11767_v1 = vadd.f32 %v11756_v58, %v5167_v63  ;;  %9050 = vmatprep.mubr.msk.f32.mxu0 %vm642_vm1, %v11621_v45  ;;  %7162 = vst.msk [vmem:[%s12307_s7 + $0x150] sm:$0xf] %vm624_vm2, %v7696_v52  ;;  %v8887_v8 = vpop.f32.mrb[166].mxu0 }
 0x44a   :  { %v7699_v17 = vpack.c.bf16 %v8887_v8, %v8887_v8  ;;  %v4642_v45 = vpop.f32.mrb[167].mxu0 }
 0x44b   :  { %v8977_v49 = vpop.f32.mrb[178].mxu1  ;;  %9024 = vmatprep.mubr.msk.f32.mxu1 %vm642_vm1, %v11767_v1  ;;  %v7698_v26 = vpack.c.bf16 %v4642_v45, %v4642_v45 }
 0x44c   :  { %v5177_v13 = vpop.f32.mrb[179].mxu1  ;;  %9025 = vmatmul.mubr.msk.f32.vlgmr.msra.gmra.mrb[192].mxu1 %vm642_vm1, %v11776_v37  ;;  %9051 = vmatmul.mubr.msk.f32.vlgmr.msra.gmra.mrb[208].mxu0 %vm642_vm1, %v11628_v3  ;;  %7165 = vst.msk [vmem:[%s12307_s7 + $0x15c] sm:$0xf] %vm624_vm2, %v7699_v17  ;;  %v11799_v0 = vadd.f32 %v8977_v49, %v11756_v58 }
 0x44d   :  { %v11789_v38 = vadd.f32 %v11756_v58, %v5177_v13  ;;  %9075 = vmatpush3.msra.mxu1 %v11464_v25  ;;  %9053 = vmatprep.mubr.msk.f32.mxu0 %vm642_vm1, %v11635_v11  ;;  %7164 = vst.msk [vmem:[%s12307_s7 + $0x158] sm:$0xf] %vm624_vm2, %v7698_v26  ;;  %v8890_v3 = vpop.f32.mrb[168].mxu0 }
 0x44e   :  { %v7701_v25 = vpack.c.bf16 %v8890_v3, %v8890_v3  ;;  %v4652_v11 = vpop.f32.mrb[169].mxu0 }
 0x44f   :  { %v8980_v39 = vpop.f32.mrb[180].mxu1  ;;  %9027 = vmatprep.mubr.msk.f32.mxu1 %vm642_vm1, %v11789_v38  ;;  %v7700_v6 = vpack.c.bf16 %v4652_v11, %v4652_v11 }
 0x450   :  { %v5187_v57 = vpop.f32.mrb[181].mxu1  ;;  %9028 = vmatmul.mubr.msk.f32.gmra.mrb[194].mxu1 %vm642_vm1, %v11799_v0  ;;  %9054 = vmatmul.mubr.msk.f32.gmra.mrb[210].mxu0 %vm642_vm1, %v11643_v14  ;;  %7167 = vst.msk [vmem:[%s12307_s7 + $0x164] sm:$0xf] %vm624_vm2, %v7701_v25  ;;  %v11821_v59 = vadd.f32 %v8980_v39, %v11756_v58 }
 0x451   :  { %v11812_v23 = vadd.f32 %v11756_v58, %v5187_v57  ;;  %9056 = vmatprep.mubr.msk.f32.mxu0 %vm642_vm1, %v11654_v36  ;;  %7166 = vst.msk [vmem:[%s12307_s7 + $0x160] sm:$0xf] %vm624_vm2, %v7700_v6  ;;  %v8893_v14 = vpop.f32.mrb[170].mxu0 }
 0x452   :  { %v7703_v42 = vpack.c.bf16 %v8893_v14, %v8893_v14  ;;  %v4662_v36 = vpop.f32.mrb[171].mxu0 }
 0x453   :  { %v8983_v22 = vpop.f32.mrb[182].mxu1  ;;  %9030 = vmatprep.mubr.msk.f32.mxu1 %vm642_vm1, %v11812_v23  ;;  %v7702_v24 = vpack.c.bf16 %v4662_v36, %v4662_v36 }
 0x454   :  { %v5197_v47 = vpop.f32.mrb[183].mxu1  ;;  %9031 = vmatmul.mubr.msk.f32.gmra.mrb[196].mxu1 %vm642_vm1, %v11821_v59  ;;  %9057 = vmatmul.mubr.msk.f32.gmra.mrb[212].mxu0 %vm642_vm1, %v11661_v41  ;;  %7169 = vst.msk [vmem:[%s12307_s7 + $0x16c] sm:$0xf] %vm624_vm2, %v7703_v42  ;;  %v11843_v61 = vadd.f32 %v8983_v22, %v11756_v58 }
 0x455   :  { %v11834_v56 = vadd.f32 %v11756_v58, %v5197_v47  ;;  %9059 = vmatprep.mubr.msk.f32.mxu0 %vm642_vm1, %v11672_v33  ;;  %7168 = vst.msk [vmem:[%s12307_s7 + $0x168] sm:$0xf] %vm624_vm2, %v7702_v24  ;;  %v8896_v41 = vpop.f32.mrb[172].mxu0 }
 0x456   :  { %v7705_v54 = vpack.c.bf16 %v8896_v41, %v8896_v41  ;;  %v4672_v33 = vpop.f32.mrb[173].mxu0 }
 0x457   :  { %v8986_v50 = vpop.f32.mrb[184].mxu1  ;;  %9033 = vmatprep.mubr.msk.f32.mxu1 %vm642_vm1, %v11834_v56  ;;  %v7704_v4 = vpack.c.bf16 %v4672_v33, %v4672_v33 }
 0x458   :  { %v5207_v15 = vpop.f32.mrb[185].mxu1  ;;  %9034 = vmatmul.mubr.msk.f32.gmra.mrb[198].mxu1 %vm642_vm1, %v11843_v61  ;;  %9060 = vmatmul.mubr.msk.f32.gmra.mrb[214].mxu0 %vm642_vm1, %v11679_v29  ;;  %7171 = vst.msk [vmem:[%s12307_s7 + $0x174] sm:$0xf] %vm624_vm2, %v7705_v54  ;;  %v11865_v48 = vadd.f32 %v8986_v50, %v11756_v58 }
 0x459   :  { %v11856_v5 = vadd.f32 %v11756_v58, %v5207_v15  ;;  %9062 = vmatprep.mubr.msk.f32.mxu0 %vm642_vm1, %v11690_v18  ;;  %7170 = vst.msk [vmem:[%s12307_s7 + $0x170] sm:$0xf] %vm624_vm2, %v7704_v4  ;;  %v8899_v29 = vpop.f32.mrb[174].mxu0 }
 0x45a   :  { %v7707_v7 = vpack.c.bf16 %v8899_v29, %v8899_v29  ;;  %v4682_v18 = vpop.f32.mrb[175].mxu0 }
 0x45b   :  { %v8989_v35 = vpop.f32.mrb[186].mxu1  ;;  %9036 = vmatprep.mubr.msk.f32.mxu1 %vm642_vm1, %v11856_v5  ;;  %v7706_v2 = vpack.c.bf16 %v4682_v18, %v4682_v18 }
 0x45c   :  { %v5217_v28 = vpop.f32.mrb[187].mxu1  ;;  %9037 = vmatmul.mubr.msk.f32.gmra.mrb[200].mxu1 %vm642_vm1, %v11865_v48  ;;  %9063 = vmatmul.mubr.msk.f32.gmra.mrb[216].mxu0 %vm642_vm1, %v11697_v32  ;;  %7173 = vst.msk [vmem:[%s12307_s7 + $0x17c] sm:$0xf] %vm624_vm2, %v7707_v7  ;;  %v11887_v31 = vadd.f32 %v8989_v35, %v11756_v58  ;;  %v11896_v32 = vld [vmem:[%s12304_s2 + $0x7] ss:$0 sm:$0xff] }
 0x45d   :  { %v11878_v30 = vadd.f32 %v11756_v58, %v5217_v28  ;;  %9065 = vmatprep.mubr.msk.f32.mxu0 %vm642_vm1, %v11708_v21  ;;  %7172 = vst.msk [vmem:[%s12307_s7 + $0x178] sm:$0xf] %vm624_vm2, %v7706_v2  ;;  %v8942_v20 = vpop.f32.mrb[176].mxu0 }
 0x45e   :  { %v5015_v46 = vadd.f32 %v8942_v20, %v11896_v32  ;;  %v5009_v43 = vpop.f32.mrb[177].mxu0 }
 0x45f   :  { %v8992_v19 = vpop.f32.mrb[188].mxu1  ;;  %9039 = vmatprep.mubr.msk.f32.mxu1 %vm642_vm1, %v11878_v30  ;;  %v5010_v40 = vadd.f32 %v11896_v32, %v5009_v43 }
 0x460   :  { %v5227_v21 = vpop.f32.mrb[189].mxu1  ;;  %9040 = vmatmul.mubr.msk.f32.gmra.mrb[202].mxu1 %vm642_vm1, %v11887_v31  ;;  %9066 = vmatmul.mubr.msk.f32.gmra.mrb[218].mxu0 %vm642_vm1, %v11715_v27  ;;  %v11911_v9 = vadd.f32 %v8992_v19, %v11756_v58  ;;  %v7709_v27 = vpack.c.bf16 %v5015_v46, %v5015_v46 }
 0x461   :  { %v11905_v12 = vadd.f32 %v11756_v58, %v5227_v21  ;;  %9068 = vmatprep.mubr.msk.f32.mxu0 %vm642_vm1, %v11726_v16  ;;  %v7708_v16 = vpack.c.bf16 %v5010_v40, %v5010_v40  ;;  %v8945_v44 = vpop.f32.mrb[178].mxu0 }
 0x462   :  { %7257 = vst.msk [vmem:[%s12305_s5 + $0xc4] sm:$0xf] %vm624_vm2, %v7709_v27  ;;  %v5025_v10 = vadd.f32 %v8945_v44, %v11896_v32  ;;  %v5019_v63 = vpop.f32.mrb[179].mxu0 }
 0x463   :  { %v8995_v34 = vpop.f32.mrb[190].mxu1  ;;  %9042 = vmatprep.mubr.msk.f32.mxu1 %vm642_vm1, %v11905_v12  ;;  %7256 = vst.msk [vmem:[%s12305_s5 + $0xc0] sm:$0xf] %vm624_vm2, %v7708_v16 }
 0x464   :  { %v5237_v60 = vpop.f32.mrb[191].mxu1  ;;  %9043 = vmatmul.mubr.msk.f32.gmra.mrb[204].mxu1 %vm642_vm1, %v11911_v9  ;;  %9069 = vmatmul.mubr.msk.f32.gmra.mrb[220].mxu0 %vm642_vm1, %v11733_v55  ;;  %v11931_v52 = vadd.f32 %v8995_v34, %v11756_v58  ;;  %v5020_v55 = vadd.f32 %v11896_v32, %v5019_v63 }
 0x465   :  { %v11921_v62 = vadd.f32 %v11756_v58, %v5237_v60  ;;  %9071 = vmatprep.mubr.msk.f32.mxu0 %vm642_vm1, %v11744_v51  ;;  %v7711_v51 = vpack.c.bf16 %v5025_v10, %v5025_v10  ;;  %v8948_v58 = vpop.f32.mrb[180].mxu0 }
 0x466   :  { %v7710_v8 = vpack.c.bf16 %v5020_v55, %v5020_v55  ;;  %v5035_v49 = vadd.f32 %v8948_v58, %v11896_v32  ;;  %v5029_v17 = vpop.f32.mrb[181].mxu0 }
 0x467   :  { %9045 = vmatprep.mubr.msk.f32.mxu1 %vm642_vm1, %v11921_v62  ;;  %7259 = vst.msk [vmem:[%s12305_s5 + $0xcc] sm:$0xf] %vm624_vm2, %v7711_v51 }
 0x468   :  { %9046 = vmatmul.mubr.msk.f32.gmra.mrb[206].mxu1 %vm642_vm1, %v11931_v52  ;;  %9072 = vmatmul.mubr.msk.f32.gmra.mrb[222].mxu0 %vm642_vm1, %v11751_v53  ;;  %7258 = vst.msk [vmem:[%s12305_s5 + $0xc8] sm:$0xf] %vm624_vm2, %v7710_v8  ;;  %v5030_v53 = vadd.f32 %v11896_v32, %v5029_v17  ;;  %v7713_v45 = vpack.c.bf16 %v5035_v49, %v5035_v49 }
 0x469   :  { %9076 = vmatprep.mubr.msk.f32.mxu1 %vm642_vm1, %v11767_v1  ;;  %v8951_v13 = vpop.f32.mrb[182].mxu0 }
 0x46a   :  { %v7712_v1 = vpack.c.bf16 %v5030_v53, %v5030_v53  ;;  %7261 = vst.msk [vmem:[%s12305_s5 + $0xd4] sm:$0xf] %vm624_vm2, %v7713_v45  ;;  %v5045_v26 = vadd.f32 %v8951_v13, %v11896_v32  ;;  %v5039_v3 = vpop.f32.mrb[183].mxu0 }
 0x46c   :  { %9077 = vmatmul.mubr.msk.f32.vlgmr.msra.gmra.mrb[208].mxu1 %vm642_vm1, %v11776_v37  ;;  %7260 = vst.msk [vmem:[%s12305_s5 + $0xd0] sm:$0xf] %vm624_vm2, %v7712_v1  ;;  %v5040_v37 = vadd.f32 %v11896_v32, %v5039_v3  ;;  %v7715_v39 = vpack.c.bf16 %v5045_v26, %v5045_v26 }
 0x46d   :  { %9079 = vmatprep.mubr.msk.f32.mxu1 %vm642_vm1, %v11789_v38  ;;  %v8954_v25 = vpop.f32.mrb[184].mxu0 }
 0x46e   :  { %v7714_v38 = vpack.c.bf16 %v5040_v37, %v5040_v37  ;;  %7263 = vst.msk [vmem:[%s12305_s5 + $0xdc] sm:$0xf] %vm624_vm2, %v7715_v39  ;;  %v5055_v11 = vadd.f32 %v8954_v25, %v11896_v32  ;;  %v5049_v57 = vpop.f32.mrb[185].mxu0 }
 0x470   :  { %9080 = vmatmul.mubr.msk.f32.gmra.mrb[210].mxu1 %vm642_vm1, %v11799_v0  ;;  %7262 = vst.msk [vmem:[%s12305_s5 + $0xd8] sm:$0xf] %vm624_vm2, %v7714_v38  ;;  %v5050_v0 = vadd.f32 %v11896_v32, %v5049_v57  ;;  %v7717_v6 = vpack.c.bf16 %v5055_v11, %v5055_v11 }
 0x471   :  { %9082 = vmatprep.mubr.msk.f32.mxu1 %vm642_vm1, %v11812_v23  ;;  %v8957_v14 = vpop.f32.mrb[186].mxu0 }
 0x472   :  { %v7716_v23 = vpack.c.bf16 %v5050_v0, %v5050_v0  ;;  %7265 = vst.msk [vmem:[%s12305_s5 + $0xe4] sm:$0xf] %vm624_vm2, %v7717_v6  ;;  %v5065_v22 = vadd.f32 %v8957_v14, %v11896_v32  ;;  %v5059_v42 = vpop.f32.mrb[187].mxu0 }
 0x474   :  { %9083 = vmatmul.mubr.msk.f32.gmra.mrb[212].mxu1 %vm642_vm1, %v11821_v59  ;;  %7264 = vst.msk [vmem:[%s12305_s5 + $0xe0] sm:$0xf] %vm624_vm2, %v7716_v23  ;;  %v5060_v59 = vadd.f32 %v11896_v32, %v5059_v42  ;;  %v7719_v36 = vpack.c.bf16 %v5065_v22, %v5065_v22 }
 0x475   :  { %9085 = vmatprep.mubr.msk.f32.mxu1 %vm642_vm1, %v11834_v56  ;;  %v8960_v24 = vpop.f32.mrb[188].mxu0 }
 0x476   :  { %v7718_v47 = vpack.c.bf16 %v5060_v59, %v5060_v59  ;;  %7267 = vst.msk [vmem:[%s12305_s5 + $0xec] sm:$0xf] %vm624_vm2, %v7719_v36  ;;  %v5075_v56 = vadd.f32 %v8960_v24, %v11896_v32  ;;  %v5069_v41 = vpop.f32.mrb[189].mxu0 }
 0x478   :  { %9086 = vmatmul.mubr.msk.f32.gmra.mrb[214].mxu1 %vm642_vm1, %v11843_v61  ;;  %7266 = vst.msk [vmem:[%s12305_s5 + $0xe8] sm:$0xf] %vm624_vm2, %v7718_v47  ;;  %v5070_v61 = vadd.f32 %v11896_v32, %v5069_v41  ;;  %v7721_v50 = vpack.c.bf16 %v5075_v56, %v5075_v56 }
 0x479   :  { %9088 = vmatprep.mubr.msk.f32.mxu1 %vm642_vm1, %v11856_v5  ;;  %v8963_v33 = vpop.f32.mrb[190].mxu0 }
 0x47a   :  { %v7720_v54 = vpack.c.bf16 %v5070_v61, %v5070_v61  ;;  %7269 = vst.msk [vmem:[%s12305_s5 + $0xf4] sm:$0xf] %vm624_vm2, %v7721_v50  ;;  %v5085_v15 = vadd.f32 %v8963_v33, %v11896_v32  ;;  %v5079_v4 = vpop.f32.mrb[191].mxu0 }
 0x47b   :  { %v5080_v5 = vadd.f32 %v11896_v32, %v5079_v4 }
 0x47c   :  { %9089 = vmatmul.mubr.msk.f32.gmra.mrb[216].mxu1 %vm642_vm1, %v11865_v48  ;;  %7268 = vst.msk [vmem:[%s12305_s5 + $0xf0] sm:$0xf] %vm624_vm2, %v7720_v54  ;;  %v7723_v48 = vpack.c.bf16 %v5085_v15, %v5085_v15 }
 0x47d   :  { %9091 = vmatprep.mubr.msk.f32.mxu1 %vm642_vm1, %v11878_v30  ;;  %v7722_v29 = vpack.c.bf16 %v5080_v5, %v5080_v5 }
 0x47e   :  { %7271 = vst.msk [vmem:[%s12305_s5 + $0xfc] sm:$0xf] %vm624_vm2, %v7723_v48 }
 0x47f   :  { %7270 = vst.msk [vmem:[%s12305_s5 + $0xf8] sm:$0xf] %vm624_vm2, %v7722_v29 }
 0x480   :  { %9092 = vmatmul.mubr.msk.f32.gmra.mrb[218].mxu1 %vm642_vm1, %v11887_v31 }
 0x481   :  { %9094 = vmatprep.mubr.msk.f32.mxu1 %vm642_vm1, %v11905_v12 }
 0x484   :  { %9095 = vmatmul.mubr.msk.f32.gmra.mrb[220].mxu1 %vm642_vm1, %v11911_v9 }
 0x485   :  { %9097 = vmatprep.mubr.msk.f32.mxu1 %vm642_vm1, %v11921_v62 }
 0x488   :  { %9098 = vmatmul.mubr.msk.f32.gmra.mrb[222].mxu1 %vm642_vm1, %v11931_v52 }
 0x4ff   :  { %v9000_v35 = vpop.f32.mrb[192].mxu0 }
 0x500   :  { %v7725_v7 = vpack.c.bf16 %v9000_v35, %v9000_v35  ;;  %v5443_v18 = vpop.f32.mrb[193].mxu0 }
 0x501   :  { %v7724_v28 = vpack.c.bf16 %v5443_v18, %v5443_v18 }
 0x502   :  { %7306 = vst.msk [vmem:[%s12306_s6 + $0x184] sm:$0xf] %vm624_vm2, %v7725_v7 }
 0x503   :  { %7305 = vst.msk [vmem:[%s12306_s6 + $0x180] sm:$0xf] %vm624_vm2, %v7724_v28  ;;  %v9003_v2 = vpop.f32.mrb[194].mxu0 }
 0x504   :  { %v7727_v30 = vpack.c.bf16 %v9003_v2, %v9003_v2  ;;  %v5453_v31 = vpop.f32.mrb[195].mxu0 }
 0x505   :  { %v7726_v32 = vpack.c.bf16 %v5453_v31, %v5453_v31 }
 0x506   :  { %7308 = vst.msk [vmem:[%s12306_s6 + $0x18c] sm:$0xf] %vm624_vm2, %v7727_v30 }
 0x507   :  { %7307 = vst.msk [vmem:[%s12306_s6 + $0x188] sm:$0xf] %vm624_vm2, %v7726_v32  ;;  %v9006_v19 = vpop.f32.mrb[196].mxu0 }
 0x508   :  { %v7729_v21 = vpack.c.bf16 %v9006_v19, %v9006_v19  ;;  %v5463_v20 = vpop.f32.mrb[197].mxu0 }
 0x509   :  { %v7728_v12 = vpack.c.bf16 %v5463_v20, %v5463_v20 }
 0x50a   :  { %7310 = vst.msk [vmem:[%s12306_s6 + $0x194] sm:$0xf] %vm624_vm2, %v7729_v21 }
 0x50b   :  { %7309 = vst.msk [vmem:[%s12306_s6 + $0x190] sm:$0xf] %vm624_vm2, %v7728_v12  ;;  %v9009_v46 = vpop.f32.mrb[198].mxu0 }
 0x50c   :  { %v7731_v43 = vpack.c.bf16 %v9009_v46, %v9009_v46  ;;  %v5473_v9 = vpop.f32.mrb[199].mxu0 }
 0x50d   :  { %v7730_v40 = vpack.c.bf16 %v5473_v9, %v5473_v9 }
 0x50e   :  { %7312 = vst.msk [vmem:[%s12306_s6 + $0x19c] sm:$0xf] %vm624_vm2, %v7731_v43 }
 0x50f   :  { %7311 = vst.msk [vmem:[%s12306_s6 + $0x198] sm:$0xf] %vm624_vm2, %v7730_v40  ;;  %v9012_v34 = vpop.f32.mrb[200].mxu0 }
 0x510   :  { %v7733_v27 = vpack.c.bf16 %v9012_v34, %v9012_v34  ;;  %v5483_v60 = vpop.f32.mrb[201].mxu0 }
 0x511   :  { %v7732_v16 = vpack.c.bf16 %v5483_v60, %v5483_v60 }
 0x512   :  { %7314 = vst.msk [vmem:[%s12306_s6 + $0x1a4] sm:$0xf] %vm624_vm2, %v7733_v27 }
 0x513   :  { %7313 = vst.msk [vmem:[%s12306_s6 + $0x1a0] sm:$0xf] %vm624_vm2, %v7732_v16  ;;  %v9015_v44 = vpop.f32.mrb[202].mxu0 }
 0x514   :  { %v7735_v62 = vpack.c.bf16 %v9015_v44, %v9015_v44  ;;  %v5493_v10 = vpop.f32.mrb[203].mxu0 }
 0x515   :  { %v7734_v63 = vpack.c.bf16 %v5493_v10, %v5493_v10 }
 0x516   :  { %7316 = vst.msk [vmem:[%s12306_s6 + $0x1ac] sm:$0xf] %vm624_vm2, %v7735_v62 }
 0x517   :  { %7315 = vst.msk [vmem:[%s12306_s6 + $0x1a8] sm:$0xf] %vm624_vm2, %v7734_v63  ;;  %v9018_v52 = vpop.f32.mrb[204].mxu0 }
 0x518   :  { %v7737_v55 = vpack.c.bf16 %v9018_v52, %v9018_v52  ;;  %v5503_v51 = vpop.f32.mrb[205].mxu0 }
 0x519   :  { %v7736_v8 = vpack.c.bf16 %v5503_v51, %v5503_v51 }
 0x51a   :  { %7318 = vst.msk [vmem:[%s12306_s6 + $0x1b4] sm:$0xf] %vm624_vm2, %v7737_v55 }
 0x51b   :  { %7317 = vst.msk [vmem:[%s12306_s6 + $0x1b0] sm:$0xf] %vm624_vm2, %v7736_v8  ;;  %v9021_v58 = vpop.f32.mrb[206].mxu0 }
 0x51c   :  { %v7739_v49 = vpack.c.bf16 %v9021_v58, %v9021_v58  ;;  %v5513_v17 = vpop.f32.mrb[207].mxu0 }
 0x51d   :  { %v7738_v53 = vpack.c.bf16 %v5513_v17, %v5513_v17 }
 0x51e   :  { %7320 = vst.msk [vmem:[%s12306_s6 + $0x1bc] sm:$0xf] %vm624_vm2, %v7739_v49 }
 0x51f   :  { %7319 = vst.msk [vmem:[%s12306_s6 + $0x1b8] sm:$0xf] %vm624_vm2, %v7738_v53  ;;  %v9026_v45 = vpop.f32.mrb[192].mxu1  ;;  %v9052_v1 = vpop.f32.mrb[208].mxu0 }
 0x520   :  { %v7741_v13 = vpack.c.bf16 %v9026_v45, %v9026_v45  ;;  %v7757_v26 = vpack.c.bf16 %v9052_v1, %v9052_v1  ;;  %v5719_v3 = vpop.f32.mrb[193].mxu1  ;;  %v5947_v37 = vpop.f32.mrb[209].mxu0 }
 0x521   :  { %v7740_v39 = vpack.c.bf16 %v5719_v3, %v5719_v3  ;;  %v7756_v38 = vpack.c.bf16 %v5947_v37, %v5947_v37 }
 0x522   :  { %7355 = vst.msk [vmem:[%s12307_s7 + $0x184] sm:$0xf] %vm624_vm2, %v7741_v13  ;;  %7404 = vst.msk [vmem:[%s12306_s6 + $0x1c4] sm:$0xf] %vm624_vm2, %v7757_v26 }
 0x523   :  { %7354 = vst.msk [vmem:[%s12307_s7 + $0x180] sm:$0xf] %vm624_vm2, %v7740_v39  ;;  %7403 = vst.msk [vmem:[%s12306_s6 + $0x1c0] sm:$0xf] %vm624_vm2, %v7756_v38  ;;  %v9029_v25 = vpop.f32.mrb[194].mxu1  ;;  %v9055_v11 = vpop.f32.mrb[210].mxu0 }
 0x524   :  { %v7743_v57 = vpack.c.bf16 %v9029_v25, %v9029_v25  ;;  %v7759_v0 = vpack.c.bf16 %v9055_v11, %v9055_v11  ;;  %v5729_v6 = vpop.f32.mrb[195].mxu1  ;;  %v5957_v23 = vpop.f32.mrb[211].mxu0 }
 0x525   :  { %v7742_v14 = vpack.c.bf16 %v5729_v6, %v5729_v6  ;;  %v7758_v22 = vpack.c.bf16 %v5957_v23, %v5957_v23 }
 0x526   :  { %7357 = vst.msk [vmem:[%s12307_s7 + $0x18c] sm:$0xf] %vm624_vm2, %v7743_v57  ;;  %7406 = vst.msk [vmem:[%s12306_s6 + $0x1cc] sm:$0xf] %vm624_vm2, %v7759_v0 }
 0x527   :  { %7356 = vst.msk [vmem:[%s12307_s7 + $0x188] sm:$0xf] %vm624_vm2, %v7742_v14  ;;  %7405 = vst.msk [vmem:[%s12306_s6 + $0x1c8] sm:$0xf] %vm624_vm2, %v7758_v22  ;;  %v9032_v42 = vpop.f32.mrb[196].mxu1  ;;  %v9058_v59 = vpop.f32.mrb[212].mxu0 }
 0x528   :  { %v7745_v36 = vpack.c.bf16 %v9032_v42, %v9032_v42  ;;  %v7761_v47 = vpack.c.bf16 %v9058_v59, %v9058_v59  ;;  %v5739_v24 = vpop.f32.mrb[197].mxu1  ;;  %v5967_v56 = vpop.f32.mrb[213].mxu0 }
 0x529   :  { %v7744_v41 = vpack.c.bf16 %v5739_v24, %v5739_v24  ;;  %v7760_v61 = vpack.c.bf16 %v5967_v56, %v5967_v56 }
 0x52a   :  { %7359 = vst.msk [vmem:[%s12307_s7 + $0x194] sm:$0xf] %vm624_vm2, %v7745_v36  ;;  %7408 = vst.msk [vmem:[%s12306_s6 + $0x1d4] sm:$0xf] %vm624_vm2, %v7761_v47 }
 0x52b   :  { %7358 = vst.msk [vmem:[%s12307_s7 + $0x190] sm:$0xf] %vm624_vm2, %v7744_v41  ;;  %7407 = vst.msk [vmem:[%s12306_s6 + $0x1d0] sm:$0xf] %vm624_vm2, %v7760_v61  ;;  %v9035_v50 = vpop.f32.mrb[198].mxu1  ;;  %v9061_v54 = vpop.f32.mrb[214].mxu0 }
 0x52c   :  { %v7747_v33 = vpack.c.bf16 %v9035_v50, %v9035_v50  ;;  %v7763_v15 = vpack.c.bf16 %v9061_v54, %v9061_v54  ;;  %v5749_v4 = vpop.f32.mrb[199].mxu1  ;;  %v5977_v5 = vpop.f32.mrb[215].mxu0 }
 0x52d   :  { %v7746_v48 = vpack.c.bf16 %v5749_v4, %v5749_v4  ;;  %v7762_v29 = vpack.c.bf16 %v5977_v5, %v5977_v5 }
 0x52e   :  { %7361 = vst.msk [vmem:[%s12307_s7 + $0x19c] sm:$0xf] %vm624_vm2, %v7747_v33  ;;  %7410 = vst.msk [vmem:[%s12306_s6 + $0x1dc] sm:$0xf] %vm624_vm2, %v7763_v15 }
 0x52f   :  { %7360 = vst.msk [vmem:[%s12307_s7 + $0x198] sm:$0xf] %vm624_vm2, %v7746_v48  ;;  %7409 = vst.msk [vmem:[%s12306_s6 + $0x1d8] sm:$0xf] %vm624_vm2, %v7762_v29  ;;  %v9038_v35 = vpop.f32.mrb[200].mxu1  ;;  %v9064_v7 = vpop.f32.mrb[216].mxu0 }
 0x530   :  { %v7749_v18 = vpack.c.bf16 %v9038_v35, %v9038_v35  ;;  %v7765_v28 = vpack.c.bf16 %v9064_v7, %v9064_v7  ;;  %v5759_v2 = vpop.f32.mrb[201].mxu1  ;;  %v5987_v30 = vpop.f32.mrb[217].mxu0 }
 0x531   :  { %v7748_v31 = vpack.c.bf16 %v5759_v2, %v5759_v2  ;;  %v7764_v32 = vpack.c.bf16 %v5987_v30, %v5987_v30 }
 0x532   :  { %7363 = vst.msk [vmem:[%s12307_s7 + $0x1a4] sm:$0xf] %vm624_vm2, %v7749_v18  ;;  %7412 = vst.msk [vmem:[%s12306_s6 + $0x1e4] sm:$0xf] %vm624_vm2, %v7765_v28 }
 0x533   :  { %7362 = vst.msk [vmem:[%s12307_s7 + $0x1a0] sm:$0xf] %vm624_vm2, %v7748_v31  ;;  %7411 = vst.msk [vmem:[%s12306_s6 + $0x1e0] sm:$0xf] %vm624_vm2, %v7764_v32  ;;  %v9041_v19 = vpop.f32.mrb[202].mxu1  ;;  %v9067_v21 = vpop.f32.mrb[218].mxu0 }
 0x534   :  { %v7751_v20 = vpack.c.bf16 %v9041_v19, %v9041_v19  ;;  %v7767_v12 = vpack.c.bf16 %v9067_v21, %v9067_v21  ;;  %v5769_v46 = vpop.f32.mrb[203].mxu1  ;;  %v5997_v43 = vpop.f32.mrb[219].mxu0 }
 0x535   :  { %v7750_v9 = vpack.c.bf16 %v5769_v46, %v5769_v46  ;;  %v7766_v40 = vpack.c.bf16 %v5997_v43, %v5997_v43 }
 0x536   :  { %7365 = vst.msk [vmem:[%s12307_s7 + $0x1ac] sm:$0xf] %vm624_vm2, %v7751_v20  ;;  %7414 = vst.msk [vmem:[%s12306_s6 + $0x1ec] sm:$0xf] %vm624_vm2, %v7767_v12 }
 0x537   :  { %7364 = vst.msk [vmem:[%s12307_s7 + $0x1a8] sm:$0xf] %vm624_vm2, %v7750_v9  ;;  %7413 = vst.msk [vmem:[%s12306_s6 + $0x1e8] sm:$0xf] %vm624_vm2, %v7766_v40  ;;  %v9044_v34 = vpop.f32.mrb[204].mxu1  ;;  %v9070_v27 = vpop.f32.mrb[220].mxu0 }
 0x538   :  { %v7753_v60 = vpack.c.bf16 %v9044_v34, %v9044_v34  ;;  %v7769_v16 = vpack.c.bf16 %v9070_v27, %v9070_v27  ;;  %v5779_v44 = vpop.f32.mrb[205].mxu1  ;;  %v6007_v62 = vpop.f32.mrb[221].mxu0 }
 0x539   :  { %v7752_v10 = vpack.c.bf16 %v5779_v44, %v5779_v44  ;;  %v7768_v63 = vpack.c.bf16 %v6007_v62, %v6007_v62 }
 0x53a   :  { %7367 = vst.msk [vmem:[%s12307_s7 + $0x1b4] sm:$0xf] %vm624_vm2, %v7753_v60  ;;  %7416 = vst.msk [vmem:[%s12306_s6 + $0x1f4] sm:$0xf] %vm624_vm2, %v7769_v16 }
 0x53b   :  { %7366 = vst.msk [vmem:[%s12307_s7 + $0x1b0] sm:$0xf] %vm624_vm2, %v7752_v10  ;;  %7415 = vst.msk [vmem:[%s12306_s6 + $0x1f0] sm:$0xf] %vm624_vm2, %v7768_v63  ;;  %v9047_v52 = vpop.f32.mrb[206].mxu1  ;;  %v9073_v55 = vpop.f32.mrb[222].mxu0 }
 0x53c   :  { %v7755_v51 = vpack.c.bf16 %v9047_v52, %v9047_v52  ;;  %v7771_v8 = vpack.c.bf16 %v9073_v55, %v9073_v55  ;;  %v5789_v58 = vpop.f32.mrb[207].mxu1  ;;  %v6017_v49 = vpop.f32.mrb[223].mxu0 }
 0x53d   :  { %v7754_v17 = vpack.c.bf16 %v5789_v58, %v5789_v58  ;;  %v7770_v53 = vpack.c.bf16 %v6017_v49, %v6017_v49 }
 0x53e   :  { %7369 = vst.msk [vmem:[%s12307_s7 + $0x1bc] sm:$0xf] %vm624_vm2, %v7755_v51  ;;  %7418 = vst.msk [vmem:[%s12306_s6 + $0x1fc] sm:$0xf] %vm624_vm2, %v7771_v8 }
 0x53f   :  { %7368 = vst.msk [vmem:[%s12307_s7 + $0x1b8] sm:$0xf] %vm624_vm2, %v7754_v17  ;;  %7417 = vst.msk [vmem:[%s12306_s6 + $0x1f8] sm:$0xf] %vm624_vm2, %v7770_v53  ;;  %v9078_v45 = vpop.f32.mrb[208].mxu1 }
 0x540   :  { %v7773_v1 = vpack.c.bf16 %v9078_v45, %v9078_v45  ;;  %v6175_v13 = vpop.f32.mrb[209].mxu1 }
 0x541   :  { %v7772_v26 = vpack.c.bf16 %v6175_v13, %v6175_v13 }
 0x542   :  { %7453 = vst.msk [vmem:[%s12307_s7 + $0x1c4] sm:$0xf] %vm624_vm2, %v7773_v1 }
 0x543   :  { %7452 = vst.msk [vmem:[%s12307_s7 + $0x1c0] sm:$0xf] %vm624_vm2, %v7772_v26  ;;  %v9081_v3 = vpop.f32.mrb[210].mxu1 }
 0x544   :  { %v7775_v37 = vpack.c.bf16 %v9081_v3, %v9081_v3  ;;  %v6185_v39 = vpop.f32.mrb[211].mxu1 }
 0x545   :  { %v7774_v38 = vpack.c.bf16 %v6185_v39, %v6185_v39 }
 0x546   :  { %7455 = vst.msk [vmem:[%s12307_s7 + $0x1cc] sm:$0xf] %vm624_vm2, %v7775_v37 }
 0x547   :  { %7454 = vst.msk [vmem:[%s12307_s7 + $0x1c8] sm:$0xf] %vm624_vm2, %v7774_v38  ;;  %v9084_v25 = vpop.f32.mrb[212].mxu1 }
 0x548   :  { %v7777_v11 = vpack.c.bf16 %v9084_v25, %v9084_v25  ;;  %v6195_v57 = vpop.f32.mrb[213].mxu1 }
 0x549   :  { %v7776_v0 = vpack.c.bf16 %v6195_v57, %v6195_v57 }
 0x54a   :  { %7457 = vst.msk [vmem:[%s12307_s7 + $0x1d4] sm:$0xf] %vm624_vm2, %v7777_v11 }
 0x54b   :  { %7456 = vst.msk [vmem:[%s12307_s7 + $0x1d0] sm:$0xf] %vm624_vm2, %v7776_v0  ;;  %v9087_v6 = vpop.f32.mrb[214].mxu1 }
 0x54c   :  { %v7779_v23 = vpack.c.bf16 %v9087_v6, %v9087_v6  ;;  %v6205_v14 = vpop.f32.mrb[215].mxu1 }
 0x54d   :  { %v7778_v22 = vpack.c.bf16 %v6205_v14, %v6205_v14 }
 0x54e   :  { %7459 = vst.msk [vmem:[%s12307_s7 + $0x1dc] sm:$0xf] %vm624_vm2, %v7779_v23 }
 0x54f   :  { %7458 = vst.msk [vmem:[%s12307_s7 + $0x1d8] sm:$0xf] %vm624_vm2, %v7778_v22  ;;  %v9090_v42 = vpop.f32.mrb[216].mxu1 }
 0x550   :  { %v7781_v59 = vpack.c.bf16 %v9090_v42, %v9090_v42  ;;  %v6215_v36 = vpop.f32.mrb[217].mxu1 }
 0x551   :  { %v7780_v47 = vpack.c.bf16 %v6215_v36, %v6215_v36 }
 0x552   :  { %7461 = vst.msk [vmem:[%s12307_s7 + $0x1e4] sm:$0xf] %vm624_vm2, %v7781_v59 }
 0x553   :  { %7460 = vst.msk [vmem:[%s12307_s7 + $0x1e0] sm:$0xf] %vm624_vm2, %v7780_v47  ;;  %v9093_v24 = vpop.f32.mrb[218].mxu1 }
 0x554   :  { %v7783_v56 = vpack.c.bf16 %v9093_v24, %v9093_v24  ;;  %v6225_v41 = vpop.f32.mrb[219].mxu1 }
 0x555   :  { %v7782_v61 = vpack.c.bf16 %v6225_v41, %v6225_v41 }
 0x556   :  { %7463 = vst.msk [vmem:[%s12307_s7 + $0x1ec] sm:$0xf] %vm624_vm2, %v7783_v56 }
 0x557   :  { %7462 = vst.msk [vmem:[%s12307_s7 + $0x1e8] sm:$0xf] %vm624_vm2, %v7782_v61  ;;  %v9096_v50 = vpop.f32.mrb[220].mxu1 }
 0x558   :  { %v7785_v54 = vpack.c.bf16 %v9096_v50, %v9096_v50  ;;  %v6235_v33 = vpop.f32.mrb[221].mxu1 }
 0x559   :  { %v7784_v15 = vpack.c.bf16 %v6235_v33, %v6235_v33 }
 0x55a   :  { %7465 = vst.msk [vmem:[%s12307_s7 + $0x1f4] sm:$0xf] %vm624_vm2, %v7785_v54 }
 0x55b   :  { %7464 = vst.msk [vmem:[%s12307_s7 + $0x1f0] sm:$0xf] %vm624_vm2, %v7784_v15  ;;  %v9099_v4 = vpop.f32.mrb[222].mxu1 }
 0x55c   :  { %v7787_v5 = vpack.c.bf16 %v9099_v4, %v9099_v4  ;;  %v6245_v48 = vpop.f32.mrb[223].mxu1 }
 0x55d   :  { %v7786_v29 = vpack.c.bf16 %v6245_v48, %v6245_v48 }
 0x55e   :  { %7467 = vst.msk [vmem:[%s12307_s7 + $0x1fc] sm:$0xf] %vm624_vm2, %v7787_v5 }
 0x55f   :  { %7466 = vst.msk [vmem:[%s12307_s7 + $0x1f8] sm:$0xf] %vm624_vm2, %v7786_v29 }

</bundles_post_ra>
